<compile_context>
chip_gen: v7x
topology: tpu7x:2x2x1
jax: 0.10.0
libtpu: 0.0.40
codegen_flags: <defaults>
</compile_context>

<pallas_src>
import jax
import jax.numpy as jnp
from jax.experimental import pallas as pl
from jax.experimental.pallas import tpu as pltpu


_VMEM = pl.BlockSpec(memory_space=pltpu.MemorySpace.VMEM)


def _round_up(n, m):
    return ((n + m - 1) // m) * m


# ----------------------------- Kernel helpers ------------------------------ #

def _sigmoid(x):
    # One EUP (tanh) pass instead of exp + reciprocal.
    return 0.5 * jnp.tanh(0.5 * x) + 0.5


def _gate_update(gates, c, Hw):
    """PyTorch gate order i, f, g, o; slices are 128-lane aligned (Hw % 128 == 0)."""
    i = _sigmoid(gates[:, 0 * Hw:1 * Hw])
    f = _sigmoid(gates[:, 1 * Hw:2 * Hw])
    g = jnp.tanh(gates[:, 2 * Hw:3 * Hw])
    o = _sigmoid(gates[:, 3 * Hw:4 * Hw])
    c = f * c + i * g
    h = o * jnp.tanh(c)
    return h, c


def _run_lstm(gx_fn, whh_ref, T, Bp, Hw, hseq_ref=None):
    """Serial LSTM recurrence; input projections are precomputed (gx_fn(t)).

    whh_ref is a bf16 (Hw, 4Hw) VMEM ref; gate math is f32.  Writes the f32
    hidden sequence to hseq_ref (if given) and returns the final (h, c).
    """
    def step(t, carry):
        h, c = carry
        gates = gx_fn(t) + jnp.dot(h.astype(jnp.bfloat16), whh_ref[...],
                                   preferred_element_type=jnp.float32)
        h, c = _gate_update(gates, c, Hw)
        if hseq_ref is not None:
            hseq_ref[t] = h
        return h, c

    h0 = jnp.zeros((Bp, Hw), jnp.float32)
    c0 = jnp.zeros((Bp, Hw), jnp.float32)
    return jax.lax.fori_loop(0, T, step, (h0, c0), unroll=True)


# ------------------------------ Fused kernel ------------------------------- #

def _fused_autoencoder_kernel(
        x_ref,                                  # (T, Bp, 1) f32
        wih1_ref, whh1_ref, b1_ref,             # enc rnn1: (1,4Hp) f32, (Hp,4Hp) bf16, (1,4Hp) f32
        wih2_ref, whh2_ref, b2_ref,             # enc rnn2: (Hp,4Ep) bf16, (Ep,4Ep) bf16, (1,4Ep) f32
        wih3_ref, whh3_ref, b3_ref,             # dec rnn1: (Ep,4Ep) bf16, (Ep,4Ep) bf16, (1,4Ep) f32
        wih4_ref, whh4_ref, b4_ref,             # dec rnn2: (Ep,4Hp) bf16, (Hp,4Hp) bf16, (1,4Hp) f32
        wout_ref, bout_ref,                     # output head: (Hp,Fp) bf16, (1,Fp) f32
        out_ref,                                # (T, Bp, Fp) f32
        gH_ref, gE_ref,                         # gx scratch (T,Bp,4Hp)/(T,Bp,4Ep) f32
        h1_ref, d1_ref, d2_ref):                # hidden-seq scratch (f32)
    T, Bp, _ = x_ref.shape
    Hp = whh1_ref.shape[0]
    Ep = whh2_ref.shape[0]
    Fp = wout_ref.shape[1]

    # ---- Encoder rnn1 (n_features == 1): input projection is a VPU
    # broadcast-multiply hoisted out of the recurrence. ----
    gH_ref[...] = x_ref[...] * wih1_ref[...] + b1_ref[...]        # (T,Bp,4Hp)
    _run_lstm(lambda t: gH_ref[t], whh1_ref, T, Bp, Hp, hseq_ref=h1_ref)

    # ---- Encoder rnn2: one bulk MXU input projection, keep only final h (z). ----
    h1 = h1_ref[...].reshape(T * Bp, Hp).astype(jnp.bfloat16)
    gE_ref[...] = (jnp.dot(h1, wih2_ref[...], preferred_element_type=jnp.float32)
                   + b2_ref[...]).reshape(T, Bp, 4 * Ep)
    z, _ = _run_lstm(lambda t: gE_ref[t], whh2_ref, T, Bp, Ep)     # z: (Bp, Ep) f32

    # ---- Decoder rnn1: input is the tiled latent z, constant over time, so the
    # input projection is computed exactly once and reused every step. ----
    gz = (jnp.dot(z.astype(jnp.bfloat16), wih3_ref[...],
                  preferred_element_type=jnp.float32) + b3_ref[...])   # (Bp, 4Ep)
    _run_lstm(lambda t: gz, whh3_ref, T, Bp, Ep, hseq_ref=d1_ref)

    # ---- Decoder rnn2 ----
    d1 = d1_ref[...].reshape(T * Bp, Ep).astype(jnp.bfloat16)
    gH_ref[...] = (jnp.dot(d1, wih4_ref[...], preferred_element_type=jnp.float32)
                   + b4_ref[...]).reshape(T, Bp, 4 * Hp)
    _run_lstm(lambda t: gH_ref[t], whh4_ref, T, Bp, Hp, hseq_ref=d2_ref)

    # ---- Fused output Linear (one bulk matmul on VMEM-resident d2 sequence). ----
    d2 = d2_ref[...].reshape(T * Bp, Hp).astype(jnp.bfloat16)
    out = (jnp.dot(d2, wout_ref[...], preferred_element_type=jnp.float32)
           + bout_ref[...])
    out_ref[...] = out.reshape(T, Bp, Fp)


# --------------------------- Parameter creation ----------------------------- #

def init_lstm_params(key, input_dim, hidden_dim):
    # PyTorch nn.LSTM init: U(-1/sqrt(H), 1/sqrt(H)); store W_ih/W_hh transposed.
    k = 1.0 / (hidden_dim ** 0.5)
    k1, k2, k3, k4 = jax.random.split(key, 4)
    w_ih = jax.random.uniform(k1, (input_dim, 4 * hidden_dim), jnp.float32, -k, k)
    w_hh = jax.random.uniform(k2, (hidden_dim, 4 * hidden_dim), jnp.float32, -k, k)
    b_ih = jax.random.uniform(k3, (4 * hidden_dim,), jnp.float32, -k, k)
    b_hh = jax.random.uniform(k4, (4 * hidden_dim,), jnp.float32, -k, k)
    return (w_ih, w_hh, b_ih + b_hh)


def init_params(key, seq_len, n_features, embedding_dim):
    hidden_dim = 2 * embedding_dim
    ks = jax.random.split(key, 6)
    params = {
        "seq_len": seq_len,
        "n_features": n_features,
        "embedding_dim": embedding_dim,
        # Encoder: rnn1 (n_features -> 2E), rnn2 (2E -> E)
        "enc_rnn1": init_lstm_params(ks[0], n_features, hidden_dim),
        "enc_rnn2": init_lstm_params(ks[1], hidden_dim, embedding_dim),
        # Decoder: rnn1 (E -> E), rnn2 (E -> 2E)
        "dec_rnn1": init_lstm_params(ks[2], embedding_dim, embedding_dim),
        "dec_rnn2": init_lstm_params(ks[3], embedding_dim, hidden_dim),
    }
    kl = 1.0 / (hidden_dim ** 0.5)
    params["out_w"] = jax.random.uniform(ks[4], (hidden_dim, n_features),
                                         jnp.float32, -kl, kl)
    params["out_b"] = jax.random.uniform(ks[5], (n_features,), jnp.float32, -kl, kl)
    return params


def prepare_params(params):
    """One-time weight prep: gate-block-wise zero padding to (8,128)-aligned
    shapes and bf16 casting of all MXU operands.  Done once at init so the
    forward pass has no per-call pad/reshape ops."""
    T = params["seq_len"]
    F = params["n_features"]
    E = params["embedding_dim"]
    H = 2 * E
    Hp = _round_up(H, 128)
    Ep = _round_up(E, 128)
    Fp = _round_up(F, 128)

    def pad_lstm(p, D, Dp, Hd, Hdp, wih_dtype):
        w_ih, w_hh, b = p
        wih = jnp.pad(w_ih.astype(jnp.float32).reshape(D, 4, Hd),
                      ((0, Dp - D), (0, 0), (0, Hdp - Hd))).reshape(Dp, 4 * Hdp)
        whh = jnp.pad(w_hh.astype(jnp.float32).reshape(Hd, 4, Hd),
                      ((0, Hdp - Hd), (0, 0), (0, Hdp - Hd))).reshape(Hdp, 4 * Hdp)
        bp = jnp.pad(b.astype(jnp.float32).reshape(4, Hd),
                     ((0, 0), (0, Hdp - Hd))).reshape(1, 4 * Hdp)
        return wih.astype(wih_dtype), whh.astype(jnp.bfloat16), bp

    # enc rnn1's W_ih stays f32: it is only used in a VPU broadcast-multiply.
    wih1, whh1, b1 = pad_lstm(params["enc_rnn1"], F, F, H, Hp, jnp.float32)
    wih2, whh2, b2 = pad_lstm(params["enc_rnn2"], H, Hp, E, Ep, jnp.bfloat16)
    wih3, whh3, b3 = pad_lstm(params["dec_rnn1"], E, Ep, E, Ep, jnp.bfloat16)
    wih4, whh4, b4 = pad_lstm(params["dec_rnn2"], E, Ep, H, Hp, jnp.bfloat16)
    wout = jnp.pad(params["out_w"].astype(jnp.float32),
                   ((0, Hp - H), (0, Fp - F))).astype(jnp.bfloat16)
    bout = jnp.pad(params["out_b"].astype(jnp.float32), (0, Fp - F)).reshape(1, Fp)

    weights = (wih1, whh1, b1, wih2, whh2, b2, wih3, whh3, b3,
               wih4, whh4, b4, wout, bout)
    return {"T": T, "F": F, "E": E, "H": H,
            "Hp": Hp, "Ep": Ep, "Fp": Fp, "weights": weights}


# ------------------------------ Forward pass -------------------------------- #

def recurrent_autoencoder(prep, x):
    """x: (B, seq_len, n_features) -> (B, seq_len, n_features)."""
    B, T, F = x.shape
    assert T == prep["T"] and F == prep["F"]
    # TODO(synk): PyTorch tutorial quirk — x.repeat(1, seq_len, n_features) only
    # type-checks against dec_rnn1 (input_dim=embedding_dim) when n_features == 1.
    assert F == 1, "decoder repeat trick requires n_features == 1"

    Bp = _round_up(B, 8)
    Hp, Ep, Fp = prep["Hp"], prep["Ep"], prep["Fp"]

    # Single transpose + batch pad at the model boundary; the whole fused chain
    # stays time-major and (8,128)-aligned inside VMEM.
    x_tbf = jnp.transpose(x.astype(jnp.float32), (1, 0, 2))       # (T, B, 1)
    x_pad = jnp.pad(x_tbf, ((0, 0), (0, Bp - B), (0, 0)))         # (T, Bp, 1)

    out_pad = pl.pallas_call(
        _fused_autoencoder_kernel,
        out_shape=jax.ShapeDtypeStruct((T, Bp, Fp), jnp.float32),
        in_specs=[_VMEM] * 15,
        out_specs=_VMEM,
        scratch_shapes=[
            pltpu.VMEM((T, Bp, 4 * Hp), jnp.float32),   # gx for enc rnn1 / dec rnn2
            pltpu.VMEM((T, Bp, 4 * Ep), jnp.float32),   # gx for enc rnn2
            pltpu.VMEM((T, Bp, Hp), jnp.float32),       # enc rnn1 hidden sequence
            pltpu.VMEM((T, Bp, Ep), jnp.float32),       # dec rnn1 hidden sequence
            pltpu.VMEM((T, Bp, Hp), jnp.float32),       # dec rnn2 hidden sequence
        ],
    )(x_pad, *prep["weights"])

    return jnp.transpose(out_pad[:, :B, :F], (1, 0, 2))           # (B, T, F)


# ------------------------- Pure-JAX reference check -------------------------- #

def _lstm_ref(x_btd, w_ih, w_hh, b):
    B, T, _ = x_btd.shape
    H = w_hh.shape[0]

    def step(carry, x_t):
        h, c = carry
        gates = x_t @ w_ih + h @ w_hh + b
        i = jax.nn.sigmoid(gates[:, :H])
        f = jax.nn.sigmoid(gates[:, H:2 * H])
        g = jnp.tanh(gates[:, 2 * H:3 * H])
        o = jax.nn.sigmoid(gates[:, 3 * H:])
        c = f * c + i * g
        h = o * jnp.tanh(c)
        return (h, c), h

    init = (jnp.zeros((B, H), jnp.float32), jnp.zeros((B, H), jnp.float32))
    (h, _), hs = jax.lax.scan(step, init, jnp.transpose(x_btd, (1, 0, 2)))
    return jnp.transpose(hs, (1, 0, 2)), h


def recurrent_autoencoder_ref(params, x):
    seq_len = params["seq_len"]
    n_features = params["n_features"]
    embedding_dim = params["embedding_dim"]
    hidden_dim = 2 * embedding_dim
    h1, _ = _lstm_ref(x, *params["enc_rnn1"])
    _, z = _lstm_ref(h1, *params["enc_rnn2"])
    xd = jnp.tile(z[:, None, :], (1, seq_len, n_features))
    d1, _ = _lstm_ref(xd, *params["dec_rnn1"])
    d2, _ = _lstm_ref(d1, *params["dec_rnn2"])
    out = d2.reshape(-1, hidden_dim) @ params["out_w"] + params["out_b"]
    return out.reshape(x.shape[0], seq_len, n_features)


# ---------------------------------- Main ------------------------------------ #

if __name__ == "__main__":
    batch, seq_len, n_features, embedding_dim = 2, 8, 1, 32
    key = jax.random.PRNGKey(0)
    kp, kx = jax.random.split(key)
    params = init_params(kp, seq_len, n_features, embedding_dim)
    prep = prepare_params(params)           # weight padding / casting done ONCE
    x = jax.random.normal(kx, (batch, seq_len, n_features), jnp.float32)

    fwd = jax.jit(lambda xx: recurrent_autoencoder(prep, xx))
    out = jax.block_until_ready(fwd(x))

    ref = jax.block_until_ready(recurrent_autoencoder_ref(params, x))
    assert out.shape == (batch, seq_len, n_features)
    # bf16 MXU operands (f32 accumulation) -> relaxed tolerance vs the f32 reference.
    assert jnp.allclose(out, ref, atol=2e-2, rtol=2e-2), "mismatch vs JAX reference"

    print("KERNEL_OK")
</pallas_src>

<mosaic_0001>
module attributes {stable_mosaic.version = 11 : i64} {
  func.func @_fused_autoencoder_kernel(%arg0: memref<8x8x1xf32, #tpu.memory_space<vmem>>, %arg1: memref<1x512xf32, #tpu.memory_space<vmem>>, %arg2: memref<128x512xbf16, #tpu.memory_space<vmem>>, %arg3: memref<1x512xf32, #tpu.memory_space<vmem>>, %arg4: memref<128x512xbf16, #tpu.memory_space<vmem>>, %arg5: memref<128x512xbf16, #tpu.memory_space<vmem>>, %arg6: memref<1x512xf32, #tpu.memory_space<vmem>>, %arg7: memref<128x512xbf16, #tpu.memory_space<vmem>>, %arg8: memref<128x512xbf16, #tpu.memory_space<vmem>>, %arg9: memref<1x512xf32, #tpu.memory_space<vmem>>, %arg10: memref<128x512xbf16, #tpu.memory_space<vmem>>, %arg11: memref<128x512xbf16, #tpu.memory_space<vmem>>, %arg12: memref<1x512xf32, #tpu.memory_space<vmem>>, %arg13: memref<128x128xbf16, #tpu.memory_space<vmem>>, %arg14: memref<1x128xf32, #tpu.memory_space<vmem>>, %arg15: memref<8x8x128xf32, #tpu.memory_space<vmem>>, %arg16: memref<8x8x512xf32, #tpu.memory_space<vmem>>, %arg17: memref<8x8x512xf32, #tpu.memory_space<vmem>>, %arg18: memref<8x8x128xf32, #tpu.memory_space<vmem>>, %arg19: memref<8x8x128xf32, #tpu.memory_space<vmem>>, %arg20: memref<8x8x128xf32, #tpu.memory_space<vmem>>) attributes {dimension_semantics = [], scalar_prefetch = 0 : i64, scratch_operands = 5 : i64, tpu.core_type = #tpu.core_type<tc>} {
    %c0 = arith.constant 0 : index
    %c0_0 = arith.constant 0 : index
    %c0_1 = arith.constant 0 : index
    %0 = vector.load %arg0[%c0, %c0_0, %c0_1] : memref<8x8x1xf32, #tpu.memory_space<vmem>>, vector<8x8x1xf32>
    %c0_2 = arith.constant 0 : index
    %c0_3 = arith.constant 0 : index
    %1 = vector.load %arg1[%c0_2, %c0_3] : memref<1x512xf32, #tpu.memory_space<vmem>>, vector<1x512xf32>
    %2 = vector.shape_cast %1 : vector<1x512xf32> to vector<1x1x512xf32>
    %3 = vector.broadcast %0 : vector<8x8x1xf32> to vector<8x8x512xf32>
    %4 = vector.broadcast %2 : vector<1x1x512xf32> to vector<8x8x512xf32>
    %5 = arith.mulf %3, %4 : vector<8x8x512xf32>
    %c0_4 = arith.constant 0 : index
    %c0_5 = arith.constant 0 : index
    %6 = vector.load %arg3[%c0_4, %c0_5] : memref<1x512xf32, #tpu.memory_space<vmem>>, vector<1x512xf32>
    %7 = vector.shape_cast %6 : vector<1x512xf32> to vector<1x1x512xf32>
    %8 = vector.broadcast %7 : vector<1x1x512xf32> to vector<8x8x512xf32>
    %9 = arith.addf %5, %8 : vector<8x8x512xf32>
    %c0_6 = arith.constant 0 : index
    %c0_7 = arith.constant 0 : index
    %c0_8 = arith.constant 0 : index
    %10 = vector.load %arg16[%c0_6, %c0_7, %c0_8] : memref<8x8x512xf32, #tpu.memory_space<vmem>>, vector<8x8x512xf32>
    tpu.vector_store %arg16[%c0_6, %c0_7, %c0_8], %9 {strides = array<i32>} : memref<8x8x512xf32, #tpu.memory_space<vmem>>, vector<8x8x512xf32>,
    %cst = arith.constant 0.000000e+00 : f32
    %11 = vector.broadcast %cst : f32 to vector<8x128xf32>
    %cst_9 = arith.constant 0.000000e+00 : f32
    %12 = vector.broadcast %cst_9 : f32 to vector<8x128xf32>
    %c0_i32 = arith.constant 0 : i32
    %13 = arith.index_cast %c0_i32 : i32 to index
    %c0_10 = arith.constant 0 : index
    %c0_11 = arith.constant 0 : index
    %14 = vector.load %arg16[%13, %c0_10, %c0_11] : memref<8x8x512xf32, #tpu.memory_space<vmem>>, vector<1x8x512xf32>
    %15 = vector.shape_cast %14 : vector<1x8x512xf32> to vector<8x512xf32>
    %16 = arith.truncf %11 : vector<8x128xf32> to vector<8x128xbf16>
    %c0_12 = arith.constant 0 : index
    %c0_13 = arith.constant 0 : index
    %17 = vector.load %arg2[%c0_12, %c0_13] : memref<128x512xbf16, #tpu.memory_space<vmem>>, vector<128x512xbf16>
    %cst_14 = arith.constant dense<0.000000e+00> : vector<8x512xf32>
    %18 = tpu.matmul %16, %17, %cst_14 {dimension_numbers = #tpu.dot_dimension_numbers<[1], [0], [0], [1], [0, 0, 1, 1], [], []>} : vector<8x128xbf16>, vector<128x512xbf16>, vector<8x512xf32> -> vector<8x512xf32>
    %19 = arith.addf %15, %18 : vector<8x512xf32>
    %20 = vector.extract_strided_slice %19 {offsets = [0, 0], sizes = [8, 128], strides = [1, 1]} : vector<8x512xf32> to vector<8x128xf32>
    %cst_15 = arith.constant 5.000000e-01 : f32
    %21 = vector.broadcast %cst_15 : f32 to vector<8x128xf32>
    %22 = arith.mulf %21, %20 : vector<8x128xf32>
    %23 = math.tanh %22 : vector<8x128xf32>
    %cst_16 = arith.constant 5.000000e-01 : f32
    %24 = vector.broadcast %cst_16 : f32 to vector<8x128xf32>
    %25 = arith.mulf %24, %23 : vector<8x128xf32>
    %cst_17 = arith.constant 5.000000e-01 : f32
    %26 = vector.broadcast %cst_17 : f32 to vector<8x128xf32>
    %27 = arith.addf %25, %26 : vector<8x128xf32>
    %28 = vector.extract_strided_slice %19 {offsets = [0, 128], sizes = [8, 128], strides = [1, 1]} : vector<8x512xf32> to vector<8x128xf32>
    %cst_18 = arith.constant 5.000000e-01 : f32
    %29 = vector.broadcast %cst_18 : f32 to vector<8x128xf32>
    %30 = arith.mulf %29, %28 : vector<8x128xf32>
    %31 = math.tanh %30 : vector<8x128xf32>
    %cst_19 = arith.constant 5.000000e-01 : f32
    %32 = vector.broadcast %cst_19 : f32 to vector<8x128xf32>
    %33 = arith.mulf %32, %31 : vector<8x128xf32>
    %cst_20 = arith.constant 5.000000e-01 : f32
    %34 = vector.broadcast %cst_20 : f32 to vector<8x128xf32>
    %35 = arith.addf %33, %34 : vector<8x128xf32>
    %36 = vector.extract_strided_slice %19 {offsets = [0, 256], sizes = [8, 128], strides = [1, 1]} : vector<8x512xf32> to vector<8x128xf32>
    %37 = math.tanh %36 : vector<8x128xf32>
    %38 = vector.extract_strided_slice %19 {offsets = [0, 384], sizes = [8, 128], strides = [1, 1]} : vector<8x512xf32> to vector<8x128xf32>
    %cst_21 = arith.constant 5.000000e-01 : f32
    %39 = vector.broadcast %cst_21 : f32 to vector<8x128xf32>
    %40 = arith.mulf %39, %38 : vector<8x128xf32>
    %41 = math.tanh %40 : vector<8x128xf32>
    %cst_22 = arith.constant 5.000000e-01 : f32
    %42 = vector.broadcast %cst_22 : f32 to vector<8x128xf32>
    %43 = arith.mulf %42, %41 : vector<8x128xf32>
    %cst_23 = arith.constant 5.000000e-01 : f32
    %44 = vector.broadcast %cst_23 : f32 to vector<8x128xf32>
    %45 = arith.addf %43, %44 : vector<8x128xf32>
    %46 = arith.mulf %35, %12 : vector<8x128xf32>
    %47 = arith.mulf %27, %37 : vector<8x128xf32>
    %48 = arith.addf %46, %47 : vector<8x128xf32>
    %49 = math.tanh %48 : vector<8x128xf32>
    %50 = arith.mulf %45, %49 : vector<8x128xf32>
    %51 = arith.index_cast %c0_i32 : i32 to index
    %c0_24 = arith.constant 0 : index
    %c0_25 = arith.constant 0 : index
    %52 = vector.load %arg18[%51, %c0_24, %c0_25] : memref<8x8x128xf32, #tpu.memory_space<vmem>>, vector<1x8x128xf32>
    %53 = vector.shape_cast %52 : vector<1x8x128xf32> to vector<8x128xf32>
    %54 = vector.shape_cast %50 : vector<8x128xf32> to vector<1x8x128xf32>
    tpu.vector_store %arg18[%51, %c0_24, %c0_25], %54 {strides = array<i32>} : memref<8x8x128xf32, #tpu.memory_space<vmem>>, vector<1x8x128xf32>,
    %c1_i32 = arith.constant 1 : i32
    %55 = arith.index_cast %c1_i32 : i32 to index
    %c0_26 = arith.constant 0 : index
    %c0_27 = arith.constant 0 : index
    %56 = vector.load %arg16[%55, %c0_26, %c0_27] : memref<8x8x512xf32, #tpu.memory_space<vmem>>, vector<1x8x512xf32>
    %57 = vector.shape_cast %56 : vector<1x8x512xf32> to vector<8x512xf32>
    %58 = arith.truncf %50 : vector<8x128xf32> to vector<8x128xbf16>
    %c0_28 = arith.constant 0 : index
    %c0_29 = arith.constant 0 : index
    %59 = vector.load %arg2[%c0_28, %c0_29] : memref<128x512xbf16, #tpu.memory_space<vmem>>, vector<128x512xbf16>
    %cst_30 = arith.constant dense<0.000000e+00> : vector<8x512xf32>
    %60 = tpu.matmul %58, %59, %cst_30 {dimension_numbers = #tpu.dot_dimension_numbers<[1], [0], [0], [1], [0, 0, 1, 1], [], []>} : vector<8x128xbf16>, vector<128x512xbf16>, vector<8x512xf32> -> vector<8x512xf32>
    %61 = arith.addf %57, %60 : vector<8x512xf32>
    %62 = vector.extract_strided_slice %61 {offsets = [0, 0], sizes = [8, 128], strides = [1, 1]} : vector<8x512xf32> to vector<8x128xf32>
    %cst_31 = arith.constant 5.000000e-01 : f32
    %63 = vector.broadcast %cst_31 : f32 to vector<8x128xf32>
    %64 = arith.mulf %63, %62 : vector<8x128xf32>
    %65 = math.tanh %64 : vector<8x128xf32>
    %cst_32 = arith.constant 5.000000e-01 : f32
    %66 = vector.broadcast %cst_32 : f32 to vector<8x128xf32>
    %67 = arith.mulf %66, %65 : vector<8x128xf32>
    %cst_33 = arith.constant 5.000000e-01 : f32
    %68 = vector.broadcast %cst_33 : f32 to vector<8x128xf32>
    %69 = arith.addf %67, %68 : vector<8x128xf32>
    %70 = vector.extract_strided_slice %61 {offsets = [0, 128], sizes = [8, 128], strides = [1, 1]} : vector<8x512xf32> to vector<8x128xf32>
    %cst_34 = arith.constant 5.000000e-01 : f32
    %71 = vector.broadcast %cst_34 : f32 to vector<8x128xf32>
    %72 = arith.mulf %71, %70 : vector<8x128xf32>
    %73 = math.tanh %72 : vector<8x128xf32>
    %cst_35 = arith.constant 5.000000e-01 : f32
    %74 = vector.broadcast %cst_35 : f32 to vector<8x128xf32>
    %75 = arith.mulf %74, %73 : vector<8x128xf32>
    %cst_36 = arith.constant 5.000000e-01 : f32
    %76 = vector.broadcast %cst_36 : f32 to vector<8x128xf32>
    %77 = arith.addf %75, %76 : vector<8x128xf32>
    %78 = vector.extract_strided_slice %61 {offsets = [0, 256], sizes = [8, 128], strides = [1, 1]} : vector<8x512xf32> to vector<8x128xf32>
    %79 = math.tanh %78 : vector<8x128xf32>
    %80 = vector.extract_strided_slice %61 {offsets = [0, 384], sizes = [8, 128], strides = [1, 1]} : vector<8x512xf32> to vector<8x128xf32>
    %cst_37 = arith.constant 5.000000e-01 : f32
    %81 = vector.broadcast %cst_37 : f32 to vector<8x128xf32>
    %82 = arith.mulf %81, %80 : vector<8x128xf32>
    %83 = math.tanh %82 : vector<8x128xf32>
    %cst_38 = arith.constant 5.000000e-01 : f32
    %84 = vector.broadcast %cst_38 : f32 to vector<8x128xf32>
    %85 = arith.mulf %84, %83 : vector<8x128xf32>
    %cst_39 = arith.constant 5.000000e-01 : f32
    %86 = vector.broadcast %cst_39 : f32 to vector<8x128xf32>
    %87 = arith.addf %85, %86 : vector<8x128xf32>
    %88 = arith.mulf %77, %48 : vector<8x128xf32>
    %89 = arith.mulf %69, %79 : vector<8x128xf32>
    %90 = arith.addf %88, %89 : vector<8x128xf32>
    %91 = math.tanh %90 : vector<8x128xf32>
    %92 = arith.mulf %87, %91 : vector<8x128xf32>
    %93 = arith.index_cast %c1_i32 : i32 to index
    %c0_40 = arith.constant 0 : index
    %c0_41 = arith.constant 0 : index
    %94 = vector.load %arg18[%93, %c0_40, %c0_41] : memref<8x8x128xf32, #tpu.memory_space<vmem>>, vector<1x8x128xf32>
    %95 = vector.shape_cast %94 : vector<1x8x128xf32> to vector<8x128xf32>
    %96 = vector.shape_cast %92 : vector<8x128xf32> to vector<1x8x128xf32>
    tpu.vector_store %arg18[%93, %c0_40, %c0_41], %96 {strides = array<i32>} : memref<8x8x128xf32, #tpu.memory_space<vmem>>, vector<1x8x128xf32>,
    %c2_i32 = arith.constant 2 : i32
    %97 = arith.index_cast %c2_i32 : i32 to index
    %c0_42 = arith.constant 0 : index
    %c0_43 = arith.constant 0 : index
    %98 = vector.load %arg16[%97, %c0_42, %c0_43] : memref<8x8x512xf32, #tpu.memory_space<vmem>>, vector<1x8x512xf32>
    %99 = vector.shape_cast %98 : vector<1x8x512xf32> to vector<8x512xf32>
    %100 = arith.truncf %92 : vector<8x128xf32> to vector<8x128xbf16>
    %c0_44 = arith.constant 0 : index
    %c0_45 = arith.constant 0 : index
    %101 = vector.load %arg2[%c0_44, %c0_45] : memref<128x512xbf16, #tpu.memory_space<vmem>>, vector<128x512xbf16>
    %cst_46 = arith.constant dense<0.000000e+00> : vector<8x512xf32>
    %102 = tpu.matmul %100, %101, %cst_46 {dimension_numbers = #tpu.dot_dimension_numbers<[1], [0], [0], [1], [0, 0, 1, 1], [], []>} : vector<8x128xbf16>, vector<128x512xbf16>, vector<8x512xf32> -> vector<8x512xf32>
    %103 = arith.addf %99, %102 : vector<8x512xf32>
    %104 = vector.extract_strided_slice %103 {offsets = [0, 0], sizes = [8, 128], strides = [1, 1]} : vector<8x512xf32> to vector<8x128xf32>
    %cst_47 = arith.constant 5.000000e-01 : f32
    %105 = vector.broadcast %cst_47 : f32 to vector<8x128xf32>
    %106 = arith.mulf %105, %104 : vector<8x128xf32>
    %107 = math.tanh %106 : vector<8x128xf32>
    %cst_48 = arith.constant 5.000000e-01 : f32
    %108 = vector.broadcast %cst_48 : f32 to vector<8x128xf32>
    %109 = arith.mulf %108, %107 : vector<8x128xf32>
    %cst_49 = arith.constant 5.000000e-01 : f32
    %110 = vector.broadcast %cst_49 : f32 to vector<8x128xf32>
    %111 = arith.addf %109, %110 : vector<8x128xf32>
    %112 = vector.extract_strided_slice %103 {offsets = [0, 128], sizes = [8, 128], strides = [1, 1]} : vector<8x512xf32> to vector<8x128xf32>
    %cst_50 = arith.constant 5.000000e-01 : f32
    %113 = vector.broadcast %cst_50 : f32 to vector<8x128xf32>
    %114 = arith.mulf %113, %112 : vector<8x128xf32>
    %115 = math.tanh %114 : vector<8x128xf32>
    %cst_51 = arith.constant 5.000000e-01 : f32
    %116 = vector.broadcast %cst_51 : f32 to vector<8x128xf32>
    %117 = arith.mulf %116, %115 : vector<8x128xf32>
    %cst_52 = arith.constant 5.000000e-01 : f32
    %118 = vector.broadcast %cst_52 : f32 to vector<8x128xf32>
    %119 = arith.addf %117, %118 : vector<8x128xf32>
    %120 = vector.extract_strided_slice %103 {offsets = [0, 256], sizes = [8, 128], strides = [1, 1]} : vector<8x512xf32> to vector<8x128xf32>
    %121 = math.tanh %120 : vector<8x128xf32>
    %122 = vector.extract_strided_slice %103 {offsets = [0, 384], sizes = [8, 128], strides = [1, 1]} : vector<8x512xf32> to vector<8x128xf32>
    %cst_53 = arith.constant 5.000000e-01 : f32
    %123 = vector.broadcast %cst_53 : f32 to vector<8x128xf32>
    %124 = arith.mulf %123, %122 : vector<8x128xf32>
    %125 = math.tanh %124 : vector<8x128xf32>
    %cst_54 = arith.constant 5.000000e-01 : f32
    %126 = vector.broadcast %cst_54 : f32 to vector<8x128xf32>
    %127 = arith.mulf %126, %125 : vector<8x128xf32>
    %cst_55 = arith.constant 5.000000e-01 : f32
    %128 = vector.broadcast %cst_55 : f32 to vector<8x128xf32>
    %129 = arith.addf %127, %128 : vector<8x128xf32>
    %130 = arith.mulf %119, %90 : vector<8x128xf32>
    %131 = arith.mulf %111, %121 : vector<8x128xf32>
    %132 = arith.addf %130, %131 : vector<8x128xf32>
    %133 = math.tanh %132 : vector<8x128xf32>
    %134 = arith.mulf %129, %133 : vector<8x128xf32>
    %135 = arith.index_cast %c2_i32 : i32 to index
    %c0_56 = arith.constant 0 : index
    %c0_57 = arith.constant 0 : index
    %136 = vector.load %arg18[%135, %c0_56, %c0_57] : memref<8x8x128xf32, #tpu.memory_space<vmem>>, vector<1x8x128xf32>
    %137 = vector.shape_cast %136 : vector<1x8x128xf32> to vector<8x128xf32>
    %138 = vector.shape_cast %134 : vector<8x128xf32> to vector<1x8x128xf32>
    tpu.vector_store %arg18[%135, %c0_56, %c0_57], %138 {strides = array<i32>} : memref<8x8x128xf32, #tpu.memory_space<vmem>>, vector<1x8x128xf32>,
    %c3_i32 = arith.constant 3 : i32
    %139 = arith.index_cast %c3_i32 : i32 to index
    %c0_58 = arith.constant 0 : index
    %c0_59 = arith.constant 0 : index
    %140 = vector.load %arg16[%139, %c0_58, %c0_59] : memref<8x8x512xf32, #tpu.memory_space<vmem>>, vector<1x8x512xf32>
    %141 = vector.shape_cast %140 : vector<1x8x512xf32> to vector<8x512xf32>
    %142 = arith.truncf %134 : vector<8x128xf32> to vector<8x128xbf16>
    %c0_60 = arith.constant 0 : index
    %c0_61 = arith.constant 0 : index
    %143 = vector.load %arg2[%c0_60, %c0_61] : memref<128x512xbf16, #tpu.memory_space<vmem>>, vector<128x512xbf16>
    %cst_62 = arith.constant dense<0.000000e+00> : vector<8x512xf32>
    %144 = tpu.matmul %142, %143, %cst_62 {dimension_numbers = #tpu.dot_dimension_numbers<[1], [0], [0], [1], [0, 0, 1, 1], [], []>} : vector<8x128xbf16>, vector<128x512xbf16>, vector<8x512xf32> -> vector<8x512xf32>
    %145 = arith.addf %141, %144 : vector<8x512xf32>
    %146 = vector.extract_strided_slice %145 {offsets = [0, 0], sizes = [8, 128], strides = [1, 1]} : vector<8x512xf32> to vector<8x128xf32>
    %cst_63 = arith.constant 5.000000e-01 : f32
    %147 = vector.broadcast %cst_63 : f32 to vector<8x128xf32>
    %148 = arith.mulf %147, %146 : vector<8x128xf32>
    %149 = math.tanh %148 : vector<8x128xf32>
    %cst_64 = arith.constant 5.000000e-01 : f32
    %150 = vector.broadcast %cst_64 : f32 to vector<8x128xf32>
    %151 = arith.mulf %150, %149 : vector<8x128xf32>
    %cst_65 = arith.constant 5.000000e-01 : f32
    %152 = vector.broadcast %cst_65 : f32 to vector<8x128xf32>
    %153 = arith.addf %151, %152 : vector<8x128xf32>
    %154 = vector.extract_strided_slice %145 {offsets = [0, 128], sizes = [8, 128], strides = [1, 1]} : vector<8x512xf32> to vector<8x128xf32>
    %cst_66 = arith.constant 5.000000e-01 : f32
    %155 = vector.broadcast %cst_66 : f32 to vector<8x128xf32>
    %156 = arith.mulf %155, %154 : vector<8x128xf32>
    %157 = math.tanh %156 : vector<8x128xf32>
    %cst_67 = arith.constant 5.000000e-01 : f32
    %158 = vector.broadcast %cst_67 : f32 to vector<8x128xf32>
    %159 = arith.mulf %158, %157 : vector<8x128xf32>
    %cst_68 = arith.constant 5.000000e-01 : f32
    %160 = vector.broadcast %cst_68 : f32 to vector<8x128xf32>
    %161 = arith.addf %159, %160 : vector<8x128xf32>
    %162 = vector.extract_strided_slice %145 {offsets = [0, 256], sizes = [8, 128], strides = [1, 1]} : vector<8x512xf32> to vector<8x128xf32>
    %163 = math.tanh %162 : vector<8x128xf32>
    %164 = vector.extract_strided_slice %145 {offsets = [0, 384], sizes = [8, 128], strides = [1, 1]} : vector<8x512xf32> to vector<8x128xf32>
    %cst_69 = arith.constant 5.000000e-01 : f32
    %165 = vector.broadcast %cst_69 : f32 to vector<8x128xf32>
    %166 = arith.mulf %165, %164 : vector<8x128xf32>
    %167 = math.tanh %166 : vector<8x128xf32>
    %cst_70 = arith.constant 5.000000e-01 : f32
    %168 = vector.broadcast %cst_70 : f32 to vector<8x128xf32>
    %169 = arith.mulf %168, %167 : vector<8x128xf32>
    %cst_71 = arith.constant 5.000000e-01 : f32
    %170 = vector.broadcast %cst_71 : f32 to vector<8x128xf32>
    %171 = arith.addf %169, %170 : vector<8x128xf32>
    %172 = arith.mulf %161, %132 : vector<8x128xf32>
    %173 = arith.mulf %153, %163 : vector<8x128xf32>
    %174 = arith.addf %172, %173 : vector<8x128xf32>
    %175 = math.tanh %174 : vector<8x128xf32>
    %176 = arith.mulf %171, %175 : vector<8x128xf32>
    %177 = arith.index_cast %c3_i32 : i32 to index
    %c0_72 = arith.constant 0 : index
    %c0_73 = arith.constant 0 : index
    %178 = vector.load %arg18[%177, %c0_72, %c0_73] : memref<8x8x128xf32, #tpu.memory_space<vmem>>, vector<1x8x128xf32>
    %179 = vector.shape_cast %178 : vector<1x8x128xf32> to vector<8x128xf32>
    %180 = vector.shape_cast %176 : vector<8x128xf32> to vector<1x8x128xf32>
    tpu.vector_store %arg18[%177, %c0_72, %c0_73], %180 {strides = array<i32>} : memref<8x8x128xf32, #tpu.memory_space<vmem>>, vector<1x8x128xf32>,
    %c4_i32 = arith.constant 4 : i32
    %181 = arith.index_cast %c4_i32 : i32 to index
    %c0_74 = arith.constant 0 : index
    %c0_75 = arith.constant 0 : index
    %182 = vector.load %arg16[%181, %c0_74, %c0_75] : memref<8x8x512xf32, #tpu.memory_space<vmem>>, vector<1x8x512xf32>
    %183 = vector.shape_cast %182 : vector<1x8x512xf32> to vector<8x512xf32>
    %184 = arith.truncf %176 : vector<8x128xf32> to vector<8x128xbf16>
    %c0_76 = arith.constant 0 : index
    %c0_77 = arith.constant 0 : index
    %185 = vector.load %arg2[%c0_76, %c0_77] : memref<128x512xbf16, #tpu.memory_space<vmem>>, vector<128x512xbf16>
    %cst_78 = arith.constant dense<0.000000e+00> : vector<8x512xf32>
    %186 = tpu.matmul %184, %185, %cst_78 {dimension_numbers = #tpu.dot_dimension_numbers<[1], [0], [0], [1], [0, 0, 1, 1], [], []>} : vector<8x128xbf16>, vector<128x512xbf16>, vector<8x512xf32> -> vector<8x512xf32>
    %187 = arith.addf %183, %186 : vector<8x512xf32>
    %188 = vector.extract_strided_slice %187 {offsets = [0, 0], sizes = [8, 128], strides = [1, 1]} : vector<8x512xf32> to vector<8x128xf32>
    %cst_79 = arith.constant 5.000000e-01 : f32
    %189 = vector.broadcast %cst_79 : f32 to vector<8x128xf32>
    %190 = arith.mulf %189, %188 : vector<8x128xf32>
    %191 = math.tanh %190 : vector<8x128xf32>
    %cst_80 = arith.constant 5.000000e-01 : f32
    %192 = vector.broadcast %cst_80 : f32 to vector<8x128xf32>
    %193 = arith.mulf %192, %191 : vector<8x128xf32>
    %cst_81 = arith.constant 5.000000e-01 : f32
    %194 = vector.broadcast %cst_81 : f32 to vector<8x128xf32>
    %195 = arith.addf %193, %194 : vector<8x128xf32>
    %196 = vector.extract_strided_slice %187 {offsets = [0, 128], sizes = [8, 128], strides = [1, 1]} : vector<8x512xf32> to vector<8x128xf32>
    %cst_82 = arith.constant 5.000000e-01 : f32
    %197 = vector.broadcast %cst_82 : f32 to vector<8x128xf32>
    %198 = arith.mulf %197, %196 : vector<8x128xf32>
    %199 = math.tanh %198 : vector<8x128xf32>
    %cst_83 = arith.constant 5.000000e-01 : f32
    %200 = vector.broadcast %cst_83 : f32 to vector<8x128xf32>
    %201 = arith.mulf %200, %199 : vector<8x128xf32>
    %cst_84 = arith.constant 5.000000e-01 : f32
    %202 = vector.broadcast %cst_84 : f32 to vector<8x128xf32>
    %203 = arith.addf %201, %202 : vector<8x128xf32>
    %204 = vector.extract_strided_slice %187 {offsets = [0, 256], sizes = [8, 128], strides = [1, 1]} : vector<8x512xf32> to vector<8x128xf32>
    %205 = math.tanh %204 : vector<8x128xf32>
    %206 = vector.extract_strided_slice %187 {offsets = [0, 384], sizes = [8, 128], strides = [1, 1]} : vector<8x512xf32> to vector<8x128xf32>
    %cst_85 = arith.constant 5.000000e-01 : f32
    %207 = vector.broadcast %cst_85 : f32 to vector<8x128xf32>
    %208 = arith.mulf %207, %206 : vector<8x128xf32>
    %209 = math.tanh %208 : vector<8x128xf32>
    %cst_86 = arith.constant 5.000000e-01 : f32
    %210 = vector.broadcast %cst_86 : f32 to vector<8x128xf32>
    %211 = arith.mulf %210, %209 : vector<8x128xf32>
    %cst_87 = arith.constant 5.000000e-01 : f32
    %212 = vector.broadcast %cst_87 : f32 to vector<8x128xf32>
    %213 = arith.addf %211, %212 : vector<8x128xf32>
    %214 = arith.mulf %203, %174 : vector<8x128xf32>
    %215 = arith.mulf %195, %205 : vector<8x128xf32>
    %216 = arith.addf %214, %215 : vector<8x128xf32>
    %217 = math.tanh %216 : vector<8x128xf32>
    %218 = arith.mulf %213, %217 : vector<8x128xf32>
    %219 = arith.index_cast %c4_i32 : i32 to index
    %c0_88 = arith.constant 0 : index
    %c0_89 = arith.constant 0 : index
    %220 = vector.load %arg18[%219, %c0_88, %c0_89] : memref<8x8x128xf32, #tpu.memory_space<vmem>>, vector<1x8x128xf32>
    %221 = vector.shape_cast %220 : vector<1x8x128xf32> to vector<8x128xf32>
    %222 = vector.shape_cast %218 : vector<8x128xf32> to vector<1x8x128xf32>
    tpu.vector_store %arg18[%219, %c0_88, %c0_89], %222 {strides = array<i32>} : memref<8x8x128xf32, #tpu.memory_space<vmem>>, vector<1x8x128xf32>,
    %c5_i32 = arith.constant 5 : i32
    %223 = arith.index_cast %c5_i32 : i32 to index
    %c0_90 = arith.constant 0 : index
    %c0_91 = arith.constant 0 : index
    %224 = vector.load %arg16[%223, %c0_90, %c0_91] : memref<8x8x512xf32, #tpu.memory_space<vmem>>, vector<1x8x512xf32>
    %225 = vector.shape_cast %224 : vector<1x8x512xf32> to vector<8x512xf32>
    %226 = arith.truncf %218 : vector<8x128xf32> to vector<8x128xbf16>
    %c0_92 = arith.constant 0 : index
    %c0_93 = arith.constant 0 : index
    %227 = vector.load %arg2[%c0_92, %c0_93] : memref<128x512xbf16, #tpu.memory_space<vmem>>, vector<128x512xbf16>
    %cst_94 = arith.constant dense<0.000000e+00> : vector<8x512xf32>
    %228 = tpu.matmul %226, %227, %cst_94 {dimension_numbers = #tpu.dot_dimension_numbers<[1], [0], [0], [1], [0, 0, 1, 1], [], []>} : vector<8x128xbf16>, vector<128x512xbf16>, vector<8x512xf32> -> vector<8x512xf32>
    %229 = arith.addf %225, %228 : vector<8x512xf32>
    %230 = vector.extract_strided_slice %229 {offsets = [0, 0], sizes = [8, 128], strides = [1, 1]} : vector<8x512xf32> to vector<8x128xf32>
    %cst_95 = arith.constant 5.000000e-01 : f32
    %231 = vector.broadcast %cst_95 : f32 to vector<8x128xf32>
    %232 = arith.mulf %231, %230 : vector<8x128xf32>
    %233 = math.tanh %232 : vector<8x128xf32>
    %cst_96 = arith.constant 5.000000e-01 : f32
    %234 = vector.broadcast %cst_96 : f32 to vector<8x128xf32>
    %235 = arith.mulf %234, %233 : vector<8x128xf32>
    %cst_97 = arith.constant 5.000000e-01 : f32
    %236 = vector.broadcast %cst_97 : f32 to vector<8x128xf32>
    %237 = arith.addf %235, %236 : vector<8x128xf32>
    %238 = vector.extract_strided_slice %229 {offsets = [0, 128], sizes = [8, 128], strides = [1, 1]} : vector<8x512xf32> to vector<8x128xf32>
    %cst_98 = arith.constant 5.000000e-01 : f32
    %239 = vector.broadcast %cst_98 : f32 to vector<8x128xf32>
    %240 = arith.mulf %239, %238 : vector<8x128xf32>
    %241 = math.tanh %240 : vector<8x128xf32>
    %cst_99 = arith.constant 5.000000e-01 : f32
    %242 = vector.broadcast %cst_99 : f32 to vector<8x128xf32>
    %243 = arith.mulf %242, %241 : vector<8x128xf32>
    %cst_100 = arith.constant 5.000000e-01 : f32
    %244 = vector.broadcast %cst_100 : f32 to vector<8x128xf32>
    %245 = arith.addf %243, %244 : vector<8x128xf32>
    %246 = vector.extract_strided_slice %229 {offsets = [0, 256], sizes = [8, 128], strides = [1, 1]} : vector<8x512xf32> to vector<8x128xf32>
    %247 = math.tanh %246 : vector<8x128xf32>
    %248 = vector.extract_strided_slice %229 {offsets = [0, 384], sizes = [8, 128], strides = [1, 1]} : vector<8x512xf32> to vector<8x128xf32>
    %cst_101 = arith.constant 5.000000e-01 : f32
    %249 = vector.broadcast %cst_101 : f32 to vector<8x128xf32>
    %250 = arith.mulf %249, %248 : vector<8x128xf32>
    %251 = math.tanh %250 : vector<8x128xf32>
    %cst_102 = arith.constant 5.000000e-01 : f32
    %252 = vector.broadcast %cst_102 : f32 to vector<8x128xf32>
    %253 = arith.mulf %252, %251 : vector<8x128xf32>
    %cst_103 = arith.constant 5.000000e-01 : f32
    %254 = vector.broadcast %cst_103 : f32 to vector<8x128xf32>
    %255 = arith.addf %253, %254 : vector<8x128xf32>
    %256 = arith.mulf %245, %216 : vector<8x128xf32>
    %257 = arith.mulf %237, %247 : vector<8x128xf32>
    %258 = arith.addf %256, %257 : vector<8x128xf32>
    %259 = math.tanh %258 : vector<8x128xf32>
    %260 = arith.mulf %255, %259 : vector<8x128xf32>
    %261 = arith.index_cast %c5_i32 : i32 to index
    %c0_104 = arith.constant 0 : index
    %c0_105 = arith.constant 0 : index
    %262 = vector.load %arg18[%261, %c0_104, %c0_105] : memref<8x8x128xf32, #tpu.memory_space<vmem>>, vector<1x8x128xf32>
    %263 = vector.shape_cast %262 : vector<1x8x128xf32> to vector<8x128xf32>
    %264 = vector.shape_cast %260 : vector<8x128xf32> to vector<1x8x128xf32>
    tpu.vector_store %arg18[%261, %c0_104, %c0_105], %264 {strides = array<i32>} : memref<8x8x128xf32, #tpu.memory_space<vmem>>, vector<1x8x128xf32>,
    %c6_i32 = arith.constant 6 : i32
    %265 = arith.index_cast %c6_i32 : i32 to index
    %c0_106 = arith.constant 0 : index
    %c0_107 = arith.constant 0 : index
    %266 = vector.load %arg16[%265, %c0_106, %c0_107] : memref<8x8x512xf32, #tpu.memory_space<vmem>>, vector<1x8x512xf32>
    %267 = vector.shape_cast %266 : vector<1x8x512xf32> to vector<8x512xf32>
    %268 = arith.truncf %260 : vector<8x128xf32> to vector<8x128xbf16>
    %c0_108 = arith.constant 0 : index
    %c0_109 = arith.constant 0 : index
    %269 = vector.load %arg2[%c0_108, %c0_109] : memref<128x512xbf16, #tpu.memory_space<vmem>>, vector<128x512xbf16>
    %cst_110 = arith.constant dense<0.000000e+00> : vector<8x512xf32>
    %270 = tpu.matmul %268, %269, %cst_110 {dimension_numbers = #tpu.dot_dimension_numbers<[1], [0], [0], [1], [0, 0, 1, 1], [], []>} : vector<8x128xbf16>, vector<128x512xbf16>, vector<8x512xf32> -> vector<8x512xf32>
    %271 = arith.addf %267, %270 : vector<8x512xf32>
    %272 = vector.extract_strided_slice %271 {offsets = [0, 0], sizes = [8, 128], strides = [1, 1]} : vector<8x512xf32> to vector<8x128xf32>
    %cst_111 = arith.constant 5.000000e-01 : f32
    %273 = vector.broadcast %cst_111 : f32 to vector<8x128xf32>
    %274 = arith.mulf %273, %272 : vector<8x128xf32>
    %275 = math.tanh %274 : vector<8x128xf32>
    %cst_112 = arith.constant 5.000000e-01 : f32
    %276 = vector.broadcast %cst_112 : f32 to vector<8x128xf32>
    %277 = arith.mulf %276, %275 : vector<8x128xf32>
    %cst_113 = arith.constant 5.000000e-01 : f32
    %278 = vector.broadcast %cst_113 : f32 to vector<8x128xf32>
    %279 = arith.addf %277, %278 : vector<8x128xf32>
    %280 = vector.extract_strided_slice %271 {offsets = [0, 128], sizes = [8, 128], strides = [1, 1]} : vector<8x512xf32> to vector<8x128xf32>
    %cst_114 = arith.constant 5.000000e-01 : f32
    %281 = vector.broadcast %cst_114 : f32 to vector<8x128xf32>
    %282 = arith.mulf %281, %280 : vector<8x128xf32>
    %283 = math.tanh %282 : vector<8x128xf32>
    %cst_115 = arith.constant 5.000000e-01 : f32
    %284 = vector.broadcast %cst_115 : f32 to vector<8x128xf32>
    %285 = arith.mulf %284, %283 : vector<8x128xf32>
    %cst_116 = arith.constant 5.000000e-01 : f32
    %286 = vector.broadcast %cst_116 : f32 to vector<8x128xf32>
    %287 = arith.addf %285, %286 : vector<8x128xf32>
    %288 = vector.extract_strided_slice %271 {offsets = [0, 256], sizes = [8, 128], strides = [1, 1]} : vector<8x512xf32> to vector<8x128xf32>
    %289 = math.tanh %288 : vector<8x128xf32>
    %290 = vector.extract_strided_slice %271 {offsets = [0, 384], sizes = [8, 128], strides = [1, 1]} : vector<8x512xf32> to vector<8x128xf32>
    %cst_117 = arith.constant 5.000000e-01 : f32
    %291 = vector.broadcast %cst_117 : f32 to vector<8x128xf32>
    %292 = arith.mulf %291, %290 : vector<8x128xf32>
    %293 = math.tanh %292 : vector<8x128xf32>
    %cst_118 = arith.constant 5.000000e-01 : f32
    %294 = vector.broadcast %cst_118 : f32 to vector<8x128xf32>
    %295 = arith.mulf %294, %293 : vector<8x128xf32>
    %cst_119 = arith.constant 5.000000e-01 : f32
    %296 = vector.broadcast %cst_119 : f32 to vector<8x128xf32>
    %297 = arith.addf %295, %296 : vector<8x128xf32>
    %298 = arith.mulf %287, %258 : vector<8x128xf32>
    %299 = arith.mulf %279, %289 : vector<8x128xf32>
    %300 = arith.addf %298, %299 : vector<8x128xf32>
    %301 = math.tanh %300 : vector<8x128xf32>
    %302 = arith.mulf %297, %301 : vector<8x128xf32>
    %303 = arith.index_cast %c6_i32 : i32 to index
    %c0_120 = arith.constant 0 : index
    %c0_121 = arith.constant 0 : index
    %304 = vector.load %arg18[%303, %c0_120, %c0_121] : memref<8x8x128xf32, #tpu.memory_space<vmem>>, vector<1x8x128xf32>
    %305 = vector.shape_cast %304 : vector<1x8x128xf32> to vector<8x128xf32>
    %306 = vector.shape_cast %302 : vector<8x128xf32> to vector<1x8x128xf32>
    tpu.vector_store %arg18[%303, %c0_120, %c0_121], %306 {strides = array<i32>} : memref<8x8x128xf32, #tpu.memory_space<vmem>>, vector<1x8x128xf32>,
    %c7_i32 = arith.constant 7 : i32
    %307 = arith.index_cast %c7_i32 : i32 to index
    %c0_122 = arith.constant 0 : index
    %c0_123 = arith.constant 0 : index
    %308 = vector.load %arg16[%307, %c0_122, %c0_123] : memref<8x8x512xf32, #tpu.memory_space<vmem>>, vector<1x8x512xf32>
    %309 = vector.shape_cast %308 : vector<1x8x512xf32> to vector<8x512xf32>
    %310 = arith.truncf %302 : vector<8x128xf32> to vector<8x128xbf16>
    %c0_124 = arith.constant 0 : index
    %c0_125 = arith.constant 0 : index
    %311 = vector.load %arg2[%c0_124, %c0_125] : memref<128x512xbf16, #tpu.memory_space<vmem>>, vector<128x512xbf16>
    %cst_126 = arith.constant dense<0.000000e+00> : vector<8x512xf32>
    %312 = tpu.matmul %310, %311, %cst_126 {dimension_numbers = #tpu.dot_dimension_numbers<[1], [0], [0], [1], [0, 0, 1, 1], [], []>} : vector<8x128xbf16>, vector<128x512xbf16>, vector<8x512xf32> -> vector<8x512xf32>
    %313 = arith.addf %309, %312 : vector<8x512xf32>
    %314 = vector.extract_strided_slice %313 {offsets = [0, 0], sizes = [8, 128], strides = [1, 1]} : vector<8x512xf32> to vector<8x128xf32>
    %cst_127 = arith.constant 5.000000e-01 : f32
    %315 = vector.broadcast %cst_127 : f32 to vector<8x128xf32>
    %316 = arith.mulf %315, %314 : vector<8x128xf32>
    %317 = math.tanh %316 : vector<8x128xf32>
    %cst_128 = arith.constant 5.000000e-01 : f32
    %318 = vector.broadcast %cst_128 : f32 to vector<8x128xf32>
    %319 = arith.mulf %318, %317 : vector<8x128xf32>
    %cst_129 = arith.constant 5.000000e-01 : f32
    %320 = vector.broadcast %cst_129 : f32 to vector<8x128xf32>
    %321 = arith.addf %319, %320 : vector<8x128xf32>
    %322 = vector.extract_strided_slice %313 {offsets = [0, 128], sizes = [8, 128], strides = [1, 1]} : vector<8x512xf32> to vector<8x128xf32>
    %cst_130 = arith.constant 5.000000e-01 : f32
    %323 = vector.broadcast %cst_130 : f32 to vector<8x128xf32>
    %324 = arith.mulf %323, %322 : vector<8x128xf32>
    %325 = math.tanh %324 : vector<8x128xf32>
    %cst_131 = arith.constant 5.000000e-01 : f32
    %326 = vector.broadcast %cst_131 : f32 to vector<8x128xf32>
    %327 = arith.mulf %326, %325 : vector<8x128xf32>
    %cst_132 = arith.constant 5.000000e-01 : f32
    %328 = vector.broadcast %cst_132 : f32 to vector<8x128xf32>
    %329 = arith.addf %327, %328 : vector<8x128xf32>
    %330 = vector.extract_strided_slice %313 {offsets = [0, 256], sizes = [8, 128], strides = [1, 1]} : vector<8x512xf32> to vector<8x128xf32>
    %331 = math.tanh %330 : vector<8x128xf32>
    %332 = vector.extract_strided_slice %313 {offsets = [0, 384], sizes = [8, 128], strides = [1, 1]} : vector<8x512xf32> to vector<8x128xf32>
    %cst_133 = arith.constant 5.000000e-01 : f32
    %333 = vector.broadcast %cst_133 : f32 to vector<8x128xf32>
    %334 = arith.mulf %333, %332 : vector<8x128xf32>
    %335 = math.tanh %334 : vector<8x128xf32>
    %cst_134 = arith.constant 5.000000e-01 : f32
    %336 = vector.broadcast %cst_134 : f32 to vector<8x128xf32>
    %337 = arith.mulf %336, %335 : vector<8x128xf32>
    %cst_135 = arith.constant 5.000000e-01 : f32
    %338 = vector.broadcast %cst_135 : f32 to vector<8x128xf32>
    %339 = arith.addf %337, %338 : vector<8x128xf32>
    %340 = arith.mulf %329, %300 : vector<8x128xf32>
    %341 = arith.mulf %321, %331 : vector<8x128xf32>
    %342 = arith.addf %340, %341 : vector<8x128xf32>
    %343 = math.tanh %342 : vector<8x128xf32>
    %344 = arith.mulf %339, %343 : vector<8x128xf32>
    %345 = arith.index_cast %c7_i32 : i32 to index
    %c0_136 = arith.constant 0 : index
    %c0_137 = arith.constant 0 : index
    %346 = vector.load %arg18[%345, %c0_136, %c0_137] : memref<8x8x128xf32, #tpu.memory_space<vmem>>, vector<1x8x128xf32>
    %347 = vector.shape_cast %346 : vector<1x8x128xf32> to vector<8x128xf32>
    %348 = vector.shape_cast %344 : vector<8x128xf32> to vector<1x8x128xf32>
    tpu.vector_store %arg18[%345, %c0_136, %c0_137], %348 {strides = array<i32>} : memref<8x8x128xf32, #tpu.memory_space<vmem>>, vector<1x8x128xf32>,
    %c8_i32 = arith.constant 8 : i32
    %c0_138 = arith.constant 0 : index
    %c0_139 = arith.constant 0 : index
    %c0_140 = arith.constant 0 : index
    %349 = vector.load %arg18[%c0_138, %c0_139, %c0_140] : memref<8x8x128xf32, #tpu.memory_space<vmem>>, vector<8x8x128xf32>
    %350 = vector.shape_cast %349 : vector<8x8x128xf32> to vector<64x128xf32>
    %351 = arith.truncf %350 : vector<64x128xf32> to vector<64x128xbf16>
    %c0_141 = arith.constant 0 : index
    %c0_142 = arith.constant 0 : index
    %352 = vector.load %arg4[%c0_141, %c0_142] : memref<128x512xbf16, #tpu.memory_space<vmem>>, vector<128x512xbf16>
    %cst_143 = arith.constant dense<0.000000e+00> : vector<64x512xf32>
    %353 = tpu.matmul %351, %352, %cst_143 {dimension_numbers = #tpu.dot_dimension_numbers<[1], [0], [0], [1], [0, 0, 1, 1], [], []>} : vector<64x128xbf16>, vector<128x512xbf16>, vector<64x512xf32> -> vector<64x512xf32>
    %c0_144 = arith.constant 0 : index
    %c0_145 = arith.constant 0 : index
    %354 = vector.load %arg6[%c0_144, %c0_145] : memref<1x512xf32, #tpu.memory_space<vmem>>, vector<1x512xf32>
    %355 = vector.broadcast %354 : vector<1x512xf32> to vector<64x512xf32>
    %356 = arith.addf %353, %355 : vector<64x512xf32>
    %357 = vector.shape_cast %356 : vector<64x512xf32> to vector<8x8x512xf32>
    %c0_146 = arith.constant 0 : index
    %c0_147 = arith.constant 0 : index
    %c0_148 = arith.constant 0 : index
    %358 = vector.load %arg17[%c0_146, %c0_147, %c0_148] : memref<8x8x512xf32, #tpu.memory_space<vmem>>, vector<8x8x512xf32>
    tpu.vector_store %arg17[%c0_146, %c0_147, %c0_148], %357 {strides = array<i32>} : memref<8x8x512xf32, #tpu.memory_space<vmem>>, vector<8x8x512xf32>,
    %cst_149 = arith.constant 0.000000e+00 : f32
    %359 = vector.broadcast %cst_149 : f32 to vector<8x128xf32>
    %cst_150 = arith.constant 0.000000e+00 : f32
    %360 = vector.broadcast %cst_150 : f32 to vector<8x128xf32>
    %c0_i32_151 = arith.constant 0 : i32
    %361 = arith.index_cast %c0_i32_151 : i32 to index
    %c0_152 = arith.constant 0 : index
    %c0_153 = arith.constant 0 : index
    %362 = vector.load %arg17[%361, %c0_152, %c0_153] : memref<8x8x512xf32, #tpu.memory_space<vmem>>, vector<1x8x512xf32>
    %363 = vector.shape_cast %362 : vector<1x8x512xf32> to vector<8x512xf32>
    %364 = arith.truncf %359 : vector<8x128xf32> to vector<8x128xbf16>
    %c0_154 = arith.constant 0 : index
    %c0_155 = arith.constant 0 : index
    %365 = vector.load %arg5[%c0_154, %c0_155] : memref<128x512xbf16, #tpu.memory_space<vmem>>, vector<128x512xbf16>
    %cst_156 = arith.constant dense<0.000000e+00> : vector<8x512xf32>
    %366 = tpu.matmul %364, %365, %cst_156 {dimension_numbers = #tpu.dot_dimension_numbers<[1], [0], [0], [1], [0, 0, 1, 1], [], []>} : vector<8x128xbf16>, vector<128x512xbf16>, vector<8x512xf32> -> vector<8x512xf32>
    %367 = arith.addf %363, %366 : vector<8x512xf32>
    %368 = vector.extract_strided_slice %367 {offsets = [0, 0], sizes = [8, 128], strides = [1, 1]} : vector<8x512xf32> to vector<8x128xf32>
    %cst_157 = arith.constant 5.000000e-01 : f32
    %369 = vector.broadcast %cst_157 : f32 to vector<8x128xf32>
    %370 = arith.mulf %369, %368 : vector<8x128xf32>
    %371 = math.tanh %370 : vector<8x128xf32>
    %cst_158 = arith.constant 5.000000e-01 : f32
    %372 = vector.broadcast %cst_158 : f32 to vector<8x128xf32>
    %373 = arith.mulf %372, %371 : vector<8x128xf32>
    %cst_159 = arith.constant 5.000000e-01 : f32
    %374 = vector.broadcast %cst_159 : f32 to vector<8x128xf32>
    %375 = arith.addf %373, %374 : vector<8x128xf32>
    %376 = vector.extract_strided_slice %367 {offsets = [0, 128], sizes = [8, 128], strides = [1, 1]} : vector<8x512xf32> to vector<8x128xf32>
    %cst_160 = arith.constant 5.000000e-01 : f32
    %377 = vector.broadcast %cst_160 : f32 to vector<8x128xf32>
    %378 = arith.mulf %377, %376 : vector<8x128xf32>
    %379 = math.tanh %378 : vector<8x128xf32>
    %cst_161 = arith.constant 5.000000e-01 : f32
    %380 = vector.broadcast %cst_161 : f32 to vector<8x128xf32>
    %381 = arith.mulf %380, %379 : vector<8x128xf32>
    %cst_162 = arith.constant 5.000000e-01 : f32
    %382 = vector.broadcast %cst_162 : f32 to vector<8x128xf32>
    %383 = arith.addf %381, %382 : vector<8x128xf32>
    %384 = vector.extract_strided_slice %367 {offsets = [0, 256], sizes = [8, 128], strides = [1, 1]} : vector<8x512xf32> to vector<8x128xf32>
    %385 = math.tanh %384 : vector<8x128xf32>
    %386 = vector.extract_strided_slice %367 {offsets = [0, 384], sizes = [8, 128], strides = [1, 1]} : vector<8x512xf32> to vector<8x128xf32>
    %cst_163 = arith.constant 5.000000e-01 : f32
    %387 = vector.broadcast %cst_163 : f32 to vector<8x128xf32>
    %388 = arith.mulf %387, %386 : vector<8x128xf32>
    %389 = math.tanh %388 : vector<8x128xf32>
    %cst_164 = arith.constant 5.000000e-01 : f32
    %390 = vector.broadcast %cst_164 : f32 to vector<8x128xf32>
    %391 = arith.mulf %390, %389 : vector<8x128xf32>
    %cst_165 = arith.constant 5.000000e-01 : f32
    %392 = vector.broadcast %cst_165 : f32 to vector<8x128xf32>
    %393 = arith.addf %391, %392 : vector<8x128xf32>
    %394 = arith.mulf %383, %360 : vector<8x128xf32>
    %395 = arith.mulf %375, %385 : vector<8x128xf32>
    %396 = arith.addf %394, %395 : vector<8x128xf32>
    %397 = math.tanh %396 : vector<8x128xf32>
    %398 = arith.mulf %393, %397 : vector<8x128xf32>
    %c1_i32_166 = arith.constant 1 : i32
    %399 = arith.index_cast %c1_i32_166 : i32 to index
    %c0_167 = arith.constant 0 : index
    %c0_168 = arith.constant 0 : index
    %400 = vector.load %arg17[%399, %c0_167, %c0_168] : memref<8x8x512xf32, #tpu.memory_space<vmem>>, vector<1x8x512xf32>
    %401 = vector.shape_cast %400 : vector<1x8x512xf32> to vector<8x512xf32>
    %402 = arith.truncf %398 : vector<8x128xf32> to vector<8x128xbf16>
    %c0_169 = arith.constant 0 : index
    %c0_170 = arith.constant 0 : index
    %403 = vector.load %arg5[%c0_169, %c0_170] : memref<128x512xbf16, #tpu.memory_space<vmem>>, vector<128x512xbf16>
    %cst_171 = arith.constant dense<0.000000e+00> : vector<8x512xf32>
    %404 = tpu.matmul %402, %403, %cst_171 {dimension_numbers = #tpu.dot_dimension_numbers<[1], [0], [0], [1], [0, 0, 1, 1], [], []>} : vector<8x128xbf16>, vector<128x512xbf16>, vector<8x512xf32> -> vector<8x512xf32>
    %405 = arith.addf %401, %404 : vector<8x512xf32>
    %406 = vector.extract_strided_slice %405 {offsets = [0, 0], sizes = [8, 128], strides = [1, 1]} : vector<8x512xf32> to vector<8x128xf32>
    %cst_172 = arith.constant 5.000000e-01 : f32
    %407 = vector.broadcast %cst_172 : f32 to vector<8x128xf32>
    %408 = arith.mulf %407, %406 : vector<8x128xf32>
    %409 = math.tanh %408 : vector<8x128xf32>
    %cst_173 = arith.constant 5.000000e-01 : f32
    %410 = vector.broadcast %cst_173 : f32 to vector<8x128xf32>
    %411 = arith.mulf %410, %409 : vector<8x128xf32>
    %cst_174 = arith.constant 5.000000e-01 : f32
    %412 = vector.broadcast %cst_174 : f32 to vector<8x128xf32>
    %413 = arith.addf %411, %412 : vector<8x128xf32>
    %414 = vector.extract_strided_slice %405 {offsets = [0, 128], sizes = [8, 128], strides = [1, 1]} : vector<8x512xf32> to vector<8x128xf32>
    %cst_175 = arith.constant 5.000000e-01 : f32
    %415 = vector.broadcast %cst_175 : f32 to vector<8x128xf32>
    %416 = arith.mulf %415, %414 : vector<8x128xf32>
    %417 = math.tanh %416 : vector<8x128xf32>
    %cst_176 = arith.constant 5.000000e-01 : f32
    %418 = vector.broadcast %cst_176 : f32 to vector<8x128xf32>
    %419 = arith.mulf %418, %417 : vector<8x128xf32>
    %cst_177 = arith.constant 5.000000e-01 : f32
    %420 = vector.broadcast %cst_177 : f32 to vector<8x128xf32>
    %421 = arith.addf %419, %420 : vector<8x128xf32>
    %422 = vector.extract_strided_slice %405 {offsets = [0, 256], sizes = [8, 128], strides = [1, 1]} : vector<8x512xf32> to vector<8x128xf32>
    %423 = math.tanh %422 : vector<8x128xf32>
    %424 = vector.extract_strided_slice %405 {offsets = [0, 384], sizes = [8, 128], strides = [1, 1]} : vector<8x512xf32> to vector<8x128xf32>
    %cst_178 = arith.constant 5.000000e-01 : f32
    %425 = vector.broadcast %cst_178 : f32 to vector<8x128xf32>
    %426 = arith.mulf %425, %424 : vector<8x128xf32>
    %427 = math.tanh %426 : vector<8x128xf32>
    %cst_179 = arith.constant 5.000000e-01 : f32
    %428 = vector.broadcast %cst_179 : f32 to vector<8x128xf32>
    %429 = arith.mulf %428, %427 : vector<8x128xf32>
    %cst_180 = arith.constant 5.000000e-01 : f32
    %430 = vector.broadcast %cst_180 : f32 to vector<8x128xf32>
    %431 = arith.addf %429, %430 : vector<8x128xf32>
    %432 = arith.mulf %421, %396 : vector<8x128xf32>
    %433 = arith.mulf %413, %423 : vector<8x128xf32>
    %434 = arith.addf %432, %433 : vector<8x128xf32>
    %435 = math.tanh %434 : vector<8x128xf32>
    %436 = arith.mulf %431, %435 : vector<8x128xf32>
    %c2_i32_181 = arith.constant 2 : i32
    %437 = arith.index_cast %c2_i32_181 : i32 to index
    %c0_182 = arith.constant 0 : index
    %c0_183 = arith.constant 0 : index
    %438 = vector.load %arg17[%437, %c0_182, %c0_183] : memref<8x8x512xf32, #tpu.memory_space<vmem>>, vector<1x8x512xf32>
    %439 = vector.shape_cast %438 : vector<1x8x512xf32> to vector<8x512xf32>
    %440 = arith.truncf %436 : vector<8x128xf32> to vector<8x128xbf16>
    %c0_184 = arith.constant 0 : index
    %c0_185 = arith.constant 0 : index
    %441 = vector.load %arg5[%c0_184, %c0_185] : memref<128x512xbf16, #tpu.memory_space<vmem>>, vector<128x512xbf16>
    %cst_186 = arith.constant dense<0.000000e+00> : vector<8x512xf32>
    %442 = tpu.matmul %440, %441, %cst_186 {dimension_numbers = #tpu.dot_dimension_numbers<[1], [0], [0], [1], [0, 0, 1, 1], [], []>} : vector<8x128xbf16>, vector<128x512xbf16>, vector<8x512xf32> -> vector<8x512xf32>
    %443 = arith.addf %439, %442 : vector<8x512xf32>
    %444 = vector.extract_strided_slice %443 {offsets = [0, 0], sizes = [8, 128], strides = [1, 1]} : vector<8x512xf32> to vector<8x128xf32>
    %cst_187 = arith.constant 5.000000e-01 : f32
    %445 = vector.broadcast %cst_187 : f32 to vector<8x128xf32>
    %446 = arith.mulf %445, %444 : vector<8x128xf32>
    %447 = math.tanh %446 : vector<8x128xf32>
    %cst_188 = arith.constant 5.000000e-01 : f32
    %448 = vector.broadcast %cst_188 : f32 to vector<8x128xf32>
    %449 = arith.mulf %448, %447 : vector<8x128xf32>
    %cst_189 = arith.constant 5.000000e-01 : f32
    %450 = vector.broadcast %cst_189 : f32 to vector<8x128xf32>
    %451 = arith.addf %449, %450 : vector<8x128xf32>
    %452 = vector.extract_strided_slice %443 {offsets = [0, 128], sizes = [8, 128], strides = [1, 1]} : vector<8x512xf32> to vector<8x128xf32>
    %cst_190 = arith.constant 5.000000e-01 : f32
    %453 = vector.broadcast %cst_190 : f32 to vector<8x128xf32>
    %454 = arith.mulf %453, %452 : vector<8x128xf32>
    %455 = math.tanh %454 : vector<8x128xf32>
    %cst_191 = arith.constant 5.000000e-01 : f32
    %456 = vector.broadcast %cst_191 : f32 to vector<8x128xf32>
    %457 = arith.mulf %456, %455 : vector<8x128xf32>
    %cst_192 = arith.constant 5.000000e-01 : f32
    %458 = vector.broadcast %cst_192 : f32 to vector<8x128xf32>
    %459 = arith.addf %457, %458 : vector<8x128xf32>
    %460 = vector.extract_strided_slice %443 {offsets = [0, 256], sizes = [8, 128], strides = [1, 1]} : vector<8x512xf32> to vector<8x128xf32>
    %461 = math.tanh %460 : vector<8x128xf32>
    %462 = vector.extract_strided_slice %443 {offsets = [0, 384], sizes = [8, 128], strides = [1, 1]} : vector<8x512xf32> to vector<8x128xf32>
    %cst_193 = arith.constant 5.000000e-01 : f32
    %463 = vector.broadcast %cst_193 : f32 to vector<8x128xf32>
    %464 = arith.mulf %463, %462 : vector<8x128xf32>
    %465 = math.tanh %464 : vector<8x128xf32>
    %cst_194 = arith.constant 5.000000e-01 : f32
    %466 = vector.broadcast %cst_194 : f32 to vector<8x128xf32>
    %467 = arith.mulf %466, %465 : vector<8x128xf32>
    %cst_195 = arith.constant 5.000000e-01 : f32
    %468 = vector.broadcast %cst_195 : f32 to vector<8x128xf32>
    %469 = arith.addf %467, %468 : vector<8x128xf32>
    %470 = arith.mulf %459, %434 : vector<8x128xf32>
    %471 = arith.mulf %451, %461 : vector<8x128xf32>
    %472 = arith.addf %470, %471 : vector<8x128xf32>
    %473 = math.tanh %472 : vector<8x128xf32>
    %474 = arith.mulf %469, %473 : vector<8x128xf32>
    %c3_i32_196 = arith.constant 3 : i32
    %475 = arith.index_cast %c3_i32_196 : i32 to index
    %c0_197 = arith.constant 0 : index
    %c0_198 = arith.constant 0 : index
    %476 = vector.load %arg17[%475, %c0_197, %c0_198] : memref<8x8x512xf32, #tpu.memory_space<vmem>>, vector<1x8x512xf32>
    %477 = vector.shape_cast %476 : vector<1x8x512xf32> to vector<8x512xf32>
    %478 = arith.truncf %474 : vector<8x128xf32> to vector<8x128xbf16>
    %c0_199 = arith.constant 0 : index
    %c0_200 = arith.constant 0 : index
    %479 = vector.load %arg5[%c0_199, %c0_200] : memref<128x512xbf16, #tpu.memory_space<vmem>>, vector<128x512xbf16>
    %cst_201 = arith.constant dense<0.000000e+00> : vector<8x512xf32>
    %480 = tpu.matmul %478, %479, %cst_201 {dimension_numbers = #tpu.dot_dimension_numbers<[1], [0], [0], [1], [0, 0, 1, 1], [], []>} : vector<8x128xbf16>, vector<128x512xbf16>, vector<8x512xf32> -> vector<8x512xf32>
    %481 = arith.addf %477, %480 : vector<8x512xf32>
    %482 = vector.extract_strided_slice %481 {offsets = [0, 0], sizes = [8, 128], strides = [1, 1]} : vector<8x512xf32> to vector<8x128xf32>
    %cst_202 = arith.constant 5.000000e-01 : f32
    %483 = vector.broadcast %cst_202 : f32 to vector<8x128xf32>
    %484 = arith.mulf %483, %482 : vector<8x128xf32>
    %485 = math.tanh %484 : vector<8x128xf32>
    %cst_203 = arith.constant 5.000000e-01 : f32
    %486 = vector.broadcast %cst_203 : f32 to vector<8x128xf32>
    %487 = arith.mulf %486, %485 : vector<8x128xf32>
    %cst_204 = arith.constant 5.000000e-01 : f32
    %488 = vector.broadcast %cst_204 : f32 to vector<8x128xf32>
    %489 = arith.addf %487, %488 : vector<8x128xf32>
    %490 = vector.extract_strided_slice %481 {offsets = [0, 128], sizes = [8, 128], strides = [1, 1]} : vector<8x512xf32> to vector<8x128xf32>
    %cst_205 = arith.constant 5.000000e-01 : f32
    %491 = vector.broadcast %cst_205 : f32 to vector<8x128xf32>
    %492 = arith.mulf %491, %490 : vector<8x128xf32>
    %493 = math.tanh %492 : vector<8x128xf32>
    %cst_206 = arith.constant 5.000000e-01 : f32
    %494 = vector.broadcast %cst_206 : f32 to vector<8x128xf32>
    %495 = arith.mulf %494, %493 : vector<8x128xf32>
    %cst_207 = arith.constant 5.000000e-01 : f32
    %496 = vector.broadcast %cst_207 : f32 to vector<8x128xf32>
    %497 = arith.addf %495, %496 : vector<8x128xf32>
    %498 = vector.extract_strided_slice %481 {offsets = [0, 256], sizes = [8, 128], strides = [1, 1]} : vector<8x512xf32> to vector<8x128xf32>
    %499 = math.tanh %498 : vector<8x128xf32>
    %500 = vector.extract_strided_slice %481 {offsets = [0, 384], sizes = [8, 128], strides = [1, 1]} : vector<8x512xf32> to vector<8x128xf32>
    %cst_208 = arith.constant 5.000000e-01 : f32
    %501 = vector.broadcast %cst_208 : f32 to vector<8x128xf32>
    %502 = arith.mulf %501, %500 : vector<8x128xf32>
    %503 = math.tanh %502 : vector<8x128xf32>
    %cst_209 = arith.constant 5.000000e-01 : f32
    %504 = vector.broadcast %cst_209 : f32 to vector<8x128xf32>
    %505 = arith.mulf %504, %503 : vector<8x128xf32>
    %cst_210 = arith.constant 5.000000e-01 : f32
    %506 = vector.broadcast %cst_210 : f32 to vector<8x128xf32>
    %507 = arith.addf %505, %506 : vector<8x128xf32>
    %508 = arith.mulf %497, %472 : vector<8x128xf32>
    %509 = arith.mulf %489, %499 : vector<8x128xf32>
    %510 = arith.addf %508, %509 : vector<8x128xf32>
    %511 = math.tanh %510 : vector<8x128xf32>
    %512 = arith.mulf %507, %511 : vector<8x128xf32>
    %c4_i32_211 = arith.constant 4 : i32
    %513 = arith.index_cast %c4_i32_211 : i32 to index
    %c0_212 = arith.constant 0 : index
    %c0_213 = arith.constant 0 : index
    %514 = vector.load %arg17[%513, %c0_212, %c0_213] : memref<8x8x512xf32, #tpu.memory_space<vmem>>, vector<1x8x512xf32>
    %515 = vector.shape_cast %514 : vector<1x8x512xf32> to vector<8x512xf32>
    %516 = arith.truncf %512 : vector<8x128xf32> to vector<8x128xbf16>
    %c0_214 = arith.constant 0 : index
    %c0_215 = arith.constant 0 : index
    %517 = vector.load %arg5[%c0_214, %c0_215] : memref<128x512xbf16, #tpu.memory_space<vmem>>, vector<128x512xbf16>
    %cst_216 = arith.constant dense<0.000000e+00> : vector<8x512xf32>
    %518 = tpu.matmul %516, %517, %cst_216 {dimension_numbers = #tpu.dot_dimension_numbers<[1], [0], [0], [1], [0, 0, 1, 1], [], []>} : vector<8x128xbf16>, vector<128x512xbf16>, vector<8x512xf32> -> vector<8x512xf32>
    %519 = arith.addf %515, %518 : vector<8x512xf32>
    %520 = vector.extract_strided_slice %519 {offsets = [0, 0], sizes = [8, 128], strides = [1, 1]} : vector<8x512xf32> to vector<8x128xf32>
    %cst_217 = arith.constant 5.000000e-01 : f32
    %521 = vector.broadcast %cst_217 : f32 to vector<8x128xf32>
    %522 = arith.mulf %521, %520 : vector<8x128xf32>
    %523 = math.tanh %522 : vector<8x128xf32>
    %cst_218 = arith.constant 5.000000e-01 : f32
    %524 = vector.broadcast %cst_218 : f32 to vector<8x128xf32>
    %525 = arith.mulf %524, %523 : vector<8x128xf32>
    %cst_219 = arith.constant 5.000000e-01 : f32
    %526 = vector.broadcast %cst_219 : f32 to vector<8x128xf32>
    %527 = arith.addf %525, %526 : vector<8x128xf32>
    %528 = vector.extract_strided_slice %519 {offsets = [0, 128], sizes = [8, 128], strides = [1, 1]} : vector<8x512xf32> to vector<8x128xf32>
    %cst_220 = arith.constant 5.000000e-01 : f32
    %529 = vector.broadcast %cst_220 : f32 to vector<8x128xf32>
    %530 = arith.mulf %529, %528 : vector<8x128xf32>
    %531 = math.tanh %530 : vector<8x128xf32>
    %cst_221 = arith.constant 5.000000e-01 : f32
    %532 = vector.broadcast %cst_221 : f32 to vector<8x128xf32>
    %533 = arith.mulf %532, %531 : vector<8x128xf32>
    %cst_222 = arith.constant 5.000000e-01 : f32
    %534 = vector.broadcast %cst_222 : f32 to vector<8x128xf32>
    %535 = arith.addf %533, %534 : vector<8x128xf32>
    %536 = vector.extract_strided_slice %519 {offsets = [0, 256], sizes = [8, 128], strides = [1, 1]} : vector<8x512xf32> to vector<8x128xf32>
    %537 = math.tanh %536 : vector<8x128xf32>
    %538 = vector.extract_strided_slice %519 {offsets = [0, 384], sizes = [8, 128], strides = [1, 1]} : vector<8x512xf32> to vector<8x128xf32>
    %cst_223 = arith.constant 5.000000e-01 : f32
    %539 = vector.broadcast %cst_223 : f32 to vector<8x128xf32>
    %540 = arith.mulf %539, %538 : vector<8x128xf32>
    %541 = math.tanh %540 : vector<8x128xf32>
    %cst_224 = arith.constant 5.000000e-01 : f32
    %542 = vector.broadcast %cst_224 : f32 to vector<8x128xf32>
    %543 = arith.mulf %542, %541 : vector<8x128xf32>
    %cst_225 = arith.constant 5.000000e-01 : f32
    %544 = vector.broadcast %cst_225 : f32 to vector<8x128xf32>
    %545 = arith.addf %543, %544 : vector<8x128xf32>
    %546 = arith.mulf %535, %510 : vector<8x128xf32>
    %547 = arith.mulf %527, %537 : vector<8x128xf32>
    %548 = arith.addf %546, %547 : vector<8x128xf32>
    %549 = math.tanh %548 : vector<8x128xf32>
    %550 = arith.mulf %545, %549 : vector<8x128xf32>
    %c5_i32_226 = arith.constant 5 : i32
    %551 = arith.index_cast %c5_i32_226 : i32 to index
    %c0_227 = arith.constant 0 : index
    %c0_228 = arith.constant 0 : index
    %552 = vector.load %arg17[%551, %c0_227, %c0_228] : memref<8x8x512xf32, #tpu.memory_space<vmem>>, vector<1x8x512xf32>
    %553 = vector.shape_cast %552 : vector<1x8x512xf32> to vector<8x512xf32>
    %554 = arith.truncf %550 : vector<8x128xf32> to vector<8x128xbf16>
    %c0_229 = arith.constant 0 : index
    %c0_230 = arith.constant 0 : index
    %555 = vector.load %arg5[%c0_229, %c0_230] : memref<128x512xbf16, #tpu.memory_space<vmem>>, vector<128x512xbf16>
    %cst_231 = arith.constant dense<0.000000e+00> : vector<8x512xf32>
    %556 = tpu.matmul %554, %555, %cst_231 {dimension_numbers = #tpu.dot_dimension_numbers<[1], [0], [0], [1], [0, 0, 1, 1], [], []>} : vector<8x128xbf16>, vector<128x512xbf16>, vector<8x512xf32> -> vector<8x512xf32>
    %557 = arith.addf %553, %556 : vector<8x512xf32>
    %558 = vector.extract_strided_slice %557 {offsets = [0, 0], sizes = [8, 128], strides = [1, 1]} : vector<8x512xf32> to vector<8x128xf32>
    %cst_232 = arith.constant 5.000000e-01 : f32
    %559 = vector.broadcast %cst_232 : f32 to vector<8x128xf32>
    %560 = arith.mulf %559, %558 : vector<8x128xf32>
    %561 = math.tanh %560 : vector<8x128xf32>
    %cst_233 = arith.constant 5.000000e-01 : f32
    %562 = vector.broadcast %cst_233 : f32 to vector<8x128xf32>
    %563 = arith.mulf %562, %561 : vector<8x128xf32>
    %cst_234 = arith.constant 5.000000e-01 : f32
    %564 = vector.broadcast %cst_234 : f32 to vector<8x128xf32>
    %565 = arith.addf %563, %564 : vector<8x128xf32>
    %566 = vector.extract_strided_slice %557 {offsets = [0, 128], sizes = [8, 128], strides = [1, 1]} : vector<8x512xf32> to vector<8x128xf32>
    %cst_235 = arith.constant 5.000000e-01 : f32
    %567 = vector.broadcast %cst_235 : f32 to vector<8x128xf32>
    %568 = arith.mulf %567, %566 : vector<8x128xf32>
    %569 = math.tanh %568 : vector<8x128xf32>
    %cst_236 = arith.constant 5.000000e-01 : f32
    %570 = vector.broadcast %cst_236 : f32 to vector<8x128xf32>
    %571 = arith.mulf %570, %569 : vector<8x128xf32>
    %cst_237 = arith.constant 5.000000e-01 : f32
    %572 = vector.broadcast %cst_237 : f32 to vector<8x128xf32>
    %573 = arith.addf %571, %572 : vector<8x128xf32>
    %574 = vector.extract_strided_slice %557 {offsets = [0, 256], sizes = [8, 128], strides = [1, 1]} : vector<8x512xf32> to vector<8x128xf32>
    %575 = math.tanh %574 : vector<8x128xf32>
    %576 = vector.extract_strided_slice %557 {offsets = [0, 384], sizes = [8, 128], strides = [1, 1]} : vector<8x512xf32> to vector<8x128xf32>
    %cst_238 = arith.constant 5.000000e-01 : f32
    %577 = vector.broadcast %cst_238 : f32 to vector<8x128xf32>
    %578 = arith.mulf %577, %576 : vector<8x128xf32>
    %579 = math.tanh %578 : vector<8x128xf32>
    %cst_239 = arith.constant 5.000000e-01 : f32
    %580 = vector.broadcast %cst_239 : f32 to vector<8x128xf32>
    %581 = arith.mulf %580, %579 : vector<8x128xf32>
    %cst_240 = arith.constant 5.000000e-01 : f32
    %582 = vector.broadcast %cst_240 : f32 to vector<8x128xf32>
    %583 = arith.addf %581, %582 : vector<8x128xf32>
    %584 = arith.mulf %573, %548 : vector<8x128xf32>
    %585 = arith.mulf %565, %575 : vector<8x128xf32>
    %586 = arith.addf %584, %585 : vector<8x128xf32>
    %587 = math.tanh %586 : vector<8x128xf32>
    %588 = arith.mulf %583, %587 : vector<8x128xf32>
    %c6_i32_241 = arith.constant 6 : i32
    %589 = arith.index_cast %c6_i32_241 : i32 to index
    %c0_242 = arith.constant 0 : index
    %c0_243 = arith.constant 0 : index
    %590 = vector.load %arg17[%589, %c0_242, %c0_243] : memref<8x8x512xf32, #tpu.memory_space<vmem>>, vector<1x8x512xf32>
    %591 = vector.shape_cast %590 : vector<1x8x512xf32> to vector<8x512xf32>
    %592 = arith.truncf %588 : vector<8x128xf32> to vector<8x128xbf16>
    %c0_244 = arith.constant 0 : index
    %c0_245 = arith.constant 0 : index
    %593 = vector.load %arg5[%c0_244, %c0_245] : memref<128x512xbf16, #tpu.memory_space<vmem>>, vector<128x512xbf16>
    %cst_246 = arith.constant dense<0.000000e+00> : vector<8x512xf32>
    %594 = tpu.matmul %592, %593, %cst_246 {dimension_numbers = #tpu.dot_dimension_numbers<[1], [0], [0], [1], [0, 0, 1, 1], [], []>} : vector<8x128xbf16>, vector<128x512xbf16>, vector<8x512xf32> -> vector<8x512xf32>
    %595 = arith.addf %591, %594 : vector<8x512xf32>
    %596 = vector.extract_strided_slice %595 {offsets = [0, 0], sizes = [8, 128], strides = [1, 1]} : vector<8x512xf32> to vector<8x128xf32>
    %cst_247 = arith.constant 5.000000e-01 : f32
    %597 = vector.broadcast %cst_247 : f32 to vector<8x128xf32>
    %598 = arith.mulf %597, %596 : vector<8x128xf32>
    %599 = math.tanh %598 : vector<8x128xf32>
    %cst_248 = arith.constant 5.000000e-01 : f32
    %600 = vector.broadcast %cst_248 : f32 to vector<8x128xf32>
    %601 = arith.mulf %600, %599 : vector<8x128xf32>
    %cst_249 = arith.constant 5.000000e-01 : f32
    %602 = vector.broadcast %cst_249 : f32 to vector<8x128xf32>
    %603 = arith.addf %601, %602 : vector<8x128xf32>
    %604 = vector.extract_strided_slice %595 {offsets = [0, 128], sizes = [8, 128], strides = [1, 1]} : vector<8x512xf32> to vector<8x128xf32>
    %cst_250 = arith.constant 5.000000e-01 : f32
    %605 = vector.broadcast %cst_250 : f32 to vector<8x128xf32>
    %606 = arith.mulf %605, %604 : vector<8x128xf32>
    %607 = math.tanh %606 : vector<8x128xf32>
    %cst_251 = arith.constant 5.000000e-01 : f32
    %608 = vector.broadcast %cst_251 : f32 to vector<8x128xf32>
    %609 = arith.mulf %608, %607 : vector<8x128xf32>
    %cst_252 = arith.constant 5.000000e-01 : f32
    %610 = vector.broadcast %cst_252 : f32 to vector<8x128xf32>
    %611 = arith.addf %609, %610 : vector<8x128xf32>
    %612 = vector.extract_strided_slice %595 {offsets = [0, 256], sizes = [8, 128], strides = [1, 1]} : vector<8x512xf32> to vector<8x128xf32>
    %613 = math.tanh %612 : vector<8x128xf32>
    %614 = vector.extract_strided_slice %595 {offsets = [0, 384], sizes = [8, 128], strides = [1, 1]} : vector<8x512xf32> to vector<8x128xf32>
    %cst_253 = arith.constant 5.000000e-01 : f32
    %615 = vector.broadcast %cst_253 : f32 to vector<8x128xf32>
    %616 = arith.mulf %615, %614 : vector<8x128xf32>
    %617 = math.tanh %616 : vector<8x128xf32>
    %cst_254 = arith.constant 5.000000e-01 : f32
    %618 = vector.broadcast %cst_254 : f32 to vector<8x128xf32>
    %619 = arith.mulf %618, %617 : vector<8x128xf32>
    %cst_255 = arith.constant 5.000000e-01 : f32
    %620 = vector.broadcast %cst_255 : f32 to vector<8x128xf32>
    %621 = arith.addf %619, %620 : vector<8x128xf32>
    %622 = arith.mulf %611, %586 : vector<8x128xf32>
    %623 = arith.mulf %603, %613 : vector<8x128xf32>
    %624 = arith.addf %622, %623 : vector<8x128xf32>
    %625 = math.tanh %624 : vector<8x128xf32>
    %626 = arith.mulf %621, %625 : vector<8x128xf32>
    %c7_i32_256 = arith.constant 7 : i32
    %627 = arith.index_cast %c7_i32_256 : i32 to index
    %c0_257 = arith.constant 0 : index
    %c0_258 = arith.constant 0 : index
    %628 = vector.load %arg17[%627, %c0_257, %c0_258] : memref<8x8x512xf32, #tpu.memory_space<vmem>>, vector<1x8x512xf32>
    %629 = vector.shape_cast %628 : vector<1x8x512xf32> to vector<8x512xf32>
    %630 = arith.truncf %626 : vector<8x128xf32> to vector<8x128xbf16>
    %c0_259 = arith.constant 0 : index
    %c0_260 = arith.constant 0 : index
    %631 = vector.load %arg5[%c0_259, %c0_260] : memref<128x512xbf16, #tpu.memory_space<vmem>>, vector<128x512xbf16>
    %cst_261 = arith.constant dense<0.000000e+00> : vector<8x512xf32>
    %632 = tpu.matmul %630, %631, %cst_261 {dimension_numbers = #tpu.dot_dimension_numbers<[1], [0], [0], [1], [0, 0, 1, 1], [], []>} : vector<8x128xbf16>, vector<128x512xbf16>, vector<8x512xf32> -> vector<8x512xf32>
    %633 = arith.addf %629, %632 : vector<8x512xf32>
    %634 = vector.extract_strided_slice %633 {offsets = [0, 0], sizes = [8, 128], strides = [1, 1]} : vector<8x512xf32> to vector<8x128xf32>
    %cst_262 = arith.constant 5.000000e-01 : f32
    %635 = vector.broadcast %cst_262 : f32 to vector<8x128xf32>
    %636 = arith.mulf %635, %634 : vector<8x128xf32>
    %637 = math.tanh %636 : vector<8x128xf32>
    %cst_263 = arith.constant 5.000000e-01 : f32
    %638 = vector.broadcast %cst_263 : f32 to vector<8x128xf32>
    %639 = arith.mulf %638, %637 : vector<8x128xf32>
    %cst_264 = arith.constant 5.000000e-01 : f32
    %640 = vector.broadcast %cst_264 : f32 to vector<8x128xf32>
    %641 = arith.addf %639, %640 : vector<8x128xf32>
    %642 = vector.extract_strided_slice %633 {offsets = [0, 128], sizes = [8, 128], strides = [1, 1]} : vector<8x512xf32> to vector<8x128xf32>
    %cst_265 = arith.constant 5.000000e-01 : f32
    %643 = vector.broadcast %cst_265 : f32 to vector<8x128xf32>
    %644 = arith.mulf %643, %642 : vector<8x128xf32>
    %645 = math.tanh %644 : vector<8x128xf32>
    %cst_266 = arith.constant 5.000000e-01 : f32
    %646 = vector.broadcast %cst_266 : f32 to vector<8x128xf32>
    %647 = arith.mulf %646, %645 : vector<8x128xf32>
    %cst_267 = arith.constant 5.000000e-01 : f32
    %648 = vector.broadcast %cst_267 : f32 to vector<8x128xf32>
    %649 = arith.addf %647, %648 : vector<8x128xf32>
    %650 = vector.extract_strided_slice %633 {offsets = [0, 256], sizes = [8, 128], strides = [1, 1]} : vector<8x512xf32> to vector<8x128xf32>
    %651 = math.tanh %650 : vector<8x128xf32>
    %652 = vector.extract_strided_slice %633 {offsets = [0, 384], sizes = [8, 128], strides = [1, 1]} : vector<8x512xf32> to vector<8x128xf32>
    %cst_268 = arith.constant 5.000000e-01 : f32
    %653 = vector.broadcast %cst_268 : f32 to vector<8x128xf32>
    %654 = arith.mulf %653, %652 : vector<8x128xf32>
    %655 = math.tanh %654 : vector<8x128xf32>
    %cst_269 = arith.constant 5.000000e-01 : f32
    %656 = vector.broadcast %cst_269 : f32 to vector<8x128xf32>
    %657 = arith.mulf %656, %655 : vector<8x128xf32>
    %cst_270 = arith.constant 5.000000e-01 : f32
    %658 = vector.broadcast %cst_270 : f32 to vector<8x128xf32>
    %659 = arith.addf %657, %658 : vector<8x128xf32>
    %660 = arith.mulf %649, %624 : vector<8x128xf32>
    %661 = arith.mulf %641, %651 : vector<8x128xf32>
    %662 = arith.addf %660, %661 : vector<8x128xf32>
    %663 = math.tanh %662 : vector<8x128xf32>
    %664 = arith.mulf %659, %663 : vector<8x128xf32>
    %c8_i32_271 = arith.constant 8 : i32
    %665 = arith.truncf %664 : vector<8x128xf32> to vector<8x128xbf16>
    %c0_272 = arith.constant 0 : index
    %c0_273 = arith.constant 0 : index
    %666 = vector.load %arg7[%c0_272, %c0_273] : memref<128x512xbf16, #tpu.memory_space<vmem>>, vector<128x512xbf16>
    %cst_274 = arith.constant dense<0.000000e+00> : vector<8x512xf32>
    %667 = tpu.matmul %665, %666, %cst_274 {dimension_numbers = #tpu.dot_dimension_numbers<[1], [0], [0], [1], [0, 0, 1, 1], [], []>} : vector<8x128xbf16>, vector<128x512xbf16>, vector<8x512xf32> -> vector<8x512xf32>
    %c0_275 = arith.constant 0 : index
    %c0_276 = arith.constant 0 : index
    %668 = vector.load %arg9[%c0_275, %c0_276] : memref<1x512xf32, #tpu.memory_space<vmem>>, vector<1x512xf32>
    %669 = vector.broadcast %668 : vector<1x512xf32> to vector<8x512xf32>
    %670 = arith.addf %667, %669 : vector<8x512xf32>
    %cst_277 = arith.constant 0.000000e+00 : f32
    %671 = vector.broadcast %cst_277 : f32 to vector<8x128xf32>
    %cst_278 = arith.constant 0.000000e+00 : f32
    %672 = vector.broadcast %cst_278 : f32 to vector<8x128xf32>
    %c0_i32_279 = arith.constant 0 : i32
    %673 = arith.truncf %671 : vector<8x128xf32> to vector<8x128xbf16>
    %c0_280 = arith.constant 0 : index
    %c0_281 = arith.constant 0 : index
    %674 = vector.load %arg8[%c0_280, %c0_281] : memref<128x512xbf16, #tpu.memory_space<vmem>>, vector<128x512xbf16>
    %cst_282 = arith.constant dense<0.000000e+00> : vector<8x512xf32>
    %675 = tpu.matmul %673, %674, %cst_282 {dimension_numbers = #tpu.dot_dimension_numbers<[1], [0], [0], [1], [0, 0, 1, 1], [], []>} : vector<8x128xbf16>, vector<128x512xbf16>, vector<8x512xf32> -> vector<8x512xf32>
    %676 = arith.addf %670, %675 : vector<8x512xf32>
    %677 = vector.extract_strided_slice %676 {offsets = [0, 0], sizes = [8, 128], strides = [1, 1]} : vector<8x512xf32> to vector<8x128xf32>
    %cst_283 = arith.constant 5.000000e-01 : f32
    %678 = vector.broadcast %cst_283 : f32 to vector<8x128xf32>
    %679 = arith.mulf %678, %677 : vector<8x128xf32>
    %680 = math.tanh %679 : vector<8x128xf32>
    %cst_284 = arith.constant 5.000000e-01 : f32
    %681 = vector.broadcast %cst_284 : f32 to vector<8x128xf32>
    %682 = arith.mulf %681, %680 : vector<8x128xf32>
    %cst_285 = arith.constant 5.000000e-01 : f32
    %683 = vector.broadcast %cst_285 : f32 to vector<8x128xf32>
    %684 = arith.addf %682, %683 : vector<8x128xf32>
    %685 = vector.extract_strided_slice %676 {offsets = [0, 128], sizes = [8, 128], strides = [1, 1]} : vector<8x512xf32> to vector<8x128xf32>
    %cst_286 = arith.constant 5.000000e-01 : f32
    %686 = vector.broadcast %cst_286 : f32 to vector<8x128xf32>
    %687 = arith.mulf %686, %685 : vector<8x128xf32>
    %688 = math.tanh %687 : vector<8x128xf32>
    %cst_287 = arith.constant 5.000000e-01 : f32
    %689 = vector.broadcast %cst_287 : f32 to vector<8x128xf32>
    %690 = arith.mulf %689, %688 : vector<8x128xf32>
    %cst_288 = arith.constant 5.000000e-01 : f32
    %691 = vector.broadcast %cst_288 : f32 to vector<8x128xf32>
    %692 = arith.addf %690, %691 : vector<8x128xf32>
    %693 = vector.extract_strided_slice %676 {offsets = [0, 256], sizes = [8, 128], strides = [1, 1]} : vector<8x512xf32> to vector<8x128xf32>
    %694 = math.tanh %693 : vector<8x128xf32>
    %695 = vector.extract_strided_slice %676 {offsets = [0, 384], sizes = [8, 128], strides = [1, 1]} : vector<8x512xf32> to vector<8x128xf32>
    %cst_289 = arith.constant 5.000000e-01 : f32
    %696 = vector.broadcast %cst_289 : f32 to vector<8x128xf32>
    %697 = arith.mulf %696, %695 : vector<8x128xf32>
    %698 = math.tanh %697 : vector<8x128xf32>
    %cst_290 = arith.constant 5.000000e-01 : f32
    %699 = vector.broadcast %cst_290 : f32 to vector<8x128xf32>
    %700 = arith.mulf %699, %698 : vector<8x128xf32>
    %cst_291 = arith.constant 5.000000e-01 : f32
    %701 = vector.broadcast %cst_291 : f32 to vector<8x128xf32>
    %702 = arith.addf %700, %701 : vector<8x128xf32>
    %703 = arith.mulf %692, %672 : vector<8x128xf32>
    %704 = arith.mulf %684, %694 : vector<8x128xf32>
    %705 = arith.addf %703, %704 : vector<8x128xf32>
    %706 = math.tanh %705 : vector<8x128xf32>
    %707 = arith.mulf %702, %706 : vector<8x128xf32>
    %708 = arith.index_cast %c0_i32_279 : i32 to index
    %c0_292 = arith.constant 0 : index
    %c0_293 = arith.constant 0 : index
    %709 = vector.load %arg19[%708, %c0_292, %c0_293] : memref<8x8x128xf32, #tpu.memory_space<vmem>>, vector<1x8x128xf32>
    %710 = vector.shape_cast %709 : vector<1x8x128xf32> to vector<8x128xf32>
    %711 = vector.shape_cast %707 : vector<8x128xf32> to vector<1x8x128xf32>
    tpu.vector_store %arg19[%708, %c0_292, %c0_293], %711 {strides = array<i32>} : memref<8x8x128xf32, #tpu.memory_space<vmem>>, vector<1x8x128xf32>,
    %c1_i32_294 = arith.constant 1 : i32
    %712 = arith.truncf %707 : vector<8x128xf32> to vector<8x128xbf16>
    %c0_295 = arith.constant 0 : index
    %c0_296 = arith.constant 0 : index
    %713 = vector.load %arg8[%c0_295, %c0_296] : memref<128x512xbf16, #tpu.memory_space<vmem>>, vector<128x512xbf16>
    %cst_297 = arith.constant dense<0.000000e+00> : vector<8x512xf32>
    %714 = tpu.matmul %712, %713, %cst_297 {dimension_numbers = #tpu.dot_dimension_numbers<[1], [0], [0], [1], [0, 0, 1, 1], [], []>} : vector<8x128xbf16>, vector<128x512xbf16>, vector<8x512xf32> -> vector<8x512xf32>
    %715 = arith.addf %670, %714 : vector<8x512xf32>
    %716 = vector.extract_strided_slice %715 {offsets = [0, 0], sizes = [8, 128], strides = [1, 1]} : vector<8x512xf32> to vector<8x128xf32>
    %cst_298 = arith.constant 5.000000e-01 : f32
    %717 = vector.broadcast %cst_298 : f32 to vector<8x128xf32>
    %718 = arith.mulf %717, %716 : vector<8x128xf32>
    %719 = math.tanh %718 : vector<8x128xf32>
    %cst_299 = arith.constant 5.000000e-01 : f32
    %720 = vector.broadcast %cst_299 : f32 to vector<8x128xf32>
    %721 = arith.mulf %720, %719 : vector<8x128xf32>
    %cst_300 = arith.constant 5.000000e-01 : f32
    %722 = vector.broadcast %cst_300 : f32 to vector<8x128xf32>
    %723 = arith.addf %721, %722 : vector<8x128xf32>
    %724 = vector.extract_strided_slice %715 {offsets = [0, 128], sizes = [8, 128], strides = [1, 1]} : vector<8x512xf32> to vector<8x128xf32>
    %cst_301 = arith.constant 5.000000e-01 : f32
    %725 = vector.broadcast %cst_301 : f32 to vector<8x128xf32>
    %726 = arith.mulf %725, %724 : vector<8x128xf32>
    %727 = math.tanh %726 : vector<8x128xf32>
    %cst_302 = arith.constant 5.000000e-01 : f32
    %728 = vector.broadcast %cst_302 : f32 to vector<8x128xf32>
    %729 = arith.mulf %728, %727 : vector<8x128xf32>
    %cst_303 = arith.constant 5.000000e-01 : f32
    %730 = vector.broadcast %cst_303 : f32 to vector<8x128xf32>
    %731 = arith.addf %729, %730 : vector<8x128xf32>
    %732 = vector.extract_strided_slice %715 {offsets = [0, 256], sizes = [8, 128], strides = [1, 1]} : vector<8x512xf32> to vector<8x128xf32>
    %733 = math.tanh %732 : vector<8x128xf32>
    %734 = vector.extract_strided_slice %715 {offsets = [0, 384], sizes = [8, 128], strides = [1, 1]} : vector<8x512xf32> to vector<8x128xf32>
    %cst_304 = arith.constant 5.000000e-01 : f32
    %735 = vector.broadcast %cst_304 : f32 to vector<8x128xf32>
    %736 = arith.mulf %735, %734 : vector<8x128xf32>
    %737 = math.tanh %736 : vector<8x128xf32>
    %cst_305 = arith.constant 5.000000e-01 : f32
    %738 = vector.broadcast %cst_305 : f32 to vector<8x128xf32>
    %739 = arith.mulf %738, %737 : vector<8x128xf32>
    %cst_306 = arith.constant 5.000000e-01 : f32
    %740 = vector.broadcast %cst_306 : f32 to vector<8x128xf32>
    %741 = arith.addf %739, %740 : vector<8x128xf32>
    %742 = arith.mulf %731, %705 : vector<8x128xf32>
    %743 = arith.mulf %723, %733 : vector<8x128xf32>
    %744 = arith.addf %742, %743 : vector<8x128xf32>
    %745 = math.tanh %744 : vector<8x128xf32>
    %746 = arith.mulf %741, %745 : vector<8x128xf32>
    %747 = arith.index_cast %c1_i32_294 : i32 to index
    %c0_307 = arith.constant 0 : index
    %c0_308 = arith.constant 0 : index
    %748 = vector.load %arg19[%747, %c0_307, %c0_308] : memref<8x8x128xf32, #tpu.memory_space<vmem>>, vector<1x8x128xf32>
    %749 = vector.shape_cast %748 : vector<1x8x128xf32> to vector<8x128xf32>
    %750 = vector.shape_cast %746 : vector<8x128xf32> to vector<1x8x128xf32>
    tpu.vector_store %arg19[%747, %c0_307, %c0_308], %750 {strides = array<i32>} : memref<8x8x128xf32, #tpu.memory_space<vmem>>, vector<1x8x128xf32>,
    %c2_i32_309 = arith.constant 2 : i32
    %751 = arith.truncf %746 : vector<8x128xf32> to vector<8x128xbf16>
    %c0_310 = arith.constant 0 : index
    %c0_311 = arith.constant 0 : index
    %752 = vector.load %arg8[%c0_310, %c0_311] : memref<128x512xbf16, #tpu.memory_space<vmem>>, vector<128x512xbf16>
    %cst_312 = arith.constant dense<0.000000e+00> : vector<8x512xf32>
    %753 = tpu.matmul %751, %752, %cst_312 {dimension_numbers = #tpu.dot_dimension_numbers<[1], [0], [0], [1], [0, 0, 1, 1], [], []>} : vector<8x128xbf16>, vector<128x512xbf16>, vector<8x512xf32> -> vector<8x512xf32>
    %754 = arith.addf %670, %753 : vector<8x512xf32>
    %755 = vector.extract_strided_slice %754 {offsets = [0, 0], sizes = [8, 128], strides = [1, 1]} : vector<8x512xf32> to vector<8x128xf32>
    %cst_313 = arith.constant 5.000000e-01 : f32
    %756 = vector.broadcast %cst_313 : f32 to vector<8x128xf32>
    %757 = arith.mulf %756, %755 : vector<8x128xf32>
    %758 = math.tanh %757 : vector<8x128xf32>
    %cst_314 = arith.constant 5.000000e-01 : f32
    %759 = vector.broadcast %cst_314 : f32 to vector<8x128xf32>
    %760 = arith.mulf %759, %758 : vector<8x128xf32>
    %cst_315 = arith.constant 5.000000e-01 : f32
    %761 = vector.broadcast %cst_315 : f32 to vector<8x128xf32>
    %762 = arith.addf %760, %761 : vector<8x128xf32>
    %763 = vector.extract_strided_slice %754 {offsets = [0, 128], sizes = [8, 128], strides = [1, 1]} : vector<8x512xf32> to vector<8x128xf32>
    %cst_316 = arith.constant 5.000000e-01 : f32
    %764 = vector.broadcast %cst_316 : f32 to vector<8x128xf32>
    %765 = arith.mulf %764, %763 : vector<8x128xf32>
    %766 = math.tanh %765 : vector<8x128xf32>
    %cst_317 = arith.constant 5.000000e-01 : f32
    %767 = vector.broadcast %cst_317 : f32 to vector<8x128xf32>
    %768 = arith.mulf %767, %766 : vector<8x128xf32>
    %cst_318 = arith.constant 5.000000e-01 : f32
    %769 = vector.broadcast %cst_318 : f32 to vector<8x128xf32>
    %770 = arith.addf %768, %769 : vector<8x128xf32>
    %771 = vector.extract_strided_slice %754 {offsets = [0, 256], sizes = [8, 128], strides = [1, 1]} : vector<8x512xf32> to vector<8x128xf32>
    %772 = math.tanh %771 : vector<8x128xf32>
    %773 = vector.extract_strided_slice %754 {offsets = [0, 384], sizes = [8, 128], strides = [1, 1]} : vector<8x512xf32> to vector<8x128xf32>
    %cst_319 = arith.constant 5.000000e-01 : f32
    %774 = vector.broadcast %cst_319 : f32 to vector<8x128xf32>
    %775 = arith.mulf %774, %773 : vector<8x128xf32>
    %776 = math.tanh %775 : vector<8x128xf32>
    %cst_320 = arith.constant 5.000000e-01 : f32
    %777 = vector.broadcast %cst_320 : f32 to vector<8x128xf32>
    %778 = arith.mulf %777, %776 : vector<8x128xf32>
    %cst_321 = arith.constant 5.000000e-01 : f32
    %779 = vector.broadcast %cst_321 : f32 to vector<8x128xf32>
    %780 = arith.addf %778, %779 : vector<8x128xf32>
    %781 = arith.mulf %770, %744 : vector<8x128xf32>
    %782 = arith.mulf %762, %772 : vector<8x128xf32>
    %783 = arith.addf %781, %782 : vector<8x128xf32>
    %784 = math.tanh %783 : vector<8x128xf32>
    %785 = arith.mulf %780, %784 : vector<8x128xf32>
    %786 = arith.index_cast %c2_i32_309 : i32 to index
    %c0_322 = arith.constant 0 : index
    %c0_323 = arith.constant 0 : index
    %787 = vector.load %arg19[%786, %c0_322, %c0_323] : memref<8x8x128xf32, #tpu.memory_space<vmem>>, vector<1x8x128xf32>
    %788 = vector.shape_cast %787 : vector<1x8x128xf32> to vector<8x128xf32>
    %789 = vector.shape_cast %785 : vector<8x128xf32> to vector<1x8x128xf32>
    tpu.vector_store %arg19[%786, %c0_322, %c0_323], %789 {strides = array<i32>} : memref<8x8x128xf32, #tpu.memory_space<vmem>>, vector<1x8x128xf32>,
    %c3_i32_324 = arith.constant 3 : i32
    %790 = arith.truncf %785 : vector<8x128xf32> to vector<8x128xbf16>
    %c0_325 = arith.constant 0 : index
    %c0_326 = arith.constant 0 : index
    %791 = vector.load %arg8[%c0_325, %c0_326] : memref<128x512xbf16, #tpu.memory_space<vmem>>, vector<128x512xbf16>
    %cst_327 = arith.constant dense<0.000000e+00> : vector<8x512xf32>
    %792 = tpu.matmul %790, %791, %cst_327 {dimension_numbers = #tpu.dot_dimension_numbers<[1], [0], [0], [1], [0, 0, 1, 1], [], []>} : vector<8x128xbf16>, vector<128x512xbf16>, vector<8x512xf32> -> vector<8x512xf32>
    %793 = arith.addf %670, %792 : vector<8x512xf32>
    %794 = vector.extract_strided_slice %793 {offsets = [0, 0], sizes = [8, 128], strides = [1, 1]} : vector<8x512xf32> to vector<8x128xf32>
    %cst_328 = arith.constant 5.000000e-01 : f32
    %795 = vector.broadcast %cst_328 : f32 to vector<8x128xf32>
    %796 = arith.mulf %795, %794 : vector<8x128xf32>
    %797 = math.tanh %796 : vector<8x128xf32>
    %cst_329 = arith.constant 5.000000e-01 : f32
    %798 = vector.broadcast %cst_329 : f32 to vector<8x128xf32>
    %799 = arith.mulf %798, %797 : vector<8x128xf32>
    %cst_330 = arith.constant 5.000000e-01 : f32
    %800 = vector.broadcast %cst_330 : f32 to vector<8x128xf32>
    %801 = arith.addf %799, %800 : vector<8x128xf32>
    %802 = vector.extract_strided_slice %793 {offsets = [0, 128], sizes = [8, 128], strides = [1, 1]} : vector<8x512xf32> to vector<8x128xf32>
    %cst_331 = arith.constant 5.000000e-01 : f32
    %803 = vector.broadcast %cst_331 : f32 to vector<8x128xf32>
    %804 = arith.mulf %803, %802 : vector<8x128xf32>
    %805 = math.tanh %804 : vector<8x128xf32>
    %cst_332 = arith.constant 5.000000e-01 : f32
    %806 = vector.broadcast %cst_332 : f32 to vector<8x128xf32>
    %807 = arith.mulf %806, %805 : vector<8x128xf32>
    %cst_333 = arith.constant 5.000000e-01 : f32
    %808 = vector.broadcast %cst_333 : f32 to vector<8x128xf32>
    %809 = arith.addf %807, %808 : vector<8x128xf32>
    %810 = vector.extract_strided_slice %793 {offsets = [0, 256], sizes = [8, 128], strides = [1, 1]} : vector<8x512xf32> to vector<8x128xf32>
    %811 = math.tanh %810 : vector<8x128xf32>
    %812 = vector.extract_strided_slice %793 {offsets = [0, 384], sizes = [8, 128], strides = [1, 1]} : vector<8x512xf32> to vector<8x128xf32>
    %cst_334 = arith.constant 5.000000e-01 : f32
    %813 = vector.broadcast %cst_334 : f32 to vector<8x128xf32>
    %814 = arith.mulf %813, %812 : vector<8x128xf32>
    %815 = math.tanh %814 : vector<8x128xf32>
    %cst_335 = arith.constant 5.000000e-01 : f32
    %816 = vector.broadcast %cst_335 : f32 to vector<8x128xf32>
    %817 = arith.mulf %816, %815 : vector<8x128xf32>
    %cst_336 = arith.constant 5.000000e-01 : f32
    %818 = vector.broadcast %cst_336 : f32 to vector<8x128xf32>
    %819 = arith.addf %817, %818 : vector<8x128xf32>
    %820 = arith.mulf %809, %783 : vector<8x128xf32>
    %821 = arith.mulf %801, %811 : vector<8x128xf32>
    %822 = arith.addf %820, %821 : vector<8x128xf32>
    %823 = math.tanh %822 : vector<8x128xf32>
    %824 = arith.mulf %819, %823 : vector<8x128xf32>
    %825 = arith.index_cast %c3_i32_324 : i32 to index
    %c0_337 = arith.constant 0 : index
    %c0_338 = arith.constant 0 : index
    %826 = vector.load %arg19[%825, %c0_337, %c0_338] : memref<8x8x128xf32, #tpu.memory_space<vmem>>, vector<1x8x128xf32>
    %827 = vector.shape_cast %826 : vector<1x8x128xf32> to vector<8x128xf32>
    %828 = vector.shape_cast %824 : vector<8x128xf32> to vector<1x8x128xf32>
    tpu.vector_store %arg19[%825, %c0_337, %c0_338], %828 {strides = array<i32>} : memref<8x8x128xf32, #tpu.memory_space<vmem>>, vector<1x8x128xf32>,
    %c4_i32_339 = arith.constant 4 : i32
    %829 = arith.truncf %824 : vector<8x128xf32> to vector<8x128xbf16>
    %c0_340 = arith.constant 0 : index
    %c0_341 = arith.constant 0 : index
    %830 = vector.load %arg8[%c0_340, %c0_341] : memref<128x512xbf16, #tpu.memory_space<vmem>>, vector<128x512xbf16>
    %cst_342 = arith.constant dense<0.000000e+00> : vector<8x512xf32>
    %831 = tpu.matmul %829, %830, %cst_342 {dimension_numbers = #tpu.dot_dimension_numbers<[1], [0], [0], [1], [0, 0, 1, 1], [], []>} : vector<8x128xbf16>, vector<128x512xbf16>, vector<8x512xf32> -> vector<8x512xf32>
    %832 = arith.addf %670, %831 : vector<8x512xf32>
    %833 = vector.extract_strided_slice %832 {offsets = [0, 0], sizes = [8, 128], strides = [1, 1]} : vector<8x512xf32> to vector<8x128xf32>
    %cst_343 = arith.constant 5.000000e-01 : f32
    %834 = vector.broadcast %cst_343 : f32 to vector<8x128xf32>
    %835 = arith.mulf %834, %833 : vector<8x128xf32>
    %836 = math.tanh %835 : vector<8x128xf32>
    %cst_344 = arith.constant 5.000000e-01 : f32
    %837 = vector.broadcast %cst_344 : f32 to vector<8x128xf32>
    %838 = arith.mulf %837, %836 : vector<8x128xf32>
    %cst_345 = arith.constant 5.000000e-01 : f32
    %839 = vector.broadcast %cst_345 : f32 to vector<8x128xf32>
    %840 = arith.addf %838, %839 : vector<8x128xf32>
    %841 = vector.extract_strided_slice %832 {offsets = [0, 128], sizes = [8, 128], strides = [1, 1]} : vector<8x512xf32> to vector<8x128xf32>
    %cst_346 = arith.constant 5.000000e-01 : f32
    %842 = vector.broadcast %cst_346 : f32 to vector<8x128xf32>
    %843 = arith.mulf %842, %841 : vector<8x128xf32>
    %844 = math.tanh %843 : vector<8x128xf32>
    %cst_347 = arith.constant 5.000000e-01 : f32
    %845 = vector.broadcast %cst_347 : f32 to vector<8x128xf32>
    %846 = arith.mulf %845, %844 : vector<8x128xf32>
    %cst_348 = arith.constant 5.000000e-01 : f32
    %847 = vector.broadcast %cst_348 : f32 to vector<8x128xf32>
    %848 = arith.addf %846, %847 : vector<8x128xf32>
    %849 = vector.extract_strided_slice %832 {offsets = [0, 256], sizes = [8, 128], strides = [1, 1]} : vector<8x512xf32> to vector<8x128xf32>
    %850 = math.tanh %849 : vector<8x128xf32>
    %851 = vector.extract_strided_slice %832 {offsets = [0, 384], sizes = [8, 128], strides = [1, 1]} : vector<8x512xf32> to vector<8x128xf32>
    %cst_349 = arith.constant 5.000000e-01 : f32
    %852 = vector.broadcast %cst_349 : f32 to vector<8x128xf32>
    %853 = arith.mulf %852, %851 : vector<8x128xf32>
    %854 = math.tanh %853 : vector<8x128xf32>
    %cst_350 = arith.constant 5.000000e-01 : f32
    %855 = vector.broadcast %cst_350 : f32 to vector<8x128xf32>
    %856 = arith.mulf %855, %854 : vector<8x128xf32>
    %cst_351 = arith.constant 5.000000e-01 : f32
    %857 = vector.broadcast %cst_351 : f32 to vector<8x128xf32>
    %858 = arith.addf %856, %857 : vector<8x128xf32>
    %859 = arith.mulf %848, %822 : vector<8x128xf32>
    %860 = arith.mulf %840, %850 : vector<8x128xf32>
    %861 = arith.addf %859, %860 : vector<8x128xf32>
    %862 = math.tanh %861 : vector<8x128xf32>
    %863 = arith.mulf %858, %862 : vector<8x128xf32>
    %864 = arith.index_cast %c4_i32_339 : i32 to index
    %c0_352 = arith.constant 0 : index
    %c0_353 = arith.constant 0 : index
    %865 = vector.load %arg19[%864, %c0_352, %c0_353] : memref<8x8x128xf32, #tpu.memory_space<vmem>>, vector<1x8x128xf32>
    %866 = vector.shape_cast %865 : vector<1x8x128xf32> to vector<8x128xf32>
    %867 = vector.shape_cast %863 : vector<8x128xf32> to vector<1x8x128xf32>
    tpu.vector_store %arg19[%864, %c0_352, %c0_353], %867 {strides = array<i32>} : memref<8x8x128xf32, #tpu.memory_space<vmem>>, vector<1x8x128xf32>,
    %c5_i32_354 = arith.constant 5 : i32
    %868 = arith.truncf %863 : vector<8x128xf32> to vector<8x128xbf16>
    %c0_355 = arith.constant 0 : index
    %c0_356 = arith.constant 0 : index
    %869 = vector.load %arg8[%c0_355, %c0_356] : memref<128x512xbf16, #tpu.memory_space<vmem>>, vector<128x512xbf16>
    %cst_357 = arith.constant dense<0.000000e+00> : vector<8x512xf32>
    %870 = tpu.matmul %868, %869, %cst_357 {dimension_numbers = #tpu.dot_dimension_numbers<[1], [0], [0], [1], [0, 0, 1, 1], [], []>} : vector<8x128xbf16>, vector<128x512xbf16>, vector<8x512xf32> -> vector<8x512xf32>
    %871 = arith.addf %670, %870 : vector<8x512xf32>
    %872 = vector.extract_strided_slice %871 {offsets = [0, 0], sizes = [8, 128], strides = [1, 1]} : vector<8x512xf32> to vector<8x128xf32>
    %cst_358 = arith.constant 5.000000e-01 : f32
    %873 = vector.broadcast %cst_358 : f32 to vector<8x128xf32>
    %874 = arith.mulf %873, %872 : vector<8x128xf32>
    %875 = math.tanh %874 : vector<8x128xf32>
    %cst_359 = arith.constant 5.000000e-01 : f32
    %876 = vector.broadcast %cst_359 : f32 to vector<8x128xf32>
    %877 = arith.mulf %876, %875 : vector<8x128xf32>
    %cst_360 = arith.constant 5.000000e-01 : f32
    %878 = vector.broadcast %cst_360 : f32 to vector<8x128xf32>
    %879 = arith.addf %877, %878 : vector<8x128xf32>
    %880 = vector.extract_strided_slice %871 {offsets = [0, 128], sizes = [8, 128], strides = [1, 1]} : vector<8x512xf32> to vector<8x128xf32>
    %cst_361 = arith.constant 5.000000e-01 : f32
    %881 = vector.broadcast %cst_361 : f32 to vector<8x128xf32>
    %882 = arith.mulf %881, %880 : vector<8x128xf32>
    %883 = math.tanh %882 : vector<8x128xf32>
    %cst_362 = arith.constant 5.000000e-01 : f32
    %884 = vector.broadcast %cst_362 : f32 to vector<8x128xf32>
    %885 = arith.mulf %884, %883 : vector<8x128xf32>
    %cst_363 = arith.constant 5.000000e-01 : f32
    %886 = vector.broadcast %cst_363 : f32 to vector<8x128xf32>
    %887 = arith.addf %885, %886 : vector<8x128xf32>
    %888 = vector.extract_strided_slice %871 {offsets = [0, 256], sizes = [8, 128], strides = [1, 1]} : vector<8x512xf32> to vector<8x128xf32>
    %889 = math.tanh %888 : vector<8x128xf32>
    %890 = vector.extract_strided_slice %871 {offsets = [0, 384], sizes = [8, 128], strides = [1, 1]} : vector<8x512xf32> to vector<8x128xf32>
    %cst_364 = arith.constant 5.000000e-01 : f32
    %891 = vector.broadcast %cst_364 : f32 to vector<8x128xf32>
    %892 = arith.mulf %891, %890 : vector<8x128xf32>
    %893 = math.tanh %892 : vector<8x128xf32>
    %cst_365 = arith.constant 5.000000e-01 : f32
    %894 = vector.broadcast %cst_365 : f32 to vector<8x128xf32>
    %895 = arith.mulf %894, %893 : vector<8x128xf32>
    %cst_366 = arith.constant 5.000000e-01 : f32
    %896 = vector.broadcast %cst_366 : f32 to vector<8x128xf32>
    %897 = arith.addf %895, %896 : vector<8x128xf32>
    %898 = arith.mulf %887, %861 : vector<8x128xf32>
    %899 = arith.mulf %879, %889 : vector<8x128xf32>
    %900 = arith.addf %898, %899 : vector<8x128xf32>
    %901 = math.tanh %900 : vector<8x128xf32>
    %902 = arith.mulf %897, %901 : vector<8x128xf32>
    %903 = arith.index_cast %c5_i32_354 : i32 to index
    %c0_367 = arith.constant 0 : index
    %c0_368 = arith.constant 0 : index
    %904 = vector.load %arg19[%903, %c0_367, %c0_368] : memref<8x8x128xf32, #tpu.memory_space<vmem>>, vector<1x8x128xf32>
    %905 = vector.shape_cast %904 : vector<1x8x128xf32> to vector<8x128xf32>
    %906 = vector.shape_cast %902 : vector<8x128xf32> to vector<1x8x128xf32>
    tpu.vector_store %arg19[%903, %c0_367, %c0_368], %906 {strides = array<i32>} : memref<8x8x128xf32, #tpu.memory_space<vmem>>, vector<1x8x128xf32>,
    %c6_i32_369 = arith.constant 6 : i32
    %907 = arith.truncf %902 : vector<8x128xf32> to vector<8x128xbf16>
    %c0_370 = arith.constant 0 : index
    %c0_371 = arith.constant 0 : index
    %908 = vector.load %arg8[%c0_370, %c0_371] : memref<128x512xbf16, #tpu.memory_space<vmem>>, vector<128x512xbf16>
    %cst_372 = arith.constant dense<0.000000e+00> : vector<8x512xf32>
    %909 = tpu.matmul %907, %908, %cst_372 {dimension_numbers = #tpu.dot_dimension_numbers<[1], [0], [0], [1], [0, 0, 1, 1], [], []>} : vector<8x128xbf16>, vector<128x512xbf16>, vector<8x512xf32> -> vector<8x512xf32>
    %910 = arith.addf %670, %909 : vector<8x512xf32>
    %911 = vector.extract_strided_slice %910 {offsets = [0, 0], sizes = [8, 128], strides = [1, 1]} : vector<8x512xf32> to vector<8x128xf32>
    %cst_373 = arith.constant 5.000000e-01 : f32
    %912 = vector.broadcast %cst_373 : f32 to vector<8x128xf32>
    %913 = arith.mulf %912, %911 : vector<8x128xf32>
    %914 = math.tanh %913 : vector<8x128xf32>
    %cst_374 = arith.constant 5.000000e-01 : f32
    %915 = vector.broadcast %cst_374 : f32 to vector<8x128xf32>
    %916 = arith.mulf %915, %914 : vector<8x128xf32>
    %cst_375 = arith.constant 5.000000e-01 : f32
    %917 = vector.broadcast %cst_375 : f32 to vector<8x128xf32>
    %918 = arith.addf %916, %917 : vector<8x128xf32>
    %919 = vector.extract_strided_slice %910 {offsets = [0, 128], sizes = [8, 128], strides = [1, 1]} : vector<8x512xf32> to vector<8x128xf32>
    %cst_376 = arith.constant 5.000000e-01 : f32
    %920 = vector.broadcast %cst_376 : f32 to vector<8x128xf32>
    %921 = arith.mulf %920, %919 : vector<8x128xf32>
    %922 = math.tanh %921 : vector<8x128xf32>
    %cst_377 = arith.constant 5.000000e-01 : f32
    %923 = vector.broadcast %cst_377 : f32 to vector<8x128xf32>
    %924 = arith.mulf %923, %922 : vector<8x128xf32>
    %cst_378 = arith.constant 5.000000e-01 : f32
    %925 = vector.broadcast %cst_378 : f32 to vector<8x128xf32>
    %926 = arith.addf %924, %925 : vector<8x128xf32>
    %927 = vector.extract_strided_slice %910 {offsets = [0, 256], sizes = [8, 128], strides = [1, 1]} : vector<8x512xf32> to vector<8x128xf32>
    %928 = math.tanh %927 : vector<8x128xf32>
    %929 = vector.extract_strided_slice %910 {offsets = [0, 384], sizes = [8, 128], strides = [1, 1]} : vector<8x512xf32> to vector<8x128xf32>
    %cst_379 = arith.constant 5.000000e-01 : f32
    %930 = vector.broadcast %cst_379 : f32 to vector<8x128xf32>
    %931 = arith.mulf %930, %929 : vector<8x128xf32>
    %932 = math.tanh %931 : vector<8x128xf32>
    %cst_380 = arith.constant 5.000000e-01 : f32
    %933 = vector.broadcast %cst_380 : f32 to vector<8x128xf32>
    %934 = arith.mulf %933, %932 : vector<8x128xf32>
    %cst_381 = arith.constant 5.000000e-01 : f32
    %935 = vector.broadcast %cst_381 : f32 to vector<8x128xf32>
    %936 = arith.addf %934, %935 : vector<8x128xf32>
    %937 = arith.mulf %926, %900 : vector<8x128xf32>
    %938 = arith.mulf %918, %928 : vector<8x128xf32>
    %939 = arith.addf %937, %938 : vector<8x128xf32>
    %940 = math.tanh %939 : vector<8x128xf32>
    %941 = arith.mulf %936, %940 : vector<8x128xf32>
    %942 = arith.index_cast %c6_i32_369 : i32 to index
    %c0_382 = arith.constant 0 : index
    %c0_383 = arith.constant 0 : index
    %943 = vector.load %arg19[%942, %c0_382, %c0_383] : memref<8x8x128xf32, #tpu.memory_space<vmem>>, vector<1x8x128xf32>
    %944 = vector.shape_cast %943 : vector<1x8x128xf32> to vector<8x128xf32>
    %945 = vector.shape_cast %941 : vector<8x128xf32> to vector<1x8x128xf32>
    tpu.vector_store %arg19[%942, %c0_382, %c0_383], %945 {strides = array<i32>} : memref<8x8x128xf32, #tpu.memory_space<vmem>>, vector<1x8x128xf32>,
    %c7_i32_384 = arith.constant 7 : i32
    %946 = arith.truncf %941 : vector<8x128xf32> to vector<8x128xbf16>
    %c0_385 = arith.constant 0 : index
    %c0_386 = arith.constant 0 : index
    %947 = vector.load %arg8[%c0_385, %c0_386] : memref<128x512xbf16, #tpu.memory_space<vmem>>, vector<128x512xbf16>
    %cst_387 = arith.constant dense<0.000000e+00> : vector<8x512xf32>
    %948 = tpu.matmul %946, %947, %cst_387 {dimension_numbers = #tpu.dot_dimension_numbers<[1], [0], [0], [1], [0, 0, 1, 1], [], []>} : vector<8x128xbf16>, vector<128x512xbf16>, vector<8x512xf32> -> vector<8x512xf32>
    %949 = arith.addf %670, %948 : vector<8x512xf32>
    %950 = vector.extract_strided_slice %949 {offsets = [0, 0], sizes = [8, 128], strides = [1, 1]} : vector<8x512xf32> to vector<8x128xf32>
    %cst_388 = arith.constant 5.000000e-01 : f32
    %951 = vector.broadcast %cst_388 : f32 to vector<8x128xf32>
    %952 = arith.mulf %951, %950 : vector<8x128xf32>
    %953 = math.tanh %952 : vector<8x128xf32>
    %cst_389 = arith.constant 5.000000e-01 : f32
    %954 = vector.broadcast %cst_389 : f32 to vector<8x128xf32>
    %955 = arith.mulf %954, %953 : vector<8x128xf32>
    %cst_390 = arith.constant 5.000000e-01 : f32
    %956 = vector.broadcast %cst_390 : f32 to vector<8x128xf32>
    %957 = arith.addf %955, %956 : vector<8x128xf32>
    %958 = vector.extract_strided_slice %949 {offsets = [0, 128], sizes = [8, 128], strides = [1, 1]} : vector<8x512xf32> to vector<8x128xf32>
    %cst_391 = arith.constant 5.000000e-01 : f32
    %959 = vector.broadcast %cst_391 : f32 to vector<8x128xf32>
    %960 = arith.mulf %959, %958 : vector<8x128xf32>
    %961 = math.tanh %960 : vector<8x128xf32>
    %cst_392 = arith.constant 5.000000e-01 : f32
    %962 = vector.broadcast %cst_392 : f32 to vector<8x128xf32>
    %963 = arith.mulf %962, %961 : vector<8x128xf32>
    %cst_393 = arith.constant 5.000000e-01 : f32
    %964 = vector.broadcast %cst_393 : f32 to vector<8x128xf32>
    %965 = arith.addf %963, %964 : vector<8x128xf32>
    %966 = vector.extract_strided_slice %949 {offsets = [0, 256], sizes = [8, 128], strides = [1, 1]} : vector<8x512xf32> to vector<8x128xf32>
    %967 = math.tanh %966 : vector<8x128xf32>
    %968 = vector.extract_strided_slice %949 {offsets = [0, 384], sizes = [8, 128], strides = [1, 1]} : vector<8x512xf32> to vector<8x128xf32>
    %cst_394 = arith.constant 5.000000e-01 : f32
    %969 = vector.broadcast %cst_394 : f32 to vector<8x128xf32>
    %970 = arith.mulf %969, %968 : vector<8x128xf32>
    %971 = math.tanh %970 : vector<8x128xf32>
    %cst_395 = arith.constant 5.000000e-01 : f32
    %972 = vector.broadcast %cst_395 : f32 to vector<8x128xf32>
    %973 = arith.mulf %972, %971 : vector<8x128xf32>
    %cst_396 = arith.constant 5.000000e-01 : f32
    %974 = vector.broadcast %cst_396 : f32 to vector<8x128xf32>
    %975 = arith.addf %973, %974 : vector<8x128xf32>
    %976 = arith.mulf %965, %939 : vector<8x128xf32>
    %977 = arith.mulf %957, %967 : vector<8x128xf32>
    %978 = arith.addf %976, %977 : vector<8x128xf32>
    %979 = math.tanh %978 : vector<8x128xf32>
    %980 = arith.mulf %975, %979 : vector<8x128xf32>
    %981 = arith.index_cast %c7_i32_384 : i32 to index
    %c0_397 = arith.constant 0 : index
    %c0_398 = arith.constant 0 : index
    %982 = vector.load %arg19[%981, %c0_397, %c0_398] : memref<8x8x128xf32, #tpu.memory_space<vmem>>, vector<1x8x128xf32>
    %983 = vector.shape_cast %982 : vector<1x8x128xf32> to vector<8x128xf32>
    %984 = vector.shape_cast %980 : vector<8x128xf32> to vector<1x8x128xf32>
    tpu.vector_store %arg19[%981, %c0_397, %c0_398], %984 {strides = array<i32>} : memref<8x8x128xf32, #tpu.memory_space<vmem>>, vector<1x8x128xf32>,
    %c8_i32_399 = arith.constant 8 : i32
    %c0_400 = arith.constant 0 : index
    %c0_401 = arith.constant 0 : index
    %c0_402 = arith.constant 0 : index
    %985 = vector.load %arg19[%c0_400, %c0_401, %c0_402] : memref<8x8x128xf32, #tpu.memory_space<vmem>>, vector<8x8x128xf32>
    %986 = vector.shape_cast %985 : vector<8x8x128xf32> to vector<64x128xf32>
    %987 = arith.truncf %986 : vector<64x128xf32> to vector<64x128xbf16>
    %c0_403 = arith.constant 0 : index
    %c0_404 = arith.constant 0 : index
    %988 = vector.load %arg10[%c0_403, %c0_404] : memref<128x512xbf16, #tpu.memory_space<vmem>>, vector<128x512xbf16>
    %cst_405 = arith.constant dense<0.000000e+00> : vector<64x512xf32>
    %989 = tpu.matmul %987, %988, %cst_405 {dimension_numbers = #tpu.dot_dimension_numbers<[1], [0], [0], [1], [0, 0, 1, 1], [], []>} : vector<64x128xbf16>, vector<128x512xbf16>, vector<64x512xf32> -> vector<64x512xf32>
    %c0_406 = arith.constant 0 : index
    %c0_407 = arith.constant 0 : index
    %990 = vector.load %arg12[%c0_406, %c0_407] : memref<1x512xf32, #tpu.memory_space<vmem>>, vector<1x512xf32>
    %991 = vector.broadcast %990 : vector<1x512xf32> to vector<64x512xf32>
    %992 = arith.addf %989, %991 : vector<64x512xf32>
    %993 = vector.shape_cast %992 : vector<64x512xf32> to vector<8x8x512xf32>
    %c0_408 = arith.constant 0 : index
    %c0_409 = arith.constant 0 : index
    %c0_410 = arith.constant 0 : index
    %994 = vector.load %arg16[%c0_408, %c0_409, %c0_410] : memref<8x8x512xf32, #tpu.memory_space<vmem>>, vector<8x8x512xf32>
    tpu.vector_store %arg16[%c0_408, %c0_409, %c0_410], %993 {strides = array<i32>} : memref<8x8x512xf32, #tpu.memory_space<vmem>>, vector<8x8x512xf32>,
    %cst_411 = arith.constant 0.000000e+00 : f32
    %995 = vector.broadcast %cst_411 : f32 to vector<8x128xf32>
    %cst_412 = arith.constant 0.000000e+00 : f32
    %996 = vector.broadcast %cst_412 : f32 to vector<8x128xf32>
    %c0_i32_413 = arith.constant 0 : i32
    %997 = arith.index_cast %c0_i32_413 : i32 to index
    %c0_414 = arith.constant 0 : index
    %c0_415 = arith.constant 0 : index
    %998 = vector.load %arg16[%997, %c0_414, %c0_415] : memref<8x8x512xf32, #tpu.memory_space<vmem>>, vector<1x8x512xf32>
    %999 = vector.shape_cast %998 : vector<1x8x512xf32> to vector<8x512xf32>
    %1000 = arith.truncf %995 : vector<8x128xf32> to vector<8x128xbf16>
    %c0_416 = arith.constant 0 : index
    %c0_417 = arith.constant 0 : index
    %1001 = vector.load %arg11[%c0_416, %c0_417] : memref<128x512xbf16, #tpu.memory_space<vmem>>, vector<128x512xbf16>
    %cst_418 = arith.constant dense<0.000000e+00> : vector<8x512xf32>
    %1002 = tpu.matmul %1000, %1001, %cst_418 {dimension_numbers = #tpu.dot_dimension_numbers<[1], [0], [0], [1], [0, 0, 1, 1], [], []>} : vector<8x128xbf16>, vector<128x512xbf16>, vector<8x512xf32> -> vector<8x512xf32>
    %1003 = arith.addf %999, %1002 : vector<8x512xf32>
    %1004 = vector.extract_strided_slice %1003 {offsets = [0, 0], sizes = [8, 128], strides = [1, 1]} : vector<8x512xf32> to vector<8x128xf32>
    %cst_419 = arith.constant 5.000000e-01 : f32
    %1005 = vector.broadcast %cst_419 : f32 to vector<8x128xf32>
    %1006 = arith.mulf %1005, %1004 : vector<8x128xf32>
    %1007 = math.tanh %1006 : vector<8x128xf32>
    %cst_420 = arith.constant 5.000000e-01 : f32
    %1008 = vector.broadcast %cst_420 : f32 to vector<8x128xf32>
    %1009 = arith.mulf %1008, %1007 : vector<8x128xf32>
    %cst_421 = arith.constant 5.000000e-01 : f32
    %1010 = vector.broadcast %cst_421 : f32 to vector<8x128xf32>
    %1011 = arith.addf %1009, %1010 : vector<8x128xf32>
    %1012 = vector.extract_strided_slice %1003 {offsets = [0, 128], sizes = [8, 128], strides = [1, 1]} : vector<8x512xf32> to vector<8x128xf32>
    %cst_422 = arith.constant 5.000000e-01 : f32
    %1013 = vector.broadcast %cst_422 : f32 to vector<8x128xf32>
    %1014 = arith.mulf %1013, %1012 : vector<8x128xf32>
    %1015 = math.tanh %1014 : vector<8x128xf32>
    %cst_423 = arith.constant 5.000000e-01 : f32
    %1016 = vector.broadcast %cst_423 : f32 to vector<8x128xf32>
    %1017 = arith.mulf %1016, %1015 : vector<8x128xf32>
    %cst_424 = arith.constant 5.000000e-01 : f32
    %1018 = vector.broadcast %cst_424 : f32 to vector<8x128xf32>
    %1019 = arith.addf %1017, %1018 : vector<8x128xf32>
    %1020 = vector.extract_strided_slice %1003 {offsets = [0, 256], sizes = [8, 128], strides = [1, 1]} : vector<8x512xf32> to vector<8x128xf32>
    %1021 = math.tanh %1020 : vector<8x128xf32>
    %1022 = vector.extract_strided_slice %1003 {offsets = [0, 384], sizes = [8, 128], strides = [1, 1]} : vector<8x512xf32> to vector<8x128xf32>
    %cst_425 = arith.constant 5.000000e-01 : f32
    %1023 = vector.broadcast %cst_425 : f32 to vector<8x128xf32>
    %1024 = arith.mulf %1023, %1022 : vector<8x128xf32>
    %1025 = math.tanh %1024 : vector<8x128xf32>
    %cst_426 = arith.constant 5.000000e-01 : f32
    %1026 = vector.broadcast %cst_426 : f32 to vector<8x128xf32>
    %1027 = arith.mulf %1026, %1025 : vector<8x128xf32>
    %cst_427 = arith.constant 5.000000e-01 : f32
    %1028 = vector.broadcast %cst_427 : f32 to vector<8x128xf32>
    %1029 = arith.addf %1027, %1028 : vector<8x128xf32>
    %1030 = arith.mulf %1019, %996 : vector<8x128xf32>
    %1031 = arith.mulf %1011, %1021 : vector<8x128xf32>
    %1032 = arith.addf %1030, %1031 : vector<8x128xf32>
    %1033 = math.tanh %1032 : vector<8x128xf32>
    %1034 = arith.mulf %1029, %1033 : vector<8x128xf32>
    %1035 = arith.index_cast %c0_i32_413 : i32 to index
    %c0_428 = arith.constant 0 : index
    %c0_429 = arith.constant 0 : index
    %1036 = vector.load %arg20[%1035, %c0_428, %c0_429] : memref<8x8x128xf32, #tpu.memory_space<vmem>>, vector<1x8x128xf32>
    %1037 = vector.shape_cast %1036 : vector<1x8x128xf32> to vector<8x128xf32>
    %1038 = vector.shape_cast %1034 : vector<8x128xf32> to vector<1x8x128xf32>
    tpu.vector_store %arg20[%1035, %c0_428, %c0_429], %1038 {strides = array<i32>} : memref<8x8x128xf32, #tpu.memory_space<vmem>>, vector<1x8x128xf32>,
    %c1_i32_430 = arith.constant 1 : i32
    %1039 = arith.index_cast %c1_i32_430 : i32 to index
    %c0_431 = arith.constant 0 : index
    %c0_432 = arith.constant 0 : index
    %1040 = vector.load %arg16[%1039, %c0_431, %c0_432] : memref<8x8x512xf32, #tpu.memory_space<vmem>>, vector<1x8x512xf32>
    %1041 = vector.shape_cast %1040 : vector<1x8x512xf32> to vector<8x512xf32>
    %1042 = arith.truncf %1034 : vector<8x128xf32> to vector<8x128xbf16>
    %c0_433 = arith.constant 0 : index
    %c0_434 = arith.constant 0 : index
    %1043 = vector.load %arg11[%c0_433, %c0_434] : memref<128x512xbf16, #tpu.memory_space<vmem>>, vector<128x512xbf16>
    %cst_435 = arith.constant dense<0.000000e+00> : vector<8x512xf32>
    %1044 = tpu.matmul %1042, %1043, %cst_435 {dimension_numbers = #tpu.dot_dimension_numbers<[1], [0], [0], [1], [0, 0, 1, 1], [], []>} : vector<8x128xbf16>, vector<128x512xbf16>, vector<8x512xf32> -> vector<8x512xf32>
    %1045 = arith.addf %1041, %1044 : vector<8x512xf32>
    %1046 = vector.extract_strided_slice %1045 {offsets = [0, 0], sizes = [8, 128], strides = [1, 1]} : vector<8x512xf32> to vector<8x128xf32>
    %cst_436 = arith.constant 5.000000e-01 : f32
    %1047 = vector.broadcast %cst_436 : f32 to vector<8x128xf32>
    %1048 = arith.mulf %1047, %1046 : vector<8x128xf32>
    %1049 = math.tanh %1048 : vector<8x128xf32>
    %cst_437 = arith.constant 5.000000e-01 : f32
    %1050 = vector.broadcast %cst_437 : f32 to vector<8x128xf32>
    %1051 = arith.mulf %1050, %1049 : vector<8x128xf32>
    %cst_438 = arith.constant 5.000000e-01 : f32
    %1052 = vector.broadcast %cst_438 : f32 to vector<8x128xf32>
    %1053 = arith.addf %1051, %1052 : vector<8x128xf32>
    %1054 = vector.extract_strided_slice %1045 {offsets = [0, 128], sizes = [8, 128], strides = [1, 1]} : vector<8x512xf32> to vector<8x128xf32>
    %cst_439 = arith.constant 5.000000e-01 : f32
    %1055 = vector.broadcast %cst_439 : f32 to vector<8x128xf32>
    %1056 = arith.mulf %1055, %1054 : vector<8x128xf32>
    %1057 = math.tanh %1056 : vector<8x128xf32>
    %cst_440 = arith.constant 5.000000e-01 : f32
    %1058 = vector.broadcast %cst_440 : f32 to vector<8x128xf32>
    %1059 = arith.mulf %1058, %1057 : vector<8x128xf32>
    %cst_441 = arith.constant 5.000000e-01 : f32
    %1060 = vector.broadcast %cst_441 : f32 to vector<8x128xf32>
    %1061 = arith.addf %1059, %1060 : vector<8x128xf32>
    %1062 = vector.extract_strided_slice %1045 {offsets = [0, 256], sizes = [8, 128], strides = [1, 1]} : vector<8x512xf32> to vector<8x128xf32>
    %1063 = math.tanh %1062 : vector<8x128xf32>
    %1064 = vector.extract_strided_slice %1045 {offsets = [0, 384], sizes = [8, 128], strides = [1, 1]} : vector<8x512xf32> to vector<8x128xf32>
    %cst_442 = arith.constant 5.000000e-01 : f32
    %1065 = vector.broadcast %cst_442 : f32 to vector<8x128xf32>
    %1066 = arith.mulf %1065, %1064 : vector<8x128xf32>
    %1067 = math.tanh %1066 : vector<8x128xf32>
    %cst_443 = arith.constant 5.000000e-01 : f32
    %1068 = vector.broadcast %cst_443 : f32 to vector<8x128xf32>
    %1069 = arith.mulf %1068, %1067 : vector<8x128xf32>
    %cst_444 = arith.constant 5.000000e-01 : f32
    %1070 = vector.broadcast %cst_444 : f32 to vector<8x128xf32>
    %1071 = arith.addf %1069, %1070 : vector<8x128xf32>
    %1072 = arith.mulf %1061, %1032 : vector<8x128xf32>
    %1073 = arith.mulf %1053, %1063 : vector<8x128xf32>
    %1074 = arith.addf %1072, %1073 : vector<8x128xf32>
    %1075 = math.tanh %1074 : vector<8x128xf32>
    %1076 = arith.mulf %1071, %1075 : vector<8x128xf32>
    %1077 = arith.index_cast %c1_i32_430 : i32 to index
    %c0_445 = arith.constant 0 : index
    %c0_446 = arith.constant 0 : index
    %1078 = vector.load %arg20[%1077, %c0_445, %c0_446] : memref<8x8x128xf32, #tpu.memory_space<vmem>>, vector<1x8x128xf32>
    %1079 = vector.shape_cast %1078 : vector<1x8x128xf32> to vector<8x128xf32>
    %1080 = vector.shape_cast %1076 : vector<8x128xf32> to vector<1x8x128xf32>
    tpu.vector_store %arg20[%1077, %c0_445, %c0_446], %1080 {strides = array<i32>} : memref<8x8x128xf32, #tpu.memory_space<vmem>>, vector<1x8x128xf32>,
    %c2_i32_447 = arith.constant 2 : i32
    %1081 = arith.index_cast %c2_i32_447 : i32 to index
    %c0_448 = arith.constant 0 : index
    %c0_449 = arith.constant 0 : index
    %1082 = vector.load %arg16[%1081, %c0_448, %c0_449] : memref<8x8x512xf32, #tpu.memory_space<vmem>>, vector<1x8x512xf32>
    %1083 = vector.shape_cast %1082 : vector<1x8x512xf32> to vector<8x512xf32>
    %1084 = arith.truncf %1076 : vector<8x128xf32> to vector<8x128xbf16>
    %c0_450 = arith.constant 0 : index
    %c0_451 = arith.constant 0 : index
    %1085 = vector.load %arg11[%c0_450, %c0_451] : memref<128x512xbf16, #tpu.memory_space<vmem>>, vector<128x512xbf16>
    %cst_452 = arith.constant dense<0.000000e+00> : vector<8x512xf32>
    %1086 = tpu.matmul %1084, %1085, %cst_452 {dimension_numbers = #tpu.dot_dimension_numbers<[1], [0], [0], [1], [0, 0, 1, 1], [], []>} : vector<8x128xbf16>, vector<128x512xbf16>, vector<8x512xf32> -> vector<8x512xf32>
    %1087 = arith.addf %1083, %1086 : vector<8x512xf32>
    %1088 = vector.extract_strided_slice %1087 {offsets = [0, 0], sizes = [8, 128], strides = [1, 1]} : vector<8x512xf32> to vector<8x128xf32>
    %cst_453 = arith.constant 5.000000e-01 : f32
    %1089 = vector.broadcast %cst_453 : f32 to vector<8x128xf32>
    %1090 = arith.mulf %1089, %1088 : vector<8x128xf32>
    %1091 = math.tanh %1090 : vector<8x128xf32>
    %cst_454 = arith.constant 5.000000e-01 : f32
    %1092 = vector.broadcast %cst_454 : f32 to vector<8x128xf32>
    %1093 = arith.mulf %1092, %1091 : vector<8x128xf32>
    %cst_455 = arith.constant 5.000000e-01 : f32
    %1094 = vector.broadcast %cst_455 : f32 to vector<8x128xf32>
    %1095 = arith.addf %1093, %1094 : vector<8x128xf32>
    %1096 = vector.extract_strided_slice %1087 {offsets = [0, 128], sizes = [8, 128], strides = [1, 1]} : vector<8x512xf32> to vector<8x128xf32>
    %cst_456 = arith.constant 5.000000e-01 : f32
    %1097 = vector.broadcast %cst_456 : f32 to vector<8x128xf32>
    %1098 = arith.mulf %1097, %1096 : vector<8x128xf32>
    %1099 = math.tanh %1098 : vector<8x128xf32>
    %cst_457 = arith.constant 5.000000e-01 : f32
    %1100 = vector.broadcast %cst_457 : f32 to vector<8x128xf32>
    %1101 = arith.mulf %1100, %1099 : vector<8x128xf32>
    %cst_458 = arith.constant 5.000000e-01 : f32
    %1102 = vector.broadcast %cst_458 : f32 to vector<8x128xf32>
    %1103 = arith.addf %1101, %1102 : vector<8x128xf32>
    %1104 = vector.extract_strided_slice %1087 {offsets = [0, 256], sizes = [8, 128], strides = [1, 1]} : vector<8x512xf32> to vector<8x128xf32>
    %1105 = math.tanh %1104 : vector<8x128xf32>
    %1106 = vector.extract_strided_slice %1087 {offsets = [0, 384], sizes = [8, 128], strides = [1, 1]} : vector<8x512xf32> to vector<8x128xf32>
    %cst_459 = arith.constant 5.000000e-01 : f32
    %1107 = vector.broadcast %cst_459 : f32 to vector<8x128xf32>
    %1108 = arith.mulf %1107, %1106 : vector<8x128xf32>
    %1109 = math.tanh %1108 : vector<8x128xf32>
    %cst_460 = arith.constant 5.000000e-01 : f32
    %1110 = vector.broadcast %cst_460 : f32 to vector<8x128xf32>
    %1111 = arith.mulf %1110, %1109 : vector<8x128xf32>
    %cst_461 = arith.constant 5.000000e-01 : f32
    %1112 = vector.broadcast %cst_461 : f32 to vector<8x128xf32>
    %1113 = arith.addf %1111, %1112 : vector<8x128xf32>
    %1114 = arith.mulf %1103, %1074 : vector<8x128xf32>
    %1115 = arith.mulf %1095, %1105 : vector<8x128xf32>
    %1116 = arith.addf %1114, %1115 : vector<8x128xf32>
    %1117 = math.tanh %1116 : vector<8x128xf32>
    %1118 = arith.mulf %1113, %1117 : vector<8x128xf32>
    %1119 = arith.index_cast %c2_i32_447 : i32 to index
    %c0_462 = arith.constant 0 : index
    %c0_463 = arith.constant 0 : index
    %1120 = vector.load %arg20[%1119, %c0_462, %c0_463] : memref<8x8x128xf32, #tpu.memory_space<vmem>>, vector<1x8x128xf32>
    %1121 = vector.shape_cast %1120 : vector<1x8x128xf32> to vector<8x128xf32>
    %1122 = vector.shape_cast %1118 : vector<8x128xf32> to vector<1x8x128xf32>
    tpu.vector_store %arg20[%1119, %c0_462, %c0_463], %1122 {strides = array<i32>} : memref<8x8x128xf32, #tpu.memory_space<vmem>>, vector<1x8x128xf32>,
    %c3_i32_464 = arith.constant 3 : i32
    %1123 = arith.index_cast %c3_i32_464 : i32 to index
    %c0_465 = arith.constant 0 : index
    %c0_466 = arith.constant 0 : index
    %1124 = vector.load %arg16[%1123, %c0_465, %c0_466] : memref<8x8x512xf32, #tpu.memory_space<vmem>>, vector<1x8x512xf32>
    %1125 = vector.shape_cast %1124 : vector<1x8x512xf32> to vector<8x512xf32>
    %1126 = arith.truncf %1118 : vector<8x128xf32> to vector<8x128xbf16>
    %c0_467 = arith.constant 0 : index
    %c0_468 = arith.constant 0 : index
    %1127 = vector.load %arg11[%c0_467, %c0_468] : memref<128x512xbf16, #tpu.memory_space<vmem>>, vector<128x512xbf16>
    %cst_469 = arith.constant dense<0.000000e+00> : vector<8x512xf32>
    %1128 = tpu.matmul %1126, %1127, %cst_469 {dimension_numbers = #tpu.dot_dimension_numbers<[1], [0], [0], [1], [0, 0, 1, 1], [], []>} : vector<8x128xbf16>, vector<128x512xbf16>, vector<8x512xf32> -> vector<8x512xf32>
    %1129 = arith.addf %1125, %1128 : vector<8x512xf32>
    %1130 = vector.extract_strided_slice %1129 {offsets = [0, 0], sizes = [8, 128], strides = [1, 1]} : vector<8x512xf32> to vector<8x128xf32>
    %cst_470 = arith.constant 5.000000e-01 : f32
    %1131 = vector.broadcast %cst_470 : f32 to vector<8x128xf32>
    %1132 = arith.mulf %1131, %1130 : vector<8x128xf32>
    %1133 = math.tanh %1132 : vector<8x128xf32>
    %cst_471 = arith.constant 5.000000e-01 : f32
    %1134 = vector.broadcast %cst_471 : f32 to vector<8x128xf32>
    %1135 = arith.mulf %1134, %1133 : vector<8x128xf32>
    %cst_472 = arith.constant 5.000000e-01 : f32
    %1136 = vector.broadcast %cst_472 : f32 to vector<8x128xf32>
    %1137 = arith.addf %1135, %1136 : vector<8x128xf32>
    %1138 = vector.extract_strided_slice %1129 {offsets = [0, 128], sizes = [8, 128], strides = [1, 1]} : vector<8x512xf32> to vector<8x128xf32>
    %cst_473 = arith.constant 5.000000e-01 : f32
    %1139 = vector.broadcast %cst_473 : f32 to vector<8x128xf32>
    %1140 = arith.mulf %1139, %1138 : vector<8x128xf32>
    %1141 = math.tanh %1140 : vector<8x128xf32>
    %cst_474 = arith.constant 5.000000e-01 : f32
    %1142 = vector.broadcast %cst_474 : f32 to vector<8x128xf32>
    %1143 = arith.mulf %1142, %1141 : vector<8x128xf32>
    %cst_475 = arith.constant 5.000000e-01 : f32
    %1144 = vector.broadcast %cst_475 : f32 to vector<8x128xf32>
    %1145 = arith.addf %1143, %1144 : vector<8x128xf32>
    %1146 = vector.extract_strided_slice %1129 {offsets = [0, 256], sizes = [8, 128], strides = [1, 1]} : vector<8x512xf32> to vector<8x128xf32>
    %1147 = math.tanh %1146 : vector<8x128xf32>
    %1148 = vector.extract_strided_slice %1129 {offsets = [0, 384], sizes = [8, 128], strides = [1, 1]} : vector<8x512xf32> to vector<8x128xf32>
    %cst_476 = arith.constant 5.000000e-01 : f32
    %1149 = vector.broadcast %cst_476 : f32 to vector<8x128xf32>
    %1150 = arith.mulf %1149, %1148 : vector<8x128xf32>
    %1151 = math.tanh %1150 : vector<8x128xf32>
    %cst_477 = arith.constant 5.000000e-01 : f32
    %1152 = vector.broadcast %cst_477 : f32 to vector<8x128xf32>
    %1153 = arith.mulf %1152, %1151 : vector<8x128xf32>
    %cst_478 = arith.constant 5.000000e-01 : f32
    %1154 = vector.broadcast %cst_478 : f32 to vector<8x128xf32>
    %1155 = arith.addf %1153, %1154 : vector<8x128xf32>
    %1156 = arith.mulf %1145, %1116 : vector<8x128xf32>
    %1157 = arith.mulf %1137, %1147 : vector<8x128xf32>
    %1158 = arith.addf %1156, %1157 : vector<8x128xf32>
    %1159 = math.tanh %1158 : vector<8x128xf32>
    %1160 = arith.mulf %1155, %1159 : vector<8x128xf32>
    %1161 = arith.index_cast %c3_i32_464 : i32 to index
    %c0_479 = arith.constant 0 : index
    %c0_480 = arith.constant 0 : index
    %1162 = vector.load %arg20[%1161, %c0_479, %c0_480] : memref<8x8x128xf32, #tpu.memory_space<vmem>>, vector<1x8x128xf32>
    %1163 = vector.shape_cast %1162 : vector<1x8x128xf32> to vector<8x128xf32>
    %1164 = vector.shape_cast %1160 : vector<8x128xf32> to vector<1x8x128xf32>
    tpu.vector_store %arg20[%1161, %c0_479, %c0_480], %1164 {strides = array<i32>} : memref<8x8x128xf32, #tpu.memory_space<vmem>>, vector<1x8x128xf32>,
    %c4_i32_481 = arith.constant 4 : i32
    %1165 = arith.index_cast %c4_i32_481 : i32 to index
    %c0_482 = arith.constant 0 : index
    %c0_483 = arith.constant 0 : index
    %1166 = vector.load %arg16[%1165, %c0_482, %c0_483] : memref<8x8x512xf32, #tpu.memory_space<vmem>>, vector<1x8x512xf32>
    %1167 = vector.shape_cast %1166 : vector<1x8x512xf32> to vector<8x512xf32>
    %1168 = arith.truncf %1160 : vector<8x128xf32> to vector<8x128xbf16>
    %c0_484 = arith.constant 0 : index
    %c0_485 = arith.constant 0 : index
    %1169 = vector.load %arg11[%c0_484, %c0_485] : memref<128x512xbf16, #tpu.memory_space<vmem>>, vector<128x512xbf16>
    %cst_486 = arith.constant dense<0.000000e+00> : vector<8x512xf32>
    %1170 = tpu.matmul %1168, %1169, %cst_486 {dimension_numbers = #tpu.dot_dimension_numbers<[1], [0], [0], [1], [0, 0, 1, 1], [], []>} : vector<8x128xbf16>, vector<128x512xbf16>, vector<8x512xf32> -> vector<8x512xf32>
    %1171 = arith.addf %1167, %1170 : vector<8x512xf32>
    %1172 = vector.extract_strided_slice %1171 {offsets = [0, 0], sizes = [8, 128], strides = [1, 1]} : vector<8x512xf32> to vector<8x128xf32>
    %cst_487 = arith.constant 5.000000e-01 : f32
    %1173 = vector.broadcast %cst_487 : f32 to vector<8x128xf32>
    %1174 = arith.mulf %1173, %1172 : vector<8x128xf32>
    %1175 = math.tanh %1174 : vector<8x128xf32>
    %cst_488 = arith.constant 5.000000e-01 : f32
    %1176 = vector.broadcast %cst_488 : f32 to vector<8x128xf32>
    %1177 = arith.mulf %1176, %1175 : vector<8x128xf32>
    %cst_489 = arith.constant 5.000000e-01 : f32
    %1178 = vector.broadcast %cst_489 : f32 to vector<8x128xf32>
    %1179 = arith.addf %1177, %1178 : vector<8x128xf32>
    %1180 = vector.extract_strided_slice %1171 {offsets = [0, 128], sizes = [8, 128], strides = [1, 1]} : vector<8x512xf32> to vector<8x128xf32>
    %cst_490 = arith.constant 5.000000e-01 : f32
    %1181 = vector.broadcast %cst_490 : f32 to vector<8x128xf32>
    %1182 = arith.mulf %1181, %1180 : vector<8x128xf32>
    %1183 = math.tanh %1182 : vector<8x128xf32>
    %cst_491 = arith.constant 5.000000e-01 : f32
    %1184 = vector.broadcast %cst_491 : f32 to vector<8x128xf32>
    %1185 = arith.mulf %1184, %1183 : vector<8x128xf32>
    %cst_492 = arith.constant 5.000000e-01 : f32
    %1186 = vector.broadcast %cst_492 : f32 to vector<8x128xf32>
    %1187 = arith.addf %1185, %1186 : vector<8x128xf32>
    %1188 = vector.extract_strided_slice %1171 {offsets = [0, 256], sizes = [8, 128], strides = [1, 1]} : vector<8x512xf32> to vector<8x128xf32>
    %1189 = math.tanh %1188 : vector<8x128xf32>
    %1190 = vector.extract_strided_slice %1171 {offsets = [0, 384], sizes = [8, 128], strides = [1, 1]} : vector<8x512xf32> to vector<8x128xf32>
    %cst_493 = arith.constant 5.000000e-01 : f32
    %1191 = vector.broadcast %cst_493 : f32 to vector<8x128xf32>
    %1192 = arith.mulf %1191, %1190 : vector<8x128xf32>
    %1193 = math.tanh %1192 : vector<8x128xf32>
    %cst_494 = arith.constant 5.000000e-01 : f32
    %1194 = vector.broadcast %cst_494 : f32 to vector<8x128xf32>
    %1195 = arith.mulf %1194, %1193 : vector<8x128xf32>
    %cst_495 = arith.constant 5.000000e-01 : f32
    %1196 = vector.broadcast %cst_495 : f32 to vector<8x128xf32>
    %1197 = arith.addf %1195, %1196 : vector<8x128xf32>
    %1198 = arith.mulf %1187, %1158 : vector<8x128xf32>
    %1199 = arith.mulf %1179, %1189 : vector<8x128xf32>
    %1200 = arith.addf %1198, %1199 : vector<8x128xf32>
    %1201 = math.tanh %1200 : vector<8x128xf32>
    %1202 = arith.mulf %1197, %1201 : vector<8x128xf32>
    %1203 = arith.index_cast %c4_i32_481 : i32 to index
    %c0_496 = arith.constant 0 : index
    %c0_497 = arith.constant 0 : index
    %1204 = vector.load %arg20[%1203, %c0_496, %c0_497] : memref<8x8x128xf32, #tpu.memory_space<vmem>>, vector<1x8x128xf32>
    %1205 = vector.shape_cast %1204 : vector<1x8x128xf32> to vector<8x128xf32>
    %1206 = vector.shape_cast %1202 : vector<8x128xf32> to vector<1x8x128xf32>
    tpu.vector_store %arg20[%1203, %c0_496, %c0_497], %1206 {strides = array<i32>} : memref<8x8x128xf32, #tpu.memory_space<vmem>>, vector<1x8x128xf32>,
    %c5_i32_498 = arith.constant 5 : i32
    %1207 = arith.index_cast %c5_i32_498 : i32 to index
    %c0_499 = arith.constant 0 : index
    %c0_500 = arith.constant 0 : index
    %1208 = vector.load %arg16[%1207, %c0_499, %c0_500] : memref<8x8x512xf32, #tpu.memory_space<vmem>>, vector<1x8x512xf32>
    %1209 = vector.shape_cast %1208 : vector<1x8x512xf32> to vector<8x512xf32>
    %1210 = arith.truncf %1202 : vector<8x128xf32> to vector<8x128xbf16>
    %c0_501 = arith.constant 0 : index
    %c0_502 = arith.constant 0 : index
    %1211 = vector.load %arg11[%c0_501, %c0_502] : memref<128x512xbf16, #tpu.memory_space<vmem>>, vector<128x512xbf16>
    %cst_503 = arith.constant dense<0.000000e+00> : vector<8x512xf32>
    %1212 = tpu.matmul %1210, %1211, %cst_503 {dimension_numbers = #tpu.dot_dimension_numbers<[1], [0], [0], [1], [0, 0, 1, 1], [], []>} : vector<8x128xbf16>, vector<128x512xbf16>, vector<8x512xf32> -> vector<8x512xf32>
    %1213 = arith.addf %1209, %1212 : vector<8x512xf32>
    %1214 = vector.extract_strided_slice %1213 {offsets = [0, 0], sizes = [8, 128], strides = [1, 1]} : vector<8x512xf32> to vector<8x128xf32>
    %cst_504 = arith.constant 5.000000e-01 : f32
    %1215 = vector.broadcast %cst_504 : f32 to vector<8x128xf32>
    %1216 = arith.mulf %1215, %1214 : vector<8x128xf32>
    %1217 = math.tanh %1216 : vector<8x128xf32>
    %cst_505 = arith.constant 5.000000e-01 : f32
    %1218 = vector.broadcast %cst_505 : f32 to vector<8x128xf32>
    %1219 = arith.mulf %1218, %1217 : vector<8x128xf32>
    %cst_506 = arith.constant 5.000000e-01 : f32
    %1220 = vector.broadcast %cst_506 : f32 to vector<8x128xf32>
    %1221 = arith.addf %1219, %1220 : vector<8x128xf32>
    %1222 = vector.extract_strided_slice %1213 {offsets = [0, 128], sizes = [8, 128], strides = [1, 1]} : vector<8x512xf32> to vector<8x128xf32>
    %cst_507 = arith.constant 5.000000e-01 : f32
    %1223 = vector.broadcast %cst_507 : f32 to vector<8x128xf32>
    %1224 = arith.mulf %1223, %1222 : vector<8x128xf32>
    %1225 = math.tanh %1224 : vector<8x128xf32>
    %cst_508 = arith.constant 5.000000e-01 : f32
    %1226 = vector.broadcast %cst_508 : f32 to vector<8x128xf32>
    %1227 = arith.mulf %1226, %1225 : vector<8x128xf32>
    %cst_509 = arith.constant 5.000000e-01 : f32
    %1228 = vector.broadcast %cst_509 : f32 to vector<8x128xf32>
    %1229 = arith.addf %1227, %1228 : vector<8x128xf32>
    %1230 = vector.extract_strided_slice %1213 {offsets = [0, 256], sizes = [8, 128], strides = [1, 1]} : vector<8x512xf32> to vector<8x128xf32>
    %1231 = math.tanh %1230 : vector<8x128xf32>
    %1232 = vector.extract_strided_slice %1213 {offsets = [0, 384], sizes = [8, 128], strides = [1, 1]} : vector<8x512xf32> to vector<8x128xf32>
    %cst_510 = arith.constant 5.000000e-01 : f32
    %1233 = vector.broadcast %cst_510 : f32 to vector<8x128xf32>
    %1234 = arith.mulf %1233, %1232 : vector<8x128xf32>
    %1235 = math.tanh %1234 : vector<8x128xf32>
    %cst_511 = arith.constant 5.000000e-01 : f32
    %1236 = vector.broadcast %cst_511 : f32 to vector<8x128xf32>
    %1237 = arith.mulf %1236, %1235 : vector<8x128xf32>
    %cst_512 = arith.constant 5.000000e-01 : f32
    %1238 = vector.broadcast %cst_512 : f32 to vector<8x128xf32>
    %1239 = arith.addf %1237, %1238 : vector<8x128xf32>
    %1240 = arith.mulf %1229, %1200 : vector<8x128xf32>
    %1241 = arith.mulf %1221, %1231 : vector<8x128xf32>
    %1242 = arith.addf %1240, %1241 : vector<8x128xf32>
    %1243 = math.tanh %1242 : vector<8x128xf32>
    %1244 = arith.mulf %1239, %1243 : vector<8x128xf32>
    %1245 = arith.index_cast %c5_i32_498 : i32 to index
    %c0_513 = arith.constant 0 : index
    %c0_514 = arith.constant 0 : index
    %1246 = vector.load %arg20[%1245, %c0_513, %c0_514] : memref<8x8x128xf32, #tpu.memory_space<vmem>>, vector<1x8x128xf32>
    %1247 = vector.shape_cast %1246 : vector<1x8x128xf32> to vector<8x128xf32>
    %1248 = vector.shape_cast %1244 : vector<8x128xf32> to vector<1x8x128xf32>
    tpu.vector_store %arg20[%1245, %c0_513, %c0_514], %1248 {strides = array<i32>} : memref<8x8x128xf32, #tpu.memory_space<vmem>>, vector<1x8x128xf32>,
    %c6_i32_515 = arith.constant 6 : i32
    %1249 = arith.index_cast %c6_i32_515 : i32 to index
    %c0_516 = arith.constant 0 : index
    %c0_517 = arith.constant 0 : index
    %1250 = vector.load %arg16[%1249, %c0_516, %c0_517] : memref<8x8x512xf32, #tpu.memory_space<vmem>>, vector<1x8x512xf32>
    %1251 = vector.shape_cast %1250 : vector<1x8x512xf32> to vector<8x512xf32>
    %1252 = arith.truncf %1244 : vector<8x128xf32> to vector<8x128xbf16>
    %c0_518 = arith.constant 0 : index
    %c0_519 = arith.constant 0 : index
    %1253 = vector.load %arg11[%c0_518, %c0_519] : memref<128x512xbf16, #tpu.memory_space<vmem>>, vector<128x512xbf16>
    %cst_520 = arith.constant dense<0.000000e+00> : vector<8x512xf32>
    %1254 = tpu.matmul %1252, %1253, %cst_520 {dimension_numbers = #tpu.dot_dimension_numbers<[1], [0], [0], [1], [0, 0, 1, 1], [], []>} : vector<8x128xbf16>, vector<128x512xbf16>, vector<8x512xf32> -> vector<8x512xf32>
    %1255 = arith.addf %1251, %1254 : vector<8x512xf32>
    %1256 = vector.extract_strided_slice %1255 {offsets = [0, 0], sizes = [8, 128], strides = [1, 1]} : vector<8x512xf32> to vector<8x128xf32>
    %cst_521 = arith.constant 5.000000e-01 : f32
    %1257 = vector.broadcast %cst_521 : f32 to vector<8x128xf32>
    %1258 = arith.mulf %1257, %1256 : vector<8x128xf32>
    %1259 = math.tanh %1258 : vector<8x128xf32>
    %cst_522 = arith.constant 5.000000e-01 : f32
    %1260 = vector.broadcast %cst_522 : f32 to vector<8x128xf32>
    %1261 = arith.mulf %1260, %1259 : vector<8x128xf32>
    %cst_523 = arith.constant 5.000000e-01 : f32
    %1262 = vector.broadcast %cst_523 : f32 to vector<8x128xf32>
    %1263 = arith.addf %1261, %1262 : vector<8x128xf32>
    %1264 = vector.extract_strided_slice %1255 {offsets = [0, 128], sizes = [8, 128], strides = [1, 1]} : vector<8x512xf32> to vector<8x128xf32>
    %cst_524 = arith.constant 5.000000e-01 : f32
    %1265 = vector.broadcast %cst_524 : f32 to vector<8x128xf32>
    %1266 = arith.mulf %1265, %1264 : vector<8x128xf32>
    %1267 = math.tanh %1266 : vector<8x128xf32>
    %cst_525 = arith.constant 5.000000e-01 : f32
    %1268 = vector.broadcast %cst_525 : f32 to vector<8x128xf32>
    %1269 = arith.mulf %1268, %1267 : vector<8x128xf32>
    %cst_526 = arith.constant 5.000000e-01 : f32
    %1270 = vector.broadcast %cst_526 : f32 to vector<8x128xf32>
    %1271 = arith.addf %1269, %1270 : vector<8x128xf32>
    %1272 = vector.extract_strided_slice %1255 {offsets = [0, 256], sizes = [8, 128], strides = [1, 1]} : vector<8x512xf32> to vector<8x128xf32>
    %1273 = math.tanh %1272 : vector<8x128xf32>
    %1274 = vector.extract_strided_slice %1255 {offsets = [0, 384], sizes = [8, 128], strides = [1, 1]} : vector<8x512xf32> to vector<8x128xf32>
    %cst_527 = arith.constant 5.000000e-01 : f32
    %1275 = vector.broadcast %cst_527 : f32 to vector<8x128xf32>
    %1276 = arith.mulf %1275, %1274 : vector<8x128xf32>
    %1277 = math.tanh %1276 : vector<8x128xf32>
    %cst_528 = arith.constant 5.000000e-01 : f32
    %1278 = vector.broadcast %cst_528 : f32 to vector<8x128xf32>
    %1279 = arith.mulf %1278, %1277 : vector<8x128xf32>
    %cst_529 = arith.constant 5.000000e-01 : f32
    %1280 = vector.broadcast %cst_529 : f32 to vector<8x128xf32>
    %1281 = arith.addf %1279, %1280 : vector<8x128xf32>
    %1282 = arith.mulf %1271, %1242 : vector<8x128xf32>
    %1283 = arith.mulf %1263, %1273 : vector<8x128xf32>
    %1284 = arith.addf %1282, %1283 : vector<8x128xf32>
    %1285 = math.tanh %1284 : vector<8x128xf32>
    %1286 = arith.mulf %1281, %1285 : vector<8x128xf32>
    %1287 = arith.index_cast %c6_i32_515 : i32 to index
    %c0_530 = arith.constant 0 : index
    %c0_531 = arith.constant 0 : index
    %1288 = vector.load %arg20[%1287, %c0_530, %c0_531] : memref<8x8x128xf32, #tpu.memory_space<vmem>>, vector<1x8x128xf32>
    %1289 = vector.shape_cast %1288 : vector<1x8x128xf32> to vector<8x128xf32>
    %1290 = vector.shape_cast %1286 : vector<8x128xf32> to vector<1x8x128xf32>
    tpu.vector_store %arg20[%1287, %c0_530, %c0_531], %1290 {strides = array<i32>} : memref<8x8x128xf32, #tpu.memory_space<vmem>>, vector<1x8x128xf32>,
    %c7_i32_532 = arith.constant 7 : i32
    %1291 = arith.index_cast %c7_i32_532 : i32 to index
    %c0_533 = arith.constant 0 : index
    %c0_534 = arith.constant 0 : index
    %1292 = vector.load %arg16[%1291, %c0_533, %c0_534] : memref<8x8x512xf32, #tpu.memory_space<vmem>>, vector<1x8x512xf32>
    %1293 = vector.shape_cast %1292 : vector<1x8x512xf32> to vector<8x512xf32>
    %1294 = arith.truncf %1286 : vector<8x128xf32> to vector<8x128xbf16>
    %c0_535 = arith.constant 0 : index
    %c0_536 = arith.constant 0 : index
    %1295 = vector.load %arg11[%c0_535, %c0_536] : memref<128x512xbf16, #tpu.memory_space<vmem>>, vector<128x512xbf16>
    %cst_537 = arith.constant dense<0.000000e+00> : vector<8x512xf32>
    %1296 = tpu.matmul %1294, %1295, %cst_537 {dimension_numbers = #tpu.dot_dimension_numbers<[1], [0], [0], [1], [0, 0, 1, 1], [], []>} : vector<8x128xbf16>, vector<128x512xbf16>, vector<8x512xf32> -> vector<8x512xf32>
    %1297 = arith.addf %1293, %1296 : vector<8x512xf32>
    %1298 = vector.extract_strided_slice %1297 {offsets = [0, 0], sizes = [8, 128], strides = [1, 1]} : vector<8x512xf32> to vector<8x128xf32>
    %cst_538 = arith.constant 5.000000e-01 : f32
    %1299 = vector.broadcast %cst_538 : f32 to vector<8x128xf32>
    %1300 = arith.mulf %1299, %1298 : vector<8x128xf32>
    %1301 = math.tanh %1300 : vector<8x128xf32>
    %cst_539 = arith.constant 5.000000e-01 : f32
    %1302 = vector.broadcast %cst_539 : f32 to vector<8x128xf32>
    %1303 = arith.mulf %1302, %1301 : vector<8x128xf32>
    %cst_540 = arith.constant 5.000000e-01 : f32
    %1304 = vector.broadcast %cst_540 : f32 to vector<8x128xf32>
    %1305 = arith.addf %1303, %1304 : vector<8x128xf32>
    %1306 = vector.extract_strided_slice %1297 {offsets = [0, 128], sizes = [8, 128], strides = [1, 1]} : vector<8x512xf32> to vector<8x128xf32>
    %cst_541 = arith.constant 5.000000e-01 : f32
    %1307 = vector.broadcast %cst_541 : f32 to vector<8x128xf32>
    %1308 = arith.mulf %1307, %1306 : vector<8x128xf32>
    %1309 = math.tanh %1308 : vector<8x128xf32>
    %cst_542 = arith.constant 5.000000e-01 : f32
    %1310 = vector.broadcast %cst_542 : f32 to vector<8x128xf32>
    %1311 = arith.mulf %1310, %1309 : vector<8x128xf32>
    %cst_543 = arith.constant 5.000000e-01 : f32
    %1312 = vector.broadcast %cst_543 : f32 to vector<8x128xf32>
    %1313 = arith.addf %1311, %1312 : vector<8x128xf32>
    %1314 = vector.extract_strided_slice %1297 {offsets = [0, 256], sizes = [8, 128], strides = [1, 1]} : vector<8x512xf32> to vector<8x128xf32>
    %1315 = math.tanh %1314 : vector<8x128xf32>
    %1316 = vector.extract_strided_slice %1297 {offsets = [0, 384], sizes = [8, 128], strides = [1, 1]} : vector<8x512xf32> to vector<8x128xf32>
    %cst_544 = arith.constant 5.000000e-01 : f32
    %1317 = vector.broadcast %cst_544 : f32 to vector<8x128xf32>
    %1318 = arith.mulf %1317, %1316 : vector<8x128xf32>
    %1319 = math.tanh %1318 : vector<8x128xf32>
    %cst_545 = arith.constant 5.000000e-01 : f32
    %1320 = vector.broadcast %cst_545 : f32 to vector<8x128xf32>
    %1321 = arith.mulf %1320, %1319 : vector<8x128xf32>
    %cst_546 = arith.constant 5.000000e-01 : f32
    %1322 = vector.broadcast %cst_546 : f32 to vector<8x128xf32>
    %1323 = arith.addf %1321, %1322 : vector<8x128xf32>
    %1324 = arith.mulf %1313, %1284 : vector<8x128xf32>
    %1325 = arith.mulf %1305, %1315 : vector<8x128xf32>
    %1326 = arith.addf %1324, %1325 : vector<8x128xf32>
    %1327 = math.tanh %1326 : vector<8x128xf32>
    %1328 = arith.mulf %1323, %1327 : vector<8x128xf32>
    %1329 = arith.index_cast %c7_i32_532 : i32 to index
    %c0_547 = arith.constant 0 : index
    %c0_548 = arith.constant 0 : index
    %1330 = vector.load %arg20[%1329, %c0_547, %c0_548] : memref<8x8x128xf32, #tpu.memory_space<vmem>>, vector<1x8x128xf32>
    %1331 = vector.shape_cast %1330 : vector<1x8x128xf32> to vector<8x128xf32>
    %1332 = vector.shape_cast %1328 : vector<8x128xf32> to vector<1x8x128xf32>
    tpu.vector_store %arg20[%1329, %c0_547, %c0_548], %1332 {strides = array<i32>} : memref<8x8x128xf32, #tpu.memory_space<vmem>>, vector<1x8x128xf32>,
    %c8_i32_549 = arith.constant 8 : i32
    %c0_550 = arith.constant 0 : index
    %c0_551 = arith.constant 0 : index
    %c0_552 = arith.constant 0 : index
    %1333 = vector.load %arg20[%c0_550, %c0_551, %c0_552] : memref<8x8x128xf32, #tpu.memory_space<vmem>>, vector<8x8x128xf32>
    %1334 = vector.shape_cast %1333 : vector<8x8x128xf32> to vector<64x128xf32>
    %1335 = arith.truncf %1334 : vector<64x128xf32> to vector<64x128xbf16>
    %c0_553 = arith.constant 0 : index
    %c0_554 = arith.constant 0 : index
    %1336 = vector.load %arg13[%c0_553, %c0_554] : memref<128x128xbf16, #tpu.memory_space<vmem>>, vector<128x128xbf16>
    %cst_555 = arith.constant dense<0.000000e+00> : vector<64x128xf32>
    %1337 = tpu.matmul %1335, %1336, %cst_555 {dimension_numbers = #tpu.dot_dimension_numbers<[1], [0], [0], [1], [0, 0, 1, 1], [], []>} : vector<64x128xbf16>, vector<128x128xbf16>, vector<64x128xf32> -> vector<64x128xf32>
    %c0_556 = arith.constant 0 : index
    %c0_557 = arith.constant 0 : index
    %1338 = vector.load %arg14[%c0_556, %c0_557] : memref<1x128xf32, #tpu.memory_space<vmem>>, vector<1x128xf32>
    %1339 = vector.broadcast %1338 : vector<1x128xf32> to vector<64x128xf32>
    %1340 = arith.addf %1337, %1339 : vector<64x128xf32>
    %1341 = vector.shape_cast %1340 : vector<64x128xf32> to vector<8x8x128xf32>
    %c0_558 = arith.constant 0 : index
    %c0_559 = arith.constant 0 : index
    %c0_560 = arith.constant 0 : index
    %1342 = vector.load %arg15[%c0_558, %c0_559, %c0_560] : memref<8x8x128xf32, #tpu.memory_space<vmem>>, vector<8x8x128xf32>
    tpu.vector_store %arg15[%c0_558, %c0_559, %c0_560], %1341 {strides = array<i32>} : memref<8x8x128xf32, #tpu.memory_space<vmem>>, vector<8x8x128xf32>,
    return
  }
}

</mosaic_0001>

<bundles_post_ra>
// kernel: _lambda_.1
= control target key start
LH: loop header
LB: loop body
LE: loop exit
PB: predicated region body
PF: predicated region fallthrough
CT: control target
= control target key end

     0   :  { %v15089_v1 = vmov 0   ;;  %v101_v39 = vlaneseq  ;;  %s15073_s2 = inlined_call_operand.vmem [shape: bf16[128,512], index: 2, kind: input, shape index: {}]   ;;  %s15074_s0 = inlined_call_operand.vmem [shape: f32[8,8,1], index: 0, kind: input, shape index: {}]   ;;  %s15075_s1 = inlined_call_operand.vmem [shape: f32[1,512], index: 1, kind: input, shape index: {}]   ;;  %s15076_s3 = inlined_call_operand.vmem [shape: f32[1,512], index: 3, kind: input, shape index: {}]   ;;  %s15077_s4 = inlined_call_operand.vmem [shape: bf16[128,512], index: 4, kind: input, shape index: {}]   ;;  %s15078_s5 = inlined_call_operand.vmem [shape: bf16[128,512], index: 5, kind: input, shape index: {}]   ;;  %s15079_s6 = inlined_call_operand.vmem [shape: f32[1,512], index: 6, kind: input, shape index: {}]   ;;  %s15080_s7 = inlined_call_operand.vmem [shape: bf16[128,512], index: 7, kind: input, shape index: {}]   ;;  %s15081_s8 = inlined_call_operand.vmem [shape: bf16[128,512], index: 8, kind: input, shape index: {}]   ;;  %s15082_s9 = inlined_call_operand.vmem [shape: f32[1,512], index: 9, kind: input, shape index: {}]   ;;  %s15083_s10 = inlined_call_operand.vmem [shape: bf16[128,512], index: 10, kind: input, shape index: {}]   ;;  %s15084_s11 = inlined_call_operand.vmem [shape: bf16[128,512], index: 11, kind: input, shape index: {}]   ;;  %s15085_s12 = inlined_call_operand.vmem [shape: f32[1,512], index: 12, kind: input, shape index: {}]   ;;  %s15086_s13 = inlined_call_operand.vmem [shape: bf16[128,128], index: 13, kind: input, shape index: {}]   ;;  %s15087_s14 = inlined_call_operand.vmem [shape: f32[1,128], index: 14, kind: input, shape index: {}]   ;;  %s15088_s15 = inlined_call_operand.vmem [shape: f32[8,8,128], index: 15, kind: output, shape index: {}]  }
   0x1   :  { %v11683_v0 = vld [vmem:[%s15073_s2 + $0x4] ss:$16 sps:$4 sm:$0xff]   ;;  %467 = vmatprep.mubr.bf16.mxu1 %v15089_v1  ;;  %10757 = vset.pattern.permute.xlu0 %v15089_v1  ;;  %v11690_v2 = vld [vmem:[%s15073_s2] ss:$16 sps:$4 sm:$0xff]   ;;  %v52_v18 = vld [vmem:[%s15074_s0 + $0x8] sm:$0xff] }
   0x2   :  { %770 = vmatprep.mubr.bf16.mxu0 %v15089_v1  ;;  %10758 = vset.pattern.permute.xlu1 %v15089_v1  ;;  %v11698_v3 = vld [vmem:[%s15073_s2 + $0x24] ss:$16 sps:$4 sm:$0xff]   ;;  %v11705_v4 = vld [vmem:[%s15073_s2 + $0x20] ss:$16 sps:$4 sm:$0xff]   ;;  %v11800_v21 = vld [vmem:[%s15073_s2 + $0xc] ss:$16 sps:$4 sm:$0xff]  }
   0x3   :  { %435 = vmatprep.subr.bf16.mxu1 %v11683_v0  ;;  %738 = vmatprep.subr.bf16.mxu0 %v11683_v0  ;;  %v11712_v5 = vld [vmem:[%s15073_s2 + $0x44] ss:$16 sps:$4 sm:$0xff]   ;;  %v11719_v6 = vld [vmem:[%s15073_s2 + $0x40] ss:$16 sps:$4 sm:$0xff]   ;;  %v11814_v24 = vld [vmem:[%s15073_s2 + $0x8] ss:$16 sps:$4 sm:$0xff]  }
   0x4   :  { %436 = vmatpush1.bf16.msra.mxu1 %v11690_v2  ;;  %739 = vmatpush1.bf16.msra.mxu0 %v11690_v2  ;;  %v11726_v7 = vld [vmem:[%s15073_s2 + $0x64] ss:$16 sps:$4 sm:$0xff]   ;;  %v11733_v8 = vld [vmem:[%s15073_s2 + $0x60] ss:$16 sps:$4 sm:$0xff]   ;;  %v11819_v25 = vld [vmem:[%s15073_s2 + $0x2c] ss:$16 sps:$4 sm:$0xff]  }
   0x5   :  { %437 = vmatprep.subr.bf16.mxu1 %v11698_v3  ;;  %740 = vmatprep.subr.bf16.mxu0 %v11698_v3  ;;  %v11740_v9 = vld [vmem:[%s15073_s2 + $0x84] ss:$16 sps:$4 sm:$0xff]   ;;  %v11747_v10 = vld [vmem:[%s15073_s2 + $0x80] ss:$16 sps:$4 sm:$0xff]   ;;  %v11830_v26 = vld [vmem:[%s15073_s2 + $0x28] ss:$16 sps:$4 sm:$0xff]  }
   0x6   :  { %v11754_v11 = vld [vmem:[%s15073_s2 + $0xa4] ss:$16 sps:$4 sm:$0xff]   ;;  %v11761_v12 = vld [vmem:[%s15073_s2 + $0xa0] ss:$16 sps:$4 sm:$0xff]   ;;  %v11837_v27 = vld [vmem:[%s15073_s2 + $0x4c] ss:$16 sps:$4 sm:$0xff]  }
   0x7   :  { %v11768_v13 = vld [vmem:[%s15073_s2 + $0xc4] ss:$16 sps:$4 sm:$0xff]   ;;  %v11783_v17 = vld [vmem:[%s15073_s2 + $0xc0] ss:$16 sps:$4 sm:$0xff]   ;;  %v11843_v28 = vld [vmem:[%s15073_s2 + $0x48] ss:$16 sps:$4 sm:$0xff]  }
   0x8   :  { %438 = vmatpush1.bf16.msra.mxu1 %v11705_v4  ;;  %741 = vmatpush1.bf16.msra.mxu0 %v11705_v4  ;;  %v51_v14 = vld [vmem:[%s15074_s0] sm:$0xff]  ;;  %v273_v16 = vld [vmem:[%s15073_s2 + $0xf0] sm:$0xff]  ;;  %v11849_v29 = vld [vmem:[%s15073_s2 + $0x6c] ss:$16 sps:$4 sm:$0xff]   ;;  %v102_v40 = vshrl.u32 %v101_v39, 7 }
   0x9   :  { %439 = vmatprep.subr.bf16.mxu1 %v11712_v5  ;;  %742 = vmatprep.subr.bf16.mxu0 %v11712_v5  ;;  %v271_v15 = vld [vmem:[%s15073_s2 + $0xe0] sm:$0xff]  ;;  %v57_v23 = vld [vmem:[%s15074_s0 + $0x30] sm:$0xff]  ;;  %v11855_v30 = vld [vmem:[%s15073_s2 + $0x68] ss:$16 sps:$4 sm:$0xff]  }
   0xa   :  { %62 = vperm.xlu0 %10757, %v51_v14   ;;  %v11791_v19 = vcombine.high %v271_v15, %v273_v16  ;;  %v55_v20 = vld [vmem:[%s15074_s0 + $0x20] sm:$0xff]  ;;  %v11803_v22 = vcombine.low %v271_v15, %v273_v16  ;;  %v11861_v31 = vld [vmem:[%s15073_s2 + $0x8c] ss:$16 sps:$4 sm:$0xff]   ;;  %v11867_v32 = vld [vmem:[%s15073_s2 + $0x88] ss:$16 sps:$4 sm:$0xff]   ;;  %v11926_v42 = vsub.s32 1, %v102_v40 }
   0xb   :  { %v11873_v33 = vld [vmem:[%s15073_s2 + $0xac] ss:$16 sps:$4 sm:$0xff]   ;;  %v11879_v34 = vld [vmem:[%s15073_s2 + $0xa8] ss:$16 sps:$4 sm:$0xff]   ;;  %v59_v44 = vld [vmem:[%s15075_s1] sm:$0xf] }
   0xc   :  { %440 = vmatpush1.bf16.msra.mxu1 %v11719_v6  ;;  %743 = vmatpush1.bf16.msra.mxu0 %v11719_v6  ;;  %v11885_v35 = vld [vmem:[%s15073_s2 + $0xcc] ss:$16 sps:$4 sm:$0xff]   ;;  %v11891_v36 = vld [vmem:[%s15073_s2 + $0xc8] ss:$16 sps:$4 sm:$0xff]   ;;  %15103 = vst [vmem:[#allocation7_spill] sm:$0xff] %v11926_v42  ;;  %v11931_v46 = vsub.s32 0, %v102_v40  ;;  %v11934_v48 = vrot.slane %v59_v44, %v11926_v42 }
   0xd   :  { %441 = vmatprep.subr.bf16.mxu1 %v11726_v7  ;;  %744 = vmatprep.subr.bf16.mxu0 %v11726_v7  ;;  %v11897_v37 = vld [vmem:[%s15073_s2 + $0xec] ss:$16 sps:$4 sm:$0xff]   ;;  %v11903_v38 = vld [vmem:[%s15073_s2 + $0xe8] ss:$16 sps:$4 sm:$0xff]   ;;  %v153_v50 = vld [vmem:[%s15076_s3] sm:$0xf] }
   0xe   :  { %67 = vperm.xlu0 %10757, %v52_v18   ;;  %15104 = vst [vmem:[#allocation8_spill] sm:$0xff] %v11931_v46  ;;  %v11940_v51 = vrot.slane %v59_v44, %v11931_v46  ;;  %v11944_v53 = vrot.slane %v153_v50, %v11926_v42  ;;  %v11948_v55 = vrot.slane %v153_v50, %v11931_v46  ;;  %v11952_v60 = vsub.s32 2, %v102_v40 }
   0xf   :  { %v11954_v61 = vsub.s32 3, %v102_v40 }
  0x10   :  { %442 = vmatpush1.bf16.msra.mxu1 %v11733_v8  ;;  %745 = vmatpush1.bf16.msra.mxu0 %v11733_v8  ;;  %15105 = vst [vmem:[#allocation9_spill] sm:$0xff] %v11952_v60  ;;  %v11957_v14 = vrot.slane %v59_v44, %v11952_v60  ;;  %v11964_v18 = vrot.slane %v153_v50, %v11952_v60 }
  0x11   :  { %443 = vmatprep.subr.bf16.mxu1 %v11740_v9  ;;  %746 = vmatprep.subr.bf16.mxu0 %v11740_v9  ;;  %15106 = vst [vmem:[#allocation10_spill] sm:$0xff] %v11954_v61  ;;  %v11960_v15 = vrot.slane %v59_v44, %v11954_v61 }
  0x12   :  { %82 = vperm.xlu0 %10757, %v55_v20  }
  0x14   :  { %444 = vmatpush1.bf16.msra.mxu1 %v11747_v10  ;;  %747 = vmatpush1.bf16.msra.mxu0 %v11747_v10 }
  0x15   :  { %445 = vmatprep.subr.bf16.mxu1 %v11754_v11  ;;  %748 = vmatprep.subr.bf16.mxu0 %v11754_v11 }
  0x16   :  { %92 = vperm.xlu0 %10757, %v57_v23   ;;  %v11968_v23 = vrot.slane %v153_v50, %v11954_v61 }
  0x18   :  { %446 = vmatpush1.bf16.msra.mxu1 %v11761_v12  ;;  %749 = vmatpush1.bf16.msra.mxu0 %v11761_v12 }
  0x19   :  { %447 = vmatprep.subr.bf16.mxu1 %v11768_v13  ;;  %750 = vmatprep.subr.bf16.mxu0 %v11768_v13 }
  0x1c   :  { %448 = vmatpush1.bf16.msra.mxu1 %v11783_v17  ;;  %751 = vmatpush1.bf16.msra.mxu0 %v11783_v17 }
  0x1d   :  { %449 = vmatprep.subr.bf16.mxu1 %v11791_v19  ;;  %752 = vmatprep.subr.bf16.mxu0 %v11791_v19 }
  0x20   :  { %450 = vmatpush1.bf16.msra.mxu1 %v11803_v22  ;;  %753 = vmatpush1.bf16.msra.mxu0 %v11803_v22 }
  0x21   :  { %476 = vmatprep.subr.bf16.mxu1 %v11800_v21  ;;  %1042 = vmatprep.subr.bf16.mxu0 %v11683_v0 }
  0x23   :  { %468 = vmatmul.mubr.bf16.vlgmr.msra.gmra.mrb[0].mxu1 %v15089_v1 }
  0x24   :  { %477 = vmatpush1.bf16.msra.mxu1 %v11814_v24  ;;  %508 = vmatprep.mubr.bf16.mxu1 %v15089_v1 }
  0x25   :  { %478 = vmatprep.subr.bf16.mxu1 %v11819_v25 }
  0x28   :  { %479 = vmatpush1.bf16.msra.mxu1 %v11830_v26 }
  0x29   :  { %480 = vmatprep.subr.bf16.mxu1 %v11837_v27 }
  0x2c   :  { %481 = vmatpush1.bf16.msra.mxu1 %v11843_v28 }
  0x2d   :  { %482 = vmatprep.subr.bf16.mxu1 %v11849_v29 }
  0x30   :  { %483 = vmatpush1.bf16.msra.mxu1 %v11855_v30 }
  0x31   :  { %484 = vmatprep.subr.bf16.mxu1 %v11861_v31 }
  0x34   :  { %485 = vmatpush1.bf16.msra.mxu1 %v11867_v32 }
  0x35   :  { %486 = vmatprep.subr.bf16.mxu1 %v11873_v33 }
  0x38   :  { %487 = vmatpush1.bf16.msra.mxu1 %v11879_v34 }
  0x39   :  { %488 = vmatprep.subr.bf16.mxu1 %v11885_v35 }
  0x3c   :  { %489 = vmatpush1.bf16.msra.mxu1 %v11891_v36 }
  0x3d   :  { %490 = vmatprep.subr.bf16.mxu1 %v11897_v37 }
  0x40   :  { %491 = vmatpush1.bf16.msra.mxu1 %v11903_v38 }
  0x41   :  { %779 = vmatprep.subr.bf16.mxu1 %v11800_v21 }
  0x43   :  { %509 = vmatmul.mubr.bf16.vlgmr.msra.gmra.mrb[4].mxu1 %v15089_v1 }
  0x44   :  { %780 = vmatpush1.bf16.msra.mxu1 %v11814_v24  ;;  %811 = vmatprep.mubr.bf16.mxu1 %v15089_v1 }
  0x45   :  { %781 = vmatprep.subr.bf16.mxu1 %v11819_v25 }
  0x48   :  { %782 = vmatpush1.bf16.msra.mxu1 %v11830_v26 }
  0x49   :  { %783 = vmatprep.subr.bf16.mxu1 %v11837_v27 }
  0x4c   :  { %784 = vmatpush1.bf16.msra.mxu1 %v11843_v28 }
  0x4d   :  { %785 = vmatprep.subr.bf16.mxu1 %v11849_v29 }
  0x50   :  { %786 = vmatpush1.bf16.msra.mxu1 %v11855_v30 }
  0x51   :  { %787 = vmatprep.subr.bf16.mxu1 %v11861_v31 }
  0x54   :  { %788 = vmatpush1.bf16.msra.mxu1 %v11867_v32 }
  0x55   :  { %789 = vmatprep.subr.bf16.mxu1 %v11873_v33 }
  0x58   :  { %790 = vmatpush1.bf16.msra.mxu1 %v11879_v34 }
  0x59   :  { %791 = vmatprep.subr.bf16.mxu1 %v11885_v35 }
  0x5c   :  { %792 = vmatpush1.bf16.msra.mxu1 %v11891_v36 }
  0x5d   :  { %793 = vmatprep.subr.bf16.mxu1 %v11897_v37 }
  0x60   :  { %794 = vmatpush1.bf16.msra.mxu1 %v11903_v38 }
  0x61   :  { %1083 = vmatprep.subr.bf16.mxu1 %v11800_v21 }
  0x89   :  { %v63_v49 = vpop.permute.xlu0 %62 }
  0x8a   :  { %v122_v52 = vmul.f32 %v11934_v48, %v63_v49  ;;  %v121_v54 = vmul.f32 %v11940_v51, %v63_v49  ;;  %v123_v16 = vmul.f32 %v11957_v14, %v63_v49  ;;  %v124_v20 = vmul.f32 %v11960_v15, %v63_v49 }
  0x8c   :  { %v176_v56 = vadd.f32 %v11944_v53, %v122_v52  ;;  %v175_v57 = vadd.f32 %v11948_v55, %v121_v54  ;;  %v177_v39 = vadd.f32 %v11964_v18, %v123_v16 }
  0xf6   :  { %v469_v41 = vpop.f32.mrb[0].mxu1 }
  0xf7   :  { %v471_v43 = vpop.f32.mrb[1].mxu1  ;;  %v517_v59 = vadd.f32 %v469_v41, %v175_v57  ;;  %v178_v41 = vadd.f32 %v11968_v23, %v124_v20 }
  0xf8   :  { %v473_v45 = vpop.f32.mrb[2].mxu1  ;;  %v518_v58 = vadd.f32 %v471_v43, %v176_v56 }
  0xf9   :  { %v474_v47 = vpop.f32.mrb[3].mxu1  ;;  %v521_v63 = vmul.f32 0.5, %v517_v59 }
  0xfa   :  { %v525_v62 = vmul.f32 0.5, %v518_v58 }
  0xfc   :  { %11247 = vtanh.f32 %v525_v62 }
  0xfd   :  { %11249 = vtanh.f32 %v521_v63 }
 0x106   :  { %v11248_v52 = vpop.eup %11247 }
 0x107   :  { %v11250_v56 = vpop.eup %11249  ;;  %v527_v57 = vmul.f32 0.5, %v11248_v52  ;;  %v54_v52 = vld [vmem:[%s15074_s0 + $0x18] sm:$0xff] }
 0x108   :  { %v523_v59 = vmul.f32 0.5, %v11250_v56 }
 0x109   :  { %v528_v49 = vadd.f32 0.5, %v527_v57 }
 0x10a   :  { %v524_v50 = vadd.f32 0.5, %v523_v59 }
 0x10b   :  { %v534_v63 = vmul.f32 0.0, %v528_v49 }
 0x116   :  { %v510_v40 = vpop.f32.mrb[4].mxu1 }
 0x117   :  { %v519_v43 = vadd.f32 %v510_v40, %v177_v39  ;;  %v512_v44 = vpop.f32.mrb[5].mxu1 }
 0x118   :  { %v520_v45 = vadd.f32 %v512_v44, %v178_v41  ;;  %v514_v47 = vpop.f32.mrb[6].mxu1 }
 0x119   :  { %11251 = vtanh.f32 %v519_v43  ;;  %v515_v54 = vpop.f32.mrb[7].mxu1  ;;  %v53_v47 = vld [vmem:[%s15074_s0 + $0x10] sm:$0xff] }
 0x11a   :  { %v530_v58 = vmul.f32 0.5, %v520_v45  ;;  %v15107_v45 = vmov 0   ;;  %72 = vperm.xlu1 %10758, %v53_v47   ;;  %v56_v54 = vld [vmem:[%s15074_s0 + $0x28] sm:$0xff] }
 0x11c   :  { %11253 = vtanh.f32 %v530_v58 }
 0x11e   :  { %77 = vperm.xlu1 %10758, %v54_v52  }
 0x122   :  { %87 = vperm.xlu1 %10758, %v56_v54  }
 0x123   :  { %v11252_v62 = vpop.eup %11251 }
 0x124   :  { %v535_v16 = vmul.f32 %v11252_v62, %v524_v50 }
 0x126   :  { %v11972_v1 = vadd.f32 %v535_v16, %v534_v63  ;;  %v11254_v20 = vpop.eup %11253 }
 0x127   :  { %v532_v39 = vmul.f32 0.5, %v11254_v20 }
 0x128   :  { %11255 = vtanh.f32 %v11972_v1 }
 0x129   :  { %v533_v40 = vadd.f32 0.5, %v532_v39 }
 0x132   :  { %v11256_v41 = vpop.eup %11255 }
 0x133   :  { %v11975_v43 = vmul.f32 %v11256_v41, %v533_v40 }
 0x135   :  { %v545_v44 = vpack.c.bf16 %v11975_v43, %v11975_v43 }
 0x137   :  { %771 = vmatmul.mubr.bf16.vlgmr.msra.gmra.mrb[0].mxu0 %v545_v44  ;;  %812 = vmatmul.mubr.bf16.vlgmr.msra.gmra.mrb[8].mxu1 %v545_v44 }
 0x138   :  { %1043 = vmatpush1.bf16.msra.mxu0 %v11690_v2  ;;  %1084 = vmatpush1.bf16.msra.mxu1 %v11814_v24 }
 0x139   :  { %1044 = vmatprep.subr.bf16.mxu0 %v11698_v3  ;;  %1085 = vmatprep.subr.bf16.mxu1 %v11819_v25 }
 0x13a   :  { %1074 = vmatprep.mubr.bf16.mxu0 %v15107_v45  ;;  %1115 = vmatprep.mubr.bf16.mxu1 %v15107_v45 }
 0x13c   :  { %1045 = vmatpush1.bf16.msra.mxu0 %v11705_v4  ;;  %1086 = vmatpush1.bf16.msra.mxu1 %v11830_v26 }
 0x13d   :  { %1046 = vmatprep.subr.bf16.mxu0 %v11712_v5  ;;  %1087 = vmatprep.subr.bf16.mxu1 %v11837_v27 }
 0x140   :  { %1047 = vmatpush1.bf16.msra.mxu0 %v11719_v6  ;;  %1088 = vmatpush1.bf16.msra.mxu1 %v11843_v28 }
 0x141   :  { %1048 = vmatprep.subr.bf16.mxu0 %v11726_v7  ;;  %1089 = vmatprep.subr.bf16.mxu1 %v11849_v29 }
 0x144   :  { %1049 = vmatpush1.bf16.msra.mxu0 %v11733_v8  ;;  %1090 = vmatpush1.bf16.msra.mxu1 %v11855_v30 }
 0x145   :  { %1050 = vmatprep.subr.bf16.mxu0 %v11740_v9  ;;  %1091 = vmatprep.subr.bf16.mxu1 %v11861_v31 }
 0x148   :  { %1051 = vmatpush1.bf16.msra.mxu0 %v11747_v10  ;;  %1092 = vmatpush1.bf16.msra.mxu1 %v11867_v32 }
 0x149   :  { %1052 = vmatprep.subr.bf16.mxu0 %v11754_v11  ;;  %1093 = vmatprep.subr.bf16.mxu1 %v11873_v33 }
 0x14c   :  { %1053 = vmatpush1.bf16.msra.mxu0 %v11761_v12  ;;  %1094 = vmatpush1.bf16.msra.mxu1 %v11879_v34 }
 0x14d   :  { %1054 = vmatprep.subr.bf16.mxu0 %v11768_v13  ;;  %1095 = vmatprep.subr.bf16.mxu1 %v11885_v35 }
 0x150   :  { %1055 = vmatpush1.bf16.msra.mxu0 %v11783_v17  ;;  %1096 = vmatpush1.bf16.msra.mxu1 %v11891_v36 }
 0x151   :  { %1056 = vmatprep.subr.bf16.mxu0 %v11791_v19  ;;  %1097 = vmatprep.subr.bf16.mxu1 %v11897_v37 }
 0x154   :  { %1057 = vmatpush1.bf16.msra.mxu0 %v11803_v22  ;;  %1098 = vmatpush1.bf16.msra.mxu1 %v11903_v38 }
 0x155   :  { %1346 = vmatprep.subr.bf16.mxu0 %v11683_v0  ;;  %1387 = vmatprep.subr.bf16.mxu1 %v11800_v21  ;;  %v58_v0 = vld [vmem:[%s15074_s0 + $0x38] sm:$0xff]  ;;  %v68_v21 = vpop.permute.xlu0 %67 }
 0x156   :  { %97 = vperm.xlu1 %10758, %v58_v0   ;;  %v125_v56 = vmul.f32 %v11940_v51, %v68_v21  ;;  %v126_v57 = vmul.f32 %v11934_v48, %v68_v21  ;;  %v127_v59 = vmul.f32 %v11957_v14, %v68_v21  ;;  %v128_v52 = vmul.f32 %v11960_v15, %v68_v21 }
 0x158   :  { %v179_v58 = vadd.f32 %v11948_v55, %v125_v56  ;;  %v180_v62 = vadd.f32 %v11944_v53, %v126_v57  ;;  %v181_v47 = vadd.f32 %v11964_v18, %v127_v59  ;;  %v182_v42 = vadd.f32 %v11968_v23, %v128_v52 }
 0x20a   :  { %v772_v49 = vpop.f32.mrb[0].mxu0  ;;  %v813_v50 = vpop.f32.mrb[8].mxu1 }
 0x20b   :  { %v820_v63 = vadd.f32 %v772_v49, %v179_v58  ;;  %v774_v16 = vpop.f32.mrb[1].mxu0  ;;  %v815_v20 = vpop.f32.mrb[9].mxu1  ;;  %v822_v61 = vadd.f32 %v813_v50, %v181_v47 }
 0x20c   :  { %v821_v39 = vadd.f32 %v774_v16, %v180_v62  ;;  %v776_v40 = vpop.f32.mrb[2].mxu0  ;;  %v817_v41 = vpop.f32.mrb[10].mxu1  ;;  %v823_v57 = vadd.f32 %v815_v20, %v182_v42 }
 0x20d   :  { %v824_v44 = vmul.f32 0.5, %v820_v63  ;;  %v777_v54 = vpop.f32.mrb[3].mxu0  ;;  %v818_v0 = vpop.f32.mrb[11].mxu1 }
 0x20e   :  { %v828_v56 = vmul.f32 0.5, %v821_v39  ;;  %v833_v58 = vmul.f32 0.5, %v823_v57 }
 0x20f   :  { %11257 = vtanh.f32 %v824_v44 }
 0x210   :  { %11259 = vtanh.f32 %v828_v56 }
 0x211   :  { %11261 = vtanh.f32 %v822_v61 }
 0x212   :  { %11263 = vtanh.f32 %v833_v58 }
 0x219   :  { %v11258_v49 = vpop.eup %11257 }
 0x21a   :  { %v11260_v62 = vpop.eup %11259  ;;  %v826_v16 = vmul.f32 0.5, %v11258_v49 }
 0x21b   :  { %v830_v40 = vmul.f32 0.5, %v11260_v62  ;;  %v11262_v59 = vpop.eup %11261 }
 0x21c   :  { %v827_v63 = vadd.f32 0.5, %v826_v16  ;;  %v11264_v50 = vpop.eup %11263 }
 0x21d   :  { %v831_v41 = vadd.f32 0.5, %v830_v40  ;;  %v835_v44 = vmul.f32 0.5, %v11264_v50  ;;  %v12128_v50 = vld [vmem:[%s15073_s2 + $0x20] ss:$16 sps:$4 sm:$0xff]  }
 0x21e   :  { %v838_v21 = vmul.f32 %v11262_v59, %v827_v63  ;;  %v12094_v63 = vld [vmem:[%s15073_s2 + $0x4] ss:$16 sps:$4 sm:$0xff]   ;;  %v12099_v59 = vld [vmem:[%s15073_s2 + $0xc] ss:$16 sps:$4 sm:$0xff]  }
 0x21f   :  { %v837_v54 = vmul.f32 %v831_v41, %v11972_v1  ;;  %v836_v61 = vadd.f32 0.5, %v835_v44  ;;  %v73_v1 = vpop.permute.xlu1 %72  ;;  %v12104_v41 = vld [vmem:[%s15073_s2] ss:$16 sps:$4 sm:$0xff]   ;;  %v12133_v44 = vld [vmem:[%s15073_s2 + $0x28] ss:$16 sps:$4 sm:$0xff]  }
 0x221   :  { %v12034_v39 = vadd.f32 %v838_v21, %v837_v54  ;;  %v12109_v21 = vld [vmem:[%s15073_s2 + $0x8] ss:$16 sps:$4 sm:$0xff]   ;;  %v12118_v54 = vld [vmem:[%s15073_s2 + $0x24] ss:$16 sps:$4 sm:$0xff]  }
 0x223   :  { %11265 = vtanh.f32 %v12034_v39 }
 0x22d   :  { %v11266_v42 = vpop.eup %11265 }
 0x22e   :  { %v12037_v20 = vmul.f32 %v11266_v42, %v836_v61  ;;  %v12142_v61 = vld [vmem:[%s15073_s2 + $0x44] ss:$16 sps:$4 sm:$0xff]   ;;  %v12147_v42 = vld [vmem:[%s15073_s2 + $0x4c] ss:$16 sps:$4 sm:$0xff]  }
 0x230   :  { %15108 = vst [vmem:[#allocation11_spill] sm:$0xff] %v12037_v20  ;;  %v849_v47 = vpack.c.bf16 %v12037_v20, %v12037_v20 }
 0x232   :  { %1075 = vmatmul.mubr.bf16.vlgmr.msra.gmra.mrb[4].mxu0 %v849_v47  ;;  %1116 = vmatmul.mubr.bf16.vlgmr.msra.gmra.mrb[12].mxu1 %v849_v47  ;;  %v12152_v47 = vld [vmem:[%s15073_s2 + $0x40] ss:$16 sps:$4 sm:$0xff]  }
 0x233   :  { %1347 = vmatpush1.bf16.msra.mxu0 %v11690_v2  ;;  %1388 = vmatpush1.bf16.msra.mxu1 %v11814_v24  ;;  %v129_v2 = vmul.f32 %v11940_v51, %v73_v1 }
 0x234   :  { %1348 = vmatprep.subr.bf16.mxu0 %v11698_v3  ;;  %1389 = vmatprep.subr.bf16.mxu1 %v11819_v25  ;;  %v130_v3 = vmul.f32 %v11934_v48, %v73_v1 }
 0x235   :  { %1378 = vmatprep.mubr.bf16.mxu0 %v15107_v45  ;;  %1419 = vmatprep.mubr.bf16.mxu1 %v15107_v45 }
 0x237   :  { %1349 = vmatpush1.bf16.msra.mxu0 %v11705_v4  ;;  %1390 = vmatpush1.bf16.msra.mxu1 %v11830_v26  ;;  %v183_v4 = vadd.f32 %v11948_v55, %v129_v2  ;;  %v12166_v2 = vld [vmem:[%s15073_s2 + $0x64] ss:$16 sps:$4 sm:$0xff]  }
 0x238   :  { %1350 = vmatprep.subr.bf16.mxu0 %v11712_v5  ;;  %1391 = vmatprep.subr.bf16.mxu1 %v11837_v27  ;;  %v131_v5 = vmul.f32 %v11957_v14, %v73_v1 }
 0x23b   :  { %1351 = vmatpush1.bf16.msra.mxu0 %v11719_v6  ;;  %1392 = vmatpush1.bf16.msra.mxu1 %v11843_v28  ;;  %v184_v6 = vadd.f32 %v11944_v53, %v130_v3  ;;  %v12171_v3 = vld [vmem:[%s15073_s2 + $0x6c] ss:$16 sps:$4 sm:$0xff]  }
 0x23c   :  { %1352 = vmatprep.subr.bf16.mxu0 %v11726_v7  ;;  %1393 = vmatprep.subr.bf16.mxu1 %v11849_v29 }
 0x23f   :  { %1353 = vmatpush1.bf16.msra.mxu0 %v11733_v8  ;;  %1394 = vmatpush1.bf16.msra.mxu1 %v11855_v30 }
 0x240   :  { %1354 = vmatprep.subr.bf16.mxu0 %v11740_v9  ;;  %1395 = vmatprep.subr.bf16.mxu1 %v11861_v31 }
 0x243   :  { %1355 = vmatpush1.bf16.msra.mxu0 %v11747_v10  ;;  %1396 = vmatpush1.bf16.msra.mxu1 %v11867_v32  ;;  %v185_v10 = vadd.f32 %v11964_v18, %v131_v5  ;;  %v12181_v5 = vld [vmem:[%s15073_s2 + $0x68] ss:$16 sps:$4 sm:$0xff]  }
 0x244   :  { %1356 = vmatprep.subr.bf16.mxu0 %v11754_v11  ;;  %1397 = vmatprep.subr.bf16.mxu1 %v11873_v33 }
 0x247   :  { %1357 = vmatpush1.bf16.msra.mxu0 %v11761_v12  ;;  %1398 = vmatpush1.bf16.msra.mxu1 %v11879_v34  ;;  %v132_v12 = vmul.f32 %v11960_v15, %v73_v1  ;;  %v12157_v1 = vld [vmem:[%s15073_s2 + $0x48] ss:$16 sps:$4 sm:$0xff]  }
 0x248   :  { %1358 = vmatprep.subr.bf16.mxu0 %v11768_v13  ;;  %1399 = vmatprep.subr.bf16.mxu1 %v11885_v35 }
 0x249   :  { %v186_v29 = vadd.f32 %v11968_v23, %v132_v12  ;;  %v12224_v12 = vld [vmem:[%s15073_s2 + $0xa0] ss:$16 sps:$4 sm:$0xff]  }
 0x24b   :  { %1359 = vmatpush1.bf16.msra.mxu0 %v11783_v17  ;;  %1400 = vmatpush1.bf16.msra.mxu1 %v11891_v36 }
 0x24c   :  { %1401 = vmatprep.subr.bf16.mxu1 %v11897_v37  ;;  %1360 = vmatprep.subr.bf16.mxu0 %v11791_v19 }
 0x24f   :  { %1402 = vmatpush1.bf16.msra.mxu1 %v11903_v38  ;;  %1361 = vmatpush1.bf16.msra.mxu0 %v11803_v22 }
 0x250   :  { %1650 = vmatprep.subr.bf16.mxu0 %v12094_v63  ;;  %1691 = vmatprep.subr.bf16.mxu1 %v12099_v59 }
 0x305   :  { %v1076_v7 = vpop.f32.mrb[4].mxu0  ;;  %v1117_v8 = vpop.f32.mrb[12].mxu1 }
 0x306   :  { %v1124_v9 = vadd.f32 %v1076_v7, %v183_v4  ;;  %v1078_v11 = vpop.f32.mrb[5].mxu0  ;;  %v1119_v13 = vpop.f32.mrb[13].mxu1  ;;  %v1126_v28 = vadd.f32 %v1117_v8, %v185_v10  ;;  %v12176_v4 = vld [vmem:[%s15073_s2 + $0x60] ss:$16 sps:$4 sm:$0xff]   ;;  %v12195_v7 = vld [vmem:[%s15073_s2 + $0x8c] ss:$16 sps:$4 sm:$0xff]  }
 0x307   :  { %v1125_v17 = vadd.f32 %v1078_v11, %v184_v6  ;;  %v1080_v19 = vpop.f32.mrb[6].mxu0  ;;  %v1121_v22 = vpop.f32.mrb[14].mxu1  ;;  %v1127_v30 = vadd.f32 %v1119_v13, %v186_v29  ;;  %v12190_v6 = vld [vmem:[%s15073_s2 + $0x84] ss:$16 sps:$4 sm:$0xff]   ;;  %v12200_v8 = vld [vmem:[%s15073_s2 + $0x80] ss:$16 sps:$4 sm:$0xff]  }
 0x308   :  { %v1128_v24 = vmul.f32 0.5, %v1124_v9  ;;  %v1081_v25 = vpop.f32.mrb[7].mxu0  ;;  %v1122_v26 = vpop.f32.mrb[15].mxu1  ;;  %v12205_v9 = vld [vmem:[%s15073_s2 + $0x88] ss:$16 sps:$4 sm:$0xff]  }
 0x309   :  { %v1132_v27 = vmul.f32 0.5, %v1125_v17  ;;  %v1137_v31 = vmul.f32 0.5, %v1127_v30  ;;  %v12214_v10 = vld [vmem:[%s15073_s2 + $0xa4] ss:$16 sps:$4 sm:$0xff]   ;;  %v12219_v11 = vld [vmem:[%s15073_s2 + $0xac] ss:$16 sps:$4 sm:$0xff]   ;;  %v78_v29 = vpop.permute.xlu1 %77 }
 0x30a   :  { %11267 = vtanh.f32 %v1128_v24  ;;  %v12229_v13 = vld [vmem:[%s15073_s2 + $0xa8] ss:$16 sps:$4 sm:$0xff]   ;;  %v12238_v17 = vld [vmem:[%s15073_s2 + $0xc4] ss:$16 sps:$4 sm:$0xff]   ;;  %v12243_v19 = vld [vmem:[%s15073_s2 + $0xcc] ss:$16 sps:$4 sm:$0xff]   ;;  %v133_v30 = vmul.f32 %v11940_v51, %v78_v29 }
 0x30b   :  { %11269 = vtanh.f32 %v1132_v27  ;;  %v12248_v22 = vld [vmem:[%s15073_s2 + $0xc0] ss:$16 sps:$4 sm:$0xff]   ;;  %v12253_v24 = vld [vmem:[%s15073_s2 + $0xc8] ss:$16 sps:$4 sm:$0xff]   ;;  %v12262_v25 = vld [vmem:[%s15073_s2 + $0xe4] ss:$16 sps:$4 sm:$0xff]  }
 0x30c   :  { %11271 = vtanh.f32 %v1126_v28  ;;  %v12267_v26 = vld [vmem:[%s15073_s2 + $0xec] ss:$16 sps:$4 sm:$0xff]   ;;  %v12272_v27 = vld [vmem:[%s15073_s2 + $0xe0] ss:$16 sps:$4 sm:$0xff]   ;;  %v12277_v28 = vld [vmem:[%s15073_s2 + $0xe8] ss:$16 sps:$4 sm:$0xff]  }
 0x30d   :  { %11273 = vtanh.f32 %v1137_v31  ;;  %v134_v31 = vmul.f32 %v11934_v48, %v78_v29 }
 0x314   :  { %v11268_v32 = vpop.eup %11267 }
 0x315   :  { %v11270_v33 = vpop.eup %11269  ;;  %v1130_v34 = vmul.f32 0.5, %v11268_v32  ;;  %v187_v32 = vadd.f32 %v11948_v55, %v133_v30 }
 0x316   :  { %v1134_v35 = vmul.f32 0.5, %v11270_v33  ;;  %v11272_v37 = vpop.eup %11271  ;;  %v135_v33 = vmul.f32 %v11957_v14, %v78_v29 }
 0x317   :  { %v1131_v36 = vadd.f32 0.5, %v1130_v34  ;;  %v11274_v57 = vpop.eup %11273 }
 0x318   :  { %v1135_v38 = vadd.f32 0.5, %v1134_v35  ;;  %v1139_v58 = vmul.f32 0.5, %v11274_v57 }
 0x319   :  { %v1142_v52 = vmul.f32 %v11272_v37, %v1131_v36  ;;  %v188_v36 = vadd.f32 %v11944_v53, %v134_v31 }
 0x31a   :  { %v1141_v0 = vmul.f32 %v1135_v38, %v12034_v39  ;;  %v1140_v49 = vadd.f32 0.5, %v1139_v58  ;;  %v12123_v39 = vld [vmem:[%s15073_s2 + $0x2c] ss:$16 sps:$4 sm:$0xff]  }
 0x31c   :  { %v12082_v56 = vadd.f32 %v1142_v52, %v1141_v0 }
 0x31e   :  { %11275 = vtanh.f32 %v12082_v56 }
 0x328   :  { %v11276_v62 = vpop.eup %11275 }
 0x329   :  { %v12085_v16 = vmul.f32 %v11276_v62, %v1140_v49  ;;  %v189_v62 = vadd.f32 %v11964_v18, %v135_v33 }
 0x32b   :  { %15109 = vst [vmem:[#allocation12_spill] sm:$0xff] %v12085_v16  ;;  %v1153_v40 = vpack.c.bf16 %v12085_v16, %v12085_v16 }
 0x32d   :  { %1379 = vmatmul.mubr.bf16.vlgmr.msra.gmra.mrb[8].mxu0 %v1153_v40  ;;  %1420 = vmatmul.mubr.bf16.vlgmr.msra.gmra.mrb[16].mxu1 %v1153_v40  ;;  %v136_v40 = vmul.f32 %v11960_v15, %v78_v29 }
 0x32e   :  { %1682 = vmatprep.mubr.bf16.mxu0 %v15107_v45  ;;  %1723 = vmatprep.mubr.bf16.mxu1 %v15107_v45 }
 0x32f   :  { %1651 = vmatpush1.bf16.msra.mxu0 %v12104_v41  ;;  %1692 = vmatpush1.bf16.msra.mxu1 %v12109_v21  ;;  %v190_v20 = vadd.f32 %v11968_v23, %v136_v40 }
 0x330   :  { %1652 = vmatprep.subr.bf16.mxu0 %v12118_v54  ;;  %1693 = vmatprep.subr.bf16.mxu1 %v12123_v39 }
 0x333   :  { %1653 = vmatpush1.bf16.msra.mxu0 %v12128_v50  ;;  %1694 = vmatpush1.bf16.msra.mxu1 %v12133_v44 }
 0x334   :  { %1654 = vmatprep.subr.bf16.mxu0 %v12142_v61  ;;  %1695 = vmatprep.subr.bf16.mxu1 %v12147_v42 }
 0x337   :  { %1655 = vmatpush1.bf16.msra.mxu0 %v12152_v47  ;;  %1696 = vmatpush1.bf16.msra.mxu1 %v12157_v1 }
 0x338   :  { %1656 = vmatprep.subr.bf16.mxu0 %v12166_v2  ;;  %1697 = vmatprep.subr.bf16.mxu1 %v12171_v3 }
 0x33b   :  { %1657 = vmatpush1.bf16.msra.mxu0 %v12176_v4  ;;  %1698 = vmatpush1.bf16.msra.mxu1 %v12181_v5 }
 0x33c   :  { %1658 = vmatprep.subr.bf16.mxu0 %v12190_v6  ;;  %1699 = vmatprep.subr.bf16.mxu1 %v12195_v7 }
 0x33f   :  { %1659 = vmatpush1.bf16.msra.mxu0 %v12200_v8  ;;  %1700 = vmatpush1.bf16.msra.mxu1 %v12205_v9 }
 0x340   :  { %1660 = vmatprep.subr.bf16.mxu0 %v12214_v10  ;;  %1701 = vmatprep.subr.bf16.mxu1 %v12219_v11 }
 0x343   :  { %1661 = vmatpush1.bf16.msra.mxu0 %v12224_v12  ;;  %1702 = vmatpush1.bf16.msra.mxu1 %v12229_v13 }
 0x344   :  { %1662 = vmatprep.subr.bf16.mxu0 %v12238_v17  ;;  %1703 = vmatprep.subr.bf16.mxu1 %v12243_v19 }
 0x347   :  { %1663 = vmatpush1.bf16.msra.mxu0 %v12248_v22  ;;  %1704 = vmatpush1.bf16.msra.mxu1 %v12253_v24 }
 0x348   :  { %1664 = vmatprep.subr.bf16.mxu0 %v12262_v25  ;;  %1705 = vmatprep.subr.bf16.mxu1 %v12267_v26 }
 0x34b   :  { %1665 = vmatpush1.bf16.msra.mxu0 %v12272_v27  ;;  %1706 = vmatpush1.bf16.msra.mxu1 %v12277_v28 }
 0x34c   :  { %1954 = vmatprep.subr.bf16.mxu0 %v12094_v63  ;;  %1995 = vmatprep.subr.bf16.mxu1 %v12099_v59 }
 0x400   :  { %v1380_v34 = vpop.f32.mrb[8].mxu0  ;;  %v1421_v35 = vpop.f32.mrb[16].mxu1 }
 0x401   :  { %v1428_v37 = vadd.f32 %v1380_v34, %v187_v32  ;;  %v1382_v38 = vpop.f32.mrb[9].mxu0  ;;  %v1423_v52 = vpop.f32.mrb[17].mxu1  ;;  %v1430_v16 = vadd.f32 %v1421_v35, %v189_v62 }
 0x402   :  { %v1429_v0 = vadd.f32 %v1382_v38, %v188_v36  ;;  %v1384_v57 = vpop.f32.mrb[10].mxu0  ;;  %v1425_v58 = vpop.f32.mrb[18].mxu1  ;;  %v1431_v31 = vadd.f32 %v1423_v52, %v190_v20 }
 0x403   :  { %v1432_v49 = vmul.f32 0.5, %v1428_v37  ;;  %v1385_v60 = vpop.f32.mrb[11].mxu0  ;;  %v1426_v46 = vpop.f32.mrb[19].mxu1 }
 0x404   :  { %v1436_v30 = vmul.f32 0.5, %v1429_v0  ;;  %v1441_v32 = vmul.f32 0.5, %v1431_v31 }
 0x405   :  { %11277 = vtanh.f32 %v1432_v49 }
 0x406   :  { %11279 = vtanh.f32 %v1436_v30 }
 0x407   :  { %11281 = vtanh.f32 %v1430_v16 }
 0x408   :  { %11283 = vtanh.f32 %v1441_v32 }
 0x40f   :  { %v11278_v34 = vpop.eup %11277 }
 0x410   :  { %v11280_v36 = vpop.eup %11279  ;;  %v1434_v38 = vmul.f32 0.5, %v11278_v34 }
 0x411   :  { %v1438_v57 = vmul.f32 0.5, %v11280_v36  ;;  %v11282_v33 = vpop.eup %11281 }
 0x412   :  { %v1435_v37 = vadd.f32 0.5, %v1434_v38  ;;  %v11284_v35 = vpop.eup %11283 }
 0x413   :  { %v1439_v58 = vadd.f32 0.5, %v1438_v57  ;;  %v1443_v0 = vmul.f32 0.5, %v11284_v35 }
 0x414   :  { %v1446_v29 = vmul.f32 %v11282_v33, %v1435_v37 }
 0x415   :  { %v1445_v46 = vmul.f32 %v1439_v58, %v12082_v56  ;;  %v1444_v16 = vadd.f32 0.5, %v1443_v0  ;;  %v83_v56 = vpop.permute.xlu0 %82 }
 0x416   :  { %v137_v62 = vmul.f32 %v11940_v51, %v83_v56  ;;  %v138_v40 = vmul.f32 %v11934_v48, %v83_v56  ;;  %v139_v31 = vmul.f32 %v11957_v14, %v83_v56  ;;  %v140_v0 = vmul.f32 %v11960_v15, %v83_v56 }
 0x417   :  { %v12294_v60 = vadd.f32 %v1446_v29, %v1445_v46 }
 0x418   :  { %v191_v30 = vadd.f32 %v11948_v55, %v137_v62  ;;  %v192_v36 = vadd.f32 %v11944_v53, %v138_v40  ;;  %v193_v35 = vadd.f32 %v11964_v18, %v139_v31 }
 0x419   :  { %11285 = vtanh.f32 %v12294_v60 }
 0x423   :  { %v11286_v20 = vpop.eup %11285 }
 0x424   :  { %v12297_v52 = vmul.f32 %v11286_v20, %v1444_v16 }
 0x426   :  { %15110 = vst [vmem:[#allocation13_spill] sm:$0xff] %v12297_v52  ;;  %v1457_v49 = vpack.c.bf16 %v12297_v52, %v12297_v52  ;;  %v194_v52 = vadd.f32 %v11968_v23, %v140_v0 }
 0x428   :  { %1683 = vmatmul.mubr.bf16.vlgmr.msra.gmra.mrb[12].mxu0 %v1457_v49  ;;  %1724 = vmatmul.mubr.bf16.vlgmr.msra.gmra.mrb[20].mxu1 %v1457_v49 }
 0x429   :  { %1955 = vmatpush1.bf16.msra.mxu0 %v12104_v41  ;;  %1996 = vmatpush1.bf16.msra.mxu1 %v12109_v21 }
 0x42a   :  { %1956 = vmatprep.subr.bf16.mxu0 %v12118_v54  ;;  %1997 = vmatprep.subr.bf16.mxu1 %v12123_v39 }
 0x42b   :  { %1986 = vmatprep.mubr.bf16.mxu0 %v15107_v45  ;;  %2027 = vmatprep.mubr.bf16.mxu1 %v15107_v45 }
 0x42d   :  { %1957 = vmatpush1.bf16.msra.mxu0 %v12128_v50  ;;  %1998 = vmatpush1.bf16.msra.mxu1 %v12133_v44 }
 0x42e   :  { %1958 = vmatprep.subr.bf16.mxu0 %v12142_v61  ;;  %1999 = vmatprep.subr.bf16.mxu1 %v12147_v42 }
 0x431   :  { %1959 = vmatpush1.bf16.msra.mxu0 %v12152_v47  ;;  %2000 = vmatpush1.bf16.msra.mxu1 %v12157_v1 }
 0x432   :  { %1960 = vmatprep.subr.bf16.mxu0 %v12166_v2  ;;  %2001 = vmatprep.subr.bf16.mxu1 %v12171_v3 }
 0x435   :  { %1961 = vmatpush1.bf16.msra.mxu0 %v12176_v4  ;;  %2002 = vmatpush1.bf16.msra.mxu1 %v12181_v5 }
 0x436   :  { %1962 = vmatprep.subr.bf16.mxu0 %v12190_v6  ;;  %2003 = vmatprep.subr.bf16.mxu1 %v12195_v7 }
 0x439   :  { %1963 = vmatpush1.bf16.msra.mxu0 %v12200_v8  ;;  %2004 = vmatpush1.bf16.msra.mxu1 %v12205_v9 }
 0x43a   :  { %1964 = vmatprep.subr.bf16.mxu0 %v12214_v10  ;;  %2005 = vmatprep.subr.bf16.mxu1 %v12219_v11 }
 0x43d   :  { %1965 = vmatpush1.bf16.msra.mxu0 %v12224_v12  ;;  %2006 = vmatpush1.bf16.msra.mxu1 %v12229_v13 }
 0x43e   :  { %1966 = vmatprep.subr.bf16.mxu0 %v12238_v17  ;;  %2007 = vmatprep.subr.bf16.mxu1 %v12243_v19 }
 0x441   :  { %1967 = vmatpush1.bf16.msra.mxu0 %v12248_v22  ;;  %2008 = vmatpush1.bf16.msra.mxu1 %v12253_v24 }
 0x442   :  { %1968 = vmatprep.subr.bf16.mxu0 %v12262_v25  ;;  %2009 = vmatprep.subr.bf16.mxu1 %v12267_v26 }
 0x445   :  { %1969 = vmatpush1.bf16.msra.mxu0 %v12272_v27  ;;  %2010 = vmatpush1.bf16.msra.mxu1 %v12277_v28 }
 0x446   :  { %2258 = vmatprep.subr.bf16.mxu0 %v12094_v63  ;;  %2299 = vmatprep.subr.bf16.mxu1 %v12099_v59 }
 0x4fb   :  { %v1684_v32 = vpop.f32.mrb[12].mxu0  ;;  %v1725_v34 = vpop.f32.mrb[20].mxu1 }
 0x4fc   :  { %v1732_v38 = vadd.f32 %v1684_v32, %v191_v30  ;;  %v1686_v57 = vpop.f32.mrb[13].mxu0  ;;  %v1727_v37 = vpop.f32.mrb[21].mxu1  ;;  %v1734_v62 = vadd.f32 %v1725_v34, %v193_v35 }
 0x4fd   :  { %v1733_v33 = vadd.f32 %v1686_v57, %v192_v36  ;;  %v1688_v58 = vpop.f32.mrb[14].mxu0  ;;  %v1729_v29 = vpop.f32.mrb[22].mxu1  ;;  %v1735_v40 = vadd.f32 %v1727_v37, %v194_v52 }
 0x4fe   :  { %v1736_v46 = vmul.f32 0.5, %v1732_v38  ;;  %v1689_v16 = vpop.f32.mrb[15].mxu0  ;;  %v1730_v20 = vpop.f32.mrb[23].mxu1 }
 0x4ff   :  { %v1740_v49 = vmul.f32 0.5, %v1733_v33  ;;  %v1745_v30 = vmul.f32 0.5, %v1735_v40 }
 0x500   :  { %11287 = vtanh.f32 %v1736_v46 }
 0x501   :  { %11289 = vtanh.f32 %v1740_v49 }
 0x502   :  { %11291 = vtanh.f32 %v1734_v62 }
 0x503   :  { %11293 = vtanh.f32 %v1745_v30 }
 0x50a   :  { %v11288_v32 = vpop.eup %11287 }
 0x50b   :  { %v11290_v36 = vpop.eup %11289  ;;  %v1738_v57 = vmul.f32 0.5, %v11288_v32 }
 0x50c   :  { %v1742_v58 = vmul.f32 0.5, %v11290_v36  ;;  %v11292_v31 = vpop.eup %11291 }
 0x50d   :  { %v1739_v38 = vadd.f32 0.5, %v1738_v57  ;;  %v11294_v34 = vpop.eup %11293 }
 0x50e   :  { %v1743_v29 = vadd.f32 0.5, %v1742_v58  ;;  %v1747_v46 = vmul.f32 0.5, %v11294_v34 }
 0x50f   :  { %v1750_v56 = vmul.f32 %v11292_v31, %v1739_v38 }
 0x510   :  { %v1749_v16 = vmul.f32 %v1743_v29, %v12294_v60  ;;  %v1748_v35 = vadd.f32 0.5, %v1747_v46  ;;  %v88_v60 = vpop.permute.xlu1 %87 }
 0x511   :  { %v141_v20 = vmul.f32 %v11940_v51, %v88_v60  ;;  %v142_v49 = vmul.f32 %v11934_v48, %v88_v60  ;;  %v143_v40 = vmul.f32 %v11957_v14, %v88_v60 }
 0x512   :  { %v12344_v33 = vadd.f32 %v1750_v56, %v1749_v16  ;;  %v144_v16 = vmul.f32 %v11960_v15, %v88_v60 }
 0x513   :  { %v195_v62 = vadd.f32 %v11948_v55, %v141_v20  ;;  %v196_v36 = vadd.f32 %v11944_v53, %v142_v49  ;;  %v197_v56 = vadd.f32 %v11964_v18, %v143_v40 }
 0x514   :  { %11295 = vtanh.f32 %v12344_v33 }
 0x51e   :  { %v11296_v52 = vpop.eup %11295 }
 0x51f   :  { %v12347_v37 = vmul.f32 %v11296_v52, %v1748_v35 }
 0x521   :  { %v1761_v0 = vpack.c.bf16 %v12347_v37, %v12347_v37 }
 0x523   :  { %1987 = vmatmul.mubr.bf16.vlgmr.msra.gmra.mrb[16].mxu0 %v1761_v0  ;;  %2028 = vmatmul.mubr.bf16.vlgmr.msra.gmra.mrb[24].mxu1 %v1761_v0  ;;  %v198_v0 = vadd.f32 %v11968_v23, %v144_v16 }
 0x524   :  { %2259 = vmatpush1.bf16.msra.mxu0 %v12104_v41  ;;  %2300 = vmatpush1.bf16.msra.mxu1 %v12109_v21 }
 0x525   :  { %2260 = vmatprep.subr.bf16.mxu0 %v12118_v54  ;;  %2301 = vmatprep.subr.bf16.mxu1 %v12123_v39 }
 0x526   :  { %2290 = vmatprep.mubr.bf16.mxu0 %v15107_v45  ;;  %2331 = vmatprep.mubr.bf16.mxu1 %v15107_v45 }
 0x528   :  { %2261 = vmatpush1.bf16.msra.mxu0 %v12128_v50  ;;  %2302 = vmatpush1.bf16.msra.mxu1 %v12133_v44 }
 0x529   :  { %2262 = vmatprep.subr.bf16.mxu0 %v12142_v61  ;;  %2303 = vmatprep.subr.bf16.mxu1 %v12147_v42 }
 0x52c   :  { %2263 = vmatpush1.bf16.msra.mxu0 %v12152_v47  ;;  %2304 = vmatpush1.bf16.msra.mxu1 %v12157_v1 }
 0x52d   :  { %2264 = vmatprep.subr.bf16.mxu0 %v12166_v2  ;;  %2305 = vmatprep.subr.bf16.mxu1 %v12171_v3 }
 0x530   :  { %2265 = vmatpush1.bf16.msra.mxu0 %v12176_v4  ;;  %2306 = vmatpush1.bf16.msra.mxu1 %v12181_v5 }
 0x531   :  { %2266 = vmatprep.subr.bf16.mxu0 %v12190_v6  ;;  %2307 = vmatprep.subr.bf16.mxu1 %v12195_v7 }
 0x534   :  { %2267 = vmatpush1.bf16.msra.mxu0 %v12200_v8  ;;  %2308 = vmatpush1.bf16.msra.mxu1 %v12205_v9 }
 0x535   :  { %2268 = vmatprep.subr.bf16.mxu0 %v12214_v10  ;;  %2309 = vmatprep.subr.bf16.mxu1 %v12219_v11 }
 0x538   :  { %2269 = vmatpush1.bf16.msra.mxu0 %v12224_v12  ;;  %2310 = vmatpush1.bf16.msra.mxu1 %v12229_v13 }
 0x539   :  { %2270 = vmatprep.subr.bf16.mxu0 %v12238_v17  ;;  %2311 = vmatprep.subr.bf16.mxu1 %v12243_v19 }
 0x53c   :  { %2271 = vmatpush1.bf16.msra.mxu0 %v12248_v22  ;;  %2312 = vmatpush1.bf16.msra.mxu1 %v12253_v24 }
 0x53d   :  { %2272 = vmatprep.subr.bf16.mxu0 %v12262_v25  ;;  %2313 = vmatprep.subr.bf16.mxu1 %v12267_v26 }
 0x540   :  { %2273 = vmatpush1.bf16.msra.mxu0 %v12272_v27  ;;  %2314 = vmatpush1.bf16.msra.mxu1 %v12277_v28 }
 0x541   :  { %2562 = vmatprep.subr.bf16.mxu0 %v12094_v63  ;;  %2603 = vmatprep.subr.bf16.mxu1 %v12099_v59 }
 0x5f6   :  { %v1988_v30 = vpop.f32.mrb[16].mxu0  ;;  %v2029_v32 = vpop.f32.mrb[24].mxu1 }
 0x5f7   :  { %v2036_v57 = vadd.f32 %v1988_v30, %v195_v62  ;;  %v1990_v58 = vpop.f32.mrb[17].mxu0  ;;  %v2031_v38 = vpop.f32.mrb[25].mxu1  ;;  %v2038_v52 = vadd.f32 %v2029_v32, %v197_v56 }
 0x5f8   :  { %v2037_v31 = vadd.f32 %v1990_v58, %v196_v36  ;;  %v1992_v63 = vpop.f32.mrb[18].mxu0  ;;  %v2033_v29 = vpop.f32.mrb[26].mxu1  ;;  %v2039_v20 = vadd.f32 %v2031_v38, %v198_v0 }
 0x5f9   :  { %v2040_v59 = vmul.f32 0.5, %v2036_v57  ;;  %v1993_v34 = vpop.f32.mrb[19].mxu0  ;;  %v2034_v46 = vpop.f32.mrb[27].mxu1 }
 0x5fa   :  { %v2044_v35 = vmul.f32 0.5, %v2037_v31  ;;  %v2049_v49 = vmul.f32 0.5, %v2039_v20 }
 0x5fb   :  { %11297 = vtanh.f32 %v2040_v59 }
 0x5fc   :  { %11299 = vtanh.f32 %v2044_v35 }
 0x5fd   :  { %11301 = vtanh.f32 %v2038_v52 }
 0x5fe   :  { %11303 = vtanh.f32 %v2049_v49 }
 0x605   :  { %v11298_v62 = vpop.eup %11297 }
 0x606   :  { %v11300_v30 = vpop.eup %11299  ;;  %v2042_v36 = vmul.f32 0.5, %v11298_v62 }
 0x607   :  { %v2046_v58 = vmul.f32 0.5, %v11300_v30  ;;  %v11302_v40 = vpop.eup %11301 }
 0x608   :  { %v2043_v57 = vadd.f32 0.5, %v2042_v36  ;;  %v11304_v32 = vpop.eup %11303 }
 0x609   :  { %v2047_v63 = vadd.f32 0.5, %v2046_v58  ;;  %v2051_v59 = vmul.f32 0.5, %v11304_v32  ;;  %v10864_v32 = vld [vmem:[%s15077_s4 + $0x28] ss:$16 sps:$4 sm:$0xff]  }
 0x60a   :  { %v2054_v60 = vmul.f32 %v11302_v40, %v2043_v57  ;;  %v10855_v57 = vld [vmem:[%s15077_s4] ss:$16 sps:$4 sm:$0xff]   ;;  %v10858_v40 = vld [vmem:[%s15077_s4 + $0x8] ss:$16 sps:$4 sm:$0xff]  }
 0x60b   :  { %v2053_v29 = vmul.f32 %v2047_v63, %v12344_v33  ;;  %v2052_v56 = vadd.f32 0.5, %v2051_v59  ;;  %v10869_v59 = vld [vmem:[%s15077_s4 + $0x44] ss:$16 sps:$4 sm:$0xff]  }
 0x60d   :  { %v12394_v31 = vadd.f32 %v2054_v60, %v2053_v29  ;;  %v10863_v60 = vld [vmem:[%s15077_s4 + $0x24] ss:$16 sps:$4 sm:$0xff]   ;;  %v10866_v29 = vld [vmem:[%s15077_s4 + $0x2c] ss:$16 sps:$4 sm:$0xff]  }
 0x60f   :  { %11305 = vtanh.f32 %v12394_v31 }
 0x619   :  { %v11306_v38 = vpop.eup %11305 }
 0x61a   :  { %v12397_v16 = vmul.f32 %v11306_v38, %v2052_v56  ;;  %v10872_v56 = vld [vmem:[%s15077_s4 + $0x4c] ss:$16 sps:$4 sm:$0xff]   ;;  %v10867_v38 = vld [vmem:[%s15077_s4 + $0x40] ss:$16 sps:$4 sm:$0xff]  }
 0x61c   :  { %v2065_v34 = vpack.c.bf16 %v12397_v16, %v12397_v16 }
 0x61e   :  { %2291 = vmatmul.mubr.bf16.vlgmr.msra.gmra.mrb[20].mxu0 %v2065_v34  ;;  %2332 = vmatmul.mubr.bf16.vlgmr.msra.gmra.mrb[28].mxu1 %v2065_v34  ;;  %v10870_v34 = vld [vmem:[%s15077_s4 + $0x48] ss:$16 sps:$4 sm:$0xff]  }
 0x61f   :  { %2563 = vmatpush1.bf16.msra.mxu0 %v12104_v41  ;;  %2604 = vmatpush1.bf16.msra.mxu1 %v12109_v21  ;;  %v10857_v41 = vld [vmem:[%s15077_s4 + $0x4] ss:$16 sps:$4 sm:$0xff]   ;;  %v10860_v21 = vld [vmem:[%s15077_s4 + $0xc] ss:$16 sps:$4 sm:$0xff]  }
 0x620   :  { %2564 = vmatprep.subr.bf16.mxu0 %v12118_v54  ;;  %2605 = vmatprep.subr.bf16.mxu1 %v12123_v39  ;;  %v93_v54 = vpop.permute.xlu0 %92 }
 0x621   :  { %2594 = vmatprep.mubr.bf16.mxu0 %v15107_v45  ;;  %2635 = vmatprep.mubr.bf16.mxu1 %v15107_v45  ;;  %v145_v39 = vmul.f32 %v11940_v51, %v93_v54 }
 0x623   :  { %2565 = vmatpush1.bf16.msra.mxu0 %v12128_v50  ;;  %2606 = vmatpush1.bf16.msra.mxu1 %v12133_v44  ;;  %v146_v50 = vmul.f32 %v11934_v48, %v93_v54  ;;  %v147_v44 = vmul.f32 %v11957_v14, %v93_v54 }
 0x624   :  { %2566 = vmatprep.subr.bf16.mxu0 %v12142_v61  ;;  %2607 = vmatprep.subr.bf16.mxu1 %v12147_v42  ;;  %v199_v61 = vadd.f32 %v11948_v55, %v145_v39  ;;  %v10876_v39 = vld [vmem:[%s15077_s4 + $0x68] ss:$16 sps:$4 sm:$0xff]  }
 0x627   :  { %2567 = vmatpush1.bf16.msra.mxu0 %v12152_v47  ;;  %2608 = vmatpush1.bf16.msra.mxu1 %v12157_v1  ;;  %v200_v1 = vadd.f32 %v11944_v53, %v146_v50  ;;  %v10881_v50 = vld [vmem:[%s15077_s4 + $0x84] ss:$16 sps:$4 sm:$0xff]  }
 0x628   :  { %2568 = vmatprep.subr.bf16.mxu0 %v12166_v2  ;;  %2609 = vmatprep.subr.bf16.mxu1 %v12171_v3 }
 0x62b   :  { %2569 = vmatpush1.bf16.msra.mxu0 %v12176_v4  ;;  %2610 = vmatpush1.bf16.msra.mxu1 %v12181_v5 }
 0x62c   :  { %2570 = vmatprep.subr.bf16.mxu0 %v12190_v6  ;;  %2611 = vmatprep.subr.bf16.mxu1 %v12195_v7 }
 0x62f   :  { %2571 = vmatpush1.bf16.msra.mxu0 %v12200_v8  ;;  %2612 = vmatpush1.bf16.msra.mxu1 %v12205_v9  ;;  %v148_v8 = vmul.f32 %v11960_v15, %v93_v54  ;;  %v10873_v54 = vld [vmem:[%s15077_s4 + $0x60] ss:$16 sps:$4 sm:$0xff]  }
 0x630   :  { %2572 = vmatprep.subr.bf16.mxu0 %v12214_v10  ;;  %2613 = vmatprep.subr.bf16.mxu1 %v12219_v11  ;;  %v201_v10 = vadd.f32 %v11964_v18, %v147_v44  ;;  %v10884_v44 = vld [vmem:[%s15077_s4 + $0x8c] ss:$16 sps:$4 sm:$0xff]  }
 0x633   :  { %2573 = vmatpush1.bf16.msra.mxu0 %v12224_v12  ;;  %2614 = vmatpush1.bf16.msra.mxu1 %v12229_v13 }
 0x634   :  { %2574 = vmatprep.subr.bf16.mxu0 %v12238_v17  ;;  %2615 = vmatprep.subr.bf16.mxu1 %v12243_v19  ;;  %v202_v19 = vadd.f32 %v11968_v23, %v148_v8  ;;  %v10899_v8 = vld [vmem:[%s15077_s4 + $0xe4] ss:$16 sps:$4 sm:$0xff]  }
 0x637   :  { %2575 = vmatpush1.bf16.msra.mxu0 %v12248_v22  ;;  %2616 = vmatpush1.bf16.msra.mxu1 %v12253_v24 }
 0x638   :  { %2576 = vmatprep.subr.bf16.mxu0 %v12262_v25  ;;  %2617 = vmatprep.subr.bf16.mxu1 %v12267_v26 }
 0x63b   :  { %2577 = vmatpush1.bf16.msra.mxu0 %v12272_v27  ;;  %2618 = vmatpush1.bf16.msra.mxu1 %v12277_v28 }
 0x63c   :  { %2894 = vmatprep.subr.bf16.mxu0 %v10857_v41  ;;  %2967 = vmatprep.subr.bf16.mxu1 %v10860_v21  ;;  %v10875_v41 = vld [vmem:[%s15077_s4 + $0x64] ss:$16 sps:$4 sm:$0xff]   ;;  %v10878_v21 = vld [vmem:[%s15077_s4 + $0x6c] ss:$16 sps:$4 sm:$0xff]  }
 0x6f1   :  { %v2292_v42 = vpop.f32.mrb[20].mxu0  ;;  %v2333_v47 = vpop.f32.mrb[28].mxu1 }
 0x6f2   :  { %v2340_v2 = vadd.f32 %v2292_v42, %v199_v61  ;;  %v2294_v3 = vpop.f32.mrb[21].mxu0  ;;  %v2335_v4 = vpop.f32.mrb[29].mxu1  ;;  %v2342_v17 = vadd.f32 %v2333_v47, %v201_v10  ;;  %v10879_v61 = vld [vmem:[%s15077_s4 + $0x80] ss:$16 sps:$4 sm:$0xff]   ;;  %v10882_v42 = vld [vmem:[%s15077_s4 + $0x88] ss:$16 sps:$4 sm:$0xff]  }
 0x6f3   :  { %v2341_v5 = vadd.f32 %v2294_v3, %v200_v1  ;;  %v2296_v6 = vpop.f32.mrb[22].mxu0  ;;  %v2337_v7 = vpop.f32.mrb[30].mxu1  ;;  %v2343_v22 = vadd.f32 %v2335_v4, %v202_v19  ;;  %v10887_v47 = vld [vmem:[%s15077_s4 + $0xa4] ss:$16 sps:$4 sm:$0xff]   ;;  %v10890_v1 = vld [vmem:[%s15077_s4 + $0xac] ss:$16 sps:$4 sm:$0xff]  }
 0x6f4   :  { %v2344_v9 = vmul.f32 0.5, %v2340_v2  ;;  %v2297_v11 = vpop.f32.mrb[23].mxu0  ;;  %v2338_v12 = vpop.f32.mrb[31].mxu1  ;;  %v10885_v2 = vld [vmem:[%s15077_s4 + $0xa0] ss:$16 sps:$4 sm:$0xff]  }
 0x6f5   :  { %v2348_v13 = vmul.f32 0.5, %v2341_v5  ;;  %v2353_v24 = vmul.f32 0.5, %v2343_v22  ;;  %v10888_v3 = vld [vmem:[%s15077_s4 + $0xa8] ss:$16 sps:$4 sm:$0xff]   ;;  %v10893_v4 = vld [vmem:[%s15077_s4 + $0xc4] ss:$16 sps:$4 sm:$0xff]  }
 0x6f6   :  { %11307 = vtanh.f32 %v2344_v9  ;;  %v10896_v5 = vld [vmem:[%s15077_s4 + $0xcc] ss:$16 sps:$4 sm:$0xff]   ;;  %v10891_v6 = vld [vmem:[%s15077_s4 + $0xc0] ss:$16 sps:$4 sm:$0xff]   ;;  %v10894_v7 = vld [vmem:[%s15077_s4 + $0xc8] ss:$16 sps:$4 sm:$0xff]  }
 0x6f7   :  { %11309 = vtanh.f32 %v2348_v13  ;;  %v10902_v9 = vld [vmem:[%s15077_s4 + $0xec] ss:$16 sps:$4 sm:$0xff]   ;;  %v10897_v10 = vld [vmem:[%s15077_s4 + $0xe0] ss:$16 sps:$4 sm:$0xff]   ;;  %v10900_v11 = vld [vmem:[%s15077_s4 + $0xe8] ss:$16 sps:$4 sm:$0xff]  }
 0x6f8   :  { %11311 = vtanh.f32 %v2342_v17  ;;  %v15111_v12 = vld [vmem:[#allocation11_spill] sm:$0xff]  ;;  %v15112_v17 = vld [vmem:[#allocation12_spill] sm:$0xff]  ;;  %v15113_v19 = vld [vmem:[#allocation13_spill] sm:$0xff] }
 0x6f9   :  { %11313 = vtanh.f32 %v2353_v24  ;;  %v2676_v13 = vpack.c.bf16 %v15111_v12, %v11975_v43  ;;  %v2677_v22 = vpack.c.bf16 %v15113_v19, %v15112_v17  ;;  %v2678_v24 = vpack.c.bf16 %v12397_v16, %v12347_v37  ;;  %v12562_v43 = vld [vmem:[%s15078_s5 + $0x4] ss:$16 sps:$4 sm:$0xff]   ;;  %v12573_v37 = vld [vmem:[%s15078_s5 + $0xc] ss:$16 sps:$4 sm:$0xff]   ;;  %v12578_v16 = vld [vmem:[%s15078_s5 + $0x8] ss:$16 sps:$4 sm:$0xff]  }
 0x700   :  { %v11308_v25 = vpop.eup %11307 }
 0x701   :  { %v11310_v26 = vpop.eup %11309  ;;  %v2346_v27 = vmul.f32 0.5, %v11308_v25  ;;  %v12567_v25 = vld [vmem:[%s15078_s5] ss:$16 sps:$4 sm:$0xff]  }
 0x702   :  { %v2350_v28 = vmul.f32 0.5, %v11310_v26  ;;  %v11312_v46 = vpop.eup %11311  ;;  %v12585_v26 = vld [vmem:[%s15078_s5 + $0x24] ss:$16 sps:$4 sm:$0xff]  }
 0x703   :  { %v2347_v33 = vadd.f32 0.5, %v2346_v27  ;;  %v11314_v49 = vpop.eup %11313  ;;  %v12590_v27 = vld [vmem:[%s15078_s5 + $0x2c] ss:$16 sps:$4 sm:$0xff]  }
 0x704   :  { %v2351_v35 = vadd.f32 0.5, %v2350_v28  ;;  %v2355_v62 = vmul.f32 0.5, %v11314_v49  ;;  %v12596_v28 = vld [vmem:[%s15078_s5 + $0x20] ss:$16 sps:$4 sm:$0xff]   ;;  %v12632_v49 = vld [vmem:[%s15078_s5 + $0x64] ss:$16 sps:$4 sm:$0xff]  }
 0x705   :  { %v2358_v52 = vmul.f32 %v11312_v46, %v2347_v33  ;;  %v12601_v33 = vld [vmem:[%s15078_s5 + $0x28] ss:$16 sps:$4 sm:$0xff]   ;;  %v12609_v46 = vld [vmem:[%s15078_s5 + $0x44] ss:$16 sps:$4 sm:$0xff]  }
 0x706   :  { %v2357_v0 = vmul.f32 %v2351_v35, %v12394_v31  ;;  %v2356_v30 = vadd.f32 0.5, %v2355_v62  ;;  %v10861_v31 = vld [vmem:[%s15077_s4 + $0x20] ss:$16 sps:$4 sm:$0xff]   ;;  %v12614_v35 = vld [vmem:[%s15078_s5 + $0x4c] ss:$16 sps:$4 sm:$0xff]  }
 0x707   :  { %v12637_v62 = vld [vmem:[%s15078_s5 + $0x6c] ss:$16 sps:$4 sm:$0xff]  }
 0x708   :  { %v12448_v20 = vadd.f32 %v2358_v52, %v2357_v0  ;;  %v12620_v52 = vld [vmem:[%s15078_s5 + $0x40] ss:$16 sps:$4 sm:$0xff]   ;;  %v12625_v0 = vld [vmem:[%s15078_s5 + $0x48] ss:$16 sps:$4 sm:$0xff]  }
 0x70a   :  { %11315 = vtanh.f32 %v12448_v20 }
 0x714   :  { %v11316_v36 = vpop.eup %11315 }
 0x715   :  { %v12451_v58 = vmul.f32 %v11316_v36, %v2356_v30  ;;  %v12643_v30 = vld [vmem:[%s15078_s5 + $0x60] ss:$16 sps:$4 sm:$0xff]   ;;  %v12648_v36 = vld [vmem:[%s15078_s5 + $0x68] ss:$16 sps:$4 sm:$0xff]  }
 0x717   :  { %v2369_v63 = vpack.c.bf16 %v12451_v58, %v12451_v58 }
 0x719   :  { %2595 = vmatmul.mubr.bf16.vlgmr.msra.gmra.mrb[24].mxu0 %v2369_v63  ;;  %2636 = vmatmul.mubr.bf16.vlgmr.msra.gmra.mrb[32].mxu1 %v2369_v63  ;;  %v12668_v63 = vld [vmem:[%s15078_s5 + $0x80] ss:$16 sps:$4 sm:$0xff]  }
 0x71a   :  { %2895 = vmatpush1.bf16.msra.mxu0 %v10855_v57  ;;  %2968 = vmatpush1.bf16.msra.mxu1 %v10858_v40  ;;  %v12657_v57 = vld [vmem:[%s15078_s5 + $0x84] ss:$16 sps:$4 sm:$0xff]   ;;  %v12662_v40 = vld [vmem:[%s15078_s5 + $0x8c] ss:$16 sps:$4 sm:$0xff]  }
 0x71b   :  { %2896 = vmatprep.subr.bf16.mxu0 %v10863_v60  ;;  %2969 = vmatprep.subr.bf16.mxu1 %v10866_v29  ;;  %v12673_v60 = vld [vmem:[%s15078_s5 + $0x88] ss:$16 sps:$4 sm:$0xff]   ;;  %v12681_v29 = vld [vmem:[%s15078_s5 + $0xa4] ss:$16 sps:$4 sm:$0xff]  }
 0x71c   :  { %2926 = vmatprep.mubr.bf16.mxu0 %v15107_v45  ;;  %2999 = vmatprep.mubr.bf16.mxu1 %v15107_v45 }
 0x71e   :  { %2897 = vmatpush1.bf16.msra.mxu0 %v10861_v31  ;;  %2970 = vmatpush1.bf16.msra.mxu1 %v10864_v32  ;;  %v12686_v31 = vld [vmem:[%s15078_s5 + $0xac] ss:$16 sps:$4 sm:$0xff]   ;;  %v12692_v32 = vld [vmem:[%s15078_s5 + $0xa0] ss:$16 sps:$4 sm:$0xff]  }
 0x71f   :  { %2898 = vmatprep.subr.bf16.mxu0 %v10869_v59  ;;  %2971 = vmatprep.subr.bf16.mxu1 %v10872_v56  ;;  %v12697_v59 = vld [vmem:[%s15078_s5 + $0xa8] ss:$16 sps:$4 sm:$0xff]   ;;  %v12705_v56 = vld [vmem:[%s15078_s5 + $0xc4] ss:$16 sps:$4 sm:$0xff]  }
 0x722   :  { %2899 = vmatpush1.bf16.msra.mxu0 %v10867_v38  ;;  %2972 = vmatpush1.bf16.msra.mxu1 %v10870_v34  ;;  %v12710_v38 = vld [vmem:[%s15078_s5 + $0xcc] ss:$16 sps:$4 sm:$0xff]   ;;  %v12716_v34 = vld [vmem:[%s15078_s5 + $0xc0] ss:$16 sps:$4 sm:$0xff]  }
 0x723   :  { %2900 = vmatprep.subr.bf16.mxu0 %v10875_v41  ;;  %2973 = vmatprep.subr.bf16.mxu1 %v10878_v21  ;;  %v12721_v41 = vld [vmem:[%s15078_s5 + $0xc8] ss:$16 sps:$4 sm:$0xff]   ;;  %v12729_v21 = vld [vmem:[%s15078_s5 + $0xe4] ss:$16 sps:$4 sm:$0xff]  }
 0x726   :  { %2901 = vmatpush1.bf16.msra.mxu0 %v10873_v54  ;;  %2974 = vmatpush1.bf16.msra.mxu1 %v10876_v39  ;;  %v12734_v54 = vld [vmem:[%s15078_s5 + $0xec] ss:$16 sps:$4 sm:$0xff]   ;;  %v12740_v39 = vld [vmem:[%s15078_s5 + $0xe0] ss:$16 sps:$4 sm:$0xff]  }
 0x727   :  { %2902 = vmatprep.subr.bf16.mxu0 %v10881_v50  ;;  %2975 = vmatprep.subr.bf16.mxu1 %v10884_v44  ;;  %v12745_v50 = vld [vmem:[%s15078_s5 + $0xe8] ss:$16 sps:$4 sm:$0xff]   ;;  %v98_v44 = vpop.permute.xlu1 %97 }
 0x72a   :  { %2903 = vmatpush1.bf16.msra.mxu0 %v10879_v61  ;;  %2976 = vmatpush1.bf16.msra.mxu1 %v10882_v42  ;;  %v149_v61 = vmul.f32 %v11940_v51, %v98_v44  ;;  %v150_v42 = vmul.f32 %v11934_v48, %v98_v44 }
 0x72b   :  { %2904 = vmatprep.subr.bf16.mxu0 %v10887_v47  ;;  %2977 = vmatprep.subr.bf16.mxu1 %v10890_v1  ;;  %v151_v47 = vmul.f32 %v11957_v14, %v98_v44 }
 0x72c   :  { %v203_v1 = vadd.f32 %v11948_v55, %v149_v61 }
 0x72d   :  { %v205_v51 = vadd.f32 %v11964_v18, %v151_v47 }
 0x72e   :  { %2905 = vmatpush1.bf16.msra.mxu0 %v10885_v2  ;;  %2978 = vmatpush1.bf16.msra.mxu1 %v10888_v3 }
 0x72f   :  { %2906 = vmatprep.subr.bf16.mxu0 %v10893_v4  ;;  %2979 = vmatprep.subr.bf16.mxu1 %v10896_v5  ;;  %v204_v4 = vadd.f32 %v11944_v53, %v150_v42 }
 0x732   :  { %2907 = vmatpush1.bf16.msra.mxu0 %v10891_v6  ;;  %2980 = vmatpush1.bf16.msra.mxu1 %v10894_v7 }
 0x733   :  { %2908 = vmatprep.subr.bf16.mxu0 %v10899_v8  ;;  %2981 = vmatprep.subr.bf16.mxu1 %v10902_v9 }
 0x736   :  { %2909 = vmatpush1.bf16.msra.mxu0 %v10897_v10  ;;  %2982 = vmatpush1.bf16.msra.mxu1 %v10900_v11  ;;  %v152_v11 = vmul.f32 %v11960_v15, %v98_v44 }
 0x737   :  { %3268 = vmatprep.subr.bf16.mxu0 %v12562_v43  ;;  %3309 = vmatprep.subr.bf16.mxu1 %v12573_v37 }
 0x738   :  { %v206_v17 = vadd.f32 %v11968_v23, %v152_v11 }
 0x739   :  { %2927 = vmatmul.mubr.bf16.vlgmr.msra.gmra.mrb[28].mxu0 %v2676_v13  ;;  %3000 = vmatmul.mubr.bf16.vlgmr.msra.gmra.mrb[36].mxu1 %v2676_v13 }
 0x73a   :  { %2936 = vmatprep.mubr.bf16.mxu0 %v15107_v45  ;;  %3009 = vmatprep.mubr.bf16.mxu1 %v15107_v45 }
 0x73b   :  { %3269 = vmatpush1.bf16.msra.mxu0 %v12567_v25  ;;  %3310 = vmatpush1.bf16.msra.mxu1 %v12578_v16 }
 0x73c   :  { %3270 = vmatprep.subr.bf16.mxu0 %v12585_v26  ;;  %3311 = vmatprep.subr.bf16.mxu1 %v12590_v27 }
 0x73f   :  { %3271 = vmatpush1.bf16.msra.mxu0 %v12596_v28  ;;  %3312 = vmatpush1.bf16.msra.mxu1 %v12601_v33 }
 0x740   :  { %3272 = vmatprep.subr.bf16.mxu0 %v12609_v46  ;;  %3313 = vmatprep.subr.bf16.mxu1 %v12614_v35 }
 0x741   :  { %2937 = vmatmul.mubr.bf16.gmra.mrb[32].mxu0 %v2677_v22  ;;  %3010 = vmatmul.mubr.bf16.gmra.mrb[40].mxu1 %v2677_v22 }
 0x742   :  { %2946 = vmatprep.mubr.bf16.mxu0 %v15107_v45  ;;  %3019 = vmatprep.mubr.bf16.mxu1 %v15107_v45 }
 0x743   :  { %3273 = vmatpush1.bf16.msra.mxu0 %v12620_v52  ;;  %3314 = vmatpush1.bf16.msra.mxu1 %v12625_v0 }
 0x744   :  { %3274 = vmatprep.subr.bf16.mxu0 %v12632_v49  ;;  %3315 = vmatprep.subr.bf16.mxu1 %v12637_v62 }
 0x747   :  { %3275 = vmatpush1.bf16.msra.mxu0 %v12643_v30  ;;  %3316 = vmatpush1.bf16.msra.mxu1 %v12648_v36 }
 0x748   :  { %3276 = vmatprep.subr.bf16.mxu0 %v12657_v57  ;;  %3317 = vmatprep.subr.bf16.mxu1 %v12662_v40 }
 0x749   :  { %2947 = vmatmul.mubr.bf16.gmra.mrb[36].mxu0 %v2678_v24  ;;  %3020 = vmatmul.mubr.bf16.gmra.mrb[44].mxu1 %v2678_v24 }
 0x74a   :  { %2956 = vmatprep.mubr.bf16.mxu0 %v15107_v45  ;;  %3029 = vmatprep.mubr.bf16.mxu1 %v15107_v45 }
 0x74b   :  { %3277 = vmatpush1.bf16.msra.mxu0 %v12668_v63  ;;  %3318 = vmatpush1.bf16.msra.mxu1 %v12673_v60 }
 0x74c   :  { %3278 = vmatprep.subr.bf16.mxu0 %v12681_v29  ;;  %3319 = vmatprep.subr.bf16.mxu1 %v12686_v31 }
 0x74f   :  { %3279 = vmatpush1.bf16.msra.mxu0 %v12692_v32  ;;  %3320 = vmatpush1.bf16.msra.mxu1 %v12697_v59 }
 0x750   :  { %3280 = vmatprep.subr.bf16.mxu0 %v12705_v56  ;;  %3321 = vmatprep.subr.bf16.mxu1 %v12710_v38 }
 0x753   :  { %3281 = vmatpush1.bf16.msra.mxu0 %v12716_v34  ;;  %3322 = vmatpush1.bf16.msra.mxu1 %v12721_v41 }
 0x754   :  { %3282 = vmatprep.subr.bf16.mxu0 %v12729_v21  ;;  %3323 = vmatprep.subr.bf16.mxu1 %v12734_v54 }
 0x757   :  { %3283 = vmatpush1.bf16.msra.mxu0 %v12740_v39  ;;  %3324 = vmatpush1.bf16.msra.mxu1 %v12745_v50 }
 0x758   :  { %3378 = vmatprep.subr.bf16.mxu0 %v12562_v43  ;;  %3419 = vmatprep.subr.bf16.mxu1 %v12573_v37 }
 0x7ec   :  { %v2596_v2 = vpop.f32.mrb[24].mxu0  ;;  %v2637_v3 = vpop.f32.mrb[32].mxu1 }
 0x7ed   :  { %v2644_v5 = vadd.f32 %v2596_v2, %v203_v1  ;;  %v2598_v6 = vpop.f32.mrb[25].mxu0  ;;  %v2639_v7 = vpop.f32.mrb[33].mxu1  ;;  %v2646_v55 = vadd.f32 %v2637_v3, %v205_v51 }
 0x7ee   :  { %v2645_v8 = vadd.f32 %v2598_v6, %v204_v4  ;;  %v2600_v9 = vpop.f32.mrb[26].mxu0  ;;  %v2641_v10 = vpop.f32.mrb[34].mxu1  ;;  %v2647_v53 = vadd.f32 %v2639_v7, %v206_v17 }
 0x7ef   :  { %v2648_v12 = vmul.f32 0.5, %v2644_v5  ;;  %v2601_v48 = vpop.f32.mrb[27].mxu0  ;;  %v2642_v13 = vpop.f32.mrb[35].mxu1 }
 0x7f0   :  { %v2652_v14 = vmul.f32 0.5, %v2645_v8  ;;  %v2657_v19 = vmul.f32 0.5, %v2647_v53 }
 0x7f1   :  { %11317 = vtanh.f32 %v2648_v12 }
 0x7f2   :  { %11319 = vtanh.f32 %v2652_v14 }
 0x7f3   :  { %11321 = vtanh.f32 %v2646_v55 }
 0x7f4   :  { %11323 = vtanh.f32 %v2657_v19 }
 0x7fb   :  { %v11318_v22 = vpop.eup %11317 }
 0x7fc   :  { %v11320_v24 = vpop.eup %11319  ;;  %v2650_v61 = vmul.f32 0.5, %v11318_v22 }
 0x7fd   :  { %v2654_v42 = vmul.f32 0.5, %v11320_v24  ;;  %v11322_v44 = vpop.eup %11321 }
 0x7fe   :  { %v2651_v15 = vadd.f32 0.5, %v2650_v61  ;;  %v11324_v3 = vpop.eup %11323 }
 0x7ff   :  { %v2655_v1 = vadd.f32 0.5, %v2654_v42  ;;  %v2659_v4 = vmul.f32 0.5, %v11324_v3 }
 0x800   :  { %v2662_v18 = vmul.f32 %v11322_v44, %v2651_v15 }
 0x801   :  { %v2661_v47 = vmul.f32 %v2655_v1, %v12448_v20  ;;  %v2660_v8 = vadd.f32 0.5, %v2659_v4 }
 0x803   :  { %v2663_v2 = vadd.f32 %v2662_v18, %v2661_v47 }
 0x805   :  { %11325 = vtanh.f32 %v2663_v2  ;;  %v2712_v2 = vld [vmem:[%s15079_s6] sm:$0xf] }
 0x80c   :  { %v12762_v5 = vpop.f32.mrb[28].mxu0  ;;  %v12764_v23 = vpop.f32.mrb[36].mxu1 }
 0x80d   :  { %v12766_v6 = vpop.f32.mrb[29].mxu0  ;;  %v12768_v7 = vpop.f32.mrb[37].mxu1 }
 0x80e   :  { %v12770_v9 = vpop.f32.mrb[30].mxu0  ;;  %v12772_v10 = vpop.f32.mrb[38].mxu1 }
 0x80f   :  { %v11326_v11 = vpop.eup %11325  ;;  %v12774_v12 = vpop.f32.mrb[31].mxu0 }
 0x810   :  { %v12776_v20 = vpop.f32.mrb[39].mxu1  ;;  %v2665_v51 = vmul.f32 %v11326_v11, %v2660_v8 }
 0x812   :  { %v2679_v48 = vpack.c.bf16 %v2665_v51, %v12451_v58 }
 0x814   :  { %v12779_v13 = vpop.f32.mrb[32].mxu0  ;;  %v12781_v14 = vpop.f32.mrb[40].mxu1  ;;  %2957 = vmatmul.mubr.bf16.gmra.mrb[40].mxu0 %v2679_v48  ;;  %3030 = vmatmul.mubr.bf16.gmra.mrb[48].mxu1 %v2679_v48 }
 0x815   :  { %15114 = vst [vmem:[#allocation11_spill] sm:$0xff] %v12779_v13  ;;  %15115 = vst [vmem:[#allocation12_spill] sm:$0xff] %v12781_v14  ;;  %v12783_v55 = vpop.f32.mrb[33].mxu0  ;;  %v12785_v17 = vpop.f32.mrb[41].mxu1  ;;  %3300 = vmatprep.mubr.bf16.mxu0 %v15107_v45  ;;  %3341 = vmatprep.mubr.bf16.mxu1 %v15107_v45 }
 0x816   :  { %15116 = vst [vmem:[#allocation13_spill] sm:$0xff] %v12783_v55  ;;  %15117 = vst [vmem:[#allocation14_spill] sm:$0xff] %v12785_v17  ;;  %v12789_v53 = vpop.f32.mrb[34].mxu0  ;;  %v12791_v19 = vpop.f32.mrb[42].mxu1 }
 0x817   :  { %15118 = vst [vmem:[#allocation15_spill] sm:$0xff] %v12789_v53  ;;  %15119 = vst [vmem:[#allocation16_spill] sm:$0xff] %v12791_v19  ;;  %v12793_v22 = vpop.f32.mrb[35].mxu0  ;;  %v12795_v58 = vpop.f32.mrb[43].mxu1 }
 0x818   :  { %15120 = vst [vmem:[#allocation17_spill] sm:$0xff] %v12793_v22  ;;  %15121 = vst [vmem:[#allocation18_spill] sm:$0xff] %v12795_v58 }
 0x81c   :  { %v12797_v24 = vpop.f32.mrb[36].mxu0  ;;  %v12799_v61 = vpop.f32.mrb[44].mxu1  ;;  %3301 = vmatmul.mubr.bf16.vlgmr.msra.gmra.mrb[44].mxu0 %v15107_v45  ;;  %3342 = vmatmul.mubr.bf16.vlgmr.msra.gmra.mrb[52].mxu1 %v15107_v45 }
 0x81d   :  { %15122 = vst [vmem:[#allocation19_spill] sm:$0xff] %v12797_v24  ;;  %15123 = vst [vmem:[#allocation20_spill] sm:$0xff] %v12799_v61  ;;  %v12803_v42 = vpop.f32.mrb[37].mxu0  ;;  %v12805_v15 = vpop.f32.mrb[45].mxu1  ;;  %3379 = vmatpush1.bf16.msra.mxu0 %v12567_v25  ;;  %3420 = vmatpush1.bf16.msra.mxu1 %v12578_v16 }
 0x81e   :  { %15124 = vst [vmem:[#allocation21_spill] sm:$0xff] %v12803_v42  ;;  %15125 = vst [vmem:[#allocation22_spill] sm:$0xff] %v12805_v15  ;;  %v12809_v44 = vpop.f32.mrb[38].mxu0  ;;  %v12811_v1 = vpop.f32.mrb[46].mxu1  ;;  %3380 = vmatprep.subr.bf16.mxu0 %v12585_v26  ;;  %3421 = vmatprep.subr.bf16.mxu1 %v12590_v27 }
 0x81f   :  { %15126 = vst [vmem:[#allocation23_spill] sm:$0xff] %v12809_v44  ;;  %15127 = vst [vmem:[#allocation24_spill] sm:$0xff] %v12811_v1  ;;  %v12815_v18 = vpop.f32.mrb[39].mxu0  ;;  %v12817_v47 = vpop.f32.mrb[47].mxu1  ;;  %3410 = vmatprep.mubr.bf16.mxu0 %v15107_v45  ;;  %3451 = vmatprep.mubr.bf16.mxu1 %v15107_v45  ;;  %v15137_v1 = vld [vmem:[#allocation9_spill] sm:$0xff] }
 0x820   :  { %15128 = vst [vmem:[#allocation25_spill] sm:$0xff] %v12815_v18  ;;  %15129 = vst [vmem:[#allocation26_spill] sm:$0xff] %v12817_v47  ;;  %v15136_v47 = vld [vmem:[#allocation8_spill] sm:$0xff]  ;;  %v12868_v44 = vrot.slane %v2712_v2, %v15137_v1 }
 0x821   :  { %3381 = vmatpush1.bf16.msra.mxu0 %v12596_v28  ;;  %3422 = vmatpush1.bf16.msra.mxu1 %v12601_v33  ;;  %v12865_v18 = vrot.slane %v2712_v2, %v15136_v47 }
 0x822   :  { %3382 = vmatprep.subr.bf16.mxu0 %v12609_v46  ;;  %3423 = vmatprep.subr.bf16.mxu1 %v12614_v35  ;;  %v3002_v47 = vadd.f32 %v12764_v23, %v12868_v44 }
 0x825   :  { %3383 = vmatpush1.bf16.msra.mxu0 %v12620_v52  ;;  %3424 = vmatpush1.bf16.msra.mxu1 %v12625_v0 }
 0x826   :  { %3384 = vmatprep.subr.bf16.mxu0 %v12632_v49  ;;  %3425 = vmatprep.subr.bf16.mxu1 %v12637_v62 }
 0x829   :  { %3385 = vmatpush1.bf16.msra.mxu0 %v12643_v30  ;;  %3426 = vmatpush1.bf16.msra.mxu1 %v12648_v36 }
 0x82a   :  { %3386 = vmatprep.subr.bf16.mxu0 %v12657_v57  ;;  %3427 = vmatprep.subr.bf16.mxu1 %v12662_v40 }
 0x82d   :  { %3387 = vmatpush1.bf16.msra.mxu0 %v12668_v63  ;;  %3428 = vmatpush1.bf16.msra.mxu1 %v12673_v60 }
 0x82e   :  { %3388 = vmatprep.subr.bf16.mxu0 %v12681_v29  ;;  %3429 = vmatprep.subr.bf16.mxu1 %v12686_v31 }
 0x831   :  { %3389 = vmatpush1.bf16.msra.mxu0 %v12692_v32  ;;  %3430 = vmatpush1.bf16.msra.mxu1 %v12697_v59 }
 0x832   :  { %3390 = vmatprep.subr.bf16.mxu0 %v12705_v56  ;;  %3431 = vmatprep.subr.bf16.mxu1 %v12710_v38 }
 0x835   :  { %3391 = vmatpush1.bf16.msra.mxu0 %v12716_v34  ;;  %3432 = vmatpush1.bf16.msra.mxu1 %v12721_v41 }
 0x836   :  { %3392 = vmatprep.subr.bf16.mxu0 %v12729_v21  ;;  %3433 = vmatprep.subr.bf16.mxu1 %v12734_v54 }
 0x839   :  { %3393 = vmatpush1.bf16.msra.mxu0 %v12740_v39  ;;  %3434 = vmatpush1.bf16.msra.mxu1 %v12745_v50 }
 0x83a   :  { %3488 = vmatprep.subr.bf16.mxu0 %v12562_v43  ;;  %3529 = vmatprep.subr.bf16.mxu1 %v12573_v37 }
 0x8e7   :  { %v12852_v3 = vpop.f32.mrb[40].mxu0  ;;  %v12854_v4 = vpop.f32.mrb[48].mxu1 }
 0x8e8   :  { %15130 = vst [vmem:[#allocation27_spill] sm:$0xff] %v12852_v3  ;;  %15131 = vst [vmem:[#allocation28_spill] sm:$0xff] %v12854_v4  ;;  %v12856_v8 = vpop.f32.mrb[41].mxu0  ;;  %v12858_v11 = vpop.f32.mrb[49].mxu1  ;;  %v15140_v3 = vld [vmem:[#allocation7_spill] sm:$0xff] }
 0x8e9   :  { %15132 = vst [vmem:[#allocation29_spill] sm:$0xff] %v12856_v8  ;;  %15133 = vst [vmem:[#allocation30_spill] sm:$0xff] %v12858_v11  ;;  %v12860_v51 = vpop.f32.mrb[42].mxu0  ;;  %v12862_v48 = vpop.f32.mrb[50].mxu1  ;;  %v12875_v4 = vrot.slane %v2712_v2, %v15140_v3  ;;  %v15141_v8 = vld [vmem:[#allocation10_spill] sm:$0xff] }
 0x8ea   :  { %15134 = vst [vmem:[#allocation31_spill] sm:$0xff] %v12860_v51  ;;  %15135 = vst [vmem:[#allocation32_spill] sm:$0xff] %v12862_v48  ;;  %v12870_v15 = vpop.f32.mrb[43].mxu0  ;;  %v12872_v42 = vpop.f32.mrb[51].mxu1  ;;  %v12878_v61 = vrot.slane %v2712_v2, %v15141_v8  ;;  %v2929_v51 = vadd.f32 %v12762_v5, %v12865_v18 }
 0x8eb   :  { %15138 = vst [vmem:[#allocation33_spill] sm:$0xff] %v12870_v15  ;;  %15139 = vst [vmem:[#allocation34_spill] sm:$0xff] %v12872_v42  ;;  %v2931_v1 = vadd.f32 %v12766_v6, %v12875_v4 }
 0x8ec   :  { %v3004_v15 = vadd.f32 %v12768_v7, %v12878_v61 }
 0x8ef   :  { %v3302_v48 = vpop.f32.mrb[44].mxu0  ;;  %v3343_v42 = vpop.f32.mrb[52].mxu1 }
 0x8f0   :  { %v3350_v11 = vadd.f32 %v3302_v48, %v2929_v51  ;;  %v3352_v3 = vadd.f32 %v3343_v42, %v3002_v47  ;;  %v3304_v24 = vpop.f32.mrb[45].mxu0  ;;  %v3345_v58 = vpop.f32.mrb[53].mxu1 }
 0x8f1   :  { %v3351_v2 = vadd.f32 %v3304_v24, %v2931_v1  ;;  %v3353_v8 = vadd.f32 %v3345_v58, %v3004_v15  ;;  %v3306_v22 = vpop.f32.mrb[46].mxu0  ;;  %v3347_v19 = vpop.f32.mrb[54].mxu1 }
 0x8f2   :  { %v3354_v5 = vmul.f32 0.5, %v3350_v11  ;;  %v3307_v53 = vpop.f32.mrb[47].mxu0  ;;  %v3348_v17 = vpop.f32.mrb[55].mxu1 }
 0x8f3   :  { %v3358_v23 = vmul.f32 0.5, %v3351_v2  ;;  %v3363_v6 = vmul.f32 0.5, %v3353_v8  ;;  %v3008_v8 = vadd.f32 %v12776_v20, %v12878_v61 }
 0x8f4   :  { %11327 = vtanh.f32 %v3354_v5 }
 0x8f5   :  { %11329 = vtanh.f32 %v3358_v23 }
 0x8f6   :  { %11331 = vtanh.f32 %v3352_v3 }
 0x8f7   :  { %11333 = vtanh.f32 %v3363_v6 }
 0x8fe   :  { %v11328_v55 = vpop.eup %11327 }
 0x8ff   :  { %v11330_v7 = vpop.eup %11329  ;;  %v3356_v14 = vmul.f32 0.5, %v11328_v55  ;;  %v2935_v55 = vadd.f32 %v12774_v12, %v12875_v4 }
 0x900   :  { %v3360_v13 = vmul.f32 0.5, %v11330_v7  ;;  %v11332_v47 = vpop.eup %11331 }
 0x901   :  { %v3357_v42 = vadd.f32 0.5, %v3356_v14  ;;  %v11334_v17 = vpop.eup %11333  ;;  %v3006_v14 = vadd.f32 %v12772_v10, %v12868_v44 }
 0x902   :  { %v3361_v51 = vadd.f32 0.5, %v3360_v13  ;;  %v3365_v53 = vmul.f32 0.5, %v11334_v17  ;;  %v2933_v13 = vadd.f32 %v12770_v9, %v12865_v18 }
 0x903   :  { %v3368_v24 = vmul.f32 %v11332_v47, %v3357_v42 }
 0x904   :  { %v3367_v58 = vmul.f32 0.0, %v3361_v51  ;;  %v3366_v19 = vadd.f32 0.5, %v3365_v53 }
 0x906   :  { %v12888_v22 = vadd.f32 %v3368_v24, %v3367_v58 }
 0x908   :  { %11335 = vtanh.f32 %v12888_v22 }
 0x912   :  { %v11336_v15 = vpop.eup %11335 }
 0x913   :  { %v3371_v1 = vmul.f32 %v11336_v15, %v3366_v19 }
 0x915   :  { %v3377_v3 = vpack.c.bf16 %v3371_v1, %v3371_v1 }
 0x917   :  { %3411 = vmatmul.mubr.bf16.vlgmr.msra.gmra.mrb[48].mxu0 %v3377_v3  ;;  %3452 = vmatmul.mubr.bf16.vlgmr.msra.gmra.mrb[56].mxu1 %v3377_v3 }
 0x918   :  { %3489 = vmatpush1.bf16.msra.mxu0 %v12567_v25  ;;  %3530 = vmatpush1.bf16.msra.mxu1 %v12578_v16 }
 0x919   :  { %3490 = vmatprep.subr.bf16.mxu0 %v12585_v26  ;;  %3531 = vmatprep.subr.bf16.mxu1 %v12590_v27 }
 0x91a   :  { %3520 = vmatprep.mubr.bf16.mxu0 %v15107_v45  ;;  %3561 = vmatprep.mubr.bf16.mxu1 %v15107_v45 }
 0x91c   :  { %3491 = vmatpush1.bf16.msra.mxu0 %v12596_v28  ;;  %3532 = vmatpush1.bf16.msra.mxu1 %v12601_v33 }
 0x91d   :  { %3492 = vmatprep.subr.bf16.mxu0 %v12609_v46  ;;  %3533 = vmatprep.subr.bf16.mxu1 %v12614_v35 }
 0x920   :  { %3493 = vmatpush1.bf16.msra.mxu0 %v12620_v52  ;;  %3534 = vmatpush1.bf16.msra.mxu1 %v12625_v0 }
 0x921   :  { %3494 = vmatprep.subr.bf16.mxu0 %v12632_v49  ;;  %3535 = vmatprep.subr.bf16.mxu1 %v12637_v62 }
 0x924   :  { %3495 = vmatpush1.bf16.msra.mxu0 %v12643_v30  ;;  %3536 = vmatpush1.bf16.msra.mxu1 %v12648_v36 }
 0x925   :  { %3496 = vmatprep.subr.bf16.mxu0 %v12657_v57  ;;  %3537 = vmatprep.subr.bf16.mxu1 %v12662_v40 }
 0x928   :  { %3497 = vmatpush1.bf16.msra.mxu0 %v12668_v63  ;;  %3538 = vmatpush1.bf16.msra.mxu1 %v12673_v60 }
 0x929   :  { %3498 = vmatprep.subr.bf16.mxu0 %v12681_v29  ;;  %3539 = vmatprep.subr.bf16.mxu1 %v12686_v31 }
 0x92c   :  { %3499 = vmatpush1.bf16.msra.mxu0 %v12692_v32  ;;  %3540 = vmatpush1.bf16.msra.mxu1 %v12697_v59 }
 0x92d   :  { %3500 = vmatprep.subr.bf16.mxu0 %v12705_v56  ;;  %3541 = vmatprep.subr.bf16.mxu1 %v12710_v38 }
 0x930   :  { %3501 = vmatpush1.bf16.msra.mxu0 %v12716_v34  ;;  %3542 = vmatpush1.bf16.msra.mxu1 %v12721_v41 }
 0x931   :  { %3502 = vmatprep.subr.bf16.mxu0 %v12729_v21  ;;  %3543 = vmatprep.subr.bf16.mxu1 %v12734_v54 }
 0x934   :  { %3503 = vmatpush1.bf16.msra.mxu0 %v12740_v39  ;;  %3544 = vmatpush1.bf16.msra.mxu1 %v12745_v50 }
 0x935   :  { %3598 = vmatprep.subr.bf16.mxu0 %v12562_v43  ;;  %3639 = vmatprep.subr.bf16.mxu1 %v12573_v37 }
 0x9ea   :  { %v3412_v11 = vpop.f32.mrb[48].mxu0  ;;  %v3453_v48 = vpop.f32.mrb[56].mxu1 }
 0x9eb   :  { %v3460_v2 = vadd.f32 %v3412_v11, %v2933_v13  ;;  %v3462_v5 = vadd.f32 %v3453_v48, %v3006_v14  ;;  %v3414_v23 = vpop.f32.mrb[49].mxu0  ;;  %v3455_v6 = vpop.f32.mrb[57].mxu1 }
 0x9ec   :  { %v3461_v7 = vadd.f32 %v3414_v23, %v2935_v55  ;;  %v3463_v42 = vadd.f32 %v3455_v6, %v3008_v8  ;;  %v3416_v47 = vpop.f32.mrb[50].mxu0  ;;  %v3457_v51 = vpop.f32.mrb[58].mxu1 }
 0x9ed   :  { %v3464_v9 = vmul.f32 0.5, %v3460_v2  ;;  %v3417_v24 = vpop.f32.mrb[51].mxu0  ;;  %v3458_v58 = vpop.f32.mrb[59].mxu1  ;;  %v15144_v47 = vld [vmem:[#allocation13_spill] sm:$0xff] }
 0x9ee   :  { %v3468_v10 = vmul.f32 0.5, %v3461_v7  ;;  %v3473_v12 = vmul.f32 0.5, %v3463_v42  ;;  %v15143_v7 = vld [vmem:[#allocation12_spill] sm:$0xff]  ;;  %v2941_v51 = vadd.f32 %v15144_v47, %v12875_v4 }
 0x9ef   :  { %11337 = vtanh.f32 %v3464_v9  ;;  %v3012_v42 = vadd.f32 %v15143_v7, %v12868_v44  ;;  %v15145_v9 = vld [vmem:[#allocation14_spill] sm:$0xff] }
 0x9f0   :  { %11339 = vtanh.f32 %v3468_v10  ;;  %v3014_v24 = vadd.f32 %v15145_v9, %v12878_v61 }
 0x9f1   :  { %11341 = vtanh.f32 %v3462_v5 }
 0x9f2   :  { %11343 = vtanh.f32 %v3473_v12 }
 0x9f9   :  { %v11338_v17 = vpop.eup %11337 }
 0x9fa   :  { %v11340_v20 = vpop.eup %11339  ;;  %v3466_v53 = vmul.f32 0.5, %v11338_v17 }
 0x9fb   :  { %v3470_v19 = vmul.f32 0.5, %v11340_v20  ;;  %v11342_v1 = vpop.eup %11341 }
 0x9fc   :  { %v3467_v15 = vadd.f32 0.5, %v3466_v53  ;;  %v11344_v8 = vpop.eup %11343 }
 0x9fd   :  { %v3471_v3 = vadd.f32 0.5, %v3470_v19  ;;  %v3475_v11 = vmul.f32 0.5, %v11344_v8 }
 0x9fe   :  { %v3478_v13 = vmul.f32 %v11342_v1, %v3467_v15 }
 0x9ff   :  { %v3477_v14 = vmul.f32 %v3471_v3, %v12888_v22  ;;  %v3476_v48 = vadd.f32 0.5, %v3475_v11  ;;  %v15142_v22 = vld [vmem:[#allocation11_spill] sm:$0xff] }
 0xa00   :  { %v2939_v6 = vadd.f32 %v15142_v22, %v12865_v18 }
 0xa01   :  { %v12934_v55 = vadd.f32 %v3478_v13, %v3477_v14 }
 0xa03   :  { %11345 = vtanh.f32 %v12934_v55 }
 0xa0d   :  { %v11346_v2 = vpop.eup %11345 }
 0xa0e   :  { %v3481_v5 = vmul.f32 %v11346_v2, %v3476_v48 }
 0xa10   :  { %v3487_v23 = vpack.c.bf16 %v3481_v5, %v3481_v5 }
 0xa12   :  { %3521 = vmatmul.mubr.bf16.vlgmr.msra.gmra.mrb[52].mxu0 %v3487_v23  ;;  %3562 = vmatmul.mubr.bf16.vlgmr.msra.gmra.mrb[60].mxu1 %v3487_v23 }
 0xa13   :  { %3599 = vmatpush1.bf16.msra.mxu0 %v12567_v25  ;;  %3640 = vmatpush1.bf16.msra.mxu1 %v12578_v16 }
 0xa14   :  { %3600 = vmatprep.subr.bf16.mxu0 %v12585_v26  ;;  %3641 = vmatprep.subr.bf16.mxu1 %v12590_v27 }
 0xa15   :  { %3630 = vmatprep.mubr.bf16.mxu0 %v15107_v45  ;;  %3671 = vmatprep.mubr.bf16.mxu1 %v15107_v45 }
 0xa17   :  { %3601 = vmatpush1.bf16.msra.mxu0 %v12596_v28  ;;  %3642 = vmatpush1.bf16.msra.mxu1 %v12601_v33 }
 0xa18   :  { %3602 = vmatprep.subr.bf16.mxu0 %v12609_v46  ;;  %3643 = vmatprep.subr.bf16.mxu1 %v12614_v35 }
 0xa1b   :  { %3603 = vmatpush1.bf16.msra.mxu0 %v12620_v52  ;;  %3644 = vmatpush1.bf16.msra.mxu1 %v12625_v0 }
 0xa1c   :  { %3604 = vmatprep.subr.bf16.mxu0 %v12632_v49  ;;  %3645 = vmatprep.subr.bf16.mxu1 %v12637_v62 }
 0xa1f   :  { %3605 = vmatpush1.bf16.msra.mxu0 %v12643_v30  ;;  %3646 = vmatpush1.bf16.msra.mxu1 %v12648_v36 }
 0xa20   :  { %3606 = vmatprep.subr.bf16.mxu0 %v12657_v57  ;;  %3647 = vmatprep.subr.bf16.mxu1 %v12662_v40 }
 0xa23   :  { %3607 = vmatpush1.bf16.msra.mxu0 %v12668_v63  ;;  %3648 = vmatpush1.bf16.msra.mxu1 %v12673_v60 }
 0xa24   :  { %3608 = vmatprep.subr.bf16.mxu0 %v12681_v29  ;;  %3649 = vmatprep.subr.bf16.mxu1 %v12686_v31 }
 0xa27   :  { %3609 = vmatpush1.bf16.msra.mxu0 %v12692_v32  ;;  %3650 = vmatpush1.bf16.msra.mxu1 %v12697_v59 }
 0xa28   :  { %3610 = vmatprep.subr.bf16.mxu0 %v12705_v56  ;;  %3651 = vmatprep.subr.bf16.mxu1 %v12710_v38 }
 0xa2b   :  { %3611 = vmatpush1.bf16.msra.mxu0 %v12716_v34  ;;  %3652 = vmatpush1.bf16.msra.mxu1 %v12721_v41 }
 0xa2c   :  { %3612 = vmatprep.subr.bf16.mxu0 %v12729_v21  ;;  %3653 = vmatprep.subr.bf16.mxu1 %v12734_v54 }
 0xa2f   :  { %3613 = vmatpush1.bf16.msra.mxu0 %v12740_v39  ;;  %3654 = vmatpush1.bf16.msra.mxu1 %v12745_v50 }
 0xa30   :  { %3708 = vmatprep.subr.bf16.mxu0 %v12562_v43  ;;  %3749 = vmatprep.subr.bf16.mxu1 %v12573_v37 }
 0xae5   :  { %v3522_v58 = vpop.f32.mrb[52].mxu0  ;;  %v3563_v10 = vpop.f32.mrb[60].mxu1 }
 0xae6   :  { %v3570_v12 = vadd.f32 %v3522_v58, %v2939_v6  ;;  %v3572_v17 = vadd.f32 %v3563_v10, %v3012_v42  ;;  %v3524_v20 = vpop.f32.mrb[53].mxu0  ;;  %v3565_v53 = vpop.f32.mrb[61].mxu1 }
 0xae7   :  { %v3571_v19 = vadd.f32 %v3524_v20, %v2941_v51  ;;  %v3573_v15 = vadd.f32 %v3565_v53, %v3014_v24  ;;  %v3526_v1 = vpop.f32.mrb[54].mxu0  ;;  %v3567_v3 = vpop.f32.mrb[62].mxu1 }
 0xae8   :  { %v3574_v13 = vmul.f32 0.5, %v3570_v12  ;;  %v3527_v14 = vpop.f32.mrb[55].mxu0  ;;  %v3568_v8 = vpop.f32.mrb[63].mxu1  ;;  %v15148_v1 = vld [vmem:[#allocation17_spill] sm:$0xff] }
 0xae9   :  { %v3578_v11 = vmul.f32 0.5, %v3571_v19  ;;  %v3583_v48 = vmul.f32 0.5, %v3573_v15  ;;  %v15147_v19 = vld [vmem:[#allocation16_spill] sm:$0xff]  ;;  %v2945_v3 = vadd.f32 %v15148_v1, %v12875_v4 }
 0xaea   :  { %11347 = vtanh.f32 %v3574_v13  ;;  %v3016_v15 = vadd.f32 %v15147_v19, %v12868_v44  ;;  %v15149_v13 = vld [vmem:[#allocation18_spill] sm:$0xff] }
 0xaeb   :  { %11349 = vtanh.f32 %v3578_v11  ;;  %v3018_v14 = vadd.f32 %v15149_v13, %v12878_v61 }
 0xaec   :  { %11351 = vtanh.f32 %v3572_v17 }
 0xaed   :  { %11353 = vtanh.f32 %v3583_v48 }
 0xaf4   :  { %v11348_v2 = vpop.eup %11347 }
 0xaf5   :  { %v11350_v5 = vpop.eup %11349  ;;  %v3576_v23 = vmul.f32 0.5, %v11348_v2 }
 0xaf6   :  { %v3580_v22 = vmul.f32 0.5, %v11350_v5  ;;  %v11352_v7 = vpop.eup %11351 }
 0xaf7   :  { %v3577_v6 = vadd.f32 0.5, %v3576_v23  ;;  %v11354_v24 = vpop.eup %11353 }
 0xaf8   :  { %v3581_v42 = vadd.f32 0.5, %v3580_v22  ;;  %v3585_v58 = vmul.f32 0.5, %v11354_v24 }
 0xaf9   :  { %v3588_v47 = vmul.f32 %v11352_v7, %v3577_v6 }
 0xafa   :  { %v3587_v51 = vmul.f32 %v3581_v42, %v12934_v55  ;;  %v3586_v10 = vadd.f32 0.5, %v3585_v58  ;;  %v15146_v55 = vld [vmem:[#allocation15_spill] sm:$0xff] }
 0xafb   :  { %v2943_v53 = vadd.f32 %v15146_v55, %v12865_v18 }
 0xafc   :  { %v12980_v9 = vadd.f32 %v3588_v47, %v3587_v51 }
 0xafe   :  { %11355 = vtanh.f32 %v12980_v9 }
 0xb08   :  { %v11356_v12 = vpop.eup %11355 }
 0xb09   :  { %v3591_v17 = vmul.f32 %v11356_v12, %v3586_v10 }
 0xb0b   :  { %v3597_v20 = vpack.c.bf16 %v3591_v17, %v3591_v17 }
 0xb0d   :  { %3631 = vmatmul.mubr.bf16.vlgmr.msra.gmra.mrb[56].mxu0 %v3597_v20  ;;  %3672 = vmatmul.mubr.bf16.vlgmr.msra.gmra.mrb[64].mxu1 %v3597_v20 }
 0xb0e   :  { %3709 = vmatpush1.bf16.msra.mxu0 %v12567_v25  ;;  %3750 = vmatpush1.bf16.msra.mxu1 %v12578_v16 }
 0xb0f   :  { %3710 = vmatprep.subr.bf16.mxu0 %v12585_v26  ;;  %3751 = vmatprep.subr.bf16.mxu1 %v12590_v27 }
 0xb10   :  { %3740 = vmatprep.mubr.bf16.mxu0 %v15107_v45  ;;  %3781 = vmatprep.mubr.bf16.mxu1 %v15107_v45 }
 0xb12   :  { %3711 = vmatpush1.bf16.msra.mxu0 %v12596_v28  ;;  %3752 = vmatpush1.bf16.msra.mxu1 %v12601_v33 }
 0xb13   :  { %3712 = vmatprep.subr.bf16.mxu0 %v12609_v46  ;;  %3753 = vmatprep.subr.bf16.mxu1 %v12614_v35 }
 0xb16   :  { %3713 = vmatpush1.bf16.msra.mxu0 %v12620_v52  ;;  %3754 = vmatpush1.bf16.msra.mxu1 %v12625_v0 }
 0xb17   :  { %3714 = vmatprep.subr.bf16.mxu0 %v12632_v49  ;;  %3755 = vmatprep.subr.bf16.mxu1 %v12637_v62 }
 0xb1a   :  { %3715 = vmatpush1.bf16.msra.mxu0 %v12643_v30  ;;  %3756 = vmatpush1.bf16.msra.mxu1 %v12648_v36 }
 0xb1b   :  { %3716 = vmatprep.subr.bf16.mxu0 %v12657_v57  ;;  %3757 = vmatprep.subr.bf16.mxu1 %v12662_v40 }
 0xb1e   :  { %3717 = vmatpush1.bf16.msra.mxu0 %v12668_v63  ;;  %3758 = vmatpush1.bf16.msra.mxu1 %v12673_v60 }
 0xb1f   :  { %3718 = vmatprep.subr.bf16.mxu0 %v12681_v29  ;;  %3759 = vmatprep.subr.bf16.mxu1 %v12686_v31 }
 0xb22   :  { %3719 = vmatpush1.bf16.msra.mxu0 %v12692_v32  ;;  %3760 = vmatpush1.bf16.msra.mxu1 %v12697_v59 }
 0xb23   :  { %3720 = vmatprep.subr.bf16.mxu0 %v12705_v56  ;;  %3761 = vmatprep.subr.bf16.mxu1 %v12710_v38 }
 0xb26   :  { %3721 = vmatpush1.bf16.msra.mxu0 %v12716_v34  ;;  %3762 = vmatpush1.bf16.msra.mxu1 %v12721_v41 }
 0xb27   :  { %3722 = vmatprep.subr.bf16.mxu0 %v12729_v21  ;;  %3763 = vmatprep.subr.bf16.mxu1 %v12734_v54 }
 0xb2a   :  { %3723 = vmatpush1.bf16.msra.mxu0 %v12740_v39  ;;  %3764 = vmatpush1.bf16.msra.mxu1 %v12745_v50 }
 0xb2b   :  { %3818 = vmatprep.subr.bf16.mxu0 %v12562_v43  ;;  %3859 = vmatprep.subr.bf16.mxu1 %v12573_v37 }
 0xbe0   :  { %v3632_v8 = vpop.f32.mrb[56].mxu0  ;;  %v3673_v11 = vpop.f32.mrb[64].mxu1 }
 0xbe1   :  { %v3680_v48 = vadd.f32 %v3632_v8, %v2943_v53  ;;  %v3682_v2 = vadd.f32 %v3673_v11, %v3016_v15  ;;  %v3634_v5 = vpop.f32.mrb[57].mxu0  ;;  %v3675_v43 = vpop.f32.mrb[65].mxu1 }
 0xbe2   :  { %v3681_v23 = vadd.f32 %v3634_v5, %v2945_v3  ;;  %v3683_v37 = vadd.f32 %v3675_v43, %v3018_v14  ;;  %v3636_v22 = vpop.f32.mrb[58].mxu0  ;;  %v3677_v6 = vpop.f32.mrb[66].mxu1 }
 0xbe3   :  { %v3684_v7 = vmul.f32 0.5, %v3680_v48  ;;  %v3637_v42 = vpop.f32.mrb[59].mxu0  ;;  %v3678_v47 = vpop.f32.mrb[67].mxu1 }
 0xbe4   :  { %v3688_v51 = vmul.f32 0.5, %v3681_v23  ;;  %v3693_v24 = vmul.f32 0.5, %v3683_v37 }
 0xbe5   :  { %11357 = vtanh.f32 %v3684_v7 }
 0xbe6   :  { %11359 = vtanh.f32 %v3688_v51 }
 0xbe7   :  { %11361 = vtanh.f32 %v3682_v2 }
 0xbe8   :  { %11363 = vtanh.f32 %v3693_v24 }
 0xbef   :  { %v11358_v58 = vpop.eup %11357 }
 0xbf0   :  { %v11360_v10 = vpop.eup %11359  ;;  %v3686_v12 = vmul.f32 0.5, %v11358_v58 }
 0xbf1   :  { %v3690_v17 = vmul.f32 0.5, %v11360_v10  ;;  %v11362_v55 = vpop.eup %11361 }
 0xbf2   :  { %v3687_v20 = vadd.f32 0.5, %v3686_v12  ;;  %v11364_v3 = vpop.eup %11363 }
 0xbf3   :  { %v3691_v53 = vadd.f32 0.5, %v3690_v17  ;;  %v3695_v13 = vmul.f32 0.5, %v11364_v3  ;;  %v13126_v3 = vld [vmem:[%s15078_s5 + $0x44] ss:$16 sps:$4 sm:$0xff]  }
 0xbf4   :  { %v3698_v19 = vmul.f32 %v11362_v55, %v3687_v20  ;;  %v13088_v20 = vld [vmem:[%s15078_s5] ss:$16 sps:$4 sm:$0xff]   ;;  %v13094_v55 = vld [vmem:[%s15078_s5 + $0x8] ss:$16 sps:$4 sm:$0xff]  }
 0xbf5   :  { %v3697_v15 = vmul.f32 %v3691_v53, %v12980_v9  ;;  %v3696_v14 = vadd.f32 0.5, %v3695_v13  ;;  %v13100_v53 = vld [vmem:[%s15078_s5 + $0x24] ss:$16 sps:$4 sm:$0xff]   ;;  %v13132_v13 = vld [vmem:[%s15078_s5 + $0x4c] ss:$16 sps:$4 sm:$0xff]  }
 0xbf7   :  { %v13026_v1 = vadd.f32 %v3698_v19, %v3697_v15  ;;  %v13106_v19 = vld [vmem:[%s15078_s5 + $0x2c] ss:$16 sps:$4 sm:$0xff]   ;;  %v13114_v15 = vld [vmem:[%s15078_s5 + $0x20] ss:$16 sps:$4 sm:$0xff]  }
 0xbf9   :  { %11365 = vtanh.f32 %v13026_v1 }
 0xc03   :  { %v11366_v8 = vpop.eup %11365 }
 0xc04   :  { %v3701_v11 = vmul.f32 %v11366_v8, %v3696_v14  ;;  %v13138_v14 = vld [vmem:[%s15078_s5 + $0x40] ss:$16 sps:$4 sm:$0xff]   ;;  %v13144_v8 = vld [vmem:[%s15078_s5 + $0x48] ss:$16 sps:$4 sm:$0xff]  }
 0xc06   :  { %v3707_v48 = vpack.c.bf16 %v3701_v11, %v3701_v11  ;;  %v13150_v11 = vld [vmem:[%s15078_s5 + $0x64] ss:$16 sps:$4 sm:$0xff]  }
 0xc08   :  { %3741 = vmatmul.mubr.bf16.vlgmr.msra.gmra.mrb[60].mxu0 %v3707_v48  ;;  %3782 = vmatmul.mubr.bf16.vlgmr.msra.gmra.mrb[68].mxu1 %v3707_v48  ;;  %v13156_v48 = vld [vmem:[%s15078_s5 + $0x6c] ss:$16 sps:$4 sm:$0xff]  }
 0xc09   :  { %3819 = vmatpush1.bf16.msra.mxu0 %v12567_v25  ;;  %3860 = vmatpush1.bf16.msra.mxu1 %v12578_v16  ;;  %v13064_v25 = vld [vmem:[%s15078_s5 + $0x4] ss:$16 sps:$4 sm:$0xff]   ;;  %v13070_v16 = vld [vmem:[%s15078_s5 + $0xc] ss:$16 sps:$4 sm:$0xff]  }
 0xc0a   :  { %3820 = vmatprep.subr.bf16.mxu0 %v12585_v26  ;;  %3861 = vmatprep.subr.bf16.mxu1 %v12590_v27  ;;  %v15150_v26 = vld [vmem:[#allocation19_spill] sm:$0xff] }
 0xc0b   :  { %3850 = vmatprep.mubr.bf16.mxu0 %v15107_v45  ;;  %3891 = vmatprep.mubr.bf16.mxu1 %v15107_v45  ;;  %v2949_v27 = vadd.f32 %v15150_v26, %v12865_v18  ;;  %v13162_v26 = vld [vmem:[%s15078_s5 + $0x60] ss:$16 sps:$4 sm:$0xff]  }
 0xc0d   :  { %3821 = vmatpush1.bf16.msra.mxu0 %v12596_v28  ;;  %3862 = vmatpush1.bf16.msra.mxu1 %v12601_v33  ;;  %v15151_v28 = vld [vmem:[#allocation20_spill] sm:$0xff] }
 0xc0e   :  { %3822 = vmatprep.subr.bf16.mxu0 %v12609_v46  ;;  %3863 = vmatprep.subr.bf16.mxu1 %v12614_v35  ;;  %v3022_v33 = vadd.f32 %v15151_v28, %v12868_v44  ;;  %v15152_v46 = vld [vmem:[#allocation21_spill] sm:$0xff] }
 0xc0f   :  { %v2951_v35 = vadd.f32 %v15152_v46, %v12875_v4  ;;  %v13174_v28 = vld [vmem:[%s15078_s5 + $0x84] ss:$16 sps:$4 sm:$0xff]   ;;  %v13186_v46 = vld [vmem:[%s15078_s5 + $0x80] ss:$16 sps:$4 sm:$0xff]  }
 0xc11   :  { %3823 = vmatpush1.bf16.msra.mxu0 %v12620_v52  ;;  %3864 = vmatpush1.bf16.msra.mxu1 %v12625_v0  ;;  %v15153_v52 = vld [vmem:[#allocation22_spill] sm:$0xff] }
 0xc12   :  { %3824 = vmatprep.subr.bf16.mxu0 %v12632_v49  ;;  %3865 = vmatprep.subr.bf16.mxu1 %v12637_v62  ;;  %v3024_v0 = vadd.f32 %v15153_v52, %v12878_v61  ;;  %v13198_v52 = vld [vmem:[%s15078_s5 + $0xa4] ss:$16 sps:$4 sm:$0xff]  }
 0xc15   :  { %3825 = vmatpush1.bf16.msra.mxu0 %v12643_v30  ;;  %3866 = vmatpush1.bf16.msra.mxu1 %v12648_v36 }
 0xc16   :  { %3826 = vmatprep.subr.bf16.mxu0 %v12657_v57  ;;  %3867 = vmatprep.subr.bf16.mxu1 %v12662_v40 }
 0xc19   :  { %3827 = vmatpush1.bf16.msra.mxu0 %v12668_v63  ;;  %3868 = vmatpush1.bf16.msra.mxu1 %v12673_v60 }
 0xc1a   :  { %3828 = vmatprep.subr.bf16.mxu0 %v12681_v29  ;;  %3869 = vmatprep.subr.bf16.mxu1 %v12686_v31 }
 0xc1d   :  { %3829 = vmatpush1.bf16.msra.mxu0 %v12692_v32  ;;  %3870 = vmatpush1.bf16.msra.mxu1 %v12697_v59 }
 0xc1e   :  { %3830 = vmatprep.subr.bf16.mxu0 %v12705_v56  ;;  %3871 = vmatprep.subr.bf16.mxu1 %v12710_v38 }
 0xc21   :  { %3831 = vmatpush1.bf16.msra.mxu0 %v12716_v34  ;;  %3872 = vmatpush1.bf16.msra.mxu1 %v12721_v41 }
 0xc22   :  { %3832 = vmatprep.subr.bf16.mxu0 %v12729_v21  ;;  %3873 = vmatprep.subr.bf16.mxu1 %v12734_v54 }
 0xc25   :  { %3833 = vmatpush1.bf16.msra.mxu0 %v12740_v39  ;;  %3874 = vmatpush1.bf16.msra.mxu1 %v12745_v50 }
 0xc26   :  { %3928 = vmatprep.subr.bf16.mxu0 %v13064_v25  ;;  %3969 = vmatprep.subr.bf16.mxu1 %v13070_v16 }
 0xcdb   :  { %v3742_v49 = vpop.f32.mrb[60].mxu0  ;;  %v3783_v62 = vpop.f32.mrb[68].mxu1 }
 0xcdc   :  { %v3790_v30 = vadd.f32 %v3742_v49, %v2949_v27  ;;  %v3792_v36 = vadd.f32 %v3783_v62, %v3022_v33  ;;  %v3744_v57 = vpop.f32.mrb[61].mxu0  ;;  %v3785_v40 = vpop.f32.mrb[69].mxu1  ;;  %v13168_v27 = vld [vmem:[%s15078_s5 + $0x68] ss:$16 sps:$4 sm:$0xff]   ;;  %v13180_v33 = vld [vmem:[%s15078_s5 + $0x8c] ss:$16 sps:$4 sm:$0xff]  }
 0xcdd   :  { %v3791_v63 = vadd.f32 %v3744_v57, %v2951_v35  ;;  %v3793_v60 = vadd.f32 %v3785_v40, %v3024_v0  ;;  %v3746_v29 = vpop.f32.mrb[62].mxu0  ;;  %v3787_v31 = vpop.f32.mrb[70].mxu1  ;;  %v13192_v35 = vld [vmem:[%s15078_s5 + $0x88] ss:$16 sps:$4 sm:$0xff]   ;;  %v13204_v0 = vld [vmem:[%s15078_s5 + $0xac] ss:$16 sps:$4 sm:$0xff]  }
 0xcde   :  { %v3794_v32 = vmul.f32 0.5, %v3790_v30  ;;  %v3747_v59 = vpop.f32.mrb[63].mxu0  ;;  %v3788_v56 = vpop.f32.mrb[71].mxu1  ;;  %v13210_v49 = vld [vmem:[%s15078_s5 + $0xa0] ss:$16 sps:$4 sm:$0xff]  }
 0xcdf   :  { %v3798_v38 = vmul.f32 0.5, %v3791_v63  ;;  %v3803_v9 = vmul.f32 0.5, %v3793_v60  ;;  %v13216_v62 = vld [vmem:[%s15078_s5 + $0xa8] ss:$16 sps:$4 sm:$0xff]   ;;  %v13222_v30 = vld [vmem:[%s15078_s5 + $0xc4] ss:$16 sps:$4 sm:$0xff]  }
 0xce0   :  { %11367 = vtanh.f32 %v3794_v32  ;;  %v15154_v57 = vld [vmem:[#allocation23_spill] sm:$0xff]  ;;  %v15155_v63 = vld [vmem:[#allocation24_spill] sm:$0xff] }
 0xce1   :  { %11369 = vtanh.f32 %v3798_v38  ;;  %v2953_v40 = vadd.f32 %v15154_v57, %v12865_v18 }
 0xce2   :  { %11371 = vtanh.f32 %v3792_v36  ;;  %v13228_v36 = vld [vmem:[%s15078_s5 + $0xcc] ss:$16 sps:$4 sm:$0xff]  }
 0xce3   :  { %11373 = vtanh.f32 %v3803_v9 }
 0xcea   :  { %v11368_v2 = vpop.eup %11367 }
 0xceb   :  { %v11370_v5 = vpop.eup %11369  ;;  %v3796_v43 = vmul.f32 0.5, %v11368_v2 }
 0xcec   :  { %v3800_v23 = vmul.f32 0.5, %v11370_v5  ;;  %v11372_v22 = vpop.eup %11371 }
 0xced   :  { %v3797_v37 = vadd.f32 0.5, %v3796_v43  ;;  %v11374_v51 = vpop.eup %11373 }
 0xcee   :  { %v3801_v6 = vadd.f32 0.5, %v3800_v23  ;;  %v3805_v24 = vmul.f32 0.5, %v11374_v51 }
 0xcef   :  { %v3808_v7 = vmul.f32 %v11372_v22, %v3797_v37 }
 0xcf0   :  { %v3807_v42 = vmul.f32 %v3801_v6, %v13026_v1  ;;  %v3806_v58 = vadd.f32 0.5, %v3805_v24  ;;  %v13120_v1 = vld [vmem:[%s15078_s5 + $0x28] ss:$16 sps:$4 sm:$0xff]  }
 0xcf2   :  { %v13082_v47 = vadd.f32 %v3808_v7, %v3807_v42 }
 0xcf4   :  { %11375 = vtanh.f32 %v13082_v47 }
 0xcfe   :  { %v11376_v10 = vpop.eup %11375 }
 0xcff   :  { %v3811_v12 = vmul.f32 %v11376_v10, %v3806_v58 }
 0xd01   :  { %v3817_v17 = vpack.c.bf16 %v3811_v12, %v3811_v12 }
 0xd03   :  { %3851 = vmatmul.mubr.bf16.vlgmr.msra.gmra.mrb[64].mxu0 %v3817_v17  ;;  %3892 = vmatmul.mubr.bf16.vlgmr.msra.gmra.mrb[72].mxu1 %v3817_v17 }
 0xd04   :  { %3929 = vmatpush1.bf16.msra.mxu0 %v13088_v20  ;;  %3970 = vmatpush1.bf16.msra.mxu1 %v13094_v55 }
 0xd05   :  { %3930 = vmatprep.subr.bf16.mxu0 %v13100_v53  ;;  %3971 = vmatprep.subr.bf16.mxu1 %v13106_v19 }
 0xd06   :  { %3960 = vmatprep.mubr.bf16.mxu0 %v15107_v45  ;;  %4001 = vmatprep.mubr.bf16.mxu1 %v15107_v45 }
 0xd08   :  { %3931 = vmatpush1.bf16.msra.mxu0 %v13114_v15  ;;  %3972 = vmatpush1.bf16.msra.mxu1 %v13120_v1 }
 0xd09   :  { %3932 = vmatprep.subr.bf16.mxu0 %v13126_v3  ;;  %3973 = vmatprep.subr.bf16.mxu1 %v13132_v13 }
 0xd0c   :  { %3933 = vmatpush1.bf16.msra.mxu0 %v13138_v14  ;;  %3974 = vmatpush1.bf16.msra.mxu1 %v13144_v8 }
 0xd0d   :  { %3934 = vmatprep.subr.bf16.mxu0 %v13150_v11  ;;  %3975 = vmatprep.subr.bf16.mxu1 %v13156_v48 }
 0xd10   :  { %3935 = vmatpush1.bf16.msra.mxu0 %v13162_v26  ;;  %3976 = vmatpush1.bf16.msra.mxu1 %v13168_v27 }
 0xd11   :  { %3936 = vmatprep.subr.bf16.mxu0 %v13174_v28  ;;  %3977 = vmatprep.subr.bf16.mxu1 %v13180_v33 }
 0xd14   :  { %3937 = vmatpush1.bf16.msra.mxu0 %v13186_v46  ;;  %3978 = vmatpush1.bf16.msra.mxu1 %v13192_v35 }
 0xd15   :  { %3938 = vmatprep.subr.bf16.mxu0 %v13198_v52  ;;  %3979 = vmatprep.subr.bf16.mxu1 %v13204_v0 }
 0xd18   :  { %3939 = vmatpush1.bf16.msra.mxu0 %v13210_v49  ;;  %3980 = vmatpush1.bf16.msra.mxu1 %v13216_v62 }
 0xd19   :  { %3940 = vmatprep.subr.bf16.mxu0 %v13222_v30  ;;  %3981 = vmatprep.subr.bf16.mxu1 %v13228_v36 }
 0xd1c   :  { %3941 = vmatpush1.bf16.msra.mxu0 %v12716_v34  ;;  %3982 = vmatpush1.bf16.msra.mxu1 %v12721_v41  ;;  %v3026_v34 = vadd.f32 %v15155_v63, %v12868_v44  ;;  %v15156_v41 = vld [vmem:[#allocation25_spill] sm:$0xff] }
 0xd1d   :  { %3942 = vmatprep.subr.bf16.mxu0 %v12729_v21  ;;  %3983 = vmatprep.subr.bf16.mxu1 %v12734_v54  ;;  %v2955_v60 = vadd.f32 %v15156_v41, %v12875_v4  ;;  %v15157_v21 = vld [vmem:[#allocation26_spill] sm:$0xff] }
 0xd1e   :  { %v3028_v54 = vadd.f32 %v15157_v21, %v12878_v61 }
 0xd20   :  { %3943 = vmatpush1.bf16.msra.mxu0 %v12740_v39  ;;  %3984 = vmatpush1.bf16.msra.mxu1 %v12745_v50 }
 0xd21   :  { %4038 = vmatprep.subr.bf16.mxu0 %v13064_v25  ;;  %4079 = vmatprep.subr.bf16.mxu1 %v13070_v16 }
 0xdd6   :  { %v3852_v29 = vpop.f32.mrb[64].mxu0  ;;  %v3893_v39 = vpop.f32.mrb[72].mxu1 }
 0xdd7   :  { %v3900_v31 = vadd.f32 %v3852_v29, %v2953_v40  ;;  %v3902_v50 = vadd.f32 %v3893_v39, %v3026_v34  ;;  %v3854_v32 = vpop.f32.mrb[65].mxu0  ;;  %v3895_v25 = vpop.f32.mrb[73].mxu1 }
 0xdd8   :  { %v3901_v59 = vadd.f32 %v3854_v32, %v2955_v60  ;;  %v3903_v16 = vadd.f32 %v3895_v25, %v3028_v54  ;;  %v3856_v56 = vpop.f32.mrb[66].mxu0  ;;  %v3897_v38 = vpop.f32.mrb[74].mxu1 }
 0xdd9   :  { %v3904_v9 = vmul.f32 0.5, %v3900_v31  ;;  %v3857_v2 = vpop.f32.mrb[67].mxu0  ;;  %v3898_v5 = vpop.f32.mrb[75].mxu1 }
 0xdda   :  { %v3908_v43 = vmul.f32 0.5, %v3901_v59  ;;  %v3913_v23 = vmul.f32 0.5, %v3903_v16 }
 0xddb   :  { %11377 = vtanh.f32 %v3904_v9 }
 0xddc   :  { %11379 = vtanh.f32 %v3908_v43 }
 0xddd   :  { %11381 = vtanh.f32 %v3902_v50 }
 0xdde   :  { %11383 = vtanh.f32 %v3913_v23 }
 0xde5   :  { %v11378_v37 = vpop.eup %11377 }
 0xde6   :  { %v11380_v22 = vpop.eup %11379  ;;  %v3906_v6 = vmul.f32 0.5, %v11378_v37 }
 0xde7   :  { %v3910_v7 = vmul.f32 0.5, %v11380_v22  ;;  %v11382_v51 = vpop.eup %11381 }
 0xde8   :  { %v3907_v42 = vadd.f32 0.5, %v3906_v6  ;;  %v11384_v17 = vpop.eup %11383  ;;  %v10953_v6 = vld [vmem:[%s15080_s7 + $0x4] ss:$16 sps:$4 sm:$0xff]  }
 0xde9   :  { %v3911_v24 = vadd.f32 0.5, %v3910_v7  ;;  %v3915_v57 = vmul.f32 0.5, %v11384_v17  ;;  %v10951_v7 = vld [vmem:[%s15080_s7] ss:$16 sps:$4 sm:$0xff]   ;;  %v10965_v17 = vld [vmem:[%s15080_s7 + $0x44] ss:$16 sps:$4 sm:$0xff]  }
 0xdea   :  { %v3918_v58 = vmul.f32 %v11382_v51, %v3907_v42  ;;  %v10954_v42 = vld [vmem:[%s15080_s7 + $0x8] ss:$16 sps:$4 sm:$0xff]   ;;  %v10956_v51 = vld [vmem:[%s15080_s7 + $0xc] ss:$16 sps:$4 sm:$0xff]  }
 0xdeb   :  { %v3917_v10 = vmul.f32 %v3911_v24, %v13082_v47  ;;  %v3916_v40 = vadd.f32 0.5, %v3915_v57  ;;  %v11593_v47 = vld [vmem:[%s15078_s5 + $0xc0] ss:$16 sps:$4 sm:$0xff]   ;;  %v10959_v24 = vld [vmem:[%s15080_s7 + $0x24] ss:$16 sps:$4 sm:$0xff]  }
 0xdec   :  { %v10968_v57 = vld [vmem:[%s15080_s7 + $0x4c] ss:$16 sps:$4 sm:$0xff]  }
 0xded   :  { %v13248_v12 = vadd.f32 %v3918_v58, %v3917_v10  ;;  %v10962_v58 = vld [vmem:[%s15080_s7 + $0x2c] ss:$16 sps:$4 sm:$0xff]   ;;  %v10957_v10 = vld [vmem:[%s15080_s7 + $0x20] ss:$16 sps:$4 sm:$0xff]  }
 0xdef   :  { %11385 = vtanh.f32 %v13248_v12 }
 0xdf9   :  { %v11386_v63 = vpop.eup %11385 }
 0xdfa   :  { %v3921_v34 = vmul.f32 %v11386_v63, %v3916_v40  ;;  %v10963_v40 = vld [vmem:[%s15080_s7 + $0x40] ss:$16 sps:$4 sm:$0xff]   ;;  %v10966_v63 = vld [vmem:[%s15080_s7 + $0x48] ss:$16 sps:$4 sm:$0xff]  }
 0xdfc   :  { %v3927_v41 = vpack.c.bf16 %v3921_v34, %v3921_v34  ;;  %v10971_v34 = vld [vmem:[%s15080_s7 + $0x64] ss:$16 sps:$4 sm:$0xff]  }
 0xdfe   :  { %3961 = vmatmul.mubr.bf16.vlgmr.msra.gmra.mrb[68].mxu0 %v3927_v41  ;;  %4002 = vmatmul.mubr.bf16.vlgmr.msra.gmra.mrb[76].mxu1 %v3927_v41  ;;  %v10974_v41 = vld [vmem:[%s15080_s7 + $0x6c] ss:$16 sps:$4 sm:$0xff]  }
 0xdff   :  { %4039 = vmatpush1.bf16.msra.mxu0 %v13088_v20  ;;  %4080 = vmatpush1.bf16.msra.mxu1 %v13094_v55  ;;  %v11594_v20 = vld [vmem:[%s15078_s5 + $0xc8] ss:$16 sps:$4 sm:$0xff]   ;;  %v11595_v55 = vld [vmem:[%s15078_s5 + $0xe4] ss:$16 sps:$4 sm:$0xff]  }
 0xe00   :  { %4040 = vmatprep.subr.bf16.mxu0 %v13100_v53  ;;  %4081 = vmatprep.subr.bf16.mxu1 %v13106_v19  ;;  %v11596_v53 = vld [vmem:[%s15078_s5 + $0xec] ss:$16 sps:$4 sm:$0xff]   ;;  %v11597_v19 = vld [vmem:[%s15078_s5 + $0xe0] ss:$16 sps:$4 sm:$0xff]  }
 0xe01   :  { %4070 = vmatprep.mubr.bf16.mxu0 %v15107_v45  ;;  %4111 = vmatprep.mubr.bf16.mxu1 %v15107_v45 }
 0xe03   :  { %4041 = vmatpush1.bf16.msra.mxu0 %v13114_v15  ;;  %4082 = vmatpush1.bf16.msra.mxu1 %v13120_v1  ;;  %v11598_v15 = vld [vmem:[%s15078_s5 + $0xe8] ss:$16 sps:$4 sm:$0xff]   ;;  %v15158_v1 = vld [vmem:[#allocation27_spill] sm:$0xff] }
 0xe04   :  { %4042 = vmatprep.subr.bf16.mxu0 %v13126_v3  ;;  %4083 = vmatprep.subr.bf16.mxu1 %v13132_v13  ;;  %v2959_v3 = vadd.f32 %v15158_v1, %v12865_v18  ;;  %v15159_v13 = vld [vmem:[#allocation28_spill] sm:$0xff]  ;;  %v10983_v1 = vld [vmem:[%s15080_s7 + $0xa4] ss:$16 sps:$4 sm:$0xff]  }
 0xe07   :  { %4043 = vmatpush1.bf16.msra.mxu0 %v13138_v14  ;;  %4084 = vmatpush1.bf16.msra.mxu1 %v13144_v8  ;;  %v3032_v14 = vadd.f32 %v15159_v13, %v12868_v44  ;;  %v15160_v8 = vld [vmem:[#allocation29_spill] sm:$0xff] }
 0xe08   :  { %4044 = vmatprep.subr.bf16.mxu0 %v13150_v11  ;;  %4085 = vmatprep.subr.bf16.mxu1 %v13156_v48  ;;  %v2961_v11 = vadd.f32 %v15160_v8, %v12875_v4  ;;  %v15161_v48 = vld [vmem:[#allocation30_spill] sm:$0xff]  ;;  %v10981_v13 = vld [vmem:[%s15080_s7 + $0xa0] ss:$16 sps:$4 sm:$0xff]   ;;  %v10989_v8 = vld [vmem:[%s15080_s7 + $0xc4] ss:$16 sps:$4 sm:$0xff]  }
 0xe0b   :  { %4045 = vmatpush1.bf16.msra.mxu0 %v13162_v26  ;;  %4086 = vmatpush1.bf16.msra.mxu1 %v13168_v27  ;;  %v3034_v26 = vadd.f32 %v15161_v48, %v12878_v61  ;;  %v10987_v48 = vld [vmem:[%s15080_s7 + $0xc0] ss:$16 sps:$4 sm:$0xff]  }
 0xe0c   :  { %4046 = vmatprep.subr.bf16.mxu0 %v13174_v28  ;;  %4087 = vmatprep.subr.bf16.mxu1 %v13180_v33 }
 0xe0f   :  { %4047 = vmatpush1.bf16.msra.mxu0 %v13186_v46  ;;  %4088 = vmatpush1.bf16.msra.mxu1 %v13192_v35 }
 0xe10   :  { %4048 = vmatprep.subr.bf16.mxu0 %v13198_v52  ;;  %4089 = vmatprep.subr.bf16.mxu1 %v13204_v0 }
 0xe13   :  { %4049 = vmatpush1.bf16.msra.mxu0 %v13210_v49  ;;  %4090 = vmatpush1.bf16.msra.mxu1 %v13216_v62 }
 0xe14   :  { %4050 = vmatprep.subr.bf16.mxu0 %v13222_v30  ;;  %4091 = vmatprep.subr.bf16.mxu1 %v13228_v36 }
 0xe17   :  { %4051 = vmatpush1.bf16.msra.mxu0 %v11593_v47  ;;  %4092 = vmatpush1.bf16.msra.mxu1 %v11594_v20  ;;  %v10969_v47 = vld [vmem:[%s15080_s7 + $0x60] ss:$16 sps:$4 sm:$0xff]   ;;  %v10972_v20 = vld [vmem:[%s15080_s7 + $0x68] ss:$16 sps:$4 sm:$0xff]  }
 0xe18   :  { %4052 = vmatprep.subr.bf16.mxu0 %v11595_v55  ;;  %4093 = vmatprep.subr.bf16.mxu1 %v11596_v53  ;;  %v10977_v55 = vld [vmem:[%s15080_s7 + $0x84] ss:$16 sps:$4 sm:$0xff]   ;;  %v10980_v53 = vld [vmem:[%s15080_s7 + $0x8c] ss:$16 sps:$4 sm:$0xff]  }
 0xe1b   :  { %4053 = vmatpush1.bf16.msra.mxu0 %v11597_v19  ;;  %4094 = vmatpush1.bf16.msra.mxu1 %v11598_v15  ;;  %v10975_v19 = vld [vmem:[%s15080_s7 + $0x80] ss:$16 sps:$4 sm:$0xff]   ;;  %v10978_v15 = vld [vmem:[%s15080_s7 + $0x88] ss:$16 sps:$4 sm:$0xff]  }
 0xe1c   :  { %4357 = vmatprep.subr.bf16.mxu0 %v10953_v6  ;;  %4398 = vmatprep.subr.bf16.mxu1 %v10956_v51 }
 0xed1   :  { %v3962_v27 = vpop.f32.mrb[68].mxu0  ;;  %v4003_v28 = vpop.f32.mrb[76].mxu1 }
 0xed2   :  { %v4010_v33 = vadd.f32 %v3962_v27, %v2959_v3  ;;  %v4012_v46 = vadd.f32 %v4003_v28, %v3032_v14  ;;  %v3964_v35 = vpop.f32.mrb[69].mxu0  ;;  %v4005_v52 = vpop.f32.mrb[77].mxu1  ;;  %v10986_v3 = vld [vmem:[%s15080_s7 + $0xac] ss:$16 sps:$4 sm:$0xff]   ;;  %v10984_v14 = vld [vmem:[%s15080_s7 + $0xa8] ss:$16 sps:$4 sm:$0xff]  }
 0xed3   :  { %v4011_v0 = vadd.f32 %v3964_v35, %v2961_v11  ;;  %v4013_v49 = vadd.f32 %v4005_v52, %v3034_v26  ;;  %v3966_v62 = vpop.f32.mrb[70].mxu0  ;;  %v4007_v30 = vpop.f32.mrb[78].mxu1  ;;  %v10992_v11 = vld [vmem:[%s15080_s7 + $0xcc] ss:$16 sps:$4 sm:$0xff]   ;;  %v10990_v26 = vld [vmem:[%s15080_s7 + $0xc8] ss:$16 sps:$4 sm:$0xff]  }
 0xed4   :  { %v4014_v36 = vmul.f32 0.5, %v4010_v33  ;;  %v3967_v60 = vpop.f32.mrb[71].mxu0  ;;  %v4008_v21 = vpop.f32.mrb[79].mxu1  ;;  %v10995_v27 = vld [vmem:[%s15080_s7 + $0xe4] ss:$16 sps:$4 sm:$0xff]   ;;  %v15163_v62 = vld [vmem:[#allocation32_spill] sm:$0xff] }
 0xed5   :  { %v4018_v54 = vmul.f32 0.5, %v4011_v0  ;;  %v4023_v29 = vmul.f32 0.5, %v4013_v49  ;;  %v10998_v28 = vld [vmem:[%s15080_s7 + $0xec] ss:$16 sps:$4 sm:$0xff]   ;;  %v10993_v33 = vld [vmem:[%s15080_s7 + $0xe0] ss:$16 sps:$4 sm:$0xff]   ;;  %v3036_v30 = vadd.f32 %v15163_v62, %v12868_v44 }
 0xed6   :  { %11387 = vtanh.f32 %v4014_v36  ;;  %v13408_v35 = vld [vmem:[%s15081_s8 + $0x4] ss:$16 sps:$4 sm:$0xff]   ;;  %v13413_v52 = vld [vmem:[%s15081_s8 + $0xc] ss:$16 sps:$4 sm:$0xff]   ;;  %v13573_v62 = vld [vmem:[%s15081_s8 + $0xc0] ss:$16 sps:$4 sm:$0xff]  }
 0xed7   :  { %11389 = vtanh.f32 %v4018_v54  ;;  %v15162_v0 = vld [vmem:[#allocation31_spill] sm:$0xff]  ;;  %v15164_v36 = vld [vmem:[#allocation33_spill] sm:$0xff]  ;;  %v15165_v21 = vld [vmem:[#allocation34_spill] sm:$0xff] }
 0xed8   :  { %11391 = vtanh.f32 %v4012_v46  ;;  %v10996_v46 = vld [vmem:[%s15080_s7 + $0xe8] ss:$16 sps:$4 sm:$0xff]   ;;  %v2963_v49 = vadd.f32 %v15162_v0, %v12865_v18  ;;  %v2965_v60 = vadd.f32 %v15164_v36, %v12875_v4  ;;  %v3038_v54 = vadd.f32 %v15165_v21, %v12878_v61  ;;  %v13561_v0 = vld [vmem:[%s15081_s8 + $0xc4] ss:$16 sps:$4 sm:$0xff]   ;;  %v13597_v21 = vld [vmem:[%s15081_s8 + $0xe0] ss:$16 sps:$4 sm:$0xff]  }
 0xed9   :  { %11393 = vtanh.f32 %v4023_v29  ;;  %v13585_v36 = vld [vmem:[%s15081_s8 + $0xe4] ss:$16 sps:$4 sm:$0xff]  }
 0xee0   :  { %v11388_v39 = vpop.eup %11387 }
 0xee1   :  { %v11390_v31 = vpop.eup %11389  ;;  %v4016_v50 = vmul.f32 0.5, %v11388_v39 }
 0xee2   :  { %v4020_v32 = vmul.f32 0.5, %v11390_v31  ;;  %v11392_v59 = vpop.eup %11391 }
 0xee3   :  { %v4017_v25 = vadd.f32 0.5, %v4016_v50  ;;  %v11394_v2 = vpop.eup %11393 }
 0xee4   :  { %v4021_v16 = vadd.f32 0.5, %v4020_v32  ;;  %v4025_v5 = vmul.f32 0.5, %v11394_v2 }
 0xee5   :  { %v4028_v56 = vmul.f32 %v11392_v59, %v4017_v25 }
 0xee6   :  { %v4027_v38 = vmul.f32 %v4021_v16, %v13248_v12  ;;  %v4026_v43 = vadd.f32 0.5, %v4025_v5  ;;  %v10960_v12 = vld [vmem:[%s15080_s7 + $0x28] ss:$16 sps:$4 sm:$0xff]  }
 0xee8   :  { %v13304_v9 = vadd.f32 %v4028_v56, %v4027_v38 }
 0xeea   :  { %11395 = vtanh.f32 %v13304_v9 }
 0xef4   :  { %v11396_v23 = vpop.eup %11395 }
 0xef5   :  { %v4031_v37 = vmul.f32 %v11396_v23, %v4026_v43 }
 0xef7   :  { %v4037_v22 = vpack.c.bf16 %v4031_v37, %v4031_v37 }
 0xef9   :  { %4071 = vmatmul.mubr.bf16.vlgmr.msra.gmra.mrb[72].mxu0 %v4037_v22  ;;  %4112 = vmatmul.mubr.bf16.vlgmr.msra.gmra.mrb[80].mxu1 %v4037_v22 }
 0xefa   :  { %4389 = vmatprep.mubr.bf16.mxu0 %v15107_v45  ;;  %4430 = vmatprep.mubr.bf16.mxu1 %v15107_v45 }
 0xefb   :  { %4358 = vmatpush1.bf16.msra.mxu0 %v10951_v7  ;;  %4399 = vmatpush1.bf16.msra.mxu1 %v10954_v42 }
 0xefc   :  { %4359 = vmatprep.subr.bf16.mxu0 %v10959_v24  ;;  %4400 = vmatprep.subr.bf16.mxu1 %v10962_v58 }
 0xeff   :  { %4360 = vmatpush1.bf16.msra.mxu0 %v10957_v10  ;;  %4401 = vmatpush1.bf16.msra.mxu1 %v10960_v12 }
 0xf00   :  { %4361 = vmatprep.subr.bf16.mxu0 %v10965_v17  ;;  %4402 = vmatprep.subr.bf16.mxu1 %v10968_v57 }
 0xf03   :  { %4362 = vmatpush1.bf16.msra.mxu0 %v10963_v40  ;;  %4403 = vmatpush1.bf16.msra.mxu1 %v10966_v63  ;;  %v13429_v40 = vld [vmem:[%s15081_s8] ss:$16 sps:$4 sm:$0xff]   ;;  %v13434_v63 = vld [vmem:[%s15081_s8 + $0x8] ss:$16 sps:$4 sm:$0xff]  }
 0xf04   :  { %4363 = vmatprep.subr.bf16.mxu0 %v10971_v34  ;;  %4404 = vmatprep.subr.bf16.mxu1 %v10974_v41  ;;  %v13444_v41 = vld [vmem:[%s15081_s8 + $0x2c] ss:$16 sps:$4 sm:$0xff]  }
 0xf07   :  { %4364 = vmatpush1.bf16.msra.mxu0 %v10969_v47  ;;  %4405 = vmatpush1.bf16.msra.mxu1 %v10972_v20  ;;  %v13451_v47 = vld [vmem:[%s15081_s8 + $0x20] ss:$16 sps:$4 sm:$0xff]   ;;  %v13456_v20 = vld [vmem:[%s15081_s8 + $0x28] ss:$16 sps:$4 sm:$0xff]  }
 0xf08   :  { %4365 = vmatprep.subr.bf16.mxu0 %v10977_v55  ;;  %4406 = vmatprep.subr.bf16.mxu1 %v10980_v53  ;;  %v13463_v55 = vld [vmem:[%s15081_s8 + $0x44] ss:$16 sps:$4 sm:$0xff]   ;;  %v13468_v53 = vld [vmem:[%s15081_s8 + $0x4c] ss:$16 sps:$4 sm:$0xff]  }
 0xf0b   :  { %4366 = vmatpush1.bf16.msra.mxu0 %v10975_v19  ;;  %4407 = vmatpush1.bf16.msra.mxu1 %v10978_v15  ;;  %v13477_v19 = vld [vmem:[%s15081_s8 + $0x40] ss:$16 sps:$4 sm:$0xff]   ;;  %v13482_v15 = vld [vmem:[%s15081_s8 + $0x48] ss:$16 sps:$4 sm:$0xff]  }
 0xf0c   :  { %4367 = vmatprep.subr.bf16.mxu0 %v10983_v1  ;;  %4408 = vmatprep.subr.bf16.mxu1 %v10986_v3  ;;  %v13489_v1 = vld [vmem:[%s15081_s8 + $0x64] ss:$16 sps:$4 sm:$0xff]   ;;  %v13494_v3 = vld [vmem:[%s15081_s8 + $0x6c] ss:$16 sps:$4 sm:$0xff]  }
 0xf0f   :  { %4368 = vmatpush1.bf16.msra.mxu0 %v10981_v13  ;;  %4409 = vmatpush1.bf16.msra.mxu1 %v10984_v14  ;;  %v13501_v13 = vld [vmem:[%s15081_s8 + $0x60] ss:$16 sps:$4 sm:$0xff]   ;;  %v13506_v14 = vld [vmem:[%s15081_s8 + $0x68] ss:$16 sps:$4 sm:$0xff]  }
 0xf10   :  { %4369 = vmatprep.subr.bf16.mxu0 %v10989_v8  ;;  %4410 = vmatprep.subr.bf16.mxu1 %v10992_v11  ;;  %v13513_v8 = vld [vmem:[%s15081_s8 + $0x84] ss:$16 sps:$4 sm:$0xff]   ;;  %v13518_v11 = vld [vmem:[%s15081_s8 + $0x8c] ss:$16 sps:$4 sm:$0xff]  }
 0xf13   :  { %4370 = vmatpush1.bf16.msra.mxu0 %v10987_v48  ;;  %4411 = vmatpush1.bf16.msra.mxu1 %v10990_v26  ;;  %v13525_v48 = vld [vmem:[%s15081_s8 + $0x80] ss:$16 sps:$4 sm:$0xff]   ;;  %v13530_v26 = vld [vmem:[%s15081_s8 + $0x88] ss:$16 sps:$4 sm:$0xff]  }
 0xf14   :  { %4371 = vmatprep.subr.bf16.mxu0 %v10995_v27  ;;  %4412 = vmatprep.subr.bf16.mxu1 %v10998_v28  ;;  %v13537_v27 = vld [vmem:[%s15081_s8 + $0xa4] ss:$16 sps:$4 sm:$0xff]   ;;  %v13542_v28 = vld [vmem:[%s15081_s8 + $0xac] ss:$16 sps:$4 sm:$0xff]  }
 0xf17   :  { %4372 = vmatpush1.bf16.msra.mxu0 %v10993_v33  ;;  %4413 = vmatpush1.bf16.msra.mxu1 %v10996_v46  ;;  %v13549_v33 = vld [vmem:[%s15081_s8 + $0xa0] ss:$16 sps:$4 sm:$0xff]   ;;  %v13554_v46 = vld [vmem:[%s15081_s8 + $0xa8] ss:$16 sps:$4 sm:$0xff]  }
 0xf18   :  { %4631 = vmatprep.subr.bf16.mxu0 %v13408_v35  ;;  %4672 = vmatprep.subr.bf16.mxu1 %v13413_v52 }
 0xfcc   :  { %v4072_v29 = vpop.f32.mrb[72].mxu0  ;;  %v4113_v39 = vpop.f32.mrb[80].mxu1 }
 0xfcd   :  { %v4120_v31 = vadd.f32 %v4072_v29, %v2963_v49  ;;  %v4122_v50 = vadd.f32 %v4113_v39, %v3036_v30  ;;  %v4074_v32 = vpop.f32.mrb[73].mxu0  ;;  %v4115_v25 = vpop.f32.mrb[81].mxu1  ;;  %v13566_v49 = vld [vmem:[%s15081_s8 + $0xcc] ss:$16 sps:$4 sm:$0xff]   ;;  %v13578_v30 = vld [vmem:[%s15081_s8 + $0xc8] ss:$16 sps:$4 sm:$0xff]  }
 0xfce   :  { %v4121_v59 = vadd.f32 %v4074_v32, %v2965_v60  ;;  %v4123_v16 = vadd.f32 %v4115_v25, %v3038_v54  ;;  %v4076_v56 = vpop.f32.mrb[74].mxu0  ;;  %v4117_v38 = vpop.f32.mrb[82].mxu1  ;;  %v13590_v60 = vld [vmem:[%s15081_s8 + $0xec] ss:$16 sps:$4 sm:$0xff]   ;;  %v13602_v54 = vld [vmem:[%s15081_s8 + $0xe8] ss:$16 sps:$4 sm:$0xff]  }
 0xfcf   :  { %v4124_v18 = vmul.f32 0.5, %v4120_v31  ;;  %v4077_v2 = vpop.f32.mrb[75].mxu0  ;;  %v4118_v5 = vpop.f32.mrb[83].mxu1  ;;  %v4175_v56 = vld [vmem:[%s15082_s9] sm:$0xf]  ;;  %v15166_v38 = vld [vmem:[#allocation8_spill] sm:$0xff] }
 0xfd0   :  { %v4128_v44 = vmul.f32 0.5, %v4121_v59  ;;  %v4133_v4 = vmul.f32 0.5, %v4123_v16  ;;  %v15167_v2 = vld [vmem:[#allocation7_spill] sm:$0xff] }
 0xfd1   :  { %11397 = vtanh.f32 %v4124_v18  ;;  %v4180_v18 = vrot.slane %v4175_v56, %v15166_v38  ;;  %v4184_v5 = vrot.slane %v4175_v56, %v15167_v2 }
 0xfd2   :  { %11399 = vtanh.f32 %v4128_v44 }
 0xfd3   :  { %11401 = vtanh.f32 %v4122_v50 }
 0xfd4   :  { %11403 = vtanh.f32 %v4133_v4  ;;  %v15168_v4 = vld [vmem:[#allocation9_spill] sm:$0xff] }
 0xfdb   :  { %v11398_v43 = vpop.eup %11397 }
 0xfdc   :  { %v11400_v61 = vpop.eup %11399  ;;  %v4126_v23 = vmul.f32 0.5, %v11398_v43  ;;  %v4188_v43 = vrot.slane %v4175_v56, %v15168_v4 }
 0xfdd   :  { %v4130_v37 = vmul.f32 0.5, %v11400_v61  ;;  %v11402_v6 = vpop.eup %11401 }
 0xfde   :  { %v4127_v22 = vadd.f32 0.5, %v4126_v23  ;;  %v11404_v58 = vpop.eup %11403 }
 0xfdf   :  { %v4131_v7 = vadd.f32 0.5, %v4130_v37  ;;  %v4135_v10 = vmul.f32 0.5, %v11404_v58 }
 0xfe0   :  { %v4138_v42 = vmul.f32 %v11402_v6, %v4127_v22 }
 0xfe1   :  { %v4137_v51 = vmul.f32 %v4131_v7, %v13304_v9  ;;  %v4136_v12 = vadd.f32 0.5, %v4135_v10  ;;  %v13439_v9 = vld [vmem:[%s15081_s8 + $0x24] ss:$16 sps:$4 sm:$0xff]   ;;  %v15169_v10 = vld [vmem:[#allocation10_spill] sm:$0xff] }
 0xfe3   :  { %v4139_v24 = vadd.f32 %v4138_v42, %v4137_v51 }
 0xfe5   :  { %11405 = vtanh.f32 %v4139_v24 }
 0xfef   :  { %v11406_v17 = vpop.eup %11405 }
 0xff0   :  { %v4141_v57 = vmul.f32 %v11406_v17, %v4136_v12  ;;  %v4192_v12 = vrot.slane %v4175_v56, %v15169_v10 }
 0xff2   :  { %v4142_v34 = vpack.c.bf16 %v4141_v57, %v4141_v57 }
 0xff4   :  { %4390 = vmatmul.mubr.bf16.vlgmr.msra.gmra.mrb[76].mxu0 %v4142_v34  ;;  %4431 = vmatmul.mubr.bf16.vlgmr.msra.gmra.mrb[84].mxu1 %v4142_v34 }
 0xff5   :  { %4632 = vmatpush1.bf16.msra.mxu0 %v13429_v40  ;;  %4673 = vmatpush1.bf16.msra.mxu1 %v13434_v63 }
 0xff6   :  { %4633 = vmatprep.subr.bf16.mxu0 %v13439_v9  ;;  %4674 = vmatprep.subr.bf16.mxu1 %v13444_v41 }
 0xff7   :  { %4663 = vmatprep.mubr.bf16.mxu0 %v15107_v45  ;;  %4704 = vmatprep.mubr.bf16.mxu1 %v15107_v45 }
 0xff9   :  { %4634 = vmatpush1.bf16.msra.mxu0 %v13451_v47  ;;  %4675 = vmatpush1.bf16.msra.mxu1 %v13456_v20 }
 0xffa   :  { %4635 = vmatprep.subr.bf16.mxu0 %v13463_v55  ;;  %4676 = vmatprep.subr.bf16.mxu1 %v13468_v53 }
 0xffd   :  { %4636 = vmatpush1.bf16.msra.mxu0 %v13477_v19  ;;  %4677 = vmatpush1.bf16.msra.mxu1 %v13482_v15 }
 0xffe   :  { %4637 = vmatprep.subr.bf16.mxu0 %v13489_v1  ;;  %4678 = vmatprep.subr.bf16.mxu1 %v13494_v3 }
0x1001   :  { %4638 = vmatpush1.bf16.msra.mxu0 %v13501_v13  ;;  %4679 = vmatpush1.bf16.msra.mxu1 %v13506_v14 }
0x1002   :  { %4639 = vmatprep.subr.bf16.mxu0 %v13513_v8  ;;  %4680 = vmatprep.subr.bf16.mxu1 %v13518_v11 }
0x1005   :  { %4640 = vmatpush1.bf16.msra.mxu0 %v13525_v48  ;;  %4681 = vmatpush1.bf16.msra.mxu1 %v13530_v26 }
0x1006   :  { %4641 = vmatprep.subr.bf16.mxu0 %v13537_v27  ;;  %4682 = vmatprep.subr.bf16.mxu1 %v13542_v28 }
0x1009   :  { %4642 = vmatpush1.bf16.msra.mxu0 %v13549_v33  ;;  %4683 = vmatpush1.bf16.msra.mxu1 %v13554_v46 }
0x100a   :  { %4643 = vmatprep.subr.bf16.mxu0 %v13561_v0  ;;  %4684 = vmatprep.subr.bf16.mxu1 %v13566_v49 }
0x100d   :  { %4644 = vmatpush1.bf16.msra.mxu0 %v13573_v62  ;;  %4685 = vmatpush1.bf16.msra.mxu1 %v13578_v30 }
0x100e   :  { %4645 = vmatprep.subr.bf16.mxu0 %v13585_v36  ;;  %4686 = vmatprep.subr.bf16.mxu1 %v13590_v60 }
0x1011   :  { %4646 = vmatpush1.bf16.msra.mxu0 %v13597_v21  ;;  %4687 = vmatpush1.bf16.msra.mxu1 %v13602_v54 }
0x1012   :  { %4929 = vmatprep.subr.bf16.mxu0 %v13408_v35  ;;  %4970 = vmatprep.subr.bf16.mxu1 %v13413_v52 }
0x1014   :  { %4664 = vmatmul.mubr.bf16.vlgmr.msra.gmra.mrb[80].mxu0 %v15107_v45  ;;  %4705 = vmatmul.mubr.bf16.vlgmr.msra.gmra.mrb[88].mxu1 %v15107_v45 }
0x1015   :  { %4930 = vmatpush1.bf16.msra.mxu0 %v13429_v40  ;;  %4971 = vmatpush1.bf16.msra.mxu1 %v13434_v63 }
0x1016   :  { %4931 = vmatprep.subr.bf16.mxu0 %v13439_v9  ;;  %4972 = vmatprep.subr.bf16.mxu1 %v13444_v41 }
0x1017   :  { %4961 = vmatprep.mubr.bf16.mxu0 %v15107_v45  ;;  %5002 = vmatprep.mubr.bf16.mxu1 %v15107_v45 }
0x1019   :  { %4932 = vmatpush1.bf16.msra.mxu0 %v13451_v47  ;;  %4973 = vmatpush1.bf16.msra.mxu1 %v13456_v20 }
0x101a   :  { %4933 = vmatprep.subr.bf16.mxu0 %v13463_v55  ;;  %4974 = vmatprep.subr.bf16.mxu1 %v13468_v53 }
0x101d   :  { %4934 = vmatpush1.bf16.msra.mxu0 %v13477_v19  ;;  %4975 = vmatpush1.bf16.msra.mxu1 %v13482_v15 }
0x101e   :  { %4935 = vmatprep.subr.bf16.mxu0 %v13489_v1  ;;  %4976 = vmatprep.subr.bf16.mxu1 %v13494_v3 }
0x1021   :  { %4936 = vmatpush1.bf16.msra.mxu0 %v13501_v13  ;;  %4977 = vmatpush1.bf16.msra.mxu1 %v13506_v14 }
0x1022   :  { %4937 = vmatprep.subr.bf16.mxu0 %v13513_v8  ;;  %4978 = vmatprep.subr.bf16.mxu1 %v13518_v11 }
0x1025   :  { %4938 = vmatpush1.bf16.msra.mxu0 %v13525_v48  ;;  %4979 = vmatpush1.bf16.msra.mxu1 %v13530_v26 }
0x1026   :  { %4939 = vmatprep.subr.bf16.mxu0 %v13537_v27  ;;  %4980 = vmatprep.subr.bf16.mxu1 %v13542_v28 }
0x1029   :  { %4940 = vmatpush1.bf16.msra.mxu0 %v13549_v33  ;;  %4981 = vmatpush1.bf16.msra.mxu1 %v13554_v46 }
0x102a   :  { %4941 = vmatprep.subr.bf16.mxu0 %v13561_v0  ;;  %4982 = vmatprep.subr.bf16.mxu1 %v13566_v49 }
0x102d   :  { %4942 = vmatpush1.bf16.msra.mxu0 %v13573_v62  ;;  %4983 = vmatpush1.bf16.msra.mxu1 %v13578_v30 }
0x102e   :  { %4943 = vmatprep.subr.bf16.mxu0 %v13585_v36  ;;  %4984 = vmatprep.subr.bf16.mxu1 %v13590_v60 }
0x1031   :  { %4944 = vmatpush1.bf16.msra.mxu0 %v13597_v21  ;;  %4985 = vmatpush1.bf16.msra.mxu1 %v13602_v54 }
0x1032   :  { %5228 = vmatprep.subr.bf16.mxu0 %v13408_v35  ;;  %5269 = vmatprep.subr.bf16.mxu1 %v13413_v52 }
0x10c7   :  { %v4391_v29 = vpop.f32.mrb[76].mxu0  ;;  %v4432_v39 = vpop.f32.mrb[84].mxu1 }
0x10c8   :  { %v4393_v31 = vpop.f32.mrb[77].mxu0  ;;  %v4434_v50 = vpop.f32.mrb[85].mxu1  ;;  %v13651_v44 = vadd.f32 %v4391_v29, %v4180_v18  ;;  %v13658_v58 = vadd.f32 %v4432_v39, %v4188_v43 }
0x10c9   :  { %v4395_v32 = vpop.f32.mrb[78].mxu0  ;;  %v4436_v25 = vpop.f32.mrb[86].mxu1  ;;  %v13654_v61 = vadd.f32 %v4393_v31, %v4184_v5 }
0x10ca   :  { %v4396_v59 = vpop.f32.mrb[79].mxu0  ;;  %v4437_v16 = vpop.f32.mrb[87].mxu1  ;;  %v13662_v32 = vadd.f32 %v4434_v50, %v4192_v12 }
0x10e7   :  { %v4665_v23 = vpop.f32.mrb[80].mxu0  ;;  %v4706_v37 = vpop.f32.mrb[88].mxu1 }
0x10e8   :  { %v4713_v22 = vadd.f32 %v4665_v23, %v13651_v44  ;;  %v4667_v6 = vpop.f32.mrb[81].mxu0  ;;  %v4708_v7 = vpop.f32.mrb[89].mxu1  ;;  %v4715_v31 = vadd.f32 %v4706_v37, %v13658_v58 }
0x10e9   :  { %v4714_v42 = vadd.f32 %v4667_v6, %v13654_v61  ;;  %v4669_v51 = vpop.f32.mrb[82].mxu0  ;;  %v4710_v24 = vpop.f32.mrb[90].mxu1  ;;  %v4716_v25 = vadd.f32 %v4708_v7, %v13662_v32 }
0x10ea   :  { %v4717_v17 = vmul.f32 0.5, %v4713_v22  ;;  %v4670_v57 = vpop.f32.mrb[83].mxu0  ;;  %v4711_v34 = vpop.f32.mrb[91].mxu1 }
0x10eb   :  { %v4721_v29 = vmul.f32 0.5, %v4714_v42  ;;  %v4726_v59 = vmul.f32 0.5, %v4716_v25 }
0x10ec   :  { %11407 = vtanh.f32 %v4717_v17 }
0x10ed   :  { %11409 = vtanh.f32 %v4721_v29 }
0x10ee   :  { %11411 = vtanh.f32 %v4715_v31 }
0x10ef   :  { %11413 = vtanh.f32 %v4726_v59 }
0x10f6   :  { %v11408_v16 = vpop.eup %11407 }
0x10f7   :  { %v11410_v18 = vpop.eup %11409  ;;  %v4719_v39 = vmul.f32 0.5, %v11408_v16 }
0x10f8   :  { %v4723_v5 = vmul.f32 0.5, %v11410_v18  ;;  %v11412_v43 = vpop.eup %11411 }
0x10f9   :  { %v4720_v56 = vadd.f32 0.5, %v4719_v39  ;;  %v11414_v50 = vpop.eup %11413 }
0x10fa   :  { %v4724_v23 = vadd.f32 0.5, %v4723_v5  ;;  %v4728_v37 = vmul.f32 0.5, %v11414_v50 }
0x10fb   :  { %v4731_v22 = vmul.f32 %v11412_v43, %v4720_v56 }
0x10fc   :  { %v4730_v6 = vmul.f32 0.0, %v4724_v23  ;;  %v4729_v51 = vadd.f32 0.5, %v4728_v37 }
0x10fe   :  { %v13665_v42 = vadd.f32 %v4731_v22, %v4730_v6 }
0x1100   :  { %11415 = vtanh.f32 %v13665_v42 }
0x110a   :  { %v11416_v24 = vpop.eup %11415 }
0x110b   :  { %v13668_v7 = vmul.f32 %v11416_v24, %v4729_v51 }
0x110d   :  { %v4736_v12 = vpack.c.bf16 %v13668_v7, %v13668_v7 }
0x110f   :  { %4962 = vmatmul.mubr.bf16.vlgmr.msra.gmra.mrb[84].mxu0 %v4736_v12  ;;  %5003 = vmatmul.mubr.bf16.vlgmr.msra.gmra.mrb[92].mxu1 %v4736_v12 }
0x1110   :  { %5229 = vmatpush1.bf16.msra.mxu0 %v13429_v40  ;;  %5270 = vmatpush1.bf16.msra.mxu1 %v13434_v63 }
0x1111   :  { %5230 = vmatprep.subr.bf16.mxu0 %v13439_v9  ;;  %5271 = vmatprep.subr.bf16.mxu1 %v13444_v41 }
0x1112   :  { %5260 = vmatprep.mubr.bf16.mxu0 %v15107_v45  ;;  %5301 = vmatprep.mubr.bf16.mxu1 %v15107_v45 }
0x1114   :  { %5231 = vmatpush1.bf16.msra.mxu0 %v13451_v47  ;;  %5272 = vmatpush1.bf16.msra.mxu1 %v13456_v20 }
0x1115   :  { %5232 = vmatprep.subr.bf16.mxu0 %v13463_v55  ;;  %5273 = vmatprep.subr.bf16.mxu1 %v13468_v53 }
0x1118   :  { %5233 = vmatpush1.bf16.msra.mxu0 %v13477_v19  ;;  %5274 = vmatpush1.bf16.msra.mxu1 %v13482_v15 }
0x1119   :  { %5234 = vmatprep.subr.bf16.mxu0 %v13489_v1  ;;  %5275 = vmatprep.subr.bf16.mxu1 %v13494_v3 }
0x111c   :  { %5235 = vmatpush1.bf16.msra.mxu0 %v13501_v13  ;;  %5276 = vmatpush1.bf16.msra.mxu1 %v13506_v14 }
0x111d   :  { %5236 = vmatprep.subr.bf16.mxu0 %v13513_v8  ;;  %5277 = vmatprep.subr.bf16.mxu1 %v13518_v11 }
0x1120   :  { %5237 = vmatpush1.bf16.msra.mxu0 %v13525_v48  ;;  %5278 = vmatpush1.bf16.msra.mxu1 %v13530_v26 }
0x1121   :  { %5238 = vmatprep.subr.bf16.mxu0 %v13537_v27  ;;  %5279 = vmatprep.subr.bf16.mxu1 %v13542_v28 }
0x1124   :  { %5239 = vmatpush1.bf16.msra.mxu0 %v13549_v33  ;;  %5280 = vmatpush1.bf16.msra.mxu1 %v13554_v46 }
0x1125   :  { %5240 = vmatprep.subr.bf16.mxu0 %v13561_v0  ;;  %5281 = vmatprep.subr.bf16.mxu1 %v13566_v49 }
0x1128   :  { %5241 = vmatpush1.bf16.msra.mxu0 %v13573_v62  ;;  %5282 = vmatpush1.bf16.msra.mxu1 %v13578_v30 }
0x1129   :  { %5242 = vmatprep.subr.bf16.mxu0 %v13585_v36  ;;  %5283 = vmatprep.subr.bf16.mxu1 %v13590_v60 }
0x112c   :  { %5243 = vmatpush1.bf16.msra.mxu0 %v13597_v21  ;;  %5284 = vmatpush1.bf16.msra.mxu1 %v13602_v54 }
0x112d   :  { %5527 = vmatprep.subr.bf16.mxu0 %v13408_v35  ;;  %5568 = vmatprep.subr.bf16.mxu1 %v13413_v52 }
0x11e2   :  { %v4963_v17 = vpop.f32.mrb[84].mxu0  ;;  %v5004_v57 = vpop.f32.mrb[92].mxu1 }
0x11e3   :  { %v5011_v34 = vadd.f32 %v4963_v17, %v13651_v44  ;;  %v4965_v29 = vpop.f32.mrb[85].mxu0  ;;  %v5006_v31 = vpop.f32.mrb[93].mxu1  ;;  %v5013_v43 = vadd.f32 %v5004_v57, %v13658_v58 }
0x11e4   :  { %v5012_v25 = vadd.f32 %v4965_v29, %v13654_v61  ;;  %v4967_v59 = vpop.f32.mrb[86].mxu0  ;;  %v5008_v16 = vpop.f32.mrb[94].mxu1  ;;  %v5014_v35 = vadd.f32 %v5006_v31, %v13662_v32 }
0x11e5   :  { %v5015_v18 = vmul.f32 0.5, %v5011_v34  ;;  %v4968_v39 = vpop.f32.mrb[87].mxu0  ;;  %v5009_v5 = vpop.f32.mrb[95].mxu1 }
0x11e6   :  { %v5019_v56 = vmul.f32 0.5, %v5012_v25  ;;  %v5024_v52 = vmul.f32 0.5, %v5014_v35  ;;  %v13772_v39 = vld [vmem:[%s15081_s8 + $0xc] ss:$16 sps:$4 sm:$0xff]   ;;  %v13777_v5 = vld [vmem:[%s15081_s8] ss:$16 sps:$4 sm:$0xff]  }
0x11e7   :  { %11417 = vtanh.f32 %v5015_v18  ;;  %v13767_v18 = vld [vmem:[%s15081_s8 + $0x4] ss:$16 sps:$4 sm:$0xff]   ;;  %v13796_v35 = vld [vmem:[%s15081_s8 + $0x2c] ss:$16 sps:$4 sm:$0xff]  }
0x11e8   :  { %11419 = vtanh.f32 %v5019_v56  ;;  %v13782_v56 = vld [vmem:[%s15081_s8 + $0x8] ss:$16 sps:$4 sm:$0xff]  }
0x11e9   :  { %11421 = vtanh.f32 %v5013_v43  ;;  %v13791_v43 = vld [vmem:[%s15081_s8 + $0x24] ss:$16 sps:$4 sm:$0xff]  }
0x11ea   :  { %11423 = vtanh.f32 %v5024_v52  ;;  %v13801_v52 = vld [vmem:[%s15081_s8 + $0x20] ss:$16 sps:$4 sm:$0xff]  }
0x11f1   :  { %v11418_v23 = vpop.eup %11417 }
0x11f2   :  { %v11420_v22 = vpop.eup %11419  ;;  %v5017_v6 = vmul.f32 0.5, %v11418_v23  ;;  %v13806_v23 = vld [vmem:[%s15081_s8 + $0x28] ss:$16 sps:$4 sm:$0xff]  }
0x11f3   :  { %v5021_v50 = vmul.f32 0.5, %v11420_v22  ;;  %v11422_v51 = vpop.eup %11421  ;;  %v13815_v22 = vld [vmem:[%s15081_s8 + $0x44] ss:$16 sps:$4 sm:$0xff]  }
0x11f4   :  { %v5018_v37 = vadd.f32 0.5, %v5017_v6  ;;  %v11424_v57 = vpop.eup %11423  ;;  %v13820_v6 = vld [vmem:[%s15081_s8 + $0x4c] ss:$16 sps:$4 sm:$0xff]  }
0x11f5   :  { %v5022_v24 = vadd.f32 0.5, %v5021_v50  ;;  %v5026_v29 = vmul.f32 0.5, %v11424_v57  ;;  %v13825_v50 = vld [vmem:[%s15081_s8 + $0x40] ss:$16 sps:$4 sm:$0xff]   ;;  %v13868_v57 = vld [vmem:[%s15081_s8 + $0x8c] ss:$16 sps:$4 sm:$0xff]  }
0x11f6   :  { %v5029_v12 = vmul.f32 %v11422_v51, %v5018_v37  ;;  %v13830_v37 = vld [vmem:[%s15081_s8 + $0x48] ss:$16 sps:$4 sm:$0xff]   ;;  %v13839_v51 = vld [vmem:[%s15081_s8 + $0x64] ss:$16 sps:$4 sm:$0xff]  }
0x11f7   :  { %v5028_v17 = vmul.f32 %v5022_v24, %v13665_v42  ;;  %v5027_v25 = vadd.f32 0.5, %v5026_v29  ;;  %v13844_v24 = vld [vmem:[%s15081_s8 + $0x6c] ss:$16 sps:$4 sm:$0xff]   ;;  %v13873_v29 = vld [vmem:[%s15081_s8 + $0x80] ss:$16 sps:$4 sm:$0xff]  }
0x11f9   :  { %v13711_v34 = vadd.f32 %v5029_v12, %v5028_v17  ;;  %v13849_v12 = vld [vmem:[%s15081_s8 + $0x60] ss:$16 sps:$4 sm:$0xff]   ;;  %v13854_v17 = vld [vmem:[%s15081_s8 + $0x68] ss:$16 sps:$4 sm:$0xff]  }
0x11fb   :  { %11425 = vtanh.f32 %v13711_v34 }
0x1205   :  { %v11426_v31 = vpop.eup %11425 }
0x1206   :  { %v13714_v59 = vmul.f32 %v11426_v31, %v5027_v25  ;;  %v13878_v25 = vld [vmem:[%s15081_s8 + $0x88] ss:$16 sps:$4 sm:$0xff]   ;;  %v13887_v31 = vld [vmem:[%s15081_s8 + $0xa4] ss:$16 sps:$4 sm:$0xff]  }
0x1208   :  { %v5035_v16 = vpack.c.bf16 %v13714_v59, %v13714_v59 }
0x120a   :  { %5261 = vmatmul.mubr.bf16.vlgmr.msra.gmra.mrb[88].mxu0 %v5035_v16  ;;  %5302 = vmatmul.mubr.bf16.vlgmr.msra.gmra.mrb[96].mxu1 %v5035_v16  ;;  %v13892_v16 = vld [vmem:[%s15081_s8 + $0xac] ss:$16 sps:$4 sm:$0xff]  }
0x120b   :  { %5528 = vmatpush1.bf16.msra.mxu0 %v13429_v40  ;;  %5569 = vmatpush1.bf16.msra.mxu1 %v13434_v63 }
0x120c   :  { %5529 = vmatprep.subr.bf16.mxu0 %v13439_v9  ;;  %5570 = vmatprep.subr.bf16.mxu1 %v13444_v41 }
0x120d   :  { %5559 = vmatprep.mubr.bf16.mxu0 %v15107_v45  ;;  %5600 = vmatprep.mubr.bf16.mxu1 %v15107_v45 }
0x120f   :  { %5530 = vmatpush1.bf16.msra.mxu0 %v13451_v47  ;;  %5571 = vmatpush1.bf16.msra.mxu1 %v13456_v20 }
0x1210   :  { %5531 = vmatprep.subr.bf16.mxu0 %v13463_v55  ;;  %5572 = vmatprep.subr.bf16.mxu1 %v13468_v53 }
0x1213   :  { %5532 = vmatpush1.bf16.msra.mxu0 %v13477_v19  ;;  %5573 = vmatpush1.bf16.msra.mxu1 %v13482_v15 }
0x1214   :  { %5533 = vmatprep.subr.bf16.mxu0 %v13489_v1  ;;  %5574 = vmatprep.subr.bf16.mxu1 %v13494_v3 }
0x1217   :  { %5534 = vmatpush1.bf16.msra.mxu0 %v13501_v13  ;;  %5575 = vmatpush1.bf16.msra.mxu1 %v13506_v14 }
0x1218   :  { %5535 = vmatprep.subr.bf16.mxu0 %v13513_v8  ;;  %5576 = vmatprep.subr.bf16.mxu1 %v13518_v11 }
0x121b   :  { %5536 = vmatpush1.bf16.msra.mxu0 %v13525_v48  ;;  %5577 = vmatpush1.bf16.msra.mxu1 %v13530_v26 }
0x121c   :  { %5537 = vmatprep.subr.bf16.mxu0 %v13537_v27  ;;  %5578 = vmatprep.subr.bf16.mxu1 %v13542_v28 }
0x121f   :  { %5538 = vmatpush1.bf16.msra.mxu0 %v13549_v33  ;;  %5579 = vmatpush1.bf16.msra.mxu1 %v13554_v46 }
0x1220   :  { %5539 = vmatprep.subr.bf16.mxu0 %v13561_v0  ;;  %5580 = vmatprep.subr.bf16.mxu1 %v13566_v49 }
0x1223   :  { %5540 = vmatpush1.bf16.msra.mxu0 %v13573_v62  ;;  %5581 = vmatpush1.bf16.msra.mxu1 %v13578_v30 }
0x1224   :  { %5541 = vmatprep.subr.bf16.mxu0 %v13585_v36  ;;  %5582 = vmatprep.subr.bf16.mxu1 %v13590_v60 }
0x1227   :  { %5542 = vmatpush1.bf16.msra.mxu0 %v13597_v21  ;;  %5583 = vmatpush1.bf16.msra.mxu1 %v13602_v54 }
0x1228   :  { %5826 = vmatprep.subr.bf16.mxu0 %v13767_v18  ;;  %5867 = vmatprep.subr.bf16.mxu1 %v13772_v39 }
0x12dd   :  { %v5262_v40 = vpop.f32.mrb[88].mxu0  ;;  %v5303_v63 = vpop.f32.mrb[96].mxu1 }
0x12de   :  { %v5310_v9 = vadd.f32 %v5262_v40, %v13651_v44  ;;  %v5264_v41 = vpop.f32.mrb[89].mxu0  ;;  %v5305_v47 = vpop.f32.mrb[97].mxu1  ;;  %v5312_v13 = vadd.f32 %v5303_v63, %v13658_v58  ;;  %v13897_v40 = vld [vmem:[%s15081_s8 + $0xa0] ss:$16 sps:$4 sm:$0xff]   ;;  %v13902_v63 = vld [vmem:[%s15081_s8 + $0xa8] ss:$16 sps:$4 sm:$0xff]  }
0x12df   :  { %v5311_v20 = vadd.f32 %v5264_v41, %v13654_v61  ;;  %v5266_v55 = vpop.f32.mrb[90].mxu0  ;;  %v5307_v53 = vpop.f32.mrb[98].mxu1  ;;  %v5313_v14 = vadd.f32 %v5305_v47, %v13662_v32  ;;  %v13916_v41 = vld [vmem:[%s15081_s8 + $0xcc] ss:$16 sps:$4 sm:$0xff]   ;;  %v13921_v47 = vld [vmem:[%s15081_s8 + $0xc0] ss:$16 sps:$4 sm:$0xff]  }
0x12e0   :  { %v5314_v19 = vmul.f32 0.5, %v5310_v9  ;;  %v5267_v15 = vpop.f32.mrb[91].mxu0  ;;  %v5308_v1 = vpop.f32.mrb[99].mxu1  ;;  %v13911_v9 = vld [vmem:[%s15081_s8 + $0xc4] ss:$16 sps:$4 sm:$0xff]  }
0x12e1   :  { %v5318_v3 = vmul.f32 0.5, %v5311_v20  ;;  %v5323_v8 = vmul.f32 0.5, %v5313_v14  ;;  %v13926_v20 = vld [vmem:[%s15081_s8 + $0xc8] ss:$16 sps:$4 sm:$0xff]   ;;  %v13935_v55 = vld [vmem:[%s15081_s8 + $0xe4] ss:$16 sps:$4 sm:$0xff]  }
0x12e2   :  { %11427 = vtanh.f32 %v5314_v19  ;;  %v13940_v53 = vld [vmem:[%s15081_s8 + $0xec] ss:$16 sps:$4 sm:$0xff]   ;;  %v13945_v19 = vld [vmem:[%s15081_s8 + $0xe0] ss:$16 sps:$4 sm:$0xff]   ;;  %v13950_v15 = vld [vmem:[%s15081_s8 + $0xe8] ss:$16 sps:$4 sm:$0xff]  }
0x12e3   :  { %11429 = vtanh.f32 %v5318_v3 }
0x12e4   :  { %11431 = vtanh.f32 %v5312_v13 }
0x12e5   :  { %11433 = vtanh.f32 %v5323_v8 }
0x12ec   :  { %v11428_v11 = vpop.eup %11427 }
0x12ed   :  { %v11430_v48 = vpop.eup %11429  ;;  %v5316_v26 = vmul.f32 0.5, %v11428_v11 }
0x12ee   :  { %v5320_v27 = vmul.f32 0.5, %v11430_v48  ;;  %v11432_v33 = vpop.eup %11431 }
0x12ef   :  { %v5317_v28 = vadd.f32 0.5, %v5316_v26  ;;  %v11434_v30 = vpop.eup %11433 }
0x12f0   :  { %v5321_v46 = vadd.f32 0.5, %v5320_v27  ;;  %v5325_v36 = vmul.f32 0.5, %v11434_v30 }
0x12f1   :  { %v5328_v0 = vmul.f32 %v11432_v33, %v5317_v28 }
0x12f2   :  { %v5327_v49 = vmul.f32 %v5321_v46, %v13711_v34  ;;  %v5326_v60 = vadd.f32 0.5, %v5325_v36  ;;  %v13863_v34 = vld [vmem:[%s15081_s8 + $0x84] ss:$16 sps:$4 sm:$0xff]  }
0x12f4   :  { %v13755_v62 = vadd.f32 %v5328_v0, %v5327_v49 }
0x12f6   :  { %11435 = vtanh.f32 %v13755_v62 }
0x1300   :  { %v11436_v21 = vpop.eup %11435 }
0x1301   :  { %v13758_v54 = vmul.f32 %v11436_v21, %v5326_v60 }
0x1303   :  { %v5334_v42 = vpack.c.bf16 %v13758_v54, %v13758_v54 }
0x1305   :  { %5560 = vmatmul.mubr.bf16.vlgmr.msra.gmra.mrb[92].mxu0 %v5334_v42  ;;  %5601 = vmatmul.mubr.bf16.vlgmr.msra.gmra.mrb[100].mxu1 %v5334_v42 }
0x1306   :  { %5858 = vmatprep.mubr.bf16.mxu0 %v15107_v45  ;;  %5899 = vmatprep.mubr.bf16.mxu1 %v15107_v45 }
0x1307   :  { %5827 = vmatpush1.bf16.msra.mxu0 %v13777_v5  ;;  %5868 = vmatpush1.bf16.msra.mxu1 %v13782_v56 }
0x1308   :  { %5828 = vmatprep.subr.bf16.mxu0 %v13791_v43  ;;  %5869 = vmatprep.subr.bf16.mxu1 %v13796_v35 }
0x130b   :  { %5829 = vmatpush1.bf16.msra.mxu0 %v13801_v52  ;;  %5870 = vmatpush1.bf16.msra.mxu1 %v13806_v23 }
0x130c   :  { %5830 = vmatprep.subr.bf16.mxu0 %v13815_v22  ;;  %5871 = vmatprep.subr.bf16.mxu1 %v13820_v6 }
0x130f   :  { %5831 = vmatpush1.bf16.msra.mxu0 %v13825_v50  ;;  %5872 = vmatpush1.bf16.msra.mxu1 %v13830_v37 }
0x1310   :  { %5832 = vmatprep.subr.bf16.mxu0 %v13839_v51  ;;  %5873 = vmatprep.subr.bf16.mxu1 %v13844_v24 }
0x1313   :  { %5833 = vmatpush1.bf16.msra.mxu0 %v13849_v12  ;;  %5874 = vmatpush1.bf16.msra.mxu1 %v13854_v17 }
0x1314   :  { %5834 = vmatprep.subr.bf16.mxu0 %v13863_v34  ;;  %5875 = vmatprep.subr.bf16.mxu1 %v13868_v57 }
0x1317   :  { %5835 = vmatpush1.bf16.msra.mxu0 %v13873_v29  ;;  %5876 = vmatpush1.bf16.msra.mxu1 %v13878_v25 }
0x1318   :  { %5836 = vmatprep.subr.bf16.mxu0 %v13887_v31  ;;  %5877 = vmatprep.subr.bf16.mxu1 %v13892_v16 }
0x131b   :  { %5837 = vmatpush1.bf16.msra.mxu0 %v13897_v40  ;;  %5878 = vmatpush1.bf16.msra.mxu1 %v13902_v63 }
0x131c   :  { %5838 = vmatprep.subr.bf16.mxu0 %v13911_v9  ;;  %5879 = vmatprep.subr.bf16.mxu1 %v13916_v41 }
0x131f   :  { %5839 = vmatpush1.bf16.msra.mxu0 %v13921_v47  ;;  %5880 = vmatpush1.bf16.msra.mxu1 %v13926_v20 }
0x1320   :  { %5840 = vmatprep.subr.bf16.mxu0 %v13935_v55  ;;  %5881 = vmatprep.subr.bf16.mxu1 %v13940_v53 }
0x1323   :  { %5841 = vmatpush1.bf16.msra.mxu0 %v13945_v19  ;;  %5882 = vmatpush1.bf16.msra.mxu1 %v13950_v15 }
0x1324   :  { %6125 = vmatprep.subr.bf16.mxu0 %v13767_v18  ;;  %6166 = vmatprep.subr.bf16.mxu1 %v13772_v39 }
0x13d8   :  { %v5561_v1 = vpop.f32.mrb[92].mxu0  ;;  %v5602_v3 = vpop.f32.mrb[100].mxu1 }
0x13d9   :  { %v5609_v13 = vadd.f32 %v5561_v1, %v13651_v44  ;;  %v5563_v14 = vpop.f32.mrb[93].mxu0  ;;  %v5604_v8 = vpop.f32.mrb[101].mxu1  ;;  %v5611_v0 = vadd.f32 %v5602_v3, %v13658_v58 }
0x13da   :  { %v5610_v11 = vadd.f32 %v5563_v14, %v13654_v61  ;;  %v5565_v48 = vpop.f32.mrb[94].mxu0  ;;  %v5606_v26 = vpop.f32.mrb[102].mxu1  ;;  %v5612_v49 = vadd.f32 %v5604_v8, %v13662_v32 }
0x13db   :  { %v5613_v27 = vmul.f32 0.5, %v5609_v13  ;;  %v5566_v28 = vpop.f32.mrb[95].mxu0  ;;  %v5607_v33 = vpop.f32.mrb[103].mxu1 }
0x13dc   :  { %v5617_v46 = vmul.f32 0.5, %v5610_v11  ;;  %v5622_v30 = vmul.f32 0.5, %v5612_v49 }
0x13dd   :  { %11437 = vtanh.f32 %v5613_v27 }
0x13de   :  { %11439 = vtanh.f32 %v5617_v46 }
0x13df   :  { %11441 = vtanh.f32 %v5611_v0 }
0x13e0   :  { %11443 = vtanh.f32 %v5622_v30 }
0x13e7   :  { %v11438_v36 = vpop.eup %11437 }
0x13e8   :  { %v11440_v60 = vpop.eup %11439  ;;  %v5615_v21 = vmul.f32 0.5, %v11438_v36 }
0x13e9   :  { %v5619_v42 = vmul.f32 0.5, %v11440_v60  ;;  %v11442_v14 = vpop.eup %11441 }
0x13ea   :  { %v5616_v1 = vadd.f32 0.5, %v5615_v21  ;;  %v11444_v3 = vpop.eup %11443 }
0x13eb   :  { %v5620_v48 = vadd.f32 0.5, %v5619_v42  ;;  %v5624_v27 = vmul.f32 0.5, %v11444_v3 }
0x13ec   :  { %v5627_v13 = vmul.f32 %v11442_v14, %v5616_v1 }
0x13ed   :  { %v5626_v26 = vmul.f32 %v5620_v48, %v13755_v62  ;;  %v5625_v28 = vadd.f32 0.5, %v5624_v27 }
0x13ef   :  { %v13963_v11 = vadd.f32 %v5627_v13, %v5626_v26 }
0x13f1   :  { %11445 = vtanh.f32 %v13963_v11 }
0x13fb   :  { %v11446_v8 = vpop.eup %11445 }
0x13fc   :  { %v13966_v33 = vmul.f32 %v11446_v8, %v5625_v28 }
0x13fe   :  { %v5633_v46 = vpack.c.bf16 %v13966_v33, %v13966_v33 }
0x1400   :  { %5859 = vmatmul.mubr.bf16.vlgmr.msra.gmra.mrb[96].mxu0 %v5633_v46  ;;  %5900 = vmatmul.mubr.bf16.vlgmr.msra.gmra.mrb[104].mxu1 %v5633_v46 }
0x1401   :  { %6126 = vmatpush1.bf16.msra.mxu0 %v13777_v5  ;;  %6167 = vmatpush1.bf16.msra.mxu1 %v13782_v56 }
0x1402   :  { %6127 = vmatprep.subr.bf16.mxu0 %v13791_v43  ;;  %6168 = vmatprep.subr.bf16.mxu1 %v13796_v35 }
0x1403   :  { %6157 = vmatprep.mubr.bf16.mxu0 %v15107_v45  ;;  %6198 = vmatprep.mubr.bf16.mxu1 %v15107_v45 }
0x1405   :  { %6128 = vmatpush1.bf16.msra.mxu0 %v13801_v52  ;;  %6169 = vmatpush1.bf16.msra.mxu1 %v13806_v23 }
0x1406   :  { %6129 = vmatprep.subr.bf16.mxu0 %v13815_v22  ;;  %6170 = vmatprep.subr.bf16.mxu1 %v13820_v6 }
0x1409   :  { %6130 = vmatpush1.bf16.msra.mxu0 %v13825_v50  ;;  %6171 = vmatpush1.bf16.msra.mxu1 %v13830_v37 }
0x140a   :  { %6131 = vmatprep.subr.bf16.mxu0 %v13839_v51  ;;  %6172 = vmatprep.subr.bf16.mxu1 %v13844_v24 }
0x140d   :  { %6132 = vmatpush1.bf16.msra.mxu0 %v13849_v12  ;;  %6173 = vmatpush1.bf16.msra.mxu1 %v13854_v17 }
0x140e   :  { %6133 = vmatprep.subr.bf16.mxu0 %v13863_v34  ;;  %6174 = vmatprep.subr.bf16.mxu1 %v13868_v57 }
0x1411   :  { %6134 = vmatpush1.bf16.msra.mxu0 %v13873_v29  ;;  %6175 = vmatpush1.bf16.msra.mxu1 %v13878_v25 }
0x1412   :  { %6135 = vmatprep.subr.bf16.mxu0 %v13887_v31  ;;  %6176 = vmatprep.subr.bf16.mxu1 %v13892_v16 }
0x1415   :  { %6136 = vmatpush1.bf16.msra.mxu0 %v13897_v40  ;;  %6177 = vmatpush1.bf16.msra.mxu1 %v13902_v63 }
0x1416   :  { %6137 = vmatprep.subr.bf16.mxu0 %v13911_v9  ;;  %6178 = vmatprep.subr.bf16.mxu1 %v13916_v41 }
0x1419   :  { %6138 = vmatpush1.bf16.msra.mxu0 %v13921_v47  ;;  %6179 = vmatpush1.bf16.msra.mxu1 %v13926_v20 }
0x141a   :  { %6139 = vmatprep.subr.bf16.mxu0 %v13935_v55  ;;  %6180 = vmatprep.subr.bf16.mxu1 %v13940_v53 }
0x141d   :  { %6140 = vmatpush1.bf16.msra.mxu0 %v13945_v19  ;;  %6181 = vmatpush1.bf16.msra.mxu1 %v13950_v15 }
0x141e   :  { %6424 = vmatprep.subr.bf16.mxu0 %v13767_v18  ;;  %6465 = vmatprep.subr.bf16.mxu1 %v13772_v39 }
0x14d3   :  { %v5860_v62 = vpop.f32.mrb[96].mxu0  ;;  %v5901_v0 = vpop.f32.mrb[104].mxu1 }
0x14d4   :  { %v5908_v49 = vadd.f32 %v5860_v62, %v13651_v44  ;;  %v5862_v30 = vpop.f32.mrb[97].mxu0  ;;  %v5903_v36 = vpop.f32.mrb[105].mxu1  ;;  %v5910_v26 = vadd.f32 %v5901_v0, %v13658_v58 }
0x14d5   :  { %v5909_v60 = vadd.f32 %v5862_v30, %v13654_v61  ;;  %v5864_v21 = vpop.f32.mrb[98].mxu0  ;;  %v5905_v42 = vpop.f32.mrb[106].mxu1  ;;  %v5911_v3 = vadd.f32 %v5903_v36, %v13662_v32 }
0x14d6   :  { %v5912_v1 = vmul.f32 0.5, %v5908_v49  ;;  %v5865_v14 = vpop.f32.mrb[99].mxu0  ;;  %v5906_v48 = vpop.f32.mrb[107].mxu1 }
0x14d7   :  { %v5916_v13 = vmul.f32 0.5, %v5909_v60  ;;  %v5921_v27 = vmul.f32 0.5, %v5911_v3 }
0x14d8   :  { %11447 = vtanh.f32 %v5912_v1 }
0x14d9   :  { %11449 = vtanh.f32 %v5916_v13 }
0x14da   :  { %11451 = vtanh.f32 %v5910_v26 }
0x14db   :  { %11453 = vtanh.f32 %v5921_v27 }
0x14e2   :  { %v11448_v28 = vpop.eup %11447 }
0x14e3   :  { %v11450_v8 = vpop.eup %11449  ;;  %v5914_v46 = vmul.f32 0.5, %v11448_v28 }
0x14e4   :  { %v5918_v62 = vmul.f32 0.5, %v11450_v8  ;;  %v11452_v21 = vpop.eup %11451 }
0x14e5   :  { %v5915_v30 = vadd.f32 0.5, %v5914_v46  ;;  %v11454_v0 = vpop.eup %11453 }
0x14e6   :  { %v5919_v42 = vadd.f32 0.5, %v5918_v62  ;;  %v5923_v1 = vmul.f32 0.5, %v11454_v0 }
0x14e7   :  { %v5926_v49 = vmul.f32 %v11452_v21, %v5915_v30 }
0x14e8   :  { %v5925_v14 = vmul.f32 %v5919_v42, %v13963_v11  ;;  %v5924_v48 = vadd.f32 0.5, %v5923_v1 }
0x14ea   :  { %v14009_v60 = vadd.f32 %v5926_v49, %v5925_v14 }
0x14ec   :  { %11455 = vtanh.f32 %v14009_v60 }
0x14f6   :  { %v11456_v36 = vpop.eup %11455 }
0x14f7   :  { %v14012_v13 = vmul.f32 %v11456_v36, %v5924_v48 }
0x14f9   :  { %v5932_v26 = vpack.c.bf16 %v14012_v13, %v14012_v13 }
0x14fb   :  { %6158 = vmatmul.mubr.bf16.vlgmr.msra.gmra.mrb[100].mxu0 %v5932_v26  ;;  %6199 = vmatmul.mubr.bf16.vlgmr.msra.gmra.mrb[108].mxu1 %v5932_v26 }
0x14fc   :  { %6425 = vmatpush1.bf16.msra.mxu0 %v13777_v5  ;;  %6466 = vmatpush1.bf16.msra.mxu1 %v13782_v56 }
0x14fd   :  { %6426 = vmatprep.subr.bf16.mxu0 %v13791_v43  ;;  %6467 = vmatprep.subr.bf16.mxu1 %v13796_v35 }
0x14fe   :  { %6456 = vmatprep.mubr.bf16.mxu0 %v15107_v45  ;;  %6497 = vmatprep.mubr.bf16.mxu1 %v15107_v45 }
0x1500   :  { %6427 = vmatpush1.bf16.msra.mxu0 %v13801_v52  ;;  %6468 = vmatpush1.bf16.msra.mxu1 %v13806_v23 }
0x1501   :  { %6428 = vmatprep.subr.bf16.mxu0 %v13815_v22  ;;  %6469 = vmatprep.subr.bf16.mxu1 %v13820_v6 }
0x1504   :  { %6429 = vmatpush1.bf16.msra.mxu0 %v13825_v50  ;;  %6470 = vmatpush1.bf16.msra.mxu1 %v13830_v37 }
0x1505   :  { %6430 = vmatprep.subr.bf16.mxu0 %v13839_v51  ;;  %6471 = vmatprep.subr.bf16.mxu1 %v13844_v24 }
0x1508   :  { %6431 = vmatpush1.bf16.msra.mxu0 %v13849_v12  ;;  %6472 = vmatpush1.bf16.msra.mxu1 %v13854_v17 }
0x1509   :  { %6432 = vmatprep.subr.bf16.mxu0 %v13863_v34  ;;  %6473 = vmatprep.subr.bf16.mxu1 %v13868_v57 }
0x150c   :  { %6433 = vmatpush1.bf16.msra.mxu0 %v13873_v29  ;;  %6474 = vmatpush1.bf16.msra.mxu1 %v13878_v25 }
0x150d   :  { %6434 = vmatprep.subr.bf16.mxu0 %v13887_v31  ;;  %6475 = vmatprep.subr.bf16.mxu1 %v13892_v16 }
0x1510   :  { %6435 = vmatpush1.bf16.msra.mxu0 %v13897_v40  ;;  %6476 = vmatpush1.bf16.msra.mxu1 %v13902_v63 }
0x1511   :  { %6436 = vmatprep.subr.bf16.mxu0 %v13911_v9  ;;  %6477 = vmatprep.subr.bf16.mxu1 %v13916_v41 }
0x1514   :  { %6437 = vmatpush1.bf16.msra.mxu0 %v13921_v47  ;;  %6478 = vmatpush1.bf16.msra.mxu1 %v13926_v20 }
0x1515   :  { %6438 = vmatprep.subr.bf16.mxu0 %v13935_v55  ;;  %6479 = vmatprep.subr.bf16.mxu1 %v13940_v53 }
0x1518   :  { %6439 = vmatpush1.bf16.msra.mxu0 %v13945_v19  ;;  %6480 = vmatpush1.bf16.msra.mxu1 %v13950_v15 }
0x1519   :  { %6723 = vmatprep.subr.bf16.mxu0 %v13767_v18  ;;  %6764 = vmatprep.subr.bf16.mxu1 %v13772_v39 }
0x15ce   :  { %v6159_v11 = vpop.f32.mrb[100].mxu0  ;;  %v6200_v3 = vpop.f32.mrb[108].mxu1 }
0x15cf   :  { %v6207_v27 = vadd.f32 %v6159_v11, %v13651_v44  ;;  %v6161_v28 = vpop.f32.mrb[101].mxu0  ;;  %v6202_v8 = vpop.f32.mrb[109].mxu1  ;;  %v6209_v0 = vadd.f32 %v6200_v3, %v13658_v58 }
0x15d0   :  { %v6208_v46 = vadd.f32 %v6161_v28, %v13654_v61  ;;  %v6163_v62 = vpop.f32.mrb[102].mxu0  ;;  %v6204_v30 = vpop.f32.mrb[110].mxu1  ;;  %v6210_v18 = vadd.f32 %v6202_v8, %v13662_v32 }
0x15d1   :  { %v6211_v21 = vmul.f32 0.5, %v6207_v27  ;;  %v6164_v42 = vpop.f32.mrb[103].mxu0  ;;  %v6205_v49 = vpop.f32.mrb[111].mxu1 }
0x15d2   :  { %v6215_v14 = vmul.f32 0.5, %v6208_v46  ;;  %v6220_v39 = vmul.f32 0.5, %v6210_v18  ;;  %v11095_v18 = vld [vmem:[%s15083_s10] ss:$16 sps:$4 sm:$0xff]  }
0x15d3   :  { %11457 = vtanh.f32 %v6211_v21 }
0x15d4   :  { %11459 = vtanh.f32 %v6215_v14 }
0x15d5   :  { %11461 = vtanh.f32 %v6209_v0 }
0x15d6   :  { %11463 = vtanh.f32 %v6220_v39  ;;  %v11098_v39 = vld [vmem:[%s15083_s10 + $0x8] ss:$16 sps:$4 sm:$0xff]  }
0x15dd   :  { %v11458_v1 = vpop.eup %11457 }
0x15de   :  { %v11460_v48 = vpop.eup %11459  ;;  %v6213_v36 = vmul.f32 0.5, %v11458_v1 }
0x15df   :  { %v6217_v26 = vmul.f32 0.5, %v11460_v48  ;;  %v11462_v28 = vpop.eup %11461  ;;  %v11103_v48 = vld [vmem:[%s15083_s10 + $0x24] ss:$16 sps:$4 sm:$0xff]  }
0x15e0   :  { %v6214_v11 = vadd.f32 0.5, %v6213_v36  ;;  %v11464_v3 = vpop.eup %11463  ;;  %v11106_v36 = vld [vmem:[%s15083_s10 + $0x2c] ss:$16 sps:$4 sm:$0xff]  }
0x15e1   :  { %v6218_v62 = vadd.f32 0.5, %v6217_v26  ;;  %v6222_v21 = vmul.f32 0.5, %v11464_v3  ;;  %v11101_v26 = vld [vmem:[%s15083_s10 + $0x20] ss:$16 sps:$4 sm:$0xff]   ;;  %v11118_v3 = vld [vmem:[%s15083_s10 + $0x6c] ss:$16 sps:$4 sm:$0xff]  }
0x15e2   :  { %v6225_v27 = vmul.f32 %v11462_v28, %v6214_v11  ;;  %v11104_v11 = vld [vmem:[%s15083_s10 + $0x28] ss:$16 sps:$4 sm:$0xff]   ;;  %v11109_v28 = vld [vmem:[%s15083_s10 + $0x44] ss:$16 sps:$4 sm:$0xff]  }
0x15e3   :  { %v6224_v30 = vmul.f32 %v6218_v62, %v14009_v60  ;;  %v6223_v42 = vadd.f32 0.5, %v6222_v21  ;;  %v11112_v62 = vld [vmem:[%s15083_s10 + $0x4c] ss:$16 sps:$4 sm:$0xff]   ;;  %v11113_v21 = vld [vmem:[%s15083_s10 + $0x60] ss:$16 sps:$4 sm:$0xff]  }
0x15e5   :  { %v14055_v46 = vadd.f32 %v6225_v27, %v6224_v30  ;;  %v11107_v27 = vld [vmem:[%s15083_s10 + $0x40] ss:$16 sps:$4 sm:$0xff]   ;;  %v11110_v30 = vld [vmem:[%s15083_s10 + $0x48] ss:$16 sps:$4 sm:$0xff]  }
0x15e7   :  { %11465 = vtanh.f32 %v14055_v46 }
0x15f1   :  { %v11466_v8 = vpop.eup %11465 }
0x15f2   :  { %v14058_v49 = vmul.f32 %v11466_v8, %v6223_v42  ;;  %v11116_v42 = vld [vmem:[%s15083_s10 + $0x68] ss:$16 sps:$4 sm:$0xff]   ;;  %v11121_v8 = vld [vmem:[%s15083_s10 + $0x84] ss:$16 sps:$4 sm:$0xff]  }
0x15f4   :  { %v6231_v14 = vpack.c.bf16 %v14058_v49, %v14058_v49 }
0x15f6   :  { %6457 = vmatmul.mubr.bf16.vlgmr.msra.gmra.mrb[104].mxu0 %v6231_v14  ;;  %6498 = vmatmul.mubr.bf16.vlgmr.msra.gmra.mrb[112].mxu1 %v6231_v14  ;;  %v11124_v14 = vld [vmem:[%s15083_s10 + $0x8c] ss:$16 sps:$4 sm:$0xff]  }
0x15f7   :  { %6724 = vmatpush1.bf16.msra.mxu0 %v13777_v5  ;;  %6765 = vmatpush1.bf16.msra.mxu1 %v13782_v56  ;;  %v11097_v5 = vld [vmem:[%s15083_s10 + $0x4] ss:$16 sps:$4 sm:$0xff]   ;;  %v11100_v56 = vld [vmem:[%s15083_s10 + $0xc] ss:$16 sps:$4 sm:$0xff]  }
0x15f8   :  { %6725 = vmatprep.subr.bf16.mxu0 %v13791_v43  ;;  %6766 = vmatprep.subr.bf16.mxu1 %v13796_v35 }
0x15f9   :  { %6755 = vmatprep.mubr.bf16.mxu0 %v15107_v45  ;;  %6796 = vmatprep.mubr.bf16.mxu1 %v15107_v45 }
0x15fb   :  { %6726 = vmatpush1.bf16.msra.mxu0 %v13801_v52  ;;  %6767 = vmatpush1.bf16.msra.mxu1 %v13806_v23 }
0x15fc   :  { %6727 = vmatprep.subr.bf16.mxu0 %v13815_v22  ;;  %6768 = vmatprep.subr.bf16.mxu1 %v13820_v6 }
0x15ff   :  { %6728 = vmatpush1.bf16.msra.mxu0 %v13825_v50  ;;  %6769 = vmatpush1.bf16.msra.mxu1 %v13830_v37 }
0x1600   :  { %6729 = vmatprep.subr.bf16.mxu0 %v13839_v51  ;;  %6770 = vmatprep.subr.bf16.mxu1 %v13844_v24 }
0x1603   :  { %6730 = vmatpush1.bf16.msra.mxu0 %v13849_v12  ;;  %6771 = vmatpush1.bf16.msra.mxu1 %v13854_v17 }
0x1604   :  { %6731 = vmatprep.subr.bf16.mxu0 %v13863_v34  ;;  %6772 = vmatprep.subr.bf16.mxu1 %v13868_v57 }
0x1607   :  { %6732 = vmatpush1.bf16.msra.mxu0 %v13873_v29  ;;  %6773 = vmatpush1.bf16.msra.mxu1 %v13878_v25 }
0x1608   :  { %6733 = vmatprep.subr.bf16.mxu0 %v13887_v31  ;;  %6774 = vmatprep.subr.bf16.mxu1 %v13892_v16 }
0x160b   :  { %6734 = vmatpush1.bf16.msra.mxu0 %v13897_v40  ;;  %6775 = vmatpush1.bf16.msra.mxu1 %v13902_v63 }
0x160c   :  { %6735 = vmatprep.subr.bf16.mxu0 %v13911_v9  ;;  %6776 = vmatprep.subr.bf16.mxu1 %v13916_v41 }
0x160f   :  { %6736 = vmatpush1.bf16.msra.mxu0 %v13921_v47  ;;  %6777 = vmatpush1.bf16.msra.mxu1 %v13926_v20 }
0x1610   :  { %6737 = vmatprep.subr.bf16.mxu0 %v13935_v55  ;;  %6778 = vmatprep.subr.bf16.mxu1 %v13940_v53 }
0x1613   :  { %6738 = vmatpush1.bf16.msra.mxu0 %v13945_v19  ;;  %6779 = vmatpush1.bf16.msra.mxu1 %v13950_v15 }
0x1614   :  { %7055 = vmatprep.subr.bf16.mxu0 %v11097_v5  ;;  %7128 = vmatprep.subr.bf16.mxu1 %v11100_v56  ;;  %v11119_v5 = vld [vmem:[%s15083_s10 + $0x80] ss:$16 sps:$4 sm:$0xff]   ;;  %v11122_v56 = vld [vmem:[%s15083_s10 + $0x88] ss:$16 sps:$4 sm:$0xff]  }
0x16c9   :  { %v6458_v43 = vpop.f32.mrb[104].mxu0  ;;  %v6499_v35 = vpop.f32.mrb[112].mxu1 }
0x16ca   :  { %v6506_v52 = vadd.f32 %v6458_v43, %v13651_v44  ;;  %v6460_v23 = vpop.f32.mrb[105].mxu0  ;;  %v6501_v22 = vpop.f32.mrb[113].mxu1  ;;  %v6508_v34 = vadd.f32 %v6499_v35, %v13658_v58  ;;  %v11127_v43 = vld [vmem:[%s15083_s10 + $0xa4] ss:$16 sps:$4 sm:$0xff]   ;;  %v11130_v35 = vld [vmem:[%s15083_s10 + $0xac] ss:$16 sps:$4 sm:$0xff]  }
0x16cb   :  { %v6507_v6 = vadd.f32 %v6460_v23, %v13654_v61  ;;  %v6462_v50 = vpop.f32.mrb[106].mxu0  ;;  %v6503_v37 = vpop.f32.mrb[114].mxu1  ;;  %v6509_v57 = vadd.f32 %v6501_v22, %v13662_v32  ;;  %v11128_v23 = vld [vmem:[%s15083_s10 + $0xa8] ss:$16 sps:$4 sm:$0xff]   ;;  %v11133_v22 = vld [vmem:[%s15083_s10 + $0xc4] ss:$16 sps:$4 sm:$0xff]  }
0x16cc   :  { %v6510_v51 = vmul.f32 0.5, %v6506_v52  ;;  %v6463_v24 = vpop.f32.mrb[107].mxu0  ;;  %v6504_v12 = vpop.f32.mrb[115].mxu1  ;;  %v11125_v52 = vld [vmem:[%s15083_s10 + $0xa0] ss:$16 sps:$4 sm:$0xff]  }
0x16cd   :  { %v6514_v17 = vmul.f32 0.5, %v6507_v6  ;;  %v6519_v29 = vmul.f32 0.5, %v6509_v57  ;;  %v11136_v6 = vld [vmem:[%s15083_s10 + $0xcc] ss:$16 sps:$4 sm:$0xff]   ;;  %v11131_v50 = vld [vmem:[%s15083_s10 + $0xc0] ss:$16 sps:$4 sm:$0xff]   ;;  %v6838_v57 = vpack.c.bf16 %v13966_v33, %v13758_v54 }
0x16ce   :  { %11467 = vtanh.f32 %v6510_v51  ;;  %v11134_v37 = vld [vmem:[%s15083_s10 + $0xc8] ss:$16 sps:$4 sm:$0xff]   ;;  %v11139_v51 = vld [vmem:[%s15083_s10 + $0xe4] ss:$16 sps:$4 sm:$0xff]   ;;  %v11142_v24 = vld [vmem:[%s15083_s10 + $0xec] ss:$16 sps:$4 sm:$0xff]  }
0x16cf   :  { %11469 = vtanh.f32 %v6514_v17  ;;  %v11137_v12 = vld [vmem:[%s15083_s10 + $0xe0] ss:$16 sps:$4 sm:$0xff]   ;;  %v11140_v17 = vld [vmem:[%s15083_s10 + $0xe8] ss:$16 sps:$4 sm:$0xff]   ;;  %v14235_v33 = vld [vmem:[%s15084_s11 + $0xc] ss:$16 sps:$4 sm:$0xff]  }
0x16d0   :  { %11471 = vtanh.f32 %v6508_v34  ;;  %v6837_v34 = vpack.c.bf16 %v13714_v59, %v13668_v7  ;;  %v14219_v7 = vld [vmem:[%s15084_s11 + $0x4] ss:$16 sps:$4 sm:$0xff]   ;;  %v14224_v59 = vld [vmem:[%s15084_s11] ss:$16 sps:$4 sm:$0xff]   ;;  %v14230_v54 = vld [vmem:[%s15084_s11 + $0x8] ss:$16 sps:$4 sm:$0xff]  }
0x16d1   :  { %11473 = vtanh.f32 %v6519_v29  ;;  %v6839_v29 = vpack.c.bf16 %v14058_v49, %v14012_v13  ;;  %v14242_v13 = vld [vmem:[%s15084_s11 + $0x24] ss:$16 sps:$4 sm:$0xff]   ;;  %v14247_v49 = vld [vmem:[%s15084_s11 + $0x2c] ss:$16 sps:$4 sm:$0xff]  }
0x16d8   :  { %v11468_v25 = vpop.eup %11467 }
0x16d9   :  { %v11470_v31 = vpop.eup %11469  ;;  %v6512_v16 = vmul.f32 0.5, %v11468_v25  ;;  %v14253_v25 = vld [vmem:[%s15084_s11 + $0x20] ss:$16 sps:$4 sm:$0xff]  }
0x16da   :  { %v6516_v40 = vmul.f32 0.5, %v11470_v31  ;;  %v11472_v9 = vpop.eup %11471  ;;  %v14258_v31 = vld [vmem:[%s15084_s11 + $0x28] ss:$16 sps:$4 sm:$0xff]  }
0x16db   :  { %v6513_v63 = vadd.f32 0.5, %v6512_v16  ;;  %v11474_v53 = vpop.eup %11473  ;;  %v14266_v16 = vld [vmem:[%s15084_s11 + $0x44] ss:$16 sps:$4 sm:$0xff]  }
0x16dc   :  { %v6517_v41 = vadd.f32 0.5, %v6516_v40  ;;  %v6521_v19 = vmul.f32 0.5, %v11474_v53  ;;  %v14271_v40 = vld [vmem:[%s15084_s11 + $0x4c] ss:$16 sps:$4 sm:$0xff]  }
0x16dd   :  { %v6524_v47 = vmul.f32 %v11472_v9, %v6513_v63  ;;  %v14277_v63 = vld [vmem:[%s15084_s11 + $0x40] ss:$16 sps:$4 sm:$0xff]   ;;  %v14282_v9 = vld [vmem:[%s15084_s11 + $0x48] ss:$16 sps:$4 sm:$0xff]   ;;  %v14305_v53 = vld [vmem:[%s15084_s11 + $0x6c] ss:$16 sps:$4 sm:$0xff]  }
0x16de   :  { %v6523_v20 = vmul.f32 %v6517_v41, %v14055_v46  ;;  %v6522_v15 = vadd.f32 0.5, %v6521_v19  ;;  %v11115_v46 = vld [vmem:[%s15083_s10 + $0x64] ss:$16 sps:$4 sm:$0xff]   ;;  %v14289_v41 = vld [vmem:[%s15084_s11 + $0x60] ss:$16 sps:$4 sm:$0xff]  }
0x16df   :  { %v14314_v19 = vld [vmem:[%s15084_s11 + $0x84] ss:$16 sps:$4 sm:$0xff]  }
0x16e0   :  { %v14105_v55 = vadd.f32 %v6524_v47, %v6523_v20  ;;  %v14294_v47 = vld [vmem:[%s15084_s11 + $0x64] ss:$16 sps:$4 sm:$0xff]   ;;  %v14300_v20 = vld [vmem:[%s15084_s11 + $0x68] ss:$16 sps:$4 sm:$0xff]  }
0x16e2   :  { %11475 = vtanh.f32 %v14105_v55 }
0x16ec   :  { %v11476_v60 = vpop.eup %11475 }
0x16ed   :  { %v14108_v0 = vmul.f32 %v11476_v60, %v6522_v15  ;;  %v14319_v15 = vld [vmem:[%s15084_s11 + $0x8c] ss:$16 sps:$4 sm:$0xff]   ;;  %v14325_v60 = vld [vmem:[%s15084_s11 + $0x80] ss:$16 sps:$4 sm:$0xff]  }
0x16ef   :  { %v6530_v1 = vpack.c.bf16 %v14108_v0, %v14108_v0 }
0x16f1   :  { %6756 = vmatmul.mubr.bf16.vlgmr.msra.gmra.mrb[108].mxu0 %v6530_v1  ;;  %6797 = vmatmul.mubr.bf16.vlgmr.msra.gmra.mrb[116].mxu1 %v6530_v1  ;;  %v14343_v1 = vld [vmem:[%s15084_s11 + $0xac] ss:$16 sps:$4 sm:$0xff]  }
0x16f2   :  { %7056 = vmatpush1.bf16.msra.mxu0 %v11095_v18  ;;  %7129 = vmatpush1.bf16.msra.mxu1 %v11098_v39  ;;  %v14330_v18 = vld [vmem:[%s15084_s11 + $0x88] ss:$16 sps:$4 sm:$0xff]   ;;  %v14338_v39 = vld [vmem:[%s15084_s11 + $0xa4] ss:$16 sps:$4 sm:$0xff]  }
0x16f3   :  { %7057 = vmatprep.subr.bf16.mxu0 %v11103_v48  ;;  %7130 = vmatprep.subr.bf16.mxu1 %v11106_v36  ;;  %v14349_v48 = vld [vmem:[%s15084_s11 + $0xa0] ss:$16 sps:$4 sm:$0xff]   ;;  %v14354_v36 = vld [vmem:[%s15084_s11 + $0xa8] ss:$16 sps:$4 sm:$0xff]  }
0x16f4   :  { %7087 = vmatprep.mubr.bf16.mxu0 %v15107_v45  ;;  %7160 = vmatprep.mubr.bf16.mxu1 %v15107_v45 }
0x16f6   :  { %7058 = vmatpush1.bf16.msra.mxu0 %v11101_v26  ;;  %7131 = vmatpush1.bf16.msra.mxu1 %v11104_v11  ;;  %v14362_v26 = vld [vmem:[%s15084_s11 + $0xc4] ss:$16 sps:$4 sm:$0xff]   ;;  %v14367_v11 = vld [vmem:[%s15084_s11 + $0xcc] ss:$16 sps:$4 sm:$0xff]  }
0x16f7   :  { %7059 = vmatprep.subr.bf16.mxu0 %v11109_v28  ;;  %7132 = vmatprep.subr.bf16.mxu1 %v11112_v62  ;;  %v14373_v28 = vld [vmem:[%s15084_s11 + $0xc0] ss:$16 sps:$4 sm:$0xff]   ;;  %v14378_v62 = vld [vmem:[%s15084_s11 + $0xc8] ss:$16 sps:$4 sm:$0xff]  }
0x16fa   :  { %7060 = vmatpush1.bf16.msra.mxu0 %v11107_v27  ;;  %7133 = vmatpush1.bf16.msra.mxu1 %v11110_v30  ;;  %v14386_v27 = vld [vmem:[%s15084_s11 + $0xe4] ss:$16 sps:$4 sm:$0xff]   ;;  %v14391_v30 = vld [vmem:[%s15084_s11 + $0xec] ss:$16 sps:$4 sm:$0xff]  }
0x16fb   :  { %7061 = vmatprep.subr.bf16.mxu0 %v11115_v46  ;;  %7134 = vmatprep.subr.bf16.mxu1 %v11118_v3  ;;  %v14397_v46 = vld [vmem:[%s15084_s11 + $0xe0] ss:$16 sps:$4 sm:$0xff]   ;;  %v14402_v3 = vld [vmem:[%s15084_s11 + $0xe8] ss:$16 sps:$4 sm:$0xff]  }
0x16fe   :  { %7062 = vmatpush1.bf16.msra.mxu0 %v11113_v21  ;;  %7135 = vmatpush1.bf16.msra.mxu1 %v11116_v42 }
0x16ff   :  { %7063 = vmatprep.subr.bf16.mxu0 %v11121_v8  ;;  %7136 = vmatprep.subr.bf16.mxu1 %v11124_v14 }
0x1702   :  { %7064 = vmatpush1.bf16.msra.mxu0 %v11119_v5  ;;  %7137 = vmatpush1.bf16.msra.mxu1 %v11122_v56 }
0x1703   :  { %7065 = vmatprep.subr.bf16.mxu0 %v11127_v43  ;;  %7138 = vmatprep.subr.bf16.mxu1 %v11130_v35 }
0x1706   :  { %7066 = vmatpush1.bf16.msra.mxu0 %v11125_v52  ;;  %7139 = vmatpush1.bf16.msra.mxu1 %v11128_v23 }
0x1707   :  { %7067 = vmatprep.subr.bf16.mxu0 %v11133_v22  ;;  %7140 = vmatprep.subr.bf16.mxu1 %v11136_v6 }
0x170a   :  { %7068 = vmatpush1.bf16.msra.mxu0 %v11131_v50  ;;  %7141 = vmatpush1.bf16.msra.mxu1 %v11134_v37 }
0x170b   :  { %7069 = vmatprep.subr.bf16.mxu0 %v11139_v51  ;;  %7142 = vmatprep.subr.bf16.mxu1 %v11142_v24 }
0x170e   :  { %7070 = vmatpush1.bf16.msra.mxu0 %v11137_v12  ;;  %7143 = vmatpush1.bf16.msra.mxu1 %v11140_v17 }
0x170f   :  { %7429 = vmatprep.subr.bf16.mxu0 %v14219_v7  ;;  %7470 = vmatprep.subr.bf16.mxu1 %v14235_v33 }
0x1711   :  { %7088 = vmatmul.mubr.bf16.vlgmr.msra.gmra.mrb[112].mxu0 %v6837_v34  ;;  %7161 = vmatmul.mubr.bf16.vlgmr.msra.gmra.mrb[120].mxu1 %v6837_v34 }
0x1712   :  { %7097 = vmatprep.mubr.bf16.mxu0 %v15107_v45  ;;  %7170 = vmatprep.mubr.bf16.mxu1 %v15107_v45 }
0x1713   :  { %7430 = vmatpush1.bf16.msra.mxu0 %v14224_v59  ;;  %7471 = vmatpush1.bf16.msra.mxu1 %v14230_v54 }
0x1714   :  { %7431 = vmatprep.subr.bf16.mxu0 %v14242_v13  ;;  %7472 = vmatprep.subr.bf16.mxu1 %v14247_v49 }
0x1717   :  { %7432 = vmatpush1.bf16.msra.mxu0 %v14253_v25  ;;  %7473 = vmatpush1.bf16.msra.mxu1 %v14258_v31 }
0x1718   :  { %7433 = vmatprep.subr.bf16.mxu0 %v14266_v16  ;;  %7474 = vmatprep.subr.bf16.mxu1 %v14271_v40 }
0x1719   :  { %7098 = vmatmul.mubr.bf16.gmra.mrb[116].mxu0 %v6838_v57  ;;  %7171 = vmatmul.mubr.bf16.gmra.mrb[124].mxu1 %v6838_v57 }
0x171a   :  { %7107 = vmatprep.mubr.bf16.mxu0 %v15107_v45  ;;  %7180 = vmatprep.mubr.bf16.mxu1 %v15107_v45 }
0x171b   :  { %7434 = vmatpush1.bf16.msra.mxu0 %v14277_v63  ;;  %7475 = vmatpush1.bf16.msra.mxu1 %v14282_v9 }
0x171c   :  { %7435 = vmatprep.subr.bf16.mxu0 %v14294_v47  ;;  %7476 = vmatprep.subr.bf16.mxu1 %v14305_v53 }
0x171f   :  { %7436 = vmatpush1.bf16.msra.mxu0 %v14289_v41  ;;  %7477 = vmatpush1.bf16.msra.mxu1 %v14300_v20 }
0x1720   :  { %7437 = vmatprep.subr.bf16.mxu0 %v14314_v19  ;;  %7478 = vmatprep.subr.bf16.mxu1 %v14319_v15 }
0x1721   :  { %7108 = vmatmul.mubr.bf16.gmra.mrb[120].mxu0 %v6839_v29  ;;  %7181 = vmatmul.mubr.bf16.gmra.mrb[128].mxu1 %v6839_v29 }
0x1722   :  { %7117 = vmatprep.mubr.bf16.mxu0 %v15107_v45  ;;  %7190 = vmatprep.mubr.bf16.mxu1 %v15107_v45 }
0x1723   :  { %7438 = vmatpush1.bf16.msra.mxu0 %v14325_v60  ;;  %7479 = vmatpush1.bf16.msra.mxu1 %v14330_v18 }
0x1724   :  { %7439 = vmatprep.subr.bf16.mxu0 %v14338_v39  ;;  %7480 = vmatprep.subr.bf16.mxu1 %v14343_v1 }
0x1727   :  { %7440 = vmatpush1.bf16.msra.mxu0 %v14349_v48  ;;  %7481 = vmatpush1.bf16.msra.mxu1 %v14354_v36 }
0x1728   :  { %7441 = vmatprep.subr.bf16.mxu0 %v14362_v26  ;;  %7482 = vmatprep.subr.bf16.mxu1 %v14367_v11 }
0x172b   :  { %7442 = vmatpush1.bf16.msra.mxu0 %v14373_v28  ;;  %7483 = vmatpush1.bf16.msra.mxu1 %v14378_v62 }
0x172c   :  { %7443 = vmatprep.subr.bf16.mxu0 %v14386_v27  ;;  %7484 = vmatprep.subr.bf16.mxu1 %v14391_v30 }
0x172f   :  { %7444 = vmatpush1.bf16.msra.mxu0 %v14397_v46  ;;  %7485 = vmatpush1.bf16.msra.mxu1 %v14402_v3 }
0x1730   :  { %7731 = vmatprep.subr.bf16.mxu0 %v14219_v7  ;;  %7772 = vmatprep.subr.bf16.mxu1 %v14235_v33 }
0x17c4   :  { %v6757_v21 = vpop.f32.mrb[108].mxu0  ;;  %v6798_v42 = vpop.f32.mrb[116].mxu1 }
0x17c5   :  { %v6805_v8 = vadd.f32 %v6757_v21, %v13651_v44  ;;  %v6759_v14 = vpop.f32.mrb[109].mxu0  ;;  %v6800_v5 = vpop.f32.mrb[117].mxu1  ;;  %v6807_v50 = vadd.f32 %v6798_v42, %v13658_v58 }
0x17c6   :  { %v6806_v56 = vadd.f32 %v6759_v14, %v13654_v61  ;;  %v6761_v43 = vpop.f32.mrb[110].mxu0  ;;  %v6802_v35 = vpop.f32.mrb[118].mxu1  ;;  %v6808_v37 = vadd.f32 %v6800_v5, %v13662_v32 }
0x17c7   :  { %v6809_v52 = vmul.f32 0.5, %v6805_v8  ;;  %v6762_v23 = vpop.f32.mrb[111].mxu0  ;;  %v6803_v22 = vpop.f32.mrb[119].mxu1 }
0x17c8   :  { %v6813_v6 = vmul.f32 0.5, %v6806_v56  ;;  %v6818_v51 = vmul.f32 0.5, %v6808_v37 }
0x17c9   :  { %11477 = vtanh.f32 %v6809_v52 }
0x17ca   :  { %11479 = vtanh.f32 %v6813_v6 }
0x17cb   :  { %11481 = vtanh.f32 %v6807_v50 }
0x17cc   :  { %11483 = vtanh.f32 %v6818_v51 }
0x17d3   :  { %v11478_v24 = vpop.eup %11477 }
0x17d4   :  { %v11480_v44 = vpop.eup %11479  ;;  %v6811_v12 = vmul.f32 0.5, %v11478_v24 }
0x17d5   :  { %v6815_v17 = vmul.f32 0.5, %v11480_v44  ;;  %v11482_v34 = vpop.eup %11481 }
0x17d6   :  { %v6812_v61 = vadd.f32 0.5, %v6811_v12  ;;  %v11484_v14 = vpop.eup %11483 }
0x17d7   :  { %v6816_v57 = vadd.f32 0.5, %v6815_v17  ;;  %v6820_v58 = vmul.f32 0.5, %v11484_v14 }
0x17d8   :  { %v6823_v29 = vmul.f32 %v11482_v34, %v6812_v61 }
0x17d9   :  { %v6822_v21 = vmul.f32 %v6816_v57, %v14105_v55  ;;  %v6821_v43 = vadd.f32 0.5, %v6820_v58 }
0x17db   :  { %v6824_v8 = vadd.f32 %v6823_v29, %v6822_v21 }
0x17dd   :  { %11485 = vtanh.f32 %v6824_v8 }
0x17e4   :  { %v14415_v42 = vpop.f32.mrb[112].mxu0  ;;  %v14417_v56 = vpop.f32.mrb[120].mxu1 }
0x17e5   :  { %v14419_v32 = vpop.f32.mrb[113].mxu0  ;;  %v14421_v5 = vpop.f32.mrb[121].mxu1 }
0x17e6   :  { %v14423_v35 = vpop.f32.mrb[114].mxu0  ;;  %v14425_v52 = vpop.f32.mrb[122].mxu1 }
0x17e7   :  { %v11486_v23 = vpop.eup %11485  ;;  %v14427_v22 = vpop.f32.mrb[115].mxu0 }
0x17e8   :  { %v14429_v55 = vpop.f32.mrb[123].mxu1  ;;  %v6826_v6 = vmul.f32 %v11486_v23, %v6821_v43  ;;  %v6873_v23 = vld [vmem:[%s15085_s12] sm:$0xf] }
0x17ea   :  { %v6840_v50 = vpack.c.bf16 %v6826_v6, %v14108_v0 }
0x17ec   :  { %v14432_v37 = vpop.f32.mrb[116].mxu0  ;;  %v14434_v51 = vpop.f32.mrb[124].mxu1  ;;  %7118 = vmatmul.mubr.bf16.gmra.mrb[124].mxu0 %v6840_v50  ;;  %7191 = vmatmul.mubr.bf16.gmra.mrb[132].mxu1 %v6840_v50 }
0x17ed   :  { %15170 = vst [vmem:[#allocation11_spill] sm:$0xff] %v14432_v37  ;;  %15171 = vst [vmem:[#allocation12_spill] sm:$0xff] %v14434_v51  ;;  %v14436_v24 = vpop.f32.mrb[117].mxu0  ;;  %v14438_v44 = vpop.f32.mrb[125].mxu1  ;;  %7461 = vmatprep.mubr.bf16.mxu0 %v15107_v45  ;;  %7502 = vmatprep.mubr.bf16.mxu1 %v15107_v45 }
0x17ee   :  { %15172 = vst [vmem:[#allocation13_spill] sm:$0xff] %v14436_v24  ;;  %15173 = vst [vmem:[#allocation14_spill] sm:$0xff] %v14438_v44  ;;  %v14442_v12 = vpop.f32.mrb[118].mxu0  ;;  %v14444_v17 = vpop.f32.mrb[126].mxu1 }
0x17ef   :  { %15174 = vst [vmem:[#allocation15_spill] sm:$0xff] %v14442_v12  ;;  %15175 = vst [vmem:[#allocation16_spill] sm:$0xff] %v14444_v17  ;;  %v14446_v61 = vpop.f32.mrb[119].mxu0  ;;  %v14448_v0 = vpop.f32.mrb[127].mxu1 }
0x17f0   :  { %15176 = vst [vmem:[#allocation17_spill] sm:$0xff] %v14446_v61  ;;  %15177 = vst [vmem:[#allocation18_spill] sm:$0xff] %v14448_v0 }
0x17f4   :  { %v14450_v34 = vpop.f32.mrb[120].mxu0  ;;  %v14452_v57 = vpop.f32.mrb[128].mxu1  ;;  %7462 = vmatmul.mubr.bf16.vlgmr.msra.gmra.mrb[128].mxu0 %v15107_v45  ;;  %7503 = vmatmul.mubr.bf16.vlgmr.msra.gmra.mrb[136].mxu1 %v15107_v45 }
0x17f5   :  { %15178 = vst [vmem:[#allocation19_spill] sm:$0xff] %v14450_v34  ;;  %15179 = vst [vmem:[#allocation20_spill] sm:$0xff] %v14452_v57  ;;  %v14456_v29 = vpop.f32.mrb[121].mxu0  ;;  %v14458_v21 = vpop.f32.mrb[129].mxu1  ;;  %7732 = vmatpush1.bf16.msra.mxu0 %v14224_v59  ;;  %7773 = vmatpush1.bf16.msra.mxu1 %v14230_v54 }
0x17f6   :  { %15180 = vst [vmem:[#allocation21_spill] sm:$0xff] %v14456_v29  ;;  %15181 = vst [vmem:[#allocation22_spill] sm:$0xff] %v14458_v21  ;;  %v14462_v8 = vpop.f32.mrb[122].mxu0  ;;  %v14464_v14 = vpop.f32.mrb[130].mxu1  ;;  %7733 = vmatprep.subr.bf16.mxu0 %v14242_v13  ;;  %7774 = vmatprep.subr.bf16.mxu1 %v14247_v49  ;;  %v14518_v21 = vrot.slane %v6873_v23, %v15166_v38  ;;  %v14521_v29 = vrot.slane %v6873_v23, %v15168_v4 }
0x17f7   :  { %15182 = vst [vmem:[#allocation23_spill] sm:$0xff] %v14462_v8  ;;  %15183 = vst [vmem:[#allocation24_spill] sm:$0xff] %v14464_v14  ;;  %v14468_v58 = vpop.f32.mrb[123].mxu0  ;;  %v14470_v43 = vpop.f32.mrb[131].mxu1  ;;  %7763 = vmatprep.mubr.bf16.mxu0 %v15107_v45  ;;  %7804 = vmatprep.mubr.bf16.mxu1 %v15107_v45 }
0x17f8   :  { %15184 = vst [vmem:[#allocation25_spill] sm:$0xff] %v14468_v58  ;;  %15185 = vst [vmem:[#allocation26_spill] sm:$0xff] %v14470_v43  ;;  %v7163_v38 = vadd.f32 %v14417_v56, %v14521_v29 }
0x17f9   :  { %7734 = vmatpush1.bf16.msra.mxu0 %v14253_v25  ;;  %7775 = vmatpush1.bf16.msra.mxu1 %v14258_v31 }
0x17fa   :  { %7735 = vmatprep.subr.bf16.mxu0 %v14266_v16  ;;  %7776 = vmatprep.subr.bf16.mxu1 %v14271_v40 }
0x17fd   :  { %7736 = vmatpush1.bf16.msra.mxu0 %v14277_v63  ;;  %7777 = vmatpush1.bf16.msra.mxu1 %v14282_v9 }
0x17fe   :  { %7737 = vmatprep.subr.bf16.mxu0 %v14294_v47  ;;  %7778 = vmatprep.subr.bf16.mxu1 %v14305_v53 }
0x1801   :  { %7738 = vmatpush1.bf16.msra.mxu0 %v14289_v41  ;;  %7779 = vmatpush1.bf16.msra.mxu1 %v14300_v20 }
0x1802   :  { %7739 = vmatprep.subr.bf16.mxu0 %v14314_v19  ;;  %7780 = vmatprep.subr.bf16.mxu1 %v14319_v15 }
0x1805   :  { %7740 = vmatpush1.bf16.msra.mxu0 %v14325_v60  ;;  %7781 = vmatpush1.bf16.msra.mxu1 %v14330_v18 }
0x1806   :  { %7741 = vmatprep.subr.bf16.mxu0 %v14338_v39  ;;  %7782 = vmatprep.subr.bf16.mxu1 %v14343_v1 }
0x1809   :  { %7742 = vmatpush1.bf16.msra.mxu0 %v14349_v48  ;;  %7783 = vmatpush1.bf16.msra.mxu1 %v14354_v36 }
0x180a   :  { %7743 = vmatprep.subr.bf16.mxu0 %v14362_v26  ;;  %7784 = vmatprep.subr.bf16.mxu1 %v14367_v11 }
0x180d   :  { %7744 = vmatpush1.bf16.msra.mxu0 %v14373_v28  ;;  %7785 = vmatpush1.bf16.msra.mxu1 %v14378_v62 }
0x180e   :  { %7745 = vmatprep.subr.bf16.mxu0 %v14386_v27  ;;  %7786 = vmatprep.subr.bf16.mxu1 %v14391_v30 }
0x1811   :  { %7746 = vmatpush1.bf16.msra.mxu0 %v14397_v46  ;;  %7787 = vmatpush1.bf16.msra.mxu1 %v14402_v3 }
0x1812   :  { %8034 = vmatprep.subr.bf16.mxu0 %v14219_v7  ;;  %8075 = vmatprep.subr.bf16.mxu1 %v14235_v33 }
0x18bf   :  { %v14505_v6 = vpop.f32.mrb[124].mxu0  ;;  %v14507_v50 = vpop.f32.mrb[132].mxu1 }
0x18c0   :  { %15186 = vst [vmem:[#allocation27_spill] sm:$0xff] %v14505_v6  ;;  %15187 = vst [vmem:[#allocation28_spill] sm:$0xff] %v14507_v50  ;;  %v14509_v43 = vpop.f32.mrb[125].mxu0  ;;  %v14511_v58 = vpop.f32.mrb[133].mxu1  ;;  %v14528_v50 = vrot.slane %v6873_v23, %v15167_v2 }
0x18c1   :  { %15188 = vst [vmem:[#allocation29_spill] sm:$0xff] %v14509_v43  ;;  %15189 = vst [vmem:[#allocation30_spill] sm:$0xff] %v14511_v58  ;;  %v14513_v14 = vpop.f32.mrb[126].mxu0  ;;  %v14515_v8 = vpop.f32.mrb[134].mxu1  ;;  %v14531_v43 = vrot.slane %v6873_v23, %v15169_v10 }
0x18c2   :  { %15190 = vst [vmem:[#allocation31_spill] sm:$0xff] %v14513_v14  ;;  %15191 = vst [vmem:[#allocation32_spill] sm:$0xff] %v14515_v8  ;;  %v14523_v57 = vpop.f32.mrb[127].mxu0  ;;  %v14525_v34 = vpop.f32.mrb[135].mxu1  ;;  %v7090_v14 = vadd.f32 %v14415_v42, %v14518_v21  ;;  %v7092_v4 = vadd.f32 %v14419_v32, %v14528_v50 }
0x18c3   :  { %15192 = vst [vmem:[#allocation33_spill] sm:$0xff] %v14523_v57  ;;  %15193 = vst [vmem:[#allocation34_spill] sm:$0xff] %v14525_v34  ;;  %v7165_v57 = vadd.f32 %v14421_v5, %v14531_v43 }
0x18c7   :  { %v7463_v8 = vpop.f32.mrb[128].mxu0  ;;  %v7504_v34 = vpop.f32.mrb[136].mxu1 }
0x18c8   :  { %v7511_v58 = vadd.f32 %v7463_v8, %v7090_v14  ;;  %v7513_v2 = vadd.f32 %v7504_v34, %v7163_v38  ;;  %v7465_v6 = vpop.f32.mrb[129].mxu0  ;;  %v7506_v0 = vpop.f32.mrb[137].mxu1  ;;  %v7096_v38 = vadd.f32 %v14427_v22, %v14528_v50 }
0x18c9   :  { %v7512_v10 = vadd.f32 %v7465_v6, %v7092_v4  ;;  %v7514_v23 = vadd.f32 %v7506_v0, %v7165_v57  ;;  %v7467_v61 = vpop.f32.mrb[130].mxu0  ;;  %v7508_v17 = vpop.f32.mrb[138].mxu1  ;;  %v7169_v4 = vadd.f32 %v14429_v55, %v14531_v43 }
0x18ca   :  { %v7515_v42 = vmul.f32 0.5, %v7511_v58  ;;  %v7468_v12 = vpop.f32.mrb[131].mxu0  ;;  %v7509_v44 = vpop.f32.mrb[139].mxu1 }
0x18cb   :  { %v7519_v56 = vmul.f32 0.5, %v7512_v10  ;;  %v7524_v32 = vmul.f32 0.5, %v7514_v23 }
0x18cc   :  { %11487 = vtanh.f32 %v7515_v42 }
0x18cd   :  { %11489 = vtanh.f32 %v7519_v56 }
0x18ce   :  { %11491 = vtanh.f32 %v7513_v2 }
0x18cf   :  { %11493 = vtanh.f32 %v7524_v32 }
0x18d6   :  { %v11488_v24 = vpop.eup %11487 }
0x18d7   :  { %v11490_v5 = vpop.eup %11489  ;;  %v7517_v51 = vmul.f32 0.5, %v11488_v24 }
0x18d8   :  { %v7521_v37 = vmul.f32 0.5, %v11490_v5  ;;  %v11492_v8 = vpop.eup %11491 }
0x18d9   :  { %v7518_v34 = vadd.f32 0.5, %v7517_v51  ;;  %v11494_v44 = vpop.eup %11493  ;;  %v7167_v51 = vadd.f32 %v14425_v52, %v14521_v29 }
0x18da   :  { %v7522_v14 = vadd.f32 0.5, %v7521_v37  ;;  %v7526_v12 = vmul.f32 0.5, %v11494_v44  ;;  %v7094_v37 = vadd.f32 %v14423_v35, %v14518_v21 }
0x18db   :  { %v7529_v6 = vmul.f32 %v11492_v8, %v7518_v34 }
0x18dc   :  { %v7528_v0 = vmul.f32 0.0, %v7522_v14  ;;  %v7527_v17 = vadd.f32 0.5, %v7526_v12 }
0x18de   :  { %v14541_v61 = vadd.f32 %v7529_v6, %v7528_v0 }
0x18e0   :  { %11495 = vtanh.f32 %v14541_v61 }
0x18ea   :  { %v11496_v57 = vpop.eup %11495 }
0x18eb   :  { %v14544_v58 = vmul.f32 %v11496_v57, %v7527_v17 }
0x18ed   :  { %v7538_v24 = vpack.c.bf16 %v14544_v58, %v14544_v58 }
0x18ef   :  { %7764 = vmatmul.mubr.bf16.vlgmr.msra.gmra.mrb[132].mxu0 %v7538_v24  ;;  %7805 = vmatmul.mubr.bf16.vlgmr.msra.gmra.mrb[140].mxu1 %v7538_v24 }
0x18f0   :  { %8035 = vmatpush1.bf16.msra.mxu0 %v14224_v59  ;;  %8076 = vmatpush1.bf16.msra.mxu1 %v14230_v54 }
0x18f1   :  { %8036 = vmatprep.subr.bf16.mxu0 %v14242_v13  ;;  %8077 = vmatprep.subr.bf16.mxu1 %v14247_v49 }
0x18f2   :  { %8066 = vmatprep.mubr.bf16.mxu0 %v15107_v45  ;;  %8107 = vmatprep.mubr.bf16.mxu1 %v15107_v45 }
0x18f4   :  { %8037 = vmatpush1.bf16.msra.mxu0 %v14253_v25  ;;  %8078 = vmatpush1.bf16.msra.mxu1 %v14258_v31 }
0x18f5   :  { %8038 = vmatprep.subr.bf16.mxu0 %v14266_v16  ;;  %8079 = vmatprep.subr.bf16.mxu1 %v14271_v40 }
0x18f8   :  { %8039 = vmatpush1.bf16.msra.mxu0 %v14277_v63  ;;  %8080 = vmatpush1.bf16.msra.mxu1 %v14282_v9 }
0x18f9   :  { %8040 = vmatprep.subr.bf16.mxu0 %v14294_v47  ;;  %8081 = vmatprep.subr.bf16.mxu1 %v14305_v53 }
0x18fc   :  { %8041 = vmatpush1.bf16.msra.mxu0 %v14289_v41  ;;  %8082 = vmatpush1.bf16.msra.mxu1 %v14300_v20 }
0x18fd   :  { %8042 = vmatprep.subr.bf16.mxu0 %v14314_v19  ;;  %8083 = vmatprep.subr.bf16.mxu1 %v14319_v15 }
0x1900   :  { %8043 = vmatpush1.bf16.msra.mxu0 %v14325_v60  ;;  %8084 = vmatpush1.bf16.msra.mxu1 %v14330_v18 }
0x1901   :  { %8044 = vmatprep.subr.bf16.mxu0 %v14338_v39  ;;  %8085 = vmatprep.subr.bf16.mxu1 %v14343_v1 }
0x1904   :  { %8045 = vmatpush1.bf16.msra.mxu0 %v14349_v48  ;;  %8086 = vmatpush1.bf16.msra.mxu1 %v14354_v36 }
0x1905   :  { %8046 = vmatprep.subr.bf16.mxu0 %v14362_v26  ;;  %8087 = vmatprep.subr.bf16.mxu1 %v14367_v11 }
0x1908   :  { %8047 = vmatpush1.bf16.msra.mxu0 %v14373_v28  ;;  %8088 = vmatpush1.bf16.msra.mxu1 %v14378_v62 }
0x1909   :  { %8048 = vmatprep.subr.bf16.mxu0 %v14386_v27  ;;  %8089 = vmatprep.subr.bf16.mxu1 %v14391_v30 }
0x190c   :  { %8049 = vmatpush1.bf16.msra.mxu0 %v14397_v46  ;;  %8090 = vmatpush1.bf16.msra.mxu1 %v14402_v3 }
0x190d   :  { %8337 = vmatprep.subr.bf16.mxu0 %v14219_v7  ;;  %8378 = vmatprep.subr.bf16.mxu1 %v14235_v33 }
0x19c2   :  { %v7765_v2 = vpop.f32.mrb[132].mxu0  ;;  %v7806_v10 = vpop.f32.mrb[140].mxu1 }
0x19c3   :  { %v7813_v23 = vadd.f32 %v7765_v2, %v7094_v37  ;;  %v7815_v42 = vadd.f32 %v7806_v10, %v7167_v51  ;;  %v7767_v56 = vpop.f32.mrb[133].mxu0  ;;  %v7808_v7 = vpop.f32.mrb[141].mxu1 }
0x19c4   :  { %v7814_v32 = vadd.f32 %v7767_v56, %v7096_v38  ;;  %v7816_v33 = vadd.f32 %v7808_v7, %v7169_v4  ;;  %v7769_v5 = vpop.f32.mrb[134].mxu0  ;;  %v7810_v34 = vpop.f32.mrb[142].mxu1 }
0x19c5   :  { %v7817_v35 = vmul.f32 0.5, %v7813_v23  ;;  %v7770_v8 = vpop.f32.mrb[135].mxu0  ;;  %v7811_v14 = vpop.f32.mrb[143].mxu1 }
0x19c6   :  { %v7821_v52 = vmul.f32 0.5, %v7814_v32  ;;  %v7826_v22 = vmul.f32 0.5, %v7816_v33  ;;  %v14651_v14 = vld [vmem:[%s15084_s11 + $0x4] ss:$16 sps:$4 sm:$0xff]  }
0x19c7   :  { %11497 = vtanh.f32 %v7817_v35 }
0x19c8   :  { %11499 = vtanh.f32 %v7821_v52  ;;  %v14656_v52 = vld [vmem:[%s15084_s11 + $0xc] ss:$16 sps:$4 sm:$0xff]  }
0x19c9   :  { %11501 = vtanh.f32 %v7815_v42 }
0x19ca   :  { %11503 = vtanh.f32 %v7826_v22  ;;  %v14661_v22 = vld [vmem:[%s15084_s11] ss:$16 sps:$4 sm:$0xff]  }
0x19d1   :  { %v11498_v6 = vpop.eup %11497 }
0x19d2   :  { %v11500_v55 = vpop.eup %11499  ;;  %v7819_v0 = vmul.f32 0.5, %v11498_v6  ;;  %v14666_v6 = vld [vmem:[%s15084_s11 + $0x8] ss:$16 sps:$4 sm:$0xff]  }
0x19d3   :  { %v7823_v44 = vmul.f32 0.5, %v11500_v55  ;;  %v11502_v17 = vpop.eup %11501  ;;  %v14675_v55 = vld [vmem:[%s15084_s11 + $0x24] ss:$16 sps:$4 sm:$0xff]  }
0x19d4   :  { %v7820_v12 = vadd.f32 0.5, %v7819_v0  ;;  %v11504_v38 = vpop.eup %11503  ;;  %v14680_v0 = vld [vmem:[%s15084_s11 + $0x2c] ss:$16 sps:$4 sm:$0xff]  }
0x19d5   :  { %v7824_v57 = vadd.f32 0.5, %v7823_v44  ;;  %v7828_v4 = vmul.f32 0.5, %v11504_v38  ;;  %v14685_v44 = vld [vmem:[%s15084_s11 + $0x20] ss:$16 sps:$4 sm:$0xff]   ;;  %v14728_v38 = vld [vmem:[%s15084_s11 + $0x6c] ss:$16 sps:$4 sm:$0xff]  }
0x19d6   :  { %v7831_v24 = vmul.f32 %v11502_v17, %v7820_v12  ;;  %v14690_v12 = vld [vmem:[%s15084_s11 + $0x28] ss:$16 sps:$4 sm:$0xff]   ;;  %v14699_v17 = vld [vmem:[%s15084_s11 + $0x44] ss:$16 sps:$4 sm:$0xff]  }
0x19d7   :  { %v7830_v37 = vmul.f32 %v7824_v57, %v14541_v61  ;;  %v7829_v2 = vadd.f32 0.5, %v7828_v4  ;;  %v14704_v57 = vld [vmem:[%s15084_s11 + $0x4c] ss:$16 sps:$4 sm:$0xff]   ;;  %v14733_v4 = vld [vmem:[%s15084_s11 + $0x60] ss:$16 sps:$4 sm:$0xff]  }
0x19d9   :  { %v14591_v51 = vadd.f32 %v7831_v24, %v7830_v37  ;;  %v14709_v24 = vld [vmem:[%s15084_s11 + $0x40] ss:$16 sps:$4 sm:$0xff]   ;;  %v14714_v37 = vld [vmem:[%s15084_s11 + $0x48] ss:$16 sps:$4 sm:$0xff]  }
0x19db   :  { %11505 = vtanh.f32 %v14591_v51 }
0x19e5   :  { %v11506_v10 = vpop.eup %11505 }
0x19e6   :  { %v14594_v23 = vmul.f32 %v11506_v10, %v7829_v2  ;;  %v14738_v2 = vld [vmem:[%s15084_s11 + $0x68] ss:$16 sps:$4 sm:$0xff]   ;;  %v14747_v10 = vld [vmem:[%s15084_s11 + $0x84] ss:$16 sps:$4 sm:$0xff]  }
0x19e8   :  { %v7841_v42 = vpack.c.bf16 %v14594_v23, %v14594_v23 }
0x19ea   :  { %8067 = vmatmul.mubr.bf16.vlgmr.msra.gmra.mrb[136].mxu0 %v7841_v42  ;;  %8108 = vmatmul.mubr.bf16.vlgmr.msra.gmra.mrb[144].mxu1 %v7841_v42  ;;  %v14752_v42 = vld [vmem:[%s15084_s11 + $0x8c] ss:$16 sps:$4 sm:$0xff]  }
0x19eb   :  { %8338 = vmatpush1.bf16.msra.mxu0 %v14224_v59  ;;  %8379 = vmatpush1.bf16.msra.mxu1 %v14230_v54  ;;  %v15194_v59 = vld [vmem:[#allocation11_spill] sm:$0xff] }
0x19ec   :  { %8339 = vmatprep.subr.bf16.mxu0 %v14242_v13  ;;  %8380 = vmatprep.subr.bf16.mxu1 %v14247_v49  ;;  %v7100_v54 = vadd.f32 %v15194_v59, %v14518_v21  ;;  %v15195_v13 = vld [vmem:[#allocation12_spill] sm:$0xff]  ;;  %v14757_v59 = vld [vmem:[%s15084_s11 + $0x80] ss:$16 sps:$4 sm:$0xff]  }
0x19ed   :  { %8369 = vmatprep.mubr.bf16.mxu0 %v15107_v45  ;;  %8410 = vmatprep.mubr.bf16.mxu1 %v15107_v45  ;;  %v7173_v49 = vadd.f32 %v15195_v13, %v14521_v29  ;;  %v14771_v13 = vld [vmem:[%s15084_s11 + $0xa4] ss:$16 sps:$4 sm:$0xff]  }
0x19ef   :  { %8340 = vmatpush1.bf16.msra.mxu0 %v14253_v25  ;;  %8381 = vmatpush1.bf16.msra.mxu1 %v14258_v31  ;;  %v15196_v25 = vld [vmem:[#allocation13_spill] sm:$0xff] }
0x19f0   :  { %8341 = vmatprep.subr.bf16.mxu0 %v14266_v16  ;;  %8382 = vmatprep.subr.bf16.mxu1 %v14271_v40  ;;  %v7102_v31 = vadd.f32 %v15196_v25, %v14528_v50  ;;  %v15197_v16 = vld [vmem:[#allocation14_spill] sm:$0xff]  ;;  %v14781_v25 = vld [vmem:[%s15084_s11 + $0xa0] ss:$16 sps:$4 sm:$0xff]  }
0x19f1   :  { %v7175_v40 = vadd.f32 %v15197_v16, %v14531_v43  ;;  %v14795_v16 = vld [vmem:[%s15084_s11 + $0xc4] ss:$16 sps:$4 sm:$0xff]  }
0x19f3   :  { %8342 = vmatpush1.bf16.msra.mxu0 %v14277_v63  ;;  %8383 = vmatpush1.bf16.msra.mxu1 %v14282_v9 }
0x19f4   :  { %8343 = vmatprep.subr.bf16.mxu0 %v14294_v47  ;;  %8384 = vmatprep.subr.bf16.mxu1 %v14305_v53 }
0x19f7   :  { %8344 = vmatpush1.bf16.msra.mxu0 %v14289_v41  ;;  %8385 = vmatpush1.bf16.msra.mxu1 %v14300_v20 }
0x19f8   :  { %8345 = vmatprep.subr.bf16.mxu0 %v14314_v19  ;;  %8386 = vmatprep.subr.bf16.mxu1 %v14319_v15 }
0x19fb   :  { %8346 = vmatpush1.bf16.msra.mxu0 %v14325_v60  ;;  %8387 = vmatpush1.bf16.msra.mxu1 %v14330_v18 }
0x19fc   :  { %8347 = vmatprep.subr.bf16.mxu0 %v14338_v39  ;;  %8388 = vmatprep.subr.bf16.mxu1 %v14343_v1 }
0x19ff   :  { %8348 = vmatpush1.bf16.msra.mxu0 %v14349_v48  ;;  %8389 = vmatpush1.bf16.msra.mxu1 %v14354_v36 }
0x1a00   :  { %8349 = vmatprep.subr.bf16.mxu0 %v14362_v26  ;;  %8390 = vmatprep.subr.bf16.mxu1 %v14367_v11 }
0x1a03   :  { %8350 = vmatpush1.bf16.msra.mxu0 %v14373_v28  ;;  %8391 = vmatpush1.bf16.msra.mxu1 %v14378_v62 }
0x1a04   :  { %8351 = vmatprep.subr.bf16.mxu0 %v14386_v27  ;;  %8392 = vmatprep.subr.bf16.mxu1 %v14391_v30 }
0x1a07   :  { %8352 = vmatpush1.bf16.msra.mxu0 %v14397_v46  ;;  %8393 = vmatpush1.bf16.msra.mxu1 %v14402_v3 }
0x1a08   :  { %8640 = vmatprep.subr.bf16.mxu0 %v14651_v14  ;;  %8681 = vmatprep.subr.bf16.mxu1 %v14656_v52 }
0x1abd   :  { %v8068_v63 = vpop.f32.mrb[136].mxu0  ;;  %v8109_v9 = vpop.f32.mrb[144].mxu1 }
0x1abe   :  { %v8116_v41 = vadd.f32 %v8068_v63, %v7100_v54  ;;  %v8118_v47 = vadd.f32 %v8109_v9, %v7173_v49  ;;  %v8070_v20 = vpop.f32.mrb[137].mxu0  ;;  %v8111_v53 = vpop.f32.mrb[145].mxu1  ;;  %v14762_v54 = vld [vmem:[%s15084_s11 + $0x88] ss:$16 sps:$4 sm:$0xff]   ;;  %v14776_v49 = vld [vmem:[%s15084_s11 + $0xac] ss:$16 sps:$4 sm:$0xff]  }
0x1abf   :  { %v8117_v19 = vadd.f32 %v8070_v20, %v7102_v31  ;;  %v8119_v15 = vadd.f32 %v8111_v53, %v7175_v40  ;;  %v8072_v60 = vpop.f32.mrb[138].mxu0  ;;  %v8113_v18 = vpop.f32.mrb[146].mxu1  ;;  %v14786_v31 = vld [vmem:[%s15084_s11 + $0xa8] ss:$16 sps:$4 sm:$0xff]   ;;  %v14800_v40 = vld [vmem:[%s15084_s11 + $0xcc] ss:$16 sps:$4 sm:$0xff]  }
0x1ac0   :  { %v8120_v39 = vmul.f32 0.5, %v8116_v41  ;;  %v8073_v1 = vpop.f32.mrb[139].mxu0  ;;  %v8114_v48 = vpop.f32.mrb[147].mxu1  ;;  %v14805_v63 = vld [vmem:[%s15084_s11 + $0xc0] ss:$16 sps:$4 sm:$0xff]   ;;  %v15199_v60 = vld [vmem:[#allocation16_spill] sm:$0xff] }
0x1ac1   :  { %v8124_v36 = vmul.f32 0.5, %v8117_v19  ;;  %v8129_v26 = vmul.f32 0.5, %v8119_v15  ;;  %v14810_v9 = vld [vmem:[%s15084_s11 + $0xc8] ss:$16 sps:$4 sm:$0xff]   ;;  %v14819_v41 = vld [vmem:[%s15084_s11 + $0xe4] ss:$16 sps:$4 sm:$0xff]   ;;  %v7177_v18 = vadd.f32 %v15199_v60, %v14521_v29 }
0x1ac2   :  { %11507 = vtanh.f32 %v8120_v39  ;;  %v14829_v20 = vld [vmem:[%s15084_s11 + $0xe0] ss:$16 sps:$4 sm:$0xff]   ;;  %v14834_v53 = vld [vmem:[%s15084_s11 + $0xe8] ss:$16 sps:$4 sm:$0xff]  }
0x1ac3   :  { %11509 = vtanh.f32 %v8124_v36  ;;  %v15198_v19 = vld [vmem:[#allocation15_spill] sm:$0xff]  ;;  %v15200_v39 = vld [vmem:[#allocation17_spill] sm:$0xff]  ;;  %v15201_v48 = vld [vmem:[#allocation18_spill] sm:$0xff] }
0x1ac4   :  { %11511 = vtanh.f32 %v8118_v47  ;;  %v14824_v47 = vld [vmem:[%s15084_s11 + $0xec] ss:$16 sps:$4 sm:$0xff]   ;;  %v7104_v15 = vadd.f32 %v15198_v19, %v14518_v21  ;;  %v7106_v1 = vadd.f32 %v15200_v39, %v14528_v50  ;;  %v7179_v36 = vadd.f32 %v15201_v48, %v14531_v43 }
0x1ac5   :  { %11513 = vtanh.f32 %v8129_v26 }
0x1acc   :  { %v11508_v11 = vpop.eup %11507 }
0x1acd   :  { %v11510_v28 = vpop.eup %11509  ;;  %v8122_v62 = vmul.f32 0.5, %v11508_v11 }
0x1ace   :  { %v8126_v27 = vmul.f32 0.5, %v11510_v28  ;;  %v11512_v46 = vpop.eup %11511 }
0x1acf   :  { %v8123_v30 = vadd.f32 0.5, %v8122_v62  ;;  %v11514_v32 = vpop.eup %11513 }
0x1ad0   :  { %v8127_v3 = vadd.f32 0.5, %v8126_v27  ;;  %v8131_v33 = vmul.f32 0.5, %v11514_v32 }
0x1ad1   :  { %v8134_v61 = vmul.f32 %v11512_v46, %v8123_v30 }
0x1ad2   :  { %v8133_v56 = vmul.f32 %v8127_v3, %v14591_v51  ;;  %v8132_v5 = vadd.f32 0.5, %v8131_v33  ;;  %v14723_v51 = vld [vmem:[%s15084_s11 + $0x64] ss:$16 sps:$4 sm:$0xff]  }
0x1ad4   :  { %v14639_v7 = vadd.f32 %v8134_v61, %v8133_v56 }
0x1ad6   :  { %11515 = vtanh.f32 %v14639_v7 }
0x1ae0   :  { %v11516_v34 = vpop.eup %11515 }
0x1ae1   :  { %v14642_v35 = vmul.f32 %v11516_v34, %v8132_v5 }
0x1ae3   :  { %v8144_v8 = vpack.c.bf16 %v14642_v35, %v14642_v35 }
0x1ae5   :  { %8370 = vmatmul.mubr.bf16.vlgmr.msra.gmra.mrb[140].mxu0 %v8144_v8  ;;  %8411 = vmatmul.mubr.bf16.vlgmr.msra.gmra.mrb[148].mxu1 %v8144_v8 }
0x1ae6   :  { %8672 = vmatprep.mubr.bf16.mxu0 %v15107_v45  ;;  %8713 = vmatprep.mubr.bf16.mxu1 %v15107_v45 }
0x1ae7   :  { %8641 = vmatpush1.bf16.msra.mxu0 %v14661_v22  ;;  %8682 = vmatpush1.bf16.msra.mxu1 %v14666_v6 }
0x1ae8   :  { %8642 = vmatprep.subr.bf16.mxu0 %v14675_v55  ;;  %8683 = vmatprep.subr.bf16.mxu1 %v14680_v0 }
0x1aeb   :  { %8643 = vmatpush1.bf16.msra.mxu0 %v14685_v44  ;;  %8684 = vmatpush1.bf16.msra.mxu1 %v14690_v12 }
0x1aec   :  { %8644 = vmatprep.subr.bf16.mxu0 %v14699_v17  ;;  %8685 = vmatprep.subr.bf16.mxu1 %v14704_v57 }
0x1aef   :  { %8645 = vmatpush1.bf16.msra.mxu0 %v14709_v24  ;;  %8686 = vmatpush1.bf16.msra.mxu1 %v14714_v37 }
0x1af0   :  { %8646 = vmatprep.subr.bf16.mxu0 %v14723_v51  ;;  %8687 = vmatprep.subr.bf16.mxu1 %v14728_v38 }
0x1af3   :  { %8647 = vmatpush1.bf16.msra.mxu0 %v14733_v4  ;;  %8688 = vmatpush1.bf16.msra.mxu1 %v14738_v2 }
0x1af4   :  { %8648 = vmatprep.subr.bf16.mxu0 %v14747_v10  ;;  %8689 = vmatprep.subr.bf16.mxu1 %v14752_v42 }
0x1af7   :  { %8649 = vmatpush1.bf16.msra.mxu0 %v14757_v59  ;;  %8690 = vmatpush1.bf16.msra.mxu1 %v14762_v54 }
0x1af8   :  { %8650 = vmatprep.subr.bf16.mxu0 %v14771_v13  ;;  %8691 = vmatprep.subr.bf16.mxu1 %v14776_v49 }
0x1afb   :  { %8651 = vmatpush1.bf16.msra.mxu0 %v14781_v25  ;;  %8692 = vmatpush1.bf16.msra.mxu1 %v14786_v31 }
0x1afc   :  { %8652 = vmatprep.subr.bf16.mxu0 %v14795_v16  ;;  %8693 = vmatprep.subr.bf16.mxu1 %v14800_v40 }
0x1aff   :  { %8653 = vmatpush1.bf16.msra.mxu0 %v14805_v63  ;;  %8694 = vmatpush1.bf16.msra.mxu1 %v14810_v9 }
0x1b00   :  { %8654 = vmatprep.subr.bf16.mxu0 %v14819_v41  ;;  %8695 = vmatprep.subr.bf16.mxu1 %v14824_v47 }
0x1b03   :  { %8655 = vmatpush1.bf16.msra.mxu0 %v14829_v20  ;;  %8696 = vmatpush1.bf16.msra.mxu1 %v14834_v53 }
0x1b04   :  { %8943 = vmatprep.subr.bf16.mxu0 %v14651_v14  ;;  %8984 = vmatprep.subr.bf16.mxu1 %v14656_v52 }
0x1bb8   :  { %v8371_v26 = vpop.f32.mrb[140].mxu0  ;;  %v8412_v11 = vpop.f32.mrb[148].mxu1 }
0x1bb9   :  { %v8419_v28 = vadd.f32 %v8371_v26, %v7104_v15  ;;  %v8421_v62 = vadd.f32 %v8412_v11, %v7177_v18  ;;  %v8373_v27 = vpop.f32.mrb[141].mxu0  ;;  %v8414_v30 = vpop.f32.mrb[149].mxu1 }
0x1bba   :  { %v8420_v46 = vadd.f32 %v8373_v27, %v7106_v1  ;;  %v8422_v3 = vadd.f32 %v8414_v30, %v7179_v36  ;;  %v8375_v61 = vpop.f32.mrb[142].mxu0  ;;  %v8416_v56 = vpop.f32.mrb[150].mxu1 }
0x1bbb   :  { %v8423_v32 = vmul.f32 0.5, %v8419_v28  ;;  %v8376_v33 = vpop.f32.mrb[143].mxu0  ;;  %v8417_v5 = vpop.f32.mrb[151].mxu1  ;;  %v15204_v56 = vld [vmem:[#allocation20_spill] sm:$0xff] }
0x1bbc   :  { %v8427_v34 = vmul.f32 0.5, %v8420_v46  ;;  %v8432_v8 = vmul.f32 0.5, %v8422_v3  ;;  %v15205_v33 = vld [vmem:[#allocation21_spill] sm:$0xff] }
0x1bbd   :  { %11517 = vtanh.f32 %v8423_v32  ;;  %v7183_v32 = vadd.f32 %v15204_v56, %v14521_v29  ;;  %v7112_v5 = vadd.f32 %v15205_v33, %v14528_v50 }
0x1bbe   :  { %11519 = vtanh.f32 %v8427_v34  ;;  %v15206_v34 = vld [vmem:[#allocation22_spill] sm:$0xff] }
0x1bbf   :  { %11521 = vtanh.f32 %v8421_v62 }
0x1bc0   :  { %11523 = vtanh.f32 %v8432_v8  ;;  %v7185_v8 = vadd.f32 %v15206_v34, %v14531_v43 }
0x1bc7   :  { %v11518_v19 = vpop.eup %11517 }
0x1bc8   :  { %v11520_v60 = vpop.eup %11519  ;;  %v8425_v39 = vmul.f32 0.5, %v11518_v19 }
0x1bc9   :  { %v8429_v48 = vmul.f32 0.5, %v11520_v60  ;;  %v11522_v18 = vpop.eup %11521 }
0x1bca   :  { %v8426_v15 = vadd.f32 0.5, %v8425_v39  ;;  %v11524_v28 = vpop.eup %11523 }
0x1bcb   :  { %v8430_v26 = vadd.f32 0.5, %v8429_v48  ;;  %v8434_v27 = vmul.f32 0.5, %v11524_v28 }
0x1bcc   :  { %v8437_v1 = vmul.f32 %v11522_v18, %v8426_v15 }
0x1bcd   :  { %v8436_v36 = vmul.f32 %v8430_v26, %v14639_v7  ;;  %v8435_v30 = vadd.f32 0.5, %v8434_v27  ;;  %v15203_v7 = vld [vmem:[#allocation19_spill] sm:$0xff] }
0x1bce   :  { %v7110_v61 = vadd.f32 %v15203_v7, %v14518_v21 }
0x1bcf   :  { %v14851_v11 = vadd.f32 %v8437_v1, %v8436_v36 }
0x1bd1   :  { %11525 = vtanh.f32 %v14851_v11 }
0x1bdb   :  { %v11526_v62 = vpop.eup %11525 }
0x1bdc   :  { %v14854_v46 = vmul.f32 %v11526_v62, %v8435_v30 }
0x1bde   :  { %15202 = vst [vmem:[#allocation8_spill] sm:$0xff] %v14854_v46  ;;  %v8447_v3 = vpack.c.bf16 %v14854_v46, %v14854_v46 }
0x1be0   :  { %8673 = vmatmul.mubr.bf16.vlgmr.msra.gmra.mrb[144].mxu0 %v8447_v3  ;;  %8714 = vmatmul.mubr.bf16.vlgmr.msra.gmra.mrb[152].mxu1 %v8447_v3 }
0x1be1   :  { %8944 = vmatpush1.bf16.msra.mxu0 %v14661_v22  ;;  %8985 = vmatpush1.bf16.msra.mxu1 %v14666_v6 }
0x1be2   :  { %8945 = vmatprep.subr.bf16.mxu0 %v14675_v55  ;;  %8986 = vmatprep.subr.bf16.mxu1 %v14680_v0 }
0x1be3   :  { %8975 = vmatprep.mubr.bf16.mxu0 %v15107_v45  ;;  %9016 = vmatprep.mubr.bf16.mxu1 %v15107_v45 }
0x1be5   :  { %8946 = vmatpush1.bf16.msra.mxu0 %v14685_v44  ;;  %8987 = vmatpush1.bf16.msra.mxu1 %v14690_v12 }
0x1be6   :  { %8947 = vmatprep.subr.bf16.mxu0 %v14699_v17  ;;  %8988 = vmatprep.subr.bf16.mxu1 %v14704_v57 }
0x1be9   :  { %8948 = vmatpush1.bf16.msra.mxu0 %v14709_v24  ;;  %8989 = vmatpush1.bf16.msra.mxu1 %v14714_v37 }
0x1bea   :  { %8949 = vmatprep.subr.bf16.mxu0 %v14723_v51  ;;  %8990 = vmatprep.subr.bf16.mxu1 %v14728_v38 }
0x1bed   :  { %8950 = vmatpush1.bf16.msra.mxu0 %v14733_v4  ;;  %8991 = vmatpush1.bf16.msra.mxu1 %v14738_v2 }
0x1bee   :  { %8951 = vmatprep.subr.bf16.mxu0 %v14747_v10  ;;  %8992 = vmatprep.subr.bf16.mxu1 %v14752_v42 }
0x1bf1   :  { %8952 = vmatpush1.bf16.msra.mxu0 %v14757_v59  ;;  %8993 = vmatpush1.bf16.msra.mxu1 %v14762_v54 }
0x1bf2   :  { %8953 = vmatprep.subr.bf16.mxu0 %v14771_v13  ;;  %8994 = vmatprep.subr.bf16.mxu1 %v14776_v49 }
0x1bf5   :  { %8954 = vmatpush1.bf16.msra.mxu0 %v14781_v25  ;;  %8995 = vmatpush1.bf16.msra.mxu1 %v14786_v31 }
0x1bf6   :  { %8955 = vmatprep.subr.bf16.mxu0 %v14795_v16  ;;  %8996 = vmatprep.subr.bf16.mxu1 %v14800_v40 }
0x1bf9   :  { %8956 = vmatpush1.bf16.msra.mxu0 %v14805_v63  ;;  %8997 = vmatpush1.bf16.msra.mxu1 %v14810_v9 }
0x1bfa   :  { %8957 = vmatprep.subr.bf16.mxu0 %v14819_v41  ;;  %8998 = vmatprep.subr.bf16.mxu1 %v14824_v47 }
0x1bfd   :  { %8958 = vmatpush1.bf16.msra.mxu0 %v14829_v20  ;;  %8999 = vmatpush1.bf16.msra.mxu1 %v14834_v53 }
0x1bfe   :  { %9246 = vmatprep.subr.bf16.mxu0 %v14651_v14  ;;  %9287 = vmatprep.subr.bf16.mxu1 %v14656_v52 }
0x1cb3   :  { %v8674_v19 = vpop.f32.mrb[144].mxu0  ;;  %v8715_v60 = vpop.f32.mrb[152].mxu1 }
0x1cb4   :  { %v8722_v39 = vadd.f32 %v8674_v19, %v7110_v61  ;;  %v8724_v48 = vadd.f32 %v8715_v60, %v7183_v32  ;;  %v8676_v15 = vpop.f32.mrb[145].mxu0  ;;  %v8717_v18 = vpop.f32.mrb[153].mxu1 }
0x1cb5   :  { %v8723_v26 = vadd.f32 %v8676_v15, %v7112_v5  ;;  %v8725_v1 = vadd.f32 %v8717_v18, %v7185_v8  ;;  %v8678_v36 = vpop.f32.mrb[146].mxu0  ;;  %v8719_v28 = vpop.f32.mrb[154].mxu1 }
0x1cb6   :  { %v8726_v27 = vmul.f32 0.5, %v8722_v39  ;;  %v8679_v30 = vpop.f32.mrb[147].mxu0  ;;  %v8720_v62 = vpop.f32.mrb[155].mxu1  ;;  %v15208_v36 = vld [vmem:[#allocation24_spill] sm:$0xff] }
0x1cb7   :  { %v8730_v3 = vmul.f32 0.5, %v8723_v26  ;;  %v8735_v7 = vmul.f32 0.5, %v8725_v1  ;;  %v7187_v28 = vadd.f32 %v15208_v36, %v14521_v29  ;;  %v15210_v62 = vld [vmem:[#allocation26_spill] sm:$0xff] }
0x1cb8   :  { %11527 = vtanh.f32 %v8726_v27  ;;  %v15209_v27 = vld [vmem:[#allocation25_spill] sm:$0xff] }
0x1cb9   :  { %11529 = vtanh.f32 %v8730_v3  ;;  %v7116_v30 = vadd.f32 %v15209_v27, %v14528_v50  ;;  %v7189_v3 = vadd.f32 %v15210_v62, %v14531_v43 }
0x1cba   :  { %11531 = vtanh.f32 %v8724_v48 }
0x1cbb   :  { %11533 = vtanh.f32 %v8735_v7 }
0x1cc2   :  { %v11528_v56 = vpop.eup %11527 }
0x1cc3   :  { %v11530_v33 = vpop.eup %11529  ;;  %v8728_v34 = vmul.f32 0.5, %v11528_v56 }
0x1cc4   :  { %v8732_v46 = vmul.f32 0.5, %v11530_v33  ;;  %v11532_v32 = vpop.eup %11531 }
0x1cc5   :  { %v8729_v61 = vadd.f32 0.5, %v8728_v34  ;;  %v11534_v39 = vpop.eup %11533 }
0x1cc6   :  { %v8733_v19 = vadd.f32 0.5, %v8732_v46  ;;  %v8737_v15 = vmul.f32 0.5, %v11534_v39 }
0x1cc7   :  { %v8740_v5 = vmul.f32 %v11532_v32, %v8729_v61 }
0x1cc8   :  { %v8739_v8 = vmul.f32 %v8733_v19, %v14851_v11  ;;  %v8738_v18 = vadd.f32 0.5, %v8737_v15  ;;  %v15207_v11 = vld [vmem:[#allocation23_spill] sm:$0xff] }
0x1cc9   :  { %v7114_v46 = vadd.f32 %v15207_v11, %v14518_v21 }
0x1cca   :  { %v14901_v60 = vadd.f32 %v8740_v5, %v8739_v8 }
0x1ccc   :  { %11535 = vtanh.f32 %v14901_v60 }
0x1cd6   :  { %v11536_v48 = vpop.eup %11535 }
0x1cd7   :  { %v14904_v26 = vmul.f32 %v11536_v48, %v8738_v18 }
0x1cd9   :  { %v8750_v1 = vpack.c.bf16 %v14904_v26, %v14904_v26 }
0x1cdb   :  { %8976 = vmatmul.mubr.bf16.vlgmr.msra.gmra.mrb[148].mxu0 %v8750_v1  ;;  %9017 = vmatmul.mubr.bf16.vlgmr.msra.gmra.mrb[156].mxu1 %v8750_v1 }
0x1cdc   :  { %9247 = vmatpush1.bf16.msra.mxu0 %v14661_v22  ;;  %9288 = vmatpush1.bf16.msra.mxu1 %v14666_v6 }
0x1cdd   :  { %9248 = vmatprep.subr.bf16.mxu0 %v14675_v55  ;;  %9289 = vmatprep.subr.bf16.mxu1 %v14680_v0 }
0x1cde   :  { %9278 = vmatprep.mubr.bf16.mxu0 %v15107_v45  ;;  %9319 = vmatprep.mubr.bf16.mxu1 %v15107_v45 }
0x1ce0   :  { %9249 = vmatpush1.bf16.msra.mxu0 %v14685_v44  ;;  %9290 = vmatpush1.bf16.msra.mxu1 %v14690_v12 }
0x1ce1   :  { %9250 = vmatprep.subr.bf16.mxu0 %v14699_v17  ;;  %9291 = vmatprep.subr.bf16.mxu1 %v14704_v57 }
0x1ce4   :  { %9251 = vmatpush1.bf16.msra.mxu0 %v14709_v24  ;;  %9292 = vmatpush1.bf16.msra.mxu1 %v14714_v37 }
0x1ce5   :  { %9252 = vmatprep.subr.bf16.mxu0 %v14723_v51  ;;  %9293 = vmatprep.subr.bf16.mxu1 %v14728_v38 }
0x1ce8   :  { %9253 = vmatpush1.bf16.msra.mxu0 %v14733_v4  ;;  %9294 = vmatpush1.bf16.msra.mxu1 %v14738_v2 }
0x1ce9   :  { %9254 = vmatprep.subr.bf16.mxu0 %v14747_v10  ;;  %9295 = vmatprep.subr.bf16.mxu1 %v14752_v42 }
0x1cec   :  { %9255 = vmatpush1.bf16.msra.mxu0 %v14757_v59  ;;  %9296 = vmatpush1.bf16.msra.mxu1 %v14762_v54 }
0x1ced   :  { %9256 = vmatprep.subr.bf16.mxu0 %v14771_v13  ;;  %9297 = vmatprep.subr.bf16.mxu1 %v14776_v49 }
0x1cf0   :  { %9257 = vmatpush1.bf16.msra.mxu0 %v14781_v25  ;;  %9298 = vmatpush1.bf16.msra.mxu1 %v14786_v31 }
0x1cf1   :  { %9258 = vmatprep.subr.bf16.mxu0 %v14795_v16  ;;  %9299 = vmatprep.subr.bf16.mxu1 %v14800_v40 }
0x1cf4   :  { %9259 = vmatpush1.bf16.msra.mxu0 %v14805_v63  ;;  %9300 = vmatpush1.bf16.msra.mxu1 %v14810_v9 }
0x1cf5   :  { %9260 = vmatprep.subr.bf16.mxu0 %v14819_v41  ;;  %9301 = vmatprep.subr.bf16.mxu1 %v14824_v47 }
0x1cf8   :  { %9261 = vmatpush1.bf16.msra.mxu0 %v14829_v20  ;;  %9302 = vmatpush1.bf16.msra.mxu1 %v14834_v53 }
0x1cf9   :  { %9549 = vmatprep.subr.bf16.mxu0 %v14651_v14  ;;  %9590 = vmatprep.subr.bf16.mxu1 %v14656_v52 }
0x1dae   :  { %v8977_v7 = vpop.f32.mrb[148].mxu0  ;;  %v9018_v56 = vpop.f32.mrb[156].mxu1 }
0x1daf   :  { %v9025_v33 = vadd.f32 %v8977_v7, %v7114_v46  ;;  %v9027_v34 = vadd.f32 %v9018_v56, %v7187_v28  ;;  %v8979_v61 = vpop.f32.mrb[149].mxu0  ;;  %v9020_v14 = vpop.f32.mrb[157].mxu1 }
0x1db0   :  { %v9026_v32 = vadd.f32 %v8979_v61, %v7116_v30  ;;  %v9028_v52 = vadd.f32 %v9020_v14, %v7189_v3  ;;  %v8981_v19 = vpop.f32.mrb[150].mxu0  ;;  %v9022_v5 = vpop.f32.mrb[158].mxu1 }
0x1db1   :  { %v9029_v8 = vmul.f32 0.5, %v9025_v33  ;;  %v8982_v39 = vpop.f32.mrb[151].mxu0  ;;  %v9023_v15 = vpop.f32.mrb[159].mxu1 }
0x1db2   :  { %v9033_v18 = vmul.f32 0.5, %v9026_v32  ;;  %v9038_v48 = vmul.f32 0.5, %v9028_v52 }
0x1db3   :  { %11537 = vtanh.f32 %v9029_v8 }
0x1db4   :  { %11539 = vtanh.f32 %v9033_v18 }
0x1db5   :  { %11541 = vtanh.f32 %v9027_v34 }
0x1db6   :  { %11543 = vtanh.f32 %v9038_v48 }
0x1dbd   :  { %v11538_v1 = vpop.eup %11537 }
0x1dbe   :  { %v11540_v11 = vpop.eup %11539  ;;  %v9031_v36 = vmul.f32 0.5, %v11538_v1  ;;  %v11240_v1 = vld [vmem:[%s15086_s13 + $0x8] sm:$0xff]  }
0x1dbf   :  { %v9035_v27 = vmul.f32 0.5, %v11540_v11  ;;  %v11542_v28 = vpop.eup %11541  ;;  %v9663_v11 = vpack.c.bf16 %v14594_v23, %v14544_v58  ;;  %v11243_v58 = vld [vmem:[%s15086_s13 + $0x20] sm:$0xff]   ;;  %v11244_v23 = vld [vmem:[%s15086_s13 + $0x28] sm:$0xff]  }
0x1dc0   :  { %v9032_v46 = vadd.f32 0.5, %v9031_v36  ;;  %v11544_v56 = vpop.eup %11543  ;;  %v11241_v36 = vld [vmem:[%s15086_s13 + $0x10] sm:$0xff]  }
0x1dc1   :  { %v9036_v62 = vadd.f32 0.5, %v9035_v27  ;;  %v9040_v33 = vmul.f32 0.5, %v11544_v56  ;;  %v11242_v27 = vld [vmem:[%s15086_s13 + $0x18] sm:$0xff]  }
0x1dc2   :  { %v9043_v30 = vmul.f32 %v11542_v28, %v9032_v46  ;;  %v11245_v46 = vld [vmem:[%s15086_s13 + $0x30] sm:$0xff]   ;;  %v11246_v28 = vld [vmem:[%s15086_s13 + $0x38] sm:$0xff]  }
0x1dc3   :  { %v9042_v3 = vmul.f32 %v9036_v62, %v14901_v60  ;;  %v9041_v61 = vadd.f32 0.5, %v9040_v33  ;;  %v15215_v62 = vld [vmem:[#allocation8_spill] sm:$0xff] }
0x1dc4   :  { %v15217_v33 = vld [vmem:[#allocation32_spill] sm:$0xff] }
0x1dc5   :  { %v14951_v7 = vadd.f32 %v9043_v30, %v9042_v3  ;;  %v9664_v30 = vpack.c.bf16 %v15215_v62, %v14642_v35 }
0x1dc7   :  { %11545 = vtanh.f32 %v14951_v7 }
0x1dd1   :  { %v11546_v34 = vpop.eup %11545 }
0x1dd2   :  { %v14954_v14 = vmul.f32 %v11546_v34, %v9041_v61  ;;  %v7197_v61 = vadd.f32 %v15217_v33, %v14521_v29  ;;  %v15218_v34 = vld [vmem:[#allocation33_spill] sm:$0xff] }
0x1dd4   :  { %v9053_v32 = vpack.c.bf16 %v14954_v14, %v14954_v14  ;;  %v9665_v3 = vpack.c.bf16 %v14954_v14, %v14904_v26 }
0x1dd6   :  { %9279 = vmatmul.mubr.bf16.vlgmr.msra.gmra.mrb[152].mxu0 %v9053_v32  ;;  %9320 = vmatmul.mubr.bf16.vlgmr.msra.gmra.mrb[160].mxu1 %v9053_v32  ;;  %v7126_v32 = vadd.f32 %v15218_v34, %v14528_v50 }
0x1dd7   :  { %9550 = vmatpush1.bf16.msra.mxu0 %v14661_v22  ;;  %9591 = vmatpush1.bf16.msra.mxu1 %v14666_v6  ;;  %v15211_v22 = vld [vmem:[#allocation27_spill] sm:$0xff] }
0x1dd8   :  { %9551 = vmatprep.subr.bf16.mxu0 %v14675_v55  ;;  %9592 = vmatprep.subr.bf16.mxu1 %v14680_v0  ;;  %v7120_v6 = vadd.f32 %v15211_v22, %v14518_v21  ;;  %v15212_v55 = vld [vmem:[#allocation28_spill] sm:$0xff] }
0x1dd9   :  { %9581 = vmatprep.mubr.bf16.mxu0 %v15107_v45  ;;  %9622 = vmatprep.mubr.bf16.mxu1 %v15107_v45  ;;  %v11239_v45 = vld [vmem:[%s15086_s13] sm:$0xff]   ;;  %v7193_v0 = vadd.f32 %v15212_v55, %v14521_v29 }
0x1ddb   :  { %9552 = vmatpush1.bf16.msra.mxu0 %v14685_v44  ;;  %9593 = vmatpush1.bf16.msra.mxu1 %v14690_v12  ;;  %v15213_v44 = vld [vmem:[#allocation29_spill] sm:$0xff] }
0x1ddc   :  { %9553 = vmatprep.subr.bf16.mxu0 %v14699_v17  ;;  %9594 = vmatprep.subr.bf16.mxu1 %v14704_v57  ;;  %v7122_v12 = vadd.f32 %v15213_v44, %v14528_v50  ;;  %v15214_v17 = vld [vmem:[#allocation30_spill] sm:$0xff] }
0x1ddd   :  { %v7195_v57 = vadd.f32 %v15214_v17, %v14531_v43 }
0x1ddf   :  { %9554 = vmatpush1.bf16.msra.mxu0 %v14709_v24  ;;  %9595 = vmatpush1.bf16.msra.mxu1 %v14714_v37 }
0x1de0   :  { %9555 = vmatprep.subr.bf16.mxu0 %v14723_v51  ;;  %9596 = vmatprep.subr.bf16.mxu1 %v14728_v38 }
0x1de3   :  { %9556 = vmatpush1.bf16.msra.mxu0 %v14733_v4  ;;  %9597 = vmatpush1.bf16.msra.mxu1 %v14738_v2 }
0x1de4   :  { %9557 = vmatprep.subr.bf16.mxu0 %v14747_v10  ;;  %9598 = vmatprep.subr.bf16.mxu1 %v14752_v42 }
0x1de7   :  { %9558 = vmatpush1.bf16.msra.mxu0 %v14757_v59  ;;  %9599 = vmatpush1.bf16.msra.mxu1 %v14762_v54 }
0x1de8   :  { %9559 = vmatprep.subr.bf16.mxu0 %v14771_v13  ;;  %9600 = vmatprep.subr.bf16.mxu1 %v14776_v49 }
0x1deb   :  { %9560 = vmatpush1.bf16.msra.mxu0 %v14781_v25  ;;  %9601 = vmatpush1.bf16.msra.mxu1 %v14786_v31 }
0x1dec   :  { %9561 = vmatprep.subr.bf16.mxu0 %v14795_v16  ;;  %9602 = vmatprep.subr.bf16.mxu1 %v14800_v40 }
0x1def   :  { %9562 = vmatpush1.bf16.msra.mxu0 %v14805_v63  ;;  %9603 = vmatpush1.bf16.msra.mxu1 %v14810_v9 }
0x1df0   :  { %9563 = vmatprep.subr.bf16.mxu0 %v14819_v41  ;;  %9604 = vmatprep.subr.bf16.mxu1 %v14824_v47 }
0x1df3   :  { %9564 = vmatpush1.bf16.msra.mxu0 %v14829_v20  ;;  %9605 = vmatpush1.bf16.msra.mxu1 %v14834_v53 }
0x1df4   :  { %10732 = vmatprep.subr.bf16.mxu0 %v11239_v45 }
0x1ea9   :  { %v9280_v24 = vpop.f32.mrb[152].mxu0  ;;  %v9321_v37 = vpop.f32.mrb[160].mxu1 }
0x1eaa   :  { %v9328_v51 = vadd.f32 %v9280_v24, %v7120_v6  ;;  %v9330_v38 = vadd.f32 %v9321_v37, %v7193_v0  ;;  %v9282_v4 = vpop.f32.mrb[153].mxu0  ;;  %v9323_v2 = vpop.f32.mrb[161].mxu1 }
0x1eab   :  { %v9329_v10 = vadd.f32 %v9282_v4, %v7122_v12  ;;  %v9331_v42 = vadd.f32 %v9323_v2, %v7195_v57  ;;  %v9284_v59 = vpop.f32.mrb[154].mxu0  ;;  %v9325_v54 = vpop.f32.mrb[162].mxu1 }
0x1eac   :  { %v9332_v13 = vmul.f32 0.5, %v9328_v51  ;;  %v9285_v49 = vpop.f32.mrb[155].mxu0  ;;  %v9326_v25 = vpop.f32.mrb[163].mxu1 }
0x1ead   :  { %v9336_v31 = vmul.f32 0.5, %v9329_v10  ;;  %v9341_v16 = vmul.f32 0.5, %v9331_v42 }
0x1eae   :  { %11547 = vtanh.f32 %v9332_v13 }
0x1eaf   :  { %11549 = vtanh.f32 %v9336_v31  ;;  %v10711_v31 = vld [vmem:[%s15087_s14] ss:$0 sm:$0xff] }
0x1eb0   :  { %11551 = vtanh.f32 %v9330_v38 }
0x1eb1   :  { %11553 = vtanh.f32 %v9341_v16 }
0x1eb8   :  { %v11548_v40 = vpop.eup %11547 }
0x1eb9   :  { %v11550_v63 = vpop.eup %11549  ;;  %v9334_v9 = vmul.f32 0.5, %v11548_v40 }
0x1eba   :  { %v9338_v41 = vmul.f32 0.5, %v11550_v63  ;;  %v11552_v20 = vpop.eup %11551 }
0x1ebb   :  { %v9335_v47 = vadd.f32 0.5, %v9334_v9  ;;  %v11554_v5 = vpop.eup %11553 }
0x1ebc   :  { %v9339_v53 = vadd.f32 0.5, %v9338_v41  ;;  %v9343_v8 = vmul.f32 0.5, %v11554_v5 }
0x1ebd   :  { %v9346_v60 = vmul.f32 %v11552_v20, %v9335_v47 }
0x1ebe   :  { %v9345_v52 = vmul.f32 %v9339_v53, %v14951_v7  ;;  %v9344_v39 = vadd.f32 0.5, %v9343_v8  ;;  %v15216_v7 = vld [vmem:[#allocation31_spill] sm:$0xff] }
0x1ebf   :  { %v7124_v56 = vadd.f32 %v15216_v7, %v14518_v21 }
0x1ec0   :  { %v15002_v19 = vadd.f32 %v9346_v60, %v9345_v52 }
0x1ec2   :  { %11555 = vtanh.f32 %v15002_v19 }
0x1ecc   :  { %v11556_v15 = vpop.eup %11555 }
0x1ecd   :  { %v15005_v18 = vmul.f32 %v11556_v15, %v9344_v39 }
0x1ecf   :  { %v9356_v48 = vpack.c.bf16 %v15005_v18, %v15005_v18 }
0x1ed1   :  { %9582 = vmatmul.mubr.bf16.vlgmr.msra.gmra.mrb[156].mxu0 %v9356_v48  ;;  %9623 = vmatmul.mubr.bf16.vlgmr.msra.gmra.mrb[164].mxu1 %v9356_v48 }
0x1ed2   :  { %10733 = vmatpush3.bf16.msra.mxu0 %v11239_v45  ;;  %10748 = vmatprep.mubr.bf16.mxu0 %v9663_v11  ;;  %v15219_v45 = vld [vmem:[#allocation34_spill] sm:$0xff] }
0x1ed3   :  { %10734 = vmatprep.subr.bf16.mxu0 %v11240_v1  ;;  %v7199_v22 = vadd.f32 %v15219_v45, %v14531_v43 }
0x1ed6   :  { %10735 = vmatpush3.bf16.msra.mxu0 %v11240_v1 }
0x1ed7   :  { %10736 = vmatprep.subr.bf16.mxu0 %v11241_v36 }
0x1eda   :  { %10737 = vmatpush3.bf16.msra.mxu0 %v11241_v36 }
0x1edb   :  { %10738 = vmatprep.subr.bf16.mxu0 %v11242_v27 }
0x1ede   :  { %10739 = vmatpush3.bf16.msra.mxu0 %v11242_v27 }
0x1edf   :  { %10740 = vmatprep.subr.bf16.mxu0 %v11243_v58 }
0x1ee2   :  { %10741 = vmatpush3.bf16.msra.mxu0 %v11243_v58 }
0x1ee3   :  { %10742 = vmatprep.subr.bf16.mxu0 %v11244_v23 }
0x1ee6   :  { %10743 = vmatpush3.bf16.msra.mxu0 %v11244_v23 }
0x1ee7   :  { %10744 = vmatprep.subr.bf16.mxu0 %v11245_v46 }
0x1eea   :  { %10745 = vmatpush3.bf16.msra.mxu0 %v11245_v46 }
0x1eeb   :  { %10746 = vmatprep.subr.bf16.mxu0 %v11246_v28 }
0x1eee   :  { %10747 = vmatpush3.bf16.msra.mxu0 %v11246_v28 }
0x1ef1   :  { %10749 = vmatmul.mubr.bf16.vlgmr.msra.gmra.mrb[160].mxu0 %v9664_v30 }
0x1ef2   :  { %10752 = vmatprep.mubr.bf16.mxu0 %v9665_v3 }
0x1fa4   :  { %v9583_v6 = vpop.f32.mrb[156].mxu0  ;;  %v9624_v55 = vpop.f32.mrb[164].mxu1 }
0x1fa5   :  { %v9631_v35 = vadd.f32 %v9583_v6, %v7124_v56  ;;  %v9633_v0 = vadd.f32 %v9624_v55, %v7197_v61  ;;  %v9585_v44 = vpop.f32.mrb[157].mxu0  ;;  %v9626_v26 = vpop.f32.mrb[165].mxu1 }
0x1fa6   :  { %v9632_v14 = vadd.f32 %v9585_v44, %v7126_v32  ;;  %v9634_v12 = vadd.f32 %v9626_v26, %v7199_v22  ;;  %v9587_v17 = vpop.f32.mrb[158].mxu0  ;;  %v9628_v57 = vpop.f32.mrb[166].mxu1 }
0x1fa7   :  { %v9635_v21 = vmul.f32 0.5, %v9631_v35  ;;  %v9588_v24 = vpop.f32.mrb[159].mxu0  ;;  %v9629_v37 = vpop.f32.mrb[167].mxu1 }
0x1fa8   :  { %v9639_v29 = vmul.f32 0.5, %v9632_v14  ;;  %v9644_v50 = vmul.f32 0.5, %v9634_v12 }
0x1fa9   :  { %11557 = vtanh.f32 %v9635_v21 }
0x1faa   :  { %11559 = vtanh.f32 %v9639_v29 }
0x1fab   :  { %11561 = vtanh.f32 %v9633_v0 }
0x1fac   :  { %11563 = vtanh.f32 %v9644_v50 }
0x1fb3   :  { %v11558_v51 = vpop.eup %11557 }
0x1fb4   :  { %v11560_v43 = vpop.eup %11559  ;;  %v9637_v38 = vmul.f32 0.5, %v11558_v51 }
0x1fb5   :  { %v9641_v4 = vmul.f32 0.5, %v11560_v43  ;;  %v11562_v10 = vpop.eup %11561 }
0x1fb6   :  { %v9638_v2 = vadd.f32 0.5, %v9637_v38  ;;  %v11564_v49 = vpop.eup %11563 }
0x1fb7   :  { %v9642_v42 = vadd.f32 0.5, %v9641_v4  ;;  %v9646_v25 = vmul.f32 0.5, %v11564_v49 }
0x1fb8   :  { %v9649_v59 = vmul.f32 %v11562_v10, %v9638_v2 }
0x1fb9   :  { %v9648_v54 = vmul.f32 %v9642_v42, %v15002_v19  ;;  %v9647_v9 = vadd.f32 0.5, %v9646_v25 }
0x1fbb   :  { %v9650_v13 = vadd.f32 %v9649_v59, %v9648_v54 }
0x1fbd   :  { %11565 = vtanh.f32 %v9650_v13 }
0x1fc4   :  { %v10750_v16 = vpop.f32.mrb[160].mxu0 }
0x1fc5   :  { %v9781_v40 = vadd.f32 %v10750_v16, %v10711_v31  ;;  %v9772_v63 = vpop.f32.mrb[161].mxu0 }
0x1fc6   :  { %v9773_v41 = vadd.f32 %v10711_v31, %v9772_v63  ;;  %v10751_v47 = vpop.f32.mrb[162].mxu0 }
0x1fc7   :  { %v11566_v20 = vpop.eup %11565  ;;  %9805 = vst [vmem:[%s15088_s15 + $0x10] sm:$0xff] %v9781_v40  ;;  %v9784_v53 = vadd.f32 %v10751_v47, %v10711_v31  ;;  %v9775_v60 = vpop.f32.mrb[163].mxu0 }
0x1fc8   :  { %9803 = vst [vmem:[%s15088_s15] sm:$0xff] %v9773_v41  ;;  %v9776_v52 = vadd.f32 %v10711_v31, %v9775_v60  ;;  %v9652_v19 = vmul.f32 %v11566_v20, %v9647_v9 }
0x1fc9   :  { %9806 = vst [vmem:[%s15088_s15 + $0x18] sm:$0xff] %v9784_v53 }
0x1fca   :  { %9804 = vst [vmem:[%s15088_s15 + $0x8] sm:$0xff] %v9776_v52  ;;  %v9666_v5 = vpack.c.bf16 %v9652_v19, %v15005_v18 }
0x1fcc   :  { %10753 = vmatmul.mubr.bf16.gmra.mrb[164].mxu0 %v9666_v5 }
0x209f   :  { %v10754_v8 = vpop.f32.mrb[164].mxu0 }
0x20a0   :  { %v9797_v39 = vadd.f32 %v10754_v8, %v10711_v31  ;;  %v9788_v15 = vpop.f32.mrb[165].mxu0 }
0x20a1   :  { %v9789_v48 = vadd.f32 %v10711_v31, %v9788_v15  ;;  %v10755_v1 = vpop.f32.mrb[166].mxu0 }
0x20a2   :  { %9809 = vst [vmem:[%s15088_s15 + $0x30] sm:$0xff] %v9797_v39  ;;  %v9800_v11 = vadd.f32 %v10755_v1, %v10711_v31  ;;  %v9791_v36 = vpop.f32.mrb[167].mxu0 }
0x20a3   :  { %9807 = vst [vmem:[%s15088_s15 + $0x20] sm:$0xff] %v9789_v48  ;;  %v9792_v27 = vadd.f32 %v10711_v31, %v9791_v36 }
0x20a4   :  { %9810 = vst [vmem:[%s15088_s15 + $0x38] sm:$0xff] %v9800_v11 }
0x20a5   :  { %9808 = vst [vmem:[%s15088_s15 + $0x28] sm:$0xff] %v9792_v27 }

</bundles_post_ra>
